<compile_context>
chip_gen: v6e
topology: v6e:2x2x1
jax: 0.10.0
libtpu: 0.0.40
codegen_flags: <defaults>
</compile_context>

<pallas_src>
import functools

import jax
import jax.numpy as jnp
from jax import lax
from jax.experimental import pallas as pl
from jax.experimental.pallas import tpu as pltpu


def _round_up(x, m):
    return (x + m - 1) // m * m


# ----------------------------------------------------------------------------
# Fused U-Net kernel (one grid step == one batch element, all layers in VMEM)
# ----------------------------------------------------------------------------
def _make_unet_kernel(H, W, base):
    HW = H * W
    Hh, Wh = H // 2, W // 2
    HWh = Hh * Wh
    C1, C2 = base, 2 * base          # encoder widths
    CCAT = 3 * base                  # skip-concat width
    # Flat padded activation buffers: interior rows [baseX, baseX+HW) hold the
    # row-major image; rows outside are never written and stay zero -> they
    # provide the top/bottom zero border of every 'same' conv.  baseX is
    # 8-aligned so activation stores are sublane-aligned.
    baseA = _round_up(W + 1, 8)
    baseB = _round_up(Wh + 1, 8)
    rowsA = _round_up(baseA + HW + W + 1, 8)
    rowsB = _round_up(baseB + HWh + Wh + 1, 8)

    def conv3x3(pref, base_row, hw, width, cin, w_ref, b_ref, m_ref):
        """'same' 3x3 conv: one fused (hw, 9*cin) x (9*cin, cout) MXU matmul.

        Taps are flat shifted slices of the zero-padded scratch; the left /
        right column wrap-around is killed with 0/1 edge masks.
        """
        mask_l = m_ref[:, 0:1]       # zero where x == 0        (dx == 0 taps)
        mask_r = m_ref[:, 1:2]       # zero where x == width-1  (dx == 2 taps)
        cols = []
        for dy in range(3):
            for dx in range(3):
                off = base_row + (dy - 1) * width + (dx - 1)
                t = pref[off:off + hw, 0:cin].astype(jnp.bfloat16)
                if dx == 0:
                    t = t * mask_l
                elif dx == 2:
                    t = t * mask_r
                cols.append(t)
        xcol = jnp.concatenate(cols, axis=-1)                    # (hw, 9*cin)
        y = jnp.dot(xcol, w_ref[...], preferred_element_type=jnp.float32)
        return jnp.maximum(y + b_ref[...], 0.0)                  # (hw, cout)

    def kernel(x_ref, w1, b1, w2, b2, wd1, bd1, wd2, bd2, wu1, bu1, wu2, bu2,
               wo, bo, spool, uup, mfull, mhalf, o_ref, padA, padB):
        # Scratch persists across grid steps and is uninitialized: re-zero it
        # every step (borders must be 0, and the first conv relies on zero
        # channel padding).  ~200 KB of VMEM stores -> negligible.
        padA[...] = jnp.zeros_like(padA)
        padB[...] = jnp.zeros_like(padB)

        # ---- stem ----------------------------------------------------------
        padA[baseA:baseA + HW, 0:2] = x_ref[0]                   # (HW, 2)
        h = conv3x3(padA, baseA, HW, W, C1, w1, b1, mfull)       # 2(->C1 zero pad) -> C1
        padA[baseA:baseA + HW, 0:C1] = h
        h1 = conv3x3(padA, baseA, HW, W, C1, w2, b2, mfull)      # C1 -> C1
        padA[baseA:baseA + HW, 0:C1] = h1                        # keep for skip

        # ---- 2x2 maxpool: four constant selection matmuls + elementwise max
        h1b = h1.astype(jnp.bfloat16)
        p = jnp.maximum(
            jnp.maximum(jnp.dot(spool[0], h1b, preferred_element_type=jnp.float32),
                        jnp.dot(spool[1], h1b, preferred_element_type=jnp.float32)),
            jnp.maximum(jnp.dot(spool[2], h1b, preferred_element_type=jnp.float32),
                        jnp.dot(spool[3], h1b, preferred_element_type=jnp.float32)))

        # ---- encoder at half resolution -------------------------------------
        padB[baseB:baseB + HWh, 0:C1] = p
        h = conv3x3(padB, baseB, HWh, Wh, C1, wd1, bd1, mhalf)   # C1 -> C2
        padB[baseB:baseB + HWh, 0:C2] = h
        h2 = conv3x3(padB, baseB, HWh, Wh, C2, wd2, bd2, mhalf)  # C2 -> C2

        # ---- nearest 2x upsample (selection matmul) + channel concat --------
        u = jnp.dot(uup[...], h2.astype(jnp.bfloat16),
                    preferred_element_type=jnp.float32)          # (HW, C2)
        padA[baseA:baseA + HW, C1:C1 + C2] = u                   # concat([h1, u])

        # ---- decoder ---------------------------------------------------------
        h = conv3x3(padA, baseA, HW, W, CCAT, wu1, bu1, mfull)   # CCAT -> C1
        padA[baseA:baseA + HW, 0:C1] = h
        h3 = conv3x3(padA, baseA, HW, W, C1, wu2, bu2, mfull)    # C1 -> C1

        # ---- 1x1 output conv, emitted as a lane-dense (1, HW) row ------------
        out_row = lax.dot_general(
            wo[...], h3.astype(jnp.bfloat16),
            (((1,), (1,)), ((), ())),                            # contract channels
            preferred_element_type=jnp.float32) + bo[...]        # (1, HW)
        o_ref[0] = out_row

    return kernel, (rowsA, CCAT), (rowsB, C2)


# ----------------------------------------------------------------------------
# Host-side constant preparation (weights, selection matrices, edge masks)
# ----------------------------------------------------------------------------
def _pool_select(H, W):
    """Four (HW/4, HW) 0/1 matrices selecting the 2x2 window members."""
    Hp, Wp = H // 2, W // 2
    k = jnp.arange(Hp * Wp)
    y2, x2 = k // Wp, k % Wp
    mats = []
    for a in (0, 1):
        for b in (0, 1):
            src = (2 * y2 + a) * W + (2 * x2 + b)
            mats.append(jax.nn.one_hot(src, H * W, dtype=jnp.float32))
    return jnp.stack(mats)                                   # (4, HW/4, HW)


def _upsample_select(Hh, Wh):
    """(4*Hh*Wh, Hh*Wh) 0/1 matrix implementing nearest 2x upsampling."""
    H2, W2 = 2 * Hh, 2 * Wh
    i = jnp.arange(H2 * W2)
    src = (i // W2 // 2) * Wh + (i % W2) // 2
    return jax.nn.one_hot(src, Hh * Wh, dtype=jnp.float32)   # (H2*W2, Hh*Wh)


def _edge_masks(H, W):
    """(HW, 2) bf16: col 0 zeros x==0 rows, col 1 zeros x==W-1 rows."""
    x = jnp.arange(H * W) % W
    left = (x != 0).astype(jnp.bfloat16)
    right = (x != W - 1).astype(jnp.bfloat16)
    return jnp.stack([left, right], axis=-1)


def _prep_constants(params, H, W, base):
    f32, bf16 = jnp.float32, jnp.bfloat16

    def wcol(w):                         # (3,3,ci,co) -> (9*ci, co) bf16
        kh, kw, ci, co = w.shape
        return w.reshape(kh * kw * ci, co).astype(bf16)

    def brow(b):                         # (co,) -> (1, co) f32
        return b.reshape(1, -1).astype(f32)

    # Zero-pad the 2 input channels up to `base` so the first conv uses the
    # same lane-aligned im2col path as every other layer (padded channels read
    # the zeroed scratch lanes, padded weight rows are zero).
    w_inc1, b_inc1 = params["inc1"]
    w_inc1_p = jnp.zeros((3, 3, base, base), f32).at[:, :, :2, :].set(w_inc1)

    w_out, b_out = params["outc"]                         # (1,1,base,1), (1,)
    wo = w_out.reshape(base, 1).T.astype(bf16)            # (1, base)
    bo = b_out.reshape(1, 1).astype(f32)

    return (wcol(w_inc1_p), brow(b_inc1),
            wcol(params["inc2"][0]), brow(params["inc2"][1]),
            wcol(params["down1"][0]), brow(params["down1"][1]),
            wcol(params["down2"][0]), brow(params["down2"][1]),
            wcol(params["up1"][0]), brow(params["up1"][1]),
            wcol(params["up2"][0]), brow(params["up2"][1]),
            wo, bo,
            _pool_select(H, W).astype(bf16),
            _upsample_select(H // 2, W // 2).astype(bf16),
            _edge_masks(H, W),
            _edge_masks(H // 2, W // 2))


# ----------------------------------------------------------------------------
# Public forward (NCHW in / NCHW out), single fused pallas_call
# ----------------------------------------------------------------------------
def aot_dudo_forward(params, Xprior, XBHC, *, base=8):
    """AOTdudo.forward(Xprior, XBHC) -> IENet(XBHC, Xprior)."""
    n, c, H, W = XBHC.shape
    assert c == 1 and Xprior.shape == XBHC.shape
    # TODO(synk): odd H/W (maxpool/upsample) not supported by the assumed UNet.
    assert H % 2 == 0 and W % 2 == 0
    HW = H * W

    # NCHW -> flat row-major (N, H*W, 2); channel order [XBHC, Xprior].
    x = jnp.stack([XBHC[:, 0], Xprior[:, 0]], axis=-1)
    x = x.reshape(n, HW, 2).astype(jnp.float32)

    consts = _prep_constants(params, H, W, base)
    kernel, shapeA, shapeB = _make_unet_kernel(H, W, base)

    def _const_spec(a):
        zero = (0,) * a.ndim
        return pl.BlockSpec(a.shape, lambda i: zero)

    out = pl.pallas_call(
        kernel,
        out_shape=jax.ShapeDtypeStruct((n, 1, HW), jnp.float32),
        grid=(n,),
        in_specs=[pl.BlockSpec((1, HW, 2), lambda i: (i, 0, 0))]
                 + [_const_spec(a) for a in consts],
        out_specs=pl.BlockSpec((1, 1, HW), lambda i: (i, 0, 0)),
        scratch_shapes=[pltpu.VMEM(shapeA, jnp.float32),
                        pltpu.VMEM(shapeB, jnp.float32)],
        compiler_params=pltpu.CompilerParams(
            dimension_semantics=("parallel",)),   # v7x: batch over both TCs
    )(x, *consts)

    return out.reshape(n, 1, H, W)                # NCHW, Cout = 1


# ----------------------------------------------------------------------------
# Deterministic synthetic parameters + pure-JAX reference (for verification)
# ----------------------------------------------------------------------------
def init_unet_params(key, cin=2, base=8):
    ks = jax.random.split(key, 14)

    def conv(kw_, kb_, k, ci, co):
        fan_in = k * k * ci
        w = jax.random.normal(kw_, (k, k, ci, co), jnp.float32) / jnp.sqrt(
            jnp.float32(fan_in))
        b = 0.1 * jax.random.normal(kb_, (co,), jnp.float32)
        return w, b

    return {
        "inc1": conv(ks[0], ks[1], 3, cin, base),
        "inc2": conv(ks[2], ks[3], 3, base, base),
        "down1": conv(ks[4], ks[5], 3, base, 2 * base),
        "down2": conv(ks[6], ks[7], 3, 2 * base, 2 * base),
        "up1": conv(ks[8], ks[9], 3, 3 * base, base),   # input = concat([h1, up(h2)])
        "up2": conv(ks[10], ks[11], 3, base, base),
        "outc": conv(ks[12], ks[13], 1, base, 1),
    }


def _conv_ref(x, w, b, relu=True):
    # Match the kernel's numerics: inputs/weights rounded to bf16, f32 accum.
    xq = x.astype(jnp.bfloat16).astype(jnp.float32)
    wq = w.astype(jnp.bfloat16).astype(jnp.float32)
    y = lax.conv_general_dilated(
        xq, wq, window_strides=(1, 1), padding="SAME",
        dimension_numbers=("NHWC", "HWIO", "NHWC"),
        precision=lax.Precision.HIGHEST) + b
    return jnp.maximum(y, 0.0) if relu else y


def unet_reference(params, Xprior, XBHC):
    xb = jnp.transpose(XBHC, (0, 2, 3, 1)).astype(jnp.float32)
    xp = jnp.transpose(Xprior, (0, 2, 3, 1)).astype(jnp.float32)
    x = jnp.concatenate([xb, xp], axis=-1)
    h = _conv_ref(x, *params["inc1"])
    h1 = _conv_ref(h, *params["inc2"])
    n, hh, ww, c = h1.shape
    p = jnp.max(h1.reshape(n, hh // 2, 2, ww // 2, 2, c), axis=(2, 4))
    h = _conv_ref(p, *params["down1"])
    h2 = _conv_ref(h, *params["down2"])
    u = jnp.repeat(jnp.repeat(h2, 2, axis=1), 2, axis=2)
    h = _conv_ref(jnp.concatenate([h1, u], axis=-1), *params["up1"])
    h3 = _conv_ref(h, *params["up2"])
    out = _conv_ref(h3, *params["outc"], relu=False)
    return jnp.transpose(out, (0, 3, 1, 2))       # (N, 1, H, W)


# ----------------------------------------------------------------------------
if __name__ == "__main__":
    key = jax.random.PRNGKey(0)
    k_prior, k_bhc, k_params = jax.random.split(key, 3)

    N, C, H, W = 2, 1, 16, 16
    Xprior = jax.random.normal(k_prior, (N, C, H, W), jnp.float32)
    XBHC = jax.random.normal(k_bhc, (N, C, H, W), jnp.float32)
    params = init_unet_params(k_params)

    fwd = jax.jit(functools.partial(aot_dudo_forward, params))
    out = fwd(Xprior, XBHC)
    jax.block_until_ready(out)

    assert out.shape == (N, 1, H, W), out.shape
    assert out.dtype == jnp.float32

    ref = jax.jit(functools.partial(unet_reference, params))(Xprior, XBHC)
    jax.block_until_ready(ref)
    assert jnp.allclose(out, ref, atol=1e-2, rtol=1e-2), \
        float(jnp.max(jnp.abs(out - ref)))

    print("KERNEL_OK")
</pallas_src>

<mosaic_0001>
module attributes {stable_mosaic.version = 11 : i64} {
  func.func @kernel(%arg0: i32, %arg1: memref<1x256x2xf32, #tpu.memory_space<vmem>>, %arg2: memref<72x8xbf16, #tpu.memory_space<vmem>>, %arg3: memref<1x8xf32, #tpu.memory_space<vmem>>, %arg4: memref<72x8xbf16, #tpu.memory_space<vmem>>, %arg5: memref<1x8xf32, #tpu.memory_space<vmem>>, %arg6: memref<72x16xbf16, #tpu.memory_space<vmem>>, %arg7: memref<1x16xf32, #tpu.memory_space<vmem>>, %arg8: memref<144x16xbf16, #tpu.memory_space<vmem>>, %arg9: memref<1x16xf32, #tpu.memory_space<vmem>>, %arg10: memref<216x8xbf16, #tpu.memory_space<vmem>>, %arg11: memref<1x8xf32, #tpu.memory_space<vmem>>, %arg12: memref<72x8xbf16, #tpu.memory_space<vmem>>, %arg13: memref<1x8xf32, #tpu.memory_space<vmem>>, %arg14: memref<1x8xbf16, #tpu.memory_space<vmem>>, %arg15: memref<1x1xf32, #tpu.memory_space<vmem>>, %arg16: memref<4x64x256xbf16, #tpu.memory_space<vmem>>, %arg17: memref<256x64xbf16, #tpu.memory_space<vmem>>, %arg18: memref<256x2xbf16, #tpu.memory_space<vmem>>, %arg19: memref<64x2xbf16, #tpu.memory_space<vmem>>, %arg20: memref<1x1x256xf32, #tpu.memory_space<vmem>>, %arg21: memref<304x24xf32, #tpu.memory_space<vmem>>, %arg22: memref<96x16xf32, #tpu.memory_space<vmem>>) attributes {dimension_semantics = [#tpu.dimension_semantics<parallel>], iteration_bounds = array<i64: 2>, scalar_prefetch = 0 : i64, scratch_operands = 2 : i64, tpu.core_type = #tpu.core_type<tc>, window_params = [{transform_indices = @transform_0, window_bounds = array<i64: 1, 256, 2>}, {pipeline_mode = #tpu.pipeline_mode<synchronous>, transform_indices = @transform_1, window_bounds = array<i64: 72, 8>}, {pipeline_mode = #tpu.pipeline_mode<synchronous>, transform_indices = @transform_2, window_bounds = array<i64: 1, 8>}, {pipeline_mode = #tpu.pipeline_mode<synchronous>, transform_indices = @transform_3, window_bounds = array<i64: 72, 8>}, {pipeline_mode = #tpu.pipeline_mode<synchronous>, transform_indices = @transform_4, window_bounds = array<i64: 1, 8>}, {pipeline_mode = #tpu.pipeline_mode<synchronous>, transform_indices = @transform_5, window_bounds = array<i64: 72, 16>}, {pipeline_mode = #tpu.pipeline_mode<synchronous>, transform_indices = @transform_6, window_bounds = array<i64: 1, 16>}, {pipeline_mode = #tpu.pipeline_mode<synchronous>, transform_indices = @transform_7, window_bounds = array<i64: 144, 16>}, {pipeline_mode = #tpu.pipeline_mode<synchronous>, transform_indices = @transform_8, window_bounds = array<i64: 1, 16>}, {pipeline_mode = #tpu.pipeline_mode<synchronous>, transform_indices = @transform_9, window_bounds = array<i64: 216, 8>}, {pipeline_mode = #tpu.pipeline_mode<synchronous>, transform_indices = @transform_10, window_bounds = array<i64: 1, 8>}, {pipeline_mode = #tpu.pipeline_mode<synchronous>, transform_indices = @transform_11, window_bounds = array<i64: 72, 8>}, {pipeline_mode = #tpu.pipeline_mode<synchronous>, transform_indices = @transform_12, window_bounds = array<i64: 1, 8>}, {pipeline_mode = #tpu.pipeline_mode<synchronous>, transform_indices = @transform_13, window_bounds = array<i64: 1, 8>}, {pipeline_mode = #tpu.pipeline_mode<synchronous>, transform_indices = @transform_14, window_bounds = array<i64: 1, 1>}, {pipeline_mode = #tpu.pipeline_mode<synchronous>, transform_indices = @transform_15, window_bounds = array<i64: 4, 64, 256>}, {pipeline_mode = #tpu.pipeline_mode<synchronous>, transform_indices = @transform_16, window_bounds = array<i64: 256, 64>}, {pipeline_mode = #tpu.pipeline_mode<synchronous>, transform_indices = @transform_17, window_bounds = array<i64: 256, 2>}, {pipeline_mode = #tpu.pipeline_mode<synchronous>, transform_indices = @transform_18, window_bounds = array<i64: 64, 2>}, {transform_indices = @transform_19, window_bounds = array<i64: 1, 1, 256>}]} {
    %cst = arith.constant 0.000000e+00 : f32
    %0 = vector.broadcast %cst : f32 to vector<304x24xf32>
    %c0 = arith.constant 0 : index
    %c0_0 = arith.constant 0 : index
    %1 = vector.load %arg21[%c0, %c0_0] : memref<304x24xf32, #tpu.memory_space<vmem>>, vector<304x24xf32>
    tpu.vector_store %arg21[%c0, %c0_0], %0 {strides = array<i32>} : memref<304x24xf32, #tpu.memory_space<vmem>>, vector<304x24xf32>,
    %cst_1 = arith.constant 0.000000e+00 : f32
    %2 = vector.broadcast %cst_1 : f32 to vector<96x16xf32>
    %c0_2 = arith.constant 0 : index
    %c0_3 = arith.constant 0 : index
    %3 = vector.load %arg22[%c0_2, %c0_3] : memref<96x16xf32, #tpu.memory_space<vmem>>, vector<96x16xf32>
    tpu.vector_store %arg22[%c0_2, %c0_3], %2 {strides = array<i32>} : memref<96x16xf32, #tpu.memory_space<vmem>>, vector<96x16xf32>,
    %c0_4 = arith.constant 0 : index
    %c0_5 = arith.constant 0 : index
    %c0_6 = arith.constant 0 : index
    %4 = vector.load %arg1[%c0_4, %c0_5, %c0_6] : memref<1x256x2xf32, #tpu.memory_space<vmem>>, vector<1x256x2xf32>
    %5 = vector.shape_cast %4 : vector<1x256x2xf32> to vector<256x2xf32>
    %c24 = arith.constant 24 : index
    %c0_7 = arith.constant 0 : index
    %6 = vector.load %arg21[%c24, %c0_7] : memref<304x24xf32, #tpu.memory_space<vmem>>, vector<256x2xf32>
    tpu.vector_store %arg21[%c24, %c0_7], %5 {strides = array<i32>} : memref<304x24xf32, #tpu.memory_space<vmem>>, vector<256x2xf32>,
    %c0_8 = arith.constant 0 : index
    %c0_9 = arith.constant 0 : index
    %7 = vector.load %arg18[%c0_8, %c0_9] : memref<256x2xbf16, #tpu.memory_space<vmem>>, vector<256x1xbf16>
    %c0_10 = arith.constant 0 : index
    %c1 = arith.constant 1 : index
    %8 = vector.load %arg18[%c0_10, %c1] : memref<256x2xbf16, #tpu.memory_space<vmem>>, vector<256x1xbf16>
    %c7 = arith.constant 7 : index
    %c0_11 = arith.constant 0 : index
    %9 = vector.load %arg21[%c7, %c0_11] : memref<304x24xf32, #tpu.memory_space<vmem>>, vector<256x8xf32>
    %10 = arith.truncf %9 : vector<256x8xf32> to vector<256x8xbf16>
    %11 = vector.broadcast %7 : vector<256x1xbf16> to vector<256x8xbf16>
    %12 = arith.mulf %10, %11 : vector<256x8xbf16>
    %c8 = arith.constant 8 : index
    %c0_12 = arith.constant 0 : index
    %13 = vector.load %arg21[%c8, %c0_12] : memref<304x24xf32, #tpu.memory_space<vmem>>, vector<256x8xf32>
    %14 = arith.truncf %13 : vector<256x8xf32> to vector<256x8xbf16>
    %c9 = arith.constant 9 : index
    %c0_13 = arith.constant 0 : index
    %15 = vector.load %arg21[%c9, %c0_13] : memref<304x24xf32, #tpu.memory_space<vmem>>, vector<256x8xf32>
    %16 = arith.truncf %15 : vector<256x8xf32> to vector<256x8xbf16>
    %17 = vector.broadcast %8 : vector<256x1xbf16> to vector<256x8xbf16>
    %18 = arith.mulf %16, %17 : vector<256x8xbf16>
    %c23 = arith.constant 23 : index
    %c0_14 = arith.constant 0 : index
    %19 = vector.load %arg21[%c23, %c0_14] : memref<304x24xf32, #tpu.memory_space<vmem>>, vector<256x8xf32>
    %20 = arith.truncf %19 : vector<256x8xf32> to vector<256x8xbf16>
    %21 = vector.broadcast %7 : vector<256x1xbf16> to vector<256x8xbf16>
    %22 = arith.mulf %20, %21 : vector<256x8xbf16>
    %c24_15 = arith.constant 24 : index
    %c0_16 = arith.constant 0 : index
    %23 = vector.load %arg21[%c24_15, %c0_16] : memref<304x24xf32, #tpu.memory_space<vmem>>, vector<256x8xf32>
    %24 = arith.truncf %23 : vector<256x8xf32> to vector<256x8xbf16>
    %c25 = arith.constant 25 : index
    %c0_17 = arith.constant 0 : index
    %25 = vector.load %arg21[%c25, %c0_17] : memref<304x24xf32, #tpu.memory_space<vmem>>, vector<256x8xf32>
    %26 = arith.truncf %25 : vector<256x8xf32> to vector<256x8xbf16>
    %27 = vector.broadcast %8 : vector<256x1xbf16> to vector<256x8xbf16>
    %28 = arith.mulf %26, %27 : vector<256x8xbf16>
    %c39 = arith.constant 39 : index
    %c0_18 = arith.constant 0 : index
    %29 = vector.load %arg21[%c39, %c0_18] : memref<304x24xf32, #tpu.memory_space<vmem>>, vector<256x8xf32>
    %30 = arith.truncf %29 : vector<256x8xf32> to vector<256x8xbf16>
    %31 = vector.broadcast %7 : vector<256x1xbf16> to vector<256x8xbf16>
    %32 = arith.mulf %30, %31 : vector<256x8xbf16>
    %c40 = arith.constant 40 : index
    %c0_19 = arith.constant 0 : index
    %33 = vector.load %arg21[%c40, %c0_19] : memref<304x24xf32, #tpu.memory_space<vmem>>, vector<256x8xf32>
    %34 = arith.truncf %33 : vector<256x8xf32> to vector<256x8xbf16>
    %c41 = arith.constant 41 : index
    %c0_20 = arith.constant 0 : index
    %35 = vector.load %arg21[%c41, %c0_20] : memref<304x24xf32, #tpu.memory_space<vmem>>, vector<256x8xf32>
    %36 = arith.truncf %35 : vector<256x8xf32> to vector<256x8xbf16>
    %37 = vector.broadcast %8 : vector<256x1xbf16> to vector<256x8xbf16>
    %38 = arith.mulf %36, %37 : vector<256x8xbf16>
    %39 = tpu.concatenate %12, %14, %18, %22, %24, %28, %32, %34, %38 in 1 : vector<256x8xbf16>, vector<256x8xbf16>, vector<256x8xbf16>, vector<256x8xbf16>, vector<256x8xbf16>, vector<256x8xbf16>, vector<256x8xbf16>, vector<256x8xbf16>, vector<256x8xbf16> -> vector<256x72xbf16>
    %c0_21 = arith.constant 0 : index
    %c0_22 = arith.constant 0 : index
    %40 = vector.load %arg2[%c0_21, %c0_22] : memref<72x8xbf16, #tpu.memory_space<vmem>>, vector<72x8xbf16>
    %cst_23 = arith.constant dense<0.000000e+00> : vector<256x8xf32>
    %41 = tpu.matmul %39, %40, %cst_23 {dimension_numbers = #tpu.dot_dimension_numbers<[1], [0], [0], [1], [0, 0, 1, 1], [], []>} : vector<256x72xbf16>, vector<72x8xbf16>, vector<256x8xf32> -> vector<256x8xf32>
    %c0_24 = arith.constant 0 : index
    %c0_25 = arith.constant 0 : index
    %42 = vector.load %arg3[%c0_24, %c0_25] : memref<1x8xf32, #tpu.memory_space<vmem>>, vector<1x8xf32>
    %43 = vector.broadcast %42 : vector<1x8xf32> to vector<256x8xf32>
    %44 = arith.addf %41, %43 : vector<256x8xf32>
    %cst_26 = arith.constant 0.000000e+00 : f32
    %45 = vector.broadcast %cst_26 : f32 to vector<256x8xf32>
    %46 = arith.maximumf %44, %45 : vector<256x8xf32>
    %c24_27 = arith.constant 24 : index
    %c0_28 = arith.constant 0 : index
    %47 = vector.load %arg21[%c24_27, %c0_28] : memref<304x24xf32, #tpu.memory_space<vmem>>, vector<256x8xf32>
    tpu.vector_store %arg21[%c24_27, %c0_28], %46 {strides = array<i32>} : memref<304x24xf32, #tpu.memory_space<vmem>>, vector<256x8xf32>,
    %c0_29 = arith.constant 0 : index
    %c0_30 = arith.constant 0 : index
    %48 = vector.load %arg18[%c0_29, %c0_30] : memref<256x2xbf16, #tpu.memory_space<vmem>>, vector<256x1xbf16>
    %c0_31 = arith.constant 0 : index
    %c1_32 = arith.constant 1 : index
    %49 = vector.load %arg18[%c0_31, %c1_32] : memref<256x2xbf16, #tpu.memory_space<vmem>>, vector<256x1xbf16>
    %c7_33 = arith.constant 7 : index
    %c0_34 = arith.constant 0 : index
    %50 = vector.load %arg21[%c7_33, %c0_34] : memref<304x24xf32, #tpu.memory_space<vmem>>, vector<256x8xf32>
    %51 = arith.truncf %50 : vector<256x8xf32> to vector<256x8xbf16>
    %52 = vector.broadcast %48 : vector<256x1xbf16> to vector<256x8xbf16>
    %53 = arith.mulf %51, %52 : vector<256x8xbf16>
    %c8_35 = arith.constant 8 : index
    %c0_36 = arith.constant 0 : index
    %54 = vector.load %arg21[%c8_35, %c0_36] : memref<304x24xf32, #tpu.memory_space<vmem>>, vector<256x8xf32>
    %55 = arith.truncf %54 : vector<256x8xf32> to vector<256x8xbf16>
    %c9_37 = arith.constant 9 : index
    %c0_38 = arith.constant 0 : index
    %56 = vector.load %arg21[%c9_37, %c0_38] : memref<304x24xf32, #tpu.memory_space<vmem>>, vector<256x8xf32>
    %57 = arith.truncf %56 : vector<256x8xf32> to vector<256x8xbf16>
    %58 = vector.broadcast %49 : vector<256x1xbf16> to vector<256x8xbf16>
    %59 = arith.mulf %57, %58 : vector<256x8xbf16>
    %c23_39 = arith.constant 23 : index
    %c0_40 = arith.constant 0 : index
    %60 = vector.load %arg21[%c23_39, %c0_40] : memref<304x24xf32, #tpu.memory_space<vmem>>, vector<256x8xf32>
    %61 = arith.truncf %60 : vector<256x8xf32> to vector<256x8xbf16>
    %62 = vector.broadcast %48 : vector<256x1xbf16> to vector<256x8xbf16>
    %63 = arith.mulf %61, %62 : vector<256x8xbf16>
    %c24_41 = arith.constant 24 : index
    %c0_42 = arith.constant 0 : index
    %64 = vector.load %arg21[%c24_41, %c0_42] : memref<304x24xf32, #tpu.memory_space<vmem>>, vector<256x8xf32>
    %65 = arith.truncf %64 : vector<256x8xf32> to vector<256x8xbf16>
    %c25_43 = arith.constant 25 : index
    %c0_44 = arith.constant 0 : index
    %66 = vector.load %arg21[%c25_43, %c0_44] : memref<304x24xf32, #tpu.memory_space<vmem>>, vector<256x8xf32>
    %67 = arith.truncf %66 : vector<256x8xf32> to vector<256x8xbf16>
    %68 = vector.broadcast %49 : vector<256x1xbf16> to vector<256x8xbf16>
    %69 = arith.mulf %67, %68 : vector<256x8xbf16>
    %c39_45 = arith.constant 39 : index
    %c0_46 = arith.constant 0 : index
    %70 = vector.load %arg21[%c39_45, %c0_46] : memref<304x24xf32, #tpu.memory_space<vmem>>, vector<256x8xf32>
    %71 = arith.truncf %70 : vector<256x8xf32> to vector<256x8xbf16>
    %72 = vector.broadcast %48 : vector<256x1xbf16> to vector<256x8xbf16>
    %73 = arith.mulf %71, %72 : vector<256x8xbf16>
    %c40_47 = arith.constant 40 : index
    %c0_48 = arith.constant 0 : index
    %74 = vector.load %arg21[%c40_47, %c0_48] : memref<304x24xf32, #tpu.memory_space<vmem>>, vector<256x8xf32>
    %75 = arith.truncf %74 : vector<256x8xf32> to vector<256x8xbf16>
    %c41_49 = arith.constant 41 : index
    %c0_50 = arith.constant 0 : index
    %76 = vector.load %arg21[%c41_49, %c0_50] : memref<304x24xf32, #tpu.memory_space<vmem>>, vector<256x8xf32>
    %77 = arith.truncf %76 : vector<256x8xf32> to vector<256x8xbf16>
    %78 = vector.broadcast %49 : vector<256x1xbf16> to vector<256x8xbf16>
    %79 = arith.mulf %77, %78 : vector<256x8xbf16>
    %80 = tpu.concatenate %53, %55, %59, %63, %65, %69, %73, %75, %79 in 1 : vector<256x8xbf16>, vector<256x8xbf16>, vector<256x8xbf16>, vector<256x8xbf16>, vector<256x8xbf16>, vector<256x8xbf16>, vector<256x8xbf16>, vector<256x8xbf16>, vector<256x8xbf16> -> vector<256x72xbf16>
    %c0_51 = arith.constant 0 : index
    %c0_52 = arith.constant 0 : index
    %81 = vector.load %arg4[%c0_51, %c0_52] : memref<72x8xbf16, #tpu.memory_space<vmem>>, vector<72x8xbf16>
    %cst_53 = arith.constant dense<0.000000e+00> : vector<256x8xf32>
    %82 = tpu.matmul %80, %81, %cst_53 {dimension_numbers = #tpu.dot_dimension_numbers<[1], [0], [0], [1], [0, 0, 1, 1], [], []>} : vector<256x72xbf16>, vector<72x8xbf16>, vector<256x8xf32> -> vector<256x8xf32>
    %c0_54 = arith.constant 0 : index
    %c0_55 = arith.constant 0 : index
    %83 = vector.load %arg5[%c0_54, %c0_55] : memref<1x8xf32, #tpu.memory_space<vmem>>, vector<1x8xf32>
    %84 = vector.broadcast %83 : vector<1x8xf32> to vector<256x8xf32>
    %85 = arith.addf %82, %84 : vector<256x8xf32>
    %cst_56 = arith.constant 0.000000e+00 : f32
    %86 = vector.broadcast %cst_56 : f32 to vector<256x8xf32>
    %87 = arith.maximumf %85, %86 : vector<256x8xf32>
    %c24_57 = arith.constant 24 : index
    %c0_58 = arith.constant 0 : index
    %88 = vector.load %arg21[%c24_57, %c0_58] : memref<304x24xf32, #tpu.memory_space<vmem>>, vector<256x8xf32>
    tpu.vector_store %arg21[%c24_57, %c0_58], %87 {strides = array<i32>} : memref<304x24xf32, #tpu.memory_space<vmem>>, vector<256x8xf32>,
    %89 = arith.truncf %87 : vector<256x8xf32> to vector<256x8xbf16>
    %c0_59 = arith.constant 0 : index
    %c0_60 = arith.constant 0 : index
    %c0_61 = arith.constant 0 : index
    %90 = vector.load %arg16[%c0_59, %c0_60, %c0_61] : memref<4x64x256xbf16, #tpu.memory_space<vmem>>, vector<1x64x256xbf16>
    %91 = vector.shape_cast %90 : vector<1x64x256xbf16> to vector<64x256xbf16>
    %cst_62 = arith.constant dense<0.000000e+00> : vector<64x8xf32>
    %92 = tpu.matmul %91, %89, %cst_62 {dimension_numbers = #tpu.dot_dimension_numbers<[1], [0], [0], [1], [0, 0, 1, 1], [], []>} : vector<64x256xbf16>, vector<256x8xbf16>, vector<64x8xf32> -> vector<64x8xf32>
    %c1_63 = arith.constant 1 : index
    %c0_64 = arith.constant 0 : index
    %c0_65 = arith.constant 0 : index
    %93 = vector.load %arg16[%c1_63, %c0_64, %c0_65] : memref<4x64x256xbf16, #tpu.memory_space<vmem>>, vector<1x64x256xbf16>
    %94 = vector.shape_cast %93 : vector<1x64x256xbf16> to vector<64x256xbf16>
    %cst_66 = arith.constant dense<0.000000e+00> : vector<64x8xf32>
    %95 = tpu.matmul %94, %89, %cst_66 {dimension_numbers = #tpu.dot_dimension_numbers<[1], [0], [0], [1], [0, 0, 1, 1], [], []>} : vector<64x256xbf16>, vector<256x8xbf16>, vector<64x8xf32> -> vector<64x8xf32>
    %96 = arith.maximumf %92, %95 : vector<64x8xf32>
    %c2 = arith.constant 2 : index
    %c0_67 = arith.constant 0 : index
    %c0_68 = arith.constant 0 : index
    %97 = vector.load %arg16[%c2, %c0_67, %c0_68] : memref<4x64x256xbf16, #tpu.memory_space<vmem>>, vector<1x64x256xbf16>
    %98 = vector.shape_cast %97 : vector<1x64x256xbf16> to vector<64x256xbf16>
    %cst_69 = arith.constant dense<0.000000e+00> : vector<64x8xf32>
    %99 = tpu.matmul %98, %89, %cst_69 {dimension_numbers = #tpu.dot_dimension_numbers<[1], [0], [0], [1], [0, 0, 1, 1], [], []>} : vector<64x256xbf16>, vector<256x8xbf16>, vector<64x8xf32> -> vector<64x8xf32>
    %c3 = arith.constant 3 : index
    %c0_70 = arith.constant 0 : index
    %c0_71 = arith.constant 0 : index
    %100 = vector.load %arg16[%c3, %c0_70, %c0_71] : memref<4x64x256xbf16, #tpu.memory_space<vmem>>, vector<1x64x256xbf16>
    %101 = vector.shape_cast %100 : vector<1x64x256xbf16> to vector<64x256xbf16>
    %cst_72 = arith.constant dense<0.000000e+00> : vector<64x8xf32>
    %102 = tpu.matmul %101, %89, %cst_72 {dimension_numbers = #tpu.dot_dimension_numbers<[1], [0], [0], [1], [0, 0, 1, 1], [], []>} : vector<64x256xbf16>, vector<256x8xbf16>, vector<64x8xf32> -> vector<64x8xf32>
    %103 = arith.maximumf %99, %102 : vector<64x8xf32>
    %104 = arith.maximumf %96, %103 : vector<64x8xf32>
    %c16 = arith.constant 16 : index
    %c0_73 = arith.constant 0 : index
    %105 = vector.load %arg22[%c16, %c0_73] : memref<96x16xf32, #tpu.memory_space<vmem>>, vector<64x8xf32>
    tpu.vector_store %arg22[%c16, %c0_73], %104 {strides = array<i32>} : memref<96x16xf32, #tpu.memory_space<vmem>>, vector<64x8xf32>,
    %c0_74 = arith.constant 0 : index
    %c0_75 = arith.constant 0 : index
    %106 = vector.load %arg19[%c0_74, %c0_75] : memref<64x2xbf16, #tpu.memory_space<vmem>>, vector<64x1xbf16>
    %c0_76 = arith.constant 0 : index
    %c1_77 = arith.constant 1 : index
    %107 = vector.load %arg19[%c0_76, %c1_77] : memref<64x2xbf16, #tpu.memory_space<vmem>>, vector<64x1xbf16>
    %c7_78 = arith.constant 7 : index
    %c0_79 = arith.constant 0 : index
    %108 = vector.load %arg22[%c7_78, %c0_79] : memref<96x16xf32, #tpu.memory_space<vmem>>, vector<64x8xf32>
    %109 = arith.truncf %108 : vector<64x8xf32> to vector<64x8xbf16>
    %110 = vector.broadcast %106 : vector<64x1xbf16> to vector<64x8xbf16>
    %111 = arith.mulf %109, %110 : vector<64x8xbf16>
    %c8_80 = arith.constant 8 : index
    %c0_81 = arith.constant 0 : index
    %112 = vector.load %arg22[%c8_80, %c0_81] : memref<96x16xf32, #tpu.memory_space<vmem>>, vector<64x8xf32>
    %113 = arith.truncf %112 : vector<64x8xf32> to vector<64x8xbf16>
    %c9_82 = arith.constant 9 : index
    %c0_83 = arith.constant 0 : index
    %114 = vector.load %arg22[%c9_82, %c0_83] : memref<96x16xf32, #tpu.memory_space<vmem>>, vector<64x8xf32>
    %115 = arith.truncf %114 : vector<64x8xf32> to vector<64x8xbf16>
    %116 = vector.broadcast %107 : vector<64x1xbf16> to vector<64x8xbf16>
    %117 = arith.mulf %115, %116 : vector<64x8xbf16>
    %c15 = arith.constant 15 : index
    %c0_84 = arith.constant 0 : index
    %118 = vector.load %arg22[%c15, %c0_84] : memref<96x16xf32, #tpu.memory_space<vmem>>, vector<64x8xf32>
    %119 = arith.truncf %118 : vector<64x8xf32> to vector<64x8xbf16>
    %120 = vector.broadcast %106 : vector<64x1xbf16> to vector<64x8xbf16>
    %121 = arith.mulf %119, %120 : vector<64x8xbf16>
    %c16_85 = arith.constant 16 : index
    %c0_86 = arith.constant 0 : index
    %122 = vector.load %arg22[%c16_85, %c0_86] : memref<96x16xf32, #tpu.memory_space<vmem>>, vector<64x8xf32>
    %123 = arith.truncf %122 : vector<64x8xf32> to vector<64x8xbf16>
    %c17 = arith.constant 17 : index
    %c0_87 = arith.constant 0 : index
    %124 = vector.load %arg22[%c17, %c0_87] : memref<96x16xf32, #tpu.memory_space<vmem>>, vector<64x8xf32>
    %125 = arith.truncf %124 : vector<64x8xf32> to vector<64x8xbf16>
    %126 = vector.broadcast %107 : vector<64x1xbf16> to vector<64x8xbf16>
    %127 = arith.mulf %125, %126 : vector<64x8xbf16>
    %c23_88 = arith.constant 23 : index
    %c0_89 = arith.constant 0 : index
    %128 = vector.load %arg22[%c23_88, %c0_89] : memref<96x16xf32, #tpu.memory_space<vmem>>, vector<64x8xf32>
    %129 = arith.truncf %128 : vector<64x8xf32> to vector<64x8xbf16>
    %130 = vector.broadcast %106 : vector<64x1xbf16> to vector<64x8xbf16>
    %131 = arith.mulf %129, %130 : vector<64x8xbf16>
    %c24_90 = arith.constant 24 : index
    %c0_91 = arith.constant 0 : index
    %132 = vector.load %arg22[%c24_90, %c0_91] : memref<96x16xf32, #tpu.memory_space<vmem>>, vector<64x8xf32>
    %133 = arith.truncf %132 : vector<64x8xf32> to vector<64x8xbf16>
    %c25_92 = arith.constant 25 : index
    %c0_93 = arith.constant 0 : index
    %134 = vector.load %arg22[%c25_92, %c0_93] : memref<96x16xf32, #tpu.memory_space<vmem>>, vector<64x8xf32>
    %135 = arith.truncf %134 : vector<64x8xf32> to vector<64x8xbf16>
    %136 = vector.broadcast %107 : vector<64x1xbf16> to vector<64x8xbf16>
    %137 = arith.mulf %135, %136 : vector<64x8xbf16>
    %138 = tpu.concatenate %111, %113, %117, %121, %123, %127, %131, %133, %137 in 1 : vector<64x8xbf16>, vector<64x8xbf16>, vector<64x8xbf16>, vector<64x8xbf16>, vector<64x8xbf16>, vector<64x8xbf16>, vector<64x8xbf16>, vector<64x8xbf16>, vector<64x8xbf16> -> vector<64x72xbf16>
    %c0_94 = arith.constant 0 : index
    %c0_95 = arith.constant 0 : index
    %139 = vector.load %arg6[%c0_94, %c0_95] : memref<72x16xbf16, #tpu.memory_space<vmem>>, vector<72x16xbf16>
    %cst_96 = arith.constant dense<0.000000e+00> : vector<64x16xf32>
    %140 = tpu.matmul %138, %139, %cst_96 {dimension_numbers = #tpu.dot_dimension_numbers<[1], [0], [0], [1], [0, 0, 1, 1], [], []>} : vector<64x72xbf16>, vector<72x16xbf16>, vector<64x16xf32> -> vector<64x16xf32>
    %c0_97 = arith.constant 0 : index
    %c0_98 = arith.constant 0 : index
    %141 = vector.load %arg7[%c0_97, %c0_98] : memref<1x16xf32, #tpu.memory_space<vmem>>, vector<1x16xf32>
    %142 = vector.broadcast %141 : vector<1x16xf32> to vector<64x16xf32>
    %143 = arith.addf %140, %142 : vector<64x16xf32>
    %cst_99 = arith.constant 0.000000e+00 : f32
    %144 = vector.broadcast %cst_99 : f32 to vector<64x16xf32>
    %145 = arith.maximumf %143, %144 : vector<64x16xf32>
    %c16_100 = arith.constant 16 : index
    %c0_101 = arith.constant 0 : index
    %146 = vector.load %arg22[%c16_100, %c0_101] : memref<96x16xf32, #tpu.memory_space<vmem>>, vector<64x16xf32>
    tpu.vector_store %arg22[%c16_100, %c0_101], %145 {strides = array<i32>} : memref<96x16xf32, #tpu.memory_space<vmem>>, vector<64x16xf32>,
    %c0_102 = arith.constant 0 : index
    %c0_103 = arith.constant 0 : index
    %147 = vector.load %arg19[%c0_102, %c0_103] : memref<64x2xbf16, #tpu.memory_space<vmem>>, vector<64x1xbf16>
    %c0_104 = arith.constant 0 : index
    %c1_105 = arith.constant 1 : index
    %148 = vector.load %arg19[%c0_104, %c1_105] : memref<64x2xbf16, #tpu.memory_space<vmem>>, vector<64x1xbf16>
    %c7_106 = arith.constant 7 : index
    %c0_107 = arith.constant 0 : index
    %149 = vector.load %arg22[%c7_106, %c0_107] : memref<96x16xf32, #tpu.memory_space<vmem>>, vector<64x16xf32>
    %150 = arith.truncf %149 : vector<64x16xf32> to vector<64x16xbf16>
    %151 = vector.broadcast %147 : vector<64x1xbf16> to vector<64x16xbf16>
    %152 = arith.mulf %150, %151 : vector<64x16xbf16>
    %c8_108 = arith.constant 8 : index
    %c0_109 = arith.constant 0 : index
    %153 = vector.load %arg22[%c8_108, %c0_109] : memref<96x16xf32, #tpu.memory_space<vmem>>, vector<64x16xf32>
    %154 = arith.truncf %153 : vector<64x16xf32> to vector<64x16xbf16>
    %c9_110 = arith.constant 9 : index
    %c0_111 = arith.constant 0 : index
    %155 = vector.load %arg22[%c9_110, %c0_111] : memref<96x16xf32, #tpu.memory_space<vmem>>, vector<64x16xf32>
    %156 = arith.truncf %155 : vector<64x16xf32> to vector<64x16xbf16>
    %157 = vector.broadcast %148 : vector<64x1xbf16> to vector<64x16xbf16>
    %158 = arith.mulf %156, %157 : vector<64x16xbf16>
    %c15_112 = arith.constant 15 : index
    %c0_113 = arith.constant 0 : index
    %159 = vector.load %arg22[%c15_112, %c0_113] : memref<96x16xf32, #tpu.memory_space<vmem>>, vector<64x16xf32>
    %160 = arith.truncf %159 : vector<64x16xf32> to vector<64x16xbf16>
    %161 = vector.broadcast %147 : vector<64x1xbf16> to vector<64x16xbf16>
    %162 = arith.mulf %160, %161 : vector<64x16xbf16>
    %c16_114 = arith.constant 16 : index
    %c0_115 = arith.constant 0 : index
    %163 = vector.load %arg22[%c16_114, %c0_115] : memref<96x16xf32, #tpu.memory_space<vmem>>, vector<64x16xf32>
    %164 = arith.truncf %163 : vector<64x16xf32> to vector<64x16xbf16>
    %c17_116 = arith.constant 17 : index
    %c0_117 = arith.constant 0 : index
    %165 = vector.load %arg22[%c17_116, %c0_117] : memref<96x16xf32, #tpu.memory_space<vmem>>, vector<64x16xf32>
    %166 = arith.truncf %165 : vector<64x16xf32> to vector<64x16xbf16>
    %167 = vector.broadcast %148 : vector<64x1xbf16> to vector<64x16xbf16>
    %168 = arith.mulf %166, %167 : vector<64x16xbf16>
    %c23_118 = arith.constant 23 : index
    %c0_119 = arith.constant 0 : index
    %169 = vector.load %arg22[%c23_118, %c0_119] : memref<96x16xf32, #tpu.memory_space<vmem>>, vector<64x16xf32>
    %170 = arith.truncf %169 : vector<64x16xf32> to vector<64x16xbf16>
    %171 = vector.broadcast %147 : vector<64x1xbf16> to vector<64x16xbf16>
    %172 = arith.mulf %170, %171 : vector<64x16xbf16>
    %c24_120 = arith.constant 24 : index
    %c0_121 = arith.constant 0 : index
    %173 = vector.load %arg22[%c24_120, %c0_121] : memref<96x16xf32, #tpu.memory_space<vmem>>, vector<64x16xf32>
    %174 = arith.truncf %173 : vector<64x16xf32> to vector<64x16xbf16>
    %c25_122 = arith.constant 25 : index
    %c0_123 = arith.constant 0 : index
    %175 = vector.load %arg22[%c25_122, %c0_123] : memref<96x16xf32, #tpu.memory_space<vmem>>, vector<64x16xf32>
    %176 = arith.truncf %175 : vector<64x16xf32> to vector<64x16xbf16>
    %177 = vector.broadcast %148 : vector<64x1xbf16> to vector<64x16xbf16>
    %178 = arith.mulf %176, %177 : vector<64x16xbf16>
    %179 = tpu.concatenate %152, %154, %158, %162, %164, %168, %172, %174, %178 in 1 : vector<64x16xbf16>, vector<64x16xbf16>, vector<64x16xbf16>, vector<64x16xbf16>, vector<64x16xbf16>, vector<64x16xbf16>, vector<64x16xbf16>, vector<64x16xbf16>, vector<64x16xbf16> -> vector<64x144xbf16>
    %c0_124 = arith.constant 0 : index
    %c0_125 = arith.constant 0 : index
    %180 = vector.load %arg8[%c0_124, %c0_125] : memref<144x16xbf16, #tpu.memory_space<vmem>>, vector<144x16xbf16>
    %cst_126 = arith.constant dense<0.000000e+00> : vector<64x16xf32>
    %181 = tpu.matmul %179, %180, %cst_126 {dimension_numbers = #tpu.dot_dimension_numbers<[1], [0], [0], [1], [0, 0, 1, 1], [], []>} : vector<64x144xbf16>, vector<144x16xbf16>, vector<64x16xf32> -> vector<64x16xf32>
    %c0_127 = arith.constant 0 : index
    %c0_128 = arith.constant 0 : index
    %182 = vector.load %arg9[%c0_127, %c0_128] : memref<1x16xf32, #tpu.memory_space<vmem>>, vector<1x16xf32>
    %183 = vector.broadcast %182 : vector<1x16xf32> to vector<64x16xf32>
    %184 = arith.addf %181, %183 : vector<64x16xf32>
    %cst_129 = arith.constant 0.000000e+00 : f32
    %185 = vector.broadcast %cst_129 : f32 to vector<64x16xf32>
    %186 = arith.maximumf %184, %185 : vector<64x16xf32>
    %c0_130 = arith.constant 0 : index
    %c0_131 = arith.constant 0 : index
    %187 = vector.load %arg17[%c0_130, %c0_131] : memref<256x64xbf16, #tpu.memory_space<vmem>>, vector<256x64xbf16>
    %188 = arith.truncf %186 : vector<64x16xf32> to vector<64x16xbf16>
    %cst_132 = arith.constant dense<0.000000e+00> : vector<256x16xf32>
    %189 = tpu.matmul %187, %188, %cst_132 {dimension_numbers = #tpu.dot_dimension_numbers<[1], [0], [0], [1], [0, 0, 1, 1], [], []>} : vector<256x64xbf16>, vector<64x16xbf16>, vector<256x16xf32> -> vector<256x16xf32>
    %c24_133 = arith.constant 24 : index
    %c8_134 = arith.constant 8 : index
    %190 = vector.load %arg21[%c24_133, %c8_134] : memref<304x24xf32, #tpu.memory_space<vmem>>, vector<256x16xf32>
    tpu.vector_store %arg21[%c24_133, %c8_134], %189 {strides = array<i32>} : memref<304x24xf32, #tpu.memory_space<vmem>>, vector<256x16xf32>,
    %c0_135 = arith.constant 0 : index
    %c0_136 = arith.constant 0 : index
    %191 = vector.load %arg18[%c0_135, %c0_136] : memref<256x2xbf16, #tpu.memory_space<vmem>>, vector<256x1xbf16>
    %c0_137 = arith.constant 0 : index
    %c1_138 = arith.constant 1 : index
    %192 = vector.load %arg18[%c0_137, %c1_138] : memref<256x2xbf16, #tpu.memory_space<vmem>>, vector<256x1xbf16>
    %c7_139 = arith.constant 7 : index
    %c0_140 = arith.constant 0 : index
    %193 = vector.load %arg21[%c7_139, %c0_140] : memref<304x24xf32, #tpu.memory_space<vmem>>, vector<256x24xf32>
    %194 = arith.truncf %193 : vector<256x24xf32> to vector<256x24xbf16>
    %195 = vector.broadcast %191 : vector<256x1xbf16> to vector<256x24xbf16>
    %196 = arith.mulf %194, %195 : vector<256x24xbf16>
    %c8_141 = arith.constant 8 : index
    %c0_142 = arith.constant 0 : index
    %197 = vector.load %arg21[%c8_141, %c0_142] : memref<304x24xf32, #tpu.memory_space<vmem>>, vector<256x24xf32>
    %198 = arith.truncf %197 : vector<256x24xf32> to vector<256x24xbf16>
    %c9_143 = arith.constant 9 : index
    %c0_144 = arith.constant 0 : index
    %199 = vector.load %arg21[%c9_143, %c0_144] : memref<304x24xf32, #tpu.memory_space<vmem>>, vector<256x24xf32>
    %200 = arith.truncf %199 : vector<256x24xf32> to vector<256x24xbf16>
    %201 = vector.broadcast %192 : vector<256x1xbf16> to vector<256x24xbf16>
    %202 = arith.mulf %200, %201 : vector<256x24xbf16>
    %c23_145 = arith.constant 23 : index
    %c0_146 = arith.constant 0 : index
    %203 = vector.load %arg21[%c23_145, %c0_146] : memref<304x24xf32, #tpu.memory_space<vmem>>, vector<256x24xf32>
    %204 = arith.truncf %203 : vector<256x24xf32> to vector<256x24xbf16>
    %205 = vector.broadcast %191 : vector<256x1xbf16> to vector<256x24xbf16>
    %206 = arith.mulf %204, %205 : vector<256x24xbf16>
    %c24_147 = arith.constant 24 : index
    %c0_148 = arith.constant 0 : index
    %207 = vector.load %arg21[%c24_147, %c0_148] : memref<304x24xf32, #tpu.memory_space<vmem>>, vector<256x24xf32>
    %208 = arith.truncf %207 : vector<256x24xf32> to vector<256x24xbf16>
    %c25_149 = arith.constant 25 : index
    %c0_150 = arith.constant 0 : index
    %209 = vector.load %arg21[%c25_149, %c0_150] : memref<304x24xf32, #tpu.memory_space<vmem>>, vector<256x24xf32>
    %210 = arith.truncf %209 : vector<256x24xf32> to vector<256x24xbf16>
    %211 = vector.broadcast %192 : vector<256x1xbf16> to vector<256x24xbf16>
    %212 = arith.mulf %210, %211 : vector<256x24xbf16>
    %c39_151 = arith.constant 39 : index
    %c0_152 = arith.constant 0 : index
    %213 = vector.load %arg21[%c39_151, %c0_152] : memref<304x24xf32, #tpu.memory_space<vmem>>, vector<256x24xf32>
    %214 = arith.truncf %213 : vector<256x24xf32> to vector<256x24xbf16>
    %215 = vector.broadcast %191 : vector<256x1xbf16> to vector<256x24xbf16>
    %216 = arith.mulf %214, %215 : vector<256x24xbf16>
    %c40_153 = arith.constant 40 : index
    %c0_154 = arith.constant 0 : index
    %217 = vector.load %arg21[%c40_153, %c0_154] : memref<304x24xf32, #tpu.memory_space<vmem>>, vector<256x24xf32>
    %218 = arith.truncf %217 : vector<256x24xf32> to vector<256x24xbf16>
    %c41_155 = arith.constant 41 : index
    %c0_156 = arith.constant 0 : index
    %219 = vector.load %arg21[%c41_155, %c0_156] : memref<304x24xf32, #tpu.memory_space<vmem>>, vector<256x24xf32>
    %220 = arith.truncf %219 : vector<256x24xf32> to vector<256x24xbf16>
    %221 = vector.broadcast %192 : vector<256x1xbf16> to vector<256x24xbf16>
    %222 = arith.mulf %220, %221 : vector<256x24xbf16>
    %223 = tpu.concatenate %196, %198, %202, %206, %208, %212, %216, %218, %222 in 1 : vector<256x24xbf16>, vector<256x24xbf16>, vector<256x24xbf16>, vector<256x24xbf16>, vector<256x24xbf16>, vector<256x24xbf16>, vector<256x24xbf16>, vector<256x24xbf16>, vector<256x24xbf16> -> vector<256x216xbf16>
    %c0_157 = arith.constant 0 : index
    %c0_158 = arith.constant 0 : index
    %224 = vector.load %arg10[%c0_157, %c0_158] : memref<216x8xbf16, #tpu.memory_space<vmem>>, vector<216x8xbf16>
    %cst_159 = arith.constant dense<0.000000e+00> : vector<256x8xf32>
    %225 = tpu.matmul %223, %224, %cst_159 {dimension_numbers = #tpu.dot_dimension_numbers<[1], [0], [0], [1], [0, 0, 1, 1], [], []>} : vector<256x216xbf16>, vector<216x8xbf16>, vector<256x8xf32> -> vector<256x8xf32>
    %c0_160 = arith.constant 0 : index
    %c0_161 = arith.constant 0 : index
    %226 = vector.load %arg11[%c0_160, %c0_161] : memref<1x8xf32, #tpu.memory_space<vmem>>, vector<1x8xf32>
    %227 = vector.broadcast %226 : vector<1x8xf32> to vector<256x8xf32>
    %228 = arith.addf %225, %227 : vector<256x8xf32>
    %cst_162 = arith.constant 0.000000e+00 : f32
    %229 = vector.broadcast %cst_162 : f32 to vector<256x8xf32>
    %230 = arith.maximumf %228, %229 : vector<256x8xf32>
    %c24_163 = arith.constant 24 : index
    %c0_164 = arith.constant 0 : index
    %231 = vector.load %arg21[%c24_163, %c0_164] : memref<304x24xf32, #tpu.memory_space<vmem>>, vector<256x8xf32>
    tpu.vector_store %arg21[%c24_163, %c0_164], %230 {strides = array<i32>} : memref<304x24xf32, #tpu.memory_space<vmem>>, vector<256x8xf32>,
    %c0_165 = arith.constant 0 : index
    %c0_166 = arith.constant 0 : index
    %232 = vector.load %arg18[%c0_165, %c0_166] : memref<256x2xbf16, #tpu.memory_space<vmem>>, vector<256x1xbf16>
    %c0_167 = arith.constant 0 : index
    %c1_168 = arith.constant 1 : index
    %233 = vector.load %arg18[%c0_167, %c1_168] : memref<256x2xbf16, #tpu.memory_space<vmem>>, vector<256x1xbf16>
    %c7_169 = arith.constant 7 : index
    %c0_170 = arith.constant 0 : index
    %234 = vector.load %arg21[%c7_169, %c0_170] : memref<304x24xf32, #tpu.memory_space<vmem>>, vector<256x8xf32>
    %235 = arith.truncf %234 : vector<256x8xf32> to vector<256x8xbf16>
    %236 = vector.broadcast %232 : vector<256x1xbf16> to vector<256x8xbf16>
    %237 = arith.mulf %235, %236 : vector<256x8xbf16>
    %c8_171 = arith.constant 8 : index
    %c0_172 = arith.constant 0 : index
    %238 = vector.load %arg21[%c8_171, %c0_172] : memref<304x24xf32, #tpu.memory_space<vmem>>, vector<256x8xf32>
    %239 = arith.truncf %238 : vector<256x8xf32> to vector<256x8xbf16>
    %c9_173 = arith.constant 9 : index
    %c0_174 = arith.constant 0 : index
    %240 = vector.load %arg21[%c9_173, %c0_174] : memref<304x24xf32, #tpu.memory_space<vmem>>, vector<256x8xf32>
    %241 = arith.truncf %240 : vector<256x8xf32> to vector<256x8xbf16>
    %242 = vector.broadcast %233 : vector<256x1xbf16> to vector<256x8xbf16>
    %243 = arith.mulf %241, %242 : vector<256x8xbf16>
    %c23_175 = arith.constant 23 : index
    %c0_176 = arith.constant 0 : index
    %244 = vector.load %arg21[%c23_175, %c0_176] : memref<304x24xf32, #tpu.memory_space<vmem>>, vector<256x8xf32>
    %245 = arith.truncf %244 : vector<256x8xf32> to vector<256x8xbf16>
    %246 = vector.broadcast %232 : vector<256x1xbf16> to vector<256x8xbf16>
    %247 = arith.mulf %245, %246 : vector<256x8xbf16>
    %c24_177 = arith.constant 24 : index
    %c0_178 = arith.constant 0 : index
    %248 = vector.load %arg21[%c24_177, %c0_178] : memref<304x24xf32, #tpu.memory_space<vmem>>, vector<256x8xf32>
    %249 = arith.truncf %248 : vector<256x8xf32> to vector<256x8xbf16>
    %c25_179 = arith.constant 25 : index
    %c0_180 = arith.constant 0 : index
    %250 = vector.load %arg21[%c25_179, %c0_180] : memref<304x24xf32, #tpu.memory_space<vmem>>, vector<256x8xf32>
    %251 = arith.truncf %250 : vector<256x8xf32> to vector<256x8xbf16>
    %252 = vector.broadcast %233 : vector<256x1xbf16> to vector<256x8xbf16>
    %253 = arith.mulf %251, %252 : vector<256x8xbf16>
    %c39_181 = arith.constant 39 : index
    %c0_182 = arith.constant 0 : index
    %254 = vector.load %arg21[%c39_181, %c0_182] : memref<304x24xf32, #tpu.memory_space<vmem>>, vector<256x8xf32>
    %255 = arith.truncf %254 : vector<256x8xf32> to vector<256x8xbf16>
    %256 = vector.broadcast %232 : vector<256x1xbf16> to vector<256x8xbf16>
    %257 = arith.mulf %255, %256 : vector<256x8xbf16>
    %c40_183 = arith.constant 40 : index
    %c0_184 = arith.constant 0 : index
    %258 = vector.load %arg21[%c40_183, %c0_184] : memref<304x24xf32, #tpu.memory_space<vmem>>, vector<256x8xf32>
    %259 = arith.truncf %258 : vector<256x8xf32> to vector<256x8xbf16>
    %c41_185 = arith.constant 41 : index
    %c0_186 = arith.constant 0 : index
    %260 = vector.load %arg21[%c41_185, %c0_186] : memref<304x24xf32, #tpu.memory_space<vmem>>, vector<256x8xf32>
    %261 = arith.truncf %260 : vector<256x8xf32> to vector<256x8xbf16>
    %262 = vector.broadcast %233 : vector<256x1xbf16> to vector<256x8xbf16>
    %263 = arith.mulf %261, %262 : vector<256x8xbf16>
    %264 = tpu.concatenate %237, %239, %243, %247, %249, %253, %257, %259, %263 in 1 : vector<256x8xbf16>, vector<256x8xbf16>, vector<256x8xbf16>, vector<256x8xbf16>, vector<256x8xbf16>, vector<256x8xbf16>, vector<256x8xbf16>, vector<256x8xbf16>, vector<256x8xbf16> -> vector<256x72xbf16>
    %c0_187 = arith.constant 0 : index
    %c0_188 = arith.constant 0 : index
    %265 = vector.load %arg12[%c0_187, %c0_188] : memref<72x8xbf16, #tpu.memory_space<vmem>>, vector<72x8xbf16>
    %cst_189 = arith.constant dense<0.000000e+00> : vector<256x8xf32>
    %266 = tpu.matmul %264, %265, %cst_189 {dimension_numbers = #tpu.dot_dimension_numbers<[1], [0], [0], [1], [0, 0, 1, 1], [], []>} : vector<256x72xbf16>, vector<72x8xbf16>, vector<256x8xf32> -> vector<256x8xf32>
    %c0_190 = arith.constant 0 : index
    %c0_191 = arith.constant 0 : index
    %267 = vector.load %arg13[%c0_190, %c0_191] : memref<1x8xf32, #tpu.memory_space<vmem>>, vector<1x8xf32>
    %268 = vector.broadcast %267 : vector<1x8xf32> to vector<256x8xf32>
    %269 = arith.addf %266, %268 : vector<256x8xf32>
    %cst_192 = arith.constant 0.000000e+00 : f32
    %270 = vector.broadcast %cst_192 : f32 to vector<256x8xf32>
    %271 = arith.maximumf %269, %270 : vector<256x8xf32>
    %c0_193 = arith.constant 0 : index
    %c0_194 = arith.constant 0 : index
    %272 = vector.load %arg14[%c0_193, %c0_194] : memref<1x8xbf16, #tpu.memory_space<vmem>>, vector<1x8xbf16>
    %273 = arith.truncf %271 : vector<256x8xf32> to vector<256x8xbf16>
    %cst_195 = arith.constant dense<0.000000e+00> : vector<1x256xf32>
    %274 = tpu.matmul %272, %273, %cst_195 {dimension_numbers = #tpu.dot_dimension_numbers<[1], [1], [0], [0], [0, 0, 1, 0], [], []>} : vector<1x8xbf16>, vector<256x8xbf16>, vector<1x256xf32> -> vector<1x256xf32>
    %c0_196 = arith.constant 0 : index
    %c0_197 = arith.constant 0 : index
    %275 = vector.load %arg15[%c0_196, %c0_197] : memref<1x1xf32, #tpu.memory_space<vmem>>, vector<1x1xf32>
    %276 = vector.broadcast %275 : vector<1x1xf32> to vector<1x256xf32>
    %277 = arith.addf %274, %276 : vector<1x256xf32>
    %c0_198 = arith.constant 0 : index
    %c0_199 = arith.constant 0 : index
    %c0_200 = arith.constant 0 : index
    %278 = vector.load %arg20[%c0_198, %c0_199, %c0_200] : memref<1x1x256xf32, #tpu.memory_space<vmem>>, vector<1x1x256xf32>
    %279 = vector.shape_cast %278 : vector<1x1x256xf32> to vector<1x256xf32>
    %280 = vector.shape_cast %277 : vector<1x256xf32> to vector<1x1x256xf32>
    tpu.vector_store %arg20[%c0_198, %c0_199, %c0_200], %280 {strides = array<i32>} : memref<1x1x256xf32, #tpu.memory_space<vmem>>, vector<1x1x256xf32>,
    return
  }
  func.func @transform_0(%arg0: i32) -> (i32, i32, i32) {
    %c0_i32 = arith.constant 0 : i32
    %c0_i32_0 = arith.constant 0 : i32
    %c0_i32_1 = arith.constant 0 : i32
    return %arg0, %c0_i32, %c0_i32_0 : i32, i32, i32
  }
  func.func @transform_1(%arg0: i32) -> (i32, i32) {
    %c0_i32 = arith.constant 0 : i32
    %c0_i32_0 = arith.constant 0 : i32
    %c0_i32_1 = arith.constant 0 : i32
    return %c0_i32, %c0_i32_0 : i32, i32
  }
  func.func @transform_2(%arg0: i32) -> (i32, i32) {
    %c0_i32 = arith.constant 0 : i32
    %c0_i32_0 = arith.constant 0 : i32
    %c0_i32_1 = arith.constant 0 : i32
    return %c0_i32, %c0_i32_0 : i32, i32
  }
  func.func @transform_3(%arg0: i32) -> (i32, i32) {
    %c0_i32 = arith.constant 0 : i32
    %c0_i32_0 = arith.constant 0 : i32
    %c0_i32_1 = arith.constant 0 : i32
    return %c0_i32, %c0_i32_0 : i32, i32
  }
  func.func @transform_4(%arg0: i32) -> (i32, i32) {
    %c0_i32 = arith.constant 0 : i32
    %c0_i32_0 = arith.constant 0 : i32
    %c0_i32_1 = arith.constant 0 : i32
    return %c0_i32, %c0_i32_0 : i32, i32
  }
  func.func @transform_5(%arg0: i32) -> (i32, i32) {
    %c0_i32 = arith.constant 0 : i32
    %c0_i32_0 = arith.constant 0 : i32
    %c0_i32_1 = arith.constant 0 : i32
    return %c0_i32, %c0_i32_0 : i32, i32
  }
  func.func @transform_6(%arg0: i32) -> (i32, i32) {
    %c0_i32 = arith.constant 0 : i32
    %c0_i32_0 = arith.constant 0 : i32
    %c0_i32_1 = arith.constant 0 : i32
    return %c0_i32, %c0_i32_0 : i32, i32
  }
  func.func @transform_7(%arg0: i32) -> (i32, i32) {
    %c0_i32 = arith.constant 0 : i32
    %c0_i32_0 = arith.constant 0 : i32
    %c0_i32_1 = arith.constant 0 : i32
    return %c0_i32, %c0_i32_0 : i32, i32
  }
  func.func @transform_8(%arg0: i32) -> (i32, i32) {
    %c0_i32 = arith.constant 0 : i32
    %c0_i32_0 = arith.constant 0 : i32
    %c0_i32_1 = arith.constant 0 : i32
    return %c0_i32, %c0_i32_0 : i32, i32
  }
  func.func @transform_9(%arg0: i32) -> (i32, i32) {
    %c0_i32 = arith.constant 0 : i32
    %c0_i32_0 = arith.constant 0 : i32
    %c0_i32_1 = arith.constant 0 : i32
    return %c0_i32, %c0_i32_0 : i32, i32
  }
  func.func @transform_10(%arg0: i32) -> (i32, i32) {
    %c0_i32 = arith.constant 0 : i32
    %c0_i32_0 = arith.constant 0 : i32
    %c0_i32_1 = arith.constant 0 : i32
    return %c0_i32, %c0_i32_0 : i32, i32
  }
  func.func @transform_11(%arg0: i32) -> (i32, i32) {
    %c0_i32 = arith.constant 0 : i32
    %c0_i32_0 = arith.constant 0 : i32
    %c0_i32_1 = arith.constant 0 : i32
    return %c0_i32, %c0_i32_0 : i32, i32
  }
  func.func @transform_12(%arg0: i32) -> (i32, i32) {
    %c0_i32 = arith.constant 0 : i32
    %c0_i32_0 = arith.constant 0 : i32
    %c0_i32_1 = arith.constant 0 : i32
    return %c0_i32, %c0_i32_0 : i32, i32
  }
  func.func @transform_13(%arg0: i32) -> (i32, i32) {
    %c0_i32 = arith.constant 0 : i32
    %c0_i32_0 = arith.constant 0 : i32
    %c0_i32_1 = arith.constant 0 : i32
    return %c0_i32, %c0_i32_0 : i32, i32
  }
  func.func @transform_14(%arg0: i32) -> (i32, i32) {
    %c0_i32 = arith.constant 0 : i32
    %c0_i32_0 = arith.constant 0 : i32
    %c0_i32_1 = arith.constant 0 : i32
    return %c0_i32, %c0_i32_0 : i32, i32
  }
  func.func @transform_15(%arg0: i32) -> (i32, i32, i32) {
    %c0_i32 = arith.constant 0 : i32
    %c0_i32_0 = arith.constant 0 : i32
    %c0_i32_1 = arith.constant 0 : i32
    %c0_i32_2 = arith.constant 0 : i32
    return %c0_i32, %c0_i32_0, %c0_i32_1 : i32, i32, i32
  }
  func.func @transform_16(%arg0: i32) -> (i32, i32) {
    %c0_i32 = arith.constant 0 : i32
    %c0_i32_0 = arith.constant 0 : i32
    %c0_i32_1 = arith.constant 0 : i32
    return %c0_i32, %c0_i32_0 : i32, i32
  }
  func.func @transform_17(%arg0: i32) -> (i32, i32) {
    %c0_i32 = arith.constant 0 : i32
    %c0_i32_0 = arith.constant 0 : i32
    %c0_i32_1 = arith.constant 0 : i32
    return %c0_i32, %c0_i32_0 : i32, i32
  }
  func.func @transform_18(%arg0: i32) -> (i32, i32) {
    %c0_i32 = arith.constant 0 : i32
    %c0_i32_0 = arith.constant 0 : i32
    %c0_i32_1 = arith.constant 0 : i32
    return %c0_i32, %c0_i32_0 : i32, i32
  }
  func.func @transform_19(%arg0: i32) -> (i32, i32, i32) {
    %c0_i32 = arith.constant 0 : i32
    %c0_i32_0 = arith.constant 0 : i32
    %c0_i32_1 = arith.constant 0 : i32
    return %arg0, %c0_i32, %c0_i32_0 : i32, i32, i32
  }
}

</mosaic_0001>

<bundles_post_ra>
// kernel: aot_dudo_forward.1
= control target key start
LH: loop header
LB: loop body
LE: loop exit
PB: predicated region body
PF: predicated region fallthrough
CT: control target
= control target key end

     0   :  { %s13727_s20 = smov 0   ;;  %s19684_s0 = inlined_call_operand.vmem [shape: f32[2,256,2], index: 0, kind: input, shape index: {}]   ;;  %s19685_s1 = inlined_call_operand.vmem [shape: bf16[72,8], index: 1, kind: input, shape index: {}]   ;;  %s19686_s2 = inlined_call_operand.vmem [shape: f32[1,8], index: 2, kind: input, shape index: {}]   ;;  %s19687_s3 = inlined_call_operand.vmem [shape: bf16[72,8], index: 3, kind: input, shape index: {}]   ;;  %s19688_s4 = inlined_call_operand.vmem [shape: f32[1,8], index: 4, kind: input, shape index: {}]   ;;  %s19689_s5 = inlined_call_operand.vmem [shape: bf16[72,16], index: 5, kind: input, shape index: {}]   ;;  %s19690_s6 = inlined_call_operand.vmem [shape: f32[1,16], index: 6, kind: input, shape index: {}]   ;;  %s19691_s7 = inlined_call_operand.vmem [shape: bf16[144,16], index: 7, kind: input, shape index: {}]   ;;  %s19692_s8 = inlined_call_operand.vmem [shape: f32[1,16], index: 8, kind: input, shape index: {}]   ;;  %s19693_s9 = inlined_call_operand.vmem [shape: bf16[216,8], index: 9, kind: input, shape index: {}]   ;;  %s19694_s10 = inlined_call_operand.vmem [shape: f32[1,8], index: 10, kind: input, shape index: {}]   ;;  %s19695_s11 = inlined_call_operand.vmem [shape: bf16[72,8], index: 11, kind: input, shape index: {}]   ;;  %s19696_s12 = inlined_call_operand.vmem [shape: f32[1,8], index: 12, kind: input, shape index: {}]   ;;  %s19697_s13 = inlined_call_operand.vmem [shape: bf16[1,8], index: 13, kind: input, shape index: {}]   ;;  %s19698_s14 = inlined_call_operand.<no memory space> [shape: f32[1,1], index: 14, kind: input, shape index: {}]   ;;  %s19699_s15 = inlined_call_operand.vmem [shape: bf16[4,64,256], index: 15, kind: input, shape index: {}]   ;;  %s19700_s16 = inlined_call_operand.vmem [shape: bf16[256,64], index: 16, kind: input, shape index: {}]   ;;  %s19701_s17 = inlined_call_operand.vmem [shape: bf16[256,2], index: 17, kind: input, shape index: {}]   ;;  %s19702_s18 = inlined_call_operand.vmem [shape: bf16[64,2], index: 18, kind: input, shape index: {}]   ;;  %s19703_s19 = inlined_call_operand.vmem [shape: f32[2,1,256], index: 19, kind: output, shape index: {}]  }
   0x1   :  { %19778 = sst [smem:[#allocation93_spill]] %s19684_s0  ;;  %v24_v0 = vstv %s19698_s14 }
   0x2   :  { %19779 = sst [smem:[#allocation94_spill]] %s19685_s1  ;;  %25 = vst [vmem:[#allocation4] sm:$0x1] %v24_v0 }
   0x3   :  { %19780 = sst [smem:[#allocation95_spill]] %s19686_s2 }
   0x4   :  { %19781 = sst [smem:[#allocation96_spill]] %s19687_s3 }
   0x5   :  { %19782 = sst [smem:[#allocation97_spill]] %s19688_s4 }
   0x6   :  { %19783 = sst [smem:[#allocation98_spill]] %s19689_s5 }
   0x7   :  { %19784 = sst [smem:[#allocation99_spill]] %s19690_s6 }
   0x8   :  { %19785 = sst [smem:[#allocation100_spill]] %s19691_s7 }
   0x9   :  { %19786 = sst [smem:[#allocation101_spill]] %s19699_s15 }
   0xa LB: > { %s12475_s21 = sadd.s32 4294967295, %s13604_s20   ;;  %p12479_p0 = scmp.ge.s32.totalorder %s13604_s20, 1  ;;  %s13604_s20 = sphi %s13727_s20, %s31_s20  }
   0xb   : > { %p539_p1 = scmp.lt.s32.totalorder %s13604_s20, 3 }
   0xd   : > { %p540_p2 = pnand %p12479_p0, %p539_p1 }
   0xf   : > { %543 = sbr.rel (%p540_p2) target bundleno = 3865 (0xf19), region = 96 }
  0x14   : > { %v721_v1 = vld [vmem:[%s19701_s17] sm:$0xf]  ;;  %v19708_v2 = vmov 1   ;;  %v19710_v3 = vmov 0   ;;  %v722_v4 = vld [vmem:[%s19701_s17 + $0x4] sm:$0xf]  ;;  %v19707_v63 = vlaneseq }
  0x15   : > { %13343 = vset.pattern.permute.xlu0 %v19708_v2  ;;  %13344 = vset.pattern.permute.xlu1 %v19710_v3  ;;  %v13746_v5 = vld [vmem:[%s19701_s17 + $0x8] sm:$0xf]  ;;  %v724_v6 = vld [vmem:[%s19701_s17 + $0xc] sm:$0xf]  ;;  %p13753_p3 = scmp.lt.s32.totalorder %s12475_s21, 1  ;;  %vm604_vm0 = vcmask 195584  }
  0x16   : > { %803 = vperm.xlu1 %13344, %v721_v1   ;;  %1394 = vperm.xlu0 %13343, %v721_v1   ;;  %v13762_v7 = vld [vmem:[%s19701_s17 + $0x14] sm:$0xf]  ;;  %v13608_v8 = vmov 0.0   ;;  %vm688_vm1 = vcmask 15360   ;;  %v13849_v9 = vld [vmem:[%s19701_s17 + $0x18] sm:$0xf] }
  0x17   : > { %608 = vst.msk [vmem:[#allocation2 + $0x18] sm:$0xff] %vm604_vm0, %v13608_v8  ;;  %609 = vst.msk [vmem:[#allocation2 + $0x20] sm:$0xff] %vm604_vm0, %v13608_v8  ;;  %s20100_s21 = smov (!%p13753_p3, %s12475_s21), 1  ;;  %s19788_s14 = sld [smem:[#allocation93_spill]]  ;;  %v725_v18 = vld [vmem:[%s19701_s17 + $0x10] sm:$0xf] }
  0x18   : > { %605 = vst.msk [vmem:[#allocation2] sm:$0xff] %vm604_vm0, %v13608_v8  ;;  %606 = vst.msk [vmem:[#allocation2 + $0x8] sm:$0xff] %vm604_vm0, %v13608_v8  ;;  %s12839_s30 = sshll.u32 %s20100_s21, 8  ;;  %v730_v19 = vld [vmem:[%s19701_s17 + $0x24] sm:$0xf]  ;;  %vm643_vm2 = vcmask 130048  }
  0x19   : > { %607 = vst.msk [vmem:[#allocation2 + $0x10] sm:$0xff] %vm604_vm0, %v13608_v8  ;;  %610 = vst.msk [vmem:[#allocation2 + $0x28] sm:$0xff] %vm604_vm0, %v13608_v8  ;;  %v13888_v21 = vld [vmem:[%s19701_s17 + $0x28] sm:$0xf]  ;;  %v13895_v22 = vld [vmem:[%s19701_s17 + $0x34] sm:$0xf] }
  0x1a   : > { %815 = vperm.xlu1 %13344, %v722_v4   ;;  %1405 = vperm.xlu0 %13343, %v722_v4   ;;  %611 = vst.msk [vmem:[#allocation2 + $0x30] sm:$0xff] %vm604_vm0, %v13608_v8  ;;  %612 = vst.msk [vmem:[#allocation2 + $0x38] sm:$0xff] %vm604_vm0, %v13608_v8  ;;  %v13900_v23 = vld [vmem:[%s19701_s17 + $0x38] sm:$0xf]  ;;  %v728_v25 = vld [vmem:[%s19701_s17 + $0x1c] sm:$0xf] }
  0x1b   : > { %613 = vst.msk [vmem:[#allocation2 + $0x40] sm:$0xff] %vm604_vm0, %v13608_v8  ;;  %614 = vst.msk [vmem:[#allocation2 + $0x48] sm:$0xff] %vm604_vm0, %v13608_v8  ;;  %v13914_v27 = vld [vmem:[%s19701_s17 + $0x44] sm:$0xf]  ;;  %v739_v30 = vld [vmem:[%s19701_s17 + $0x48] sm:$0xf] }
  0x1c   : > { %615 = vst.msk [vmem:[#allocation2 + $0x50] sm:$0xff] %vm604_vm0, %v13608_v8  ;;  %616 = vst.msk [vmem:[#allocation2 + $0x58] sm:$0xff] %vm604_vm0, %v13608_v8  ;;  %v729_v31 = vld [vmem:[%s19701_s17 + $0x20] sm:$0xf]  ;;  %v13933_v32 = vld [vmem:[%s19701_s17 + $0x54] sm:$0xf] }
  0x1d   : > { %617 = vst.msk [vmem:[#allocation2 + $0x60] sm:$0xff] %vm604_vm0, %v13608_v8  ;;  %618 = vst.msk [vmem:[#allocation2 + $0x68] sm:$0xff] %vm604_vm0, %v13608_v8  ;;  %s13856_s2 = scalar_lea.vmem %s19788_s14, %s12839_s30  ;;  %v743_v33 = vld [vmem:[%s19701_s17 + $0x58] sm:$0xf]  ;;  %v13946_v36 = vld [vmem:[%s19701_s17 + $0x64] sm:$0xf] }
  0x1e   : > { %13345 = vset.pattern.permute.xlu1 %v19708_v2  ;;  %1416 = vperm.xlu0 %13343, %v13746_v5   ;;  %619 = vst.msk [vmem:[#allocation2 + $0x70] sm:$0xff] %vm604_vm0, %v13608_v8  ;;  %620 = vst.msk [vmem:[#allocation2 + $0x78] sm:$0xff] %vm604_vm0, %v13608_v8  ;;  %v656_v10 = vld [vmem:[%s13856_s2] sm:$0xff]  ;;  %v657_v11 = vld [vmem:[%s13856_s2 + $0x8] sm:$0xff]  ;;  %s19761_s14 = smov 8   ;;  %s19757_s0 = smov 16  }
  0x1f   : > { %621 = vst.msk [vmem:[#allocation2 + $0x80] sm:$0xff] %vm604_vm0, %v13608_v8  ;;  %622 = vst.msk [vmem:[#allocation2 + $0x88] sm:$0xff] %vm604_vm0, %v13608_v8  ;;  %1427 = vperm.xlu1 %13345, %v724_v6   ;;  %v658_v12 = vld [vmem:[%s13856_s2 + $0x10] sm:$0xff]  ;;  %v659_v13 = vld [vmem:[%s13856_s2 + $0x18] sm:$0xff]  ;;  %v13610_v61 = vmov 839922192  }
  0x20   : > { %623 = vst.msk [vmem:[#allocation2 + $0x90] sm:$0xff] %vm604_vm0, %v13608_v8  ;;  %624 = vst.msk [vmem:[#allocation2 + $0x98] sm:$0xff] %vm604_vm0, %v13608_v8  ;;  %v660_v14 = vld [vmem:[%s13856_s2 + $0x20] sm:$0xff]  ;;  %v661_v15 = vld [vmem:[%s13856_s2 + $0x28] sm:$0xff]  ;;  %v807_v62 = vunpack.c.l.s4 %v13610_v61  ;;  %s19755_s25 = smov 24   ;;  %s19790_s27 = sld [smem:[#allocation94_spill]] }
  0x21   : > { %625 = vst.msk [vmem:[#allocation2 + $0xa0] sm:$0xff] %vm604_vm0, %v13608_v8  ;;  %626 = vst.msk [vmem:[#allocation2 + $0xa8] sm:$0xff] %vm604_vm0, %v13608_v8  ;;  %v662_v16 = vld [vmem:[%s13856_s2 + $0x30] sm:$0xff]  ;;  %v663_v17 = vld [vmem:[%s13856_s2 + $0x38] sm:$0xff]  ;;  %vm2797_vm3 = vcmask 1043456   ;;  %s19759_s28 = smov 32  }
  0x22   : > { %627 = vst.msk [vmem:[#allocation2 + $0xb0] sm:$0xff] %vm604_vm0, %v13608_v8  ;;  %628 = vst.msk [vmem:[#allocation2 + $0xb8] sm:$0xff] %vm604_vm0, %v13608_v8  ;;  %1449 = vperm.xlu0 %13343, %v13762_v7   ;;  %v664_v20 = vld [vmem:[%s13856_s2 + $0x40] sm:$0xff]  ;;  %v665_v24 = vld [vmem:[%s13856_s2 + $0x48] sm:$0xff]  ;;  %v808_v4 = vunpack.c.0.s8 %v807_v62  ;;  %s19753_s1 = smov 40   ;;  %s19751_s23 = smov 48  }
  0x23   : > { %629 = vst.msk [vmem:[#allocation2 + $0xc0] sm:$0xff] %vm604_vm0, %v13608_v8  ;;  %630 = vst.msk [vmem:[#allocation2 + $0xc8] sm:$0xff] %vm604_vm0, %v13608_v8  ;;  %13346 = vset.pattern.permute.xlu1 %v19710_v3  ;;  %v666_v26 = vld [vmem:[%s13856_s2 + $0x50] sm:$0xff]  ;;  %v667_v28 = vld [vmem:[%s13856_s2 + $0x58] sm:$0xff]  ;;  %s19724_s26 = smov 56   ;;  %s19726_s22 = smov 64  }
  0x24   : > { %631 = vst.msk [vmem:[#allocation2 + $0xd0] sm:$0xff] %vm604_vm0, %v13608_v8  ;;  %632 = vst.msk [vmem:[#allocation2 + $0xd8] sm:$0xff] %vm604_vm0, %v13608_v8  ;;  %839 = vperm.xlu1 %13346, %v724_v6   ;;  %v668_v29 = vld [vmem:[%s13856_s2 + $0x60] sm:$0xff]  ;;  %v669_v34 = vld [vmem:[%s13856_s2 + $0x68] sm:$0xff]  ;;  %vm2443_vm4 = vcmask 64512   ;;  %vm2556_vm5 = vcmask 261120  }
  0x25   : > { %633 = vst.msk [vmem:[#allocation2 + $0xe0] sm:$0xff] %vm604_vm0, %v13608_v8  ;;  %634 = vst.msk [vmem:[#allocation2 + $0xe8] sm:$0xff] %vm604_vm0, %v13608_v8  ;;  %v670_v35 = vld [vmem:[%s13856_s2 + $0x70] sm:$0xff]  ;;  %v747_v37 = vld [vmem:[%s19701_s17 + $0x68] sm:$0xf]  ;;  %vm2589_vm6 = vcmask 326656  }
  0x26   : > { %635 = vst.msk [vmem:[#allocation2 + $0xf0] sm:$0xff] %vm604_vm0, %v13608_v8  ;;  %636 = vst.msk [vmem:[#allocation2 + $0xf8] sm:$0xff] %vm604_vm0, %v13608_v8  ;;  %1460 = vperm.xlu0 %13343, %v13849_v9   ;;  %v732_v38 = vld [vmem:[%s19701_s17 + $0x2c] sm:$0xf]  ;;  %v13961_v39 = vld [vmem:[%s19701_s17 + $0x74] sm:$0xf] }
  0x27   : > { %637 = vst.msk [vmem:[#allocation2 + $0x100] sm:$0xff] %vm604_vm0, %v13608_v8  ;;  %638 = vst.msk [vmem:[#allocation2 + $0x108] sm:$0xff] %vm604_vm0, %v13608_v8  ;;  %v671_v40 = vld [vmem:[%s13856_s2 + $0x78] sm:$0xff]  ;;  %v672_v41 = vld [vmem:[%s13856_s2 + $0x80] sm:$0xff]  ;;  %vm2622_vm7 = vcmask 392192   ;;  %vm2688_vm8 = vcmask 523264  }
  0x28   : > { %639 = vst.msk [vmem:[#allocation2 + $0x110] sm:$0xff] %vm604_vm0, %v13608_v8  ;;  %640 = vst.msk [vmem:[#allocation2 + $0x118] sm:$0xff] %vm604_vm0, %v13608_v8  ;;  %13347 = vset.pattern.permute.xlu1 %v19708_v2  ;;  %v751_v42 = vld [vmem:[%s19701_s17 + $0x78] sm:$0xf]  ;;  %v733_v43 = vld [vmem:[%s19701_s17 + $0x30] sm:$0xf] }
  0x29   : > { %641 = vst.msk [vmem:[#allocation2 + $0x120] sm:$0xff] %vm604_vm0, %v13608_v8  ;;  %642 = vst.msk [vmem:[#allocation2 + $0x128] sm:$0xff] %vm604_vm0, %v13608_v8  ;;  %1438 = vperm.xlu1 %13347, %v725_v18   ;;  %v673_v44 = vld [vmem:[%s13856_s2 + $0x88] sm:$0xff]  ;;  %v674_v45 = vld [vmem:[%s13856_s2 + $0x90] sm:$0xff]  ;;  %vm2655_vm9 = vcmask 457728   ;;  %vm2764_vm10 = vcmask 588800  }
  0x2a   : > { %689 = vst.msk [vmem:[#allocation2 + $0x18] sm:$0xff] %vm688_vm1, %v656_v10  ;;  %690 = vst.msk [vmem:[#allocation2 + $0x20] sm:$0xff] %vm688_vm1, %v657_v11  ;;  %1493 = vperm.xlu0 %13343, %v730_v19   ;;  %v736_v46 = vld [vmem:[%s19701_s17 + $0x3c] sm:$0xf]  ;;  %v676_v48 = vld [vmem:[%s13856_s2 + $0xa0] sm:$0xff]  ;;  %s19821_s29 = sld [smem:[#allocation95_spill]] }
  0x2b   : > { %691 = vst.msk [vmem:[#allocation2 + $0x28] sm:$0xff] %vm688_vm1, %v658_v12  ;;  %692 = vst.msk [vmem:[#allocation2 + $0x30] sm:$0xff] %vm688_vm1, %v659_v13  ;;  %v675_v47 = vld [vmem:[%s13856_s2 + $0x98] sm:$0xff]  ;;  %v737_v49 = vld [vmem:[%s19701_s17 + $0x40] sm:$0xf]  ;;  %s19834_s24 = sld [smem:[#allocation96_spill]] }
  0x2c   : > { %693 = vst.msk [vmem:[#allocation2 + $0x38] sm:$0xff] %vm688_vm1, %v660_v14  ;;  %694 = vst.msk [vmem:[#allocation2 + $0x40] sm:$0xff] %vm688_vm1, %v661_v15  ;;  %v677_v52 = vld [vmem:[%s13856_s2 + $0xa8] sm:$0xff]  ;;  %v678_v53 = vld [vmem:[%s13856_s2 + $0xb0] sm:$0xff]  ;;  %s19884_s4 = sld [smem:[#allocation97_spill]]  ;;  %s19888_s3 = smov 32  }
  0x2d   : > { %695 = vst.msk [vmem:[#allocation2 + $0x48] sm:$0xff] %vm688_vm1, %v662_v16  ;;  %696 = vst.msk [vmem:[#allocation2 + $0x50] sm:$0xff] %vm688_vm1, %v663_v17  ;;  %13348 = vset.pattern.permute.xlu1 %v19710_v3  ;;  %v740_v55 = vld [vmem:[%s19701_s17 + $0x4c] sm:$0xf]  ;;  %v679_v56 = vld [vmem:[%s13856_s2 + $0xb8] sm:$0xff]  ;;  %s19885_s15 = sld [smem:[#allocation101_spill]] }
  0x2e   : > { %697 = vst.msk [vmem:[#allocation2 + $0x58] sm:$0xff] %vm688_vm1, %v664_v20  ;;  %851 = vperm.xlu1 %13348, %v725_v18   ;;  %1504 = vperm.xlu0 %13343, %v13888_v21   ;;  %698 = vst.msk [vmem:[#allocation2 + $0x60] sm:$0xff] %vm688_vm1, %v665_v24  ;;  %v680_v57 = vld [vmem:[%s13856_s2 + $0xc0] sm:$0xff]  ;;  %v741_v58 = vld [vmem:[%s19701_s17 + $0x50] sm:$0xf]  ;;  %s19887_s5 = sld [smem:[#allocation98_spill]] }
  0x2f   : > { %699 = vst.msk [vmem:[#allocation2 + $0x68] sm:$0xff] %vm688_vm1, %v666_v26  ;;  %700 = vst.msk [vmem:[#allocation2 + $0x70] sm:$0xff] %vm688_vm1, %v667_v28  ;;  %v681_v59 = vld [vmem:[%s13856_s2 + $0xc8] sm:$0xff]  ;;  %v682_v60 = vld [vmem:[%s13856_s2 + $0xd0] sm:$0xff]  ;;  %s19893_s7 = sld [smem:[#allocation100_spill]]  ;;  %vm6947_vm11 = vcmask 654336  }
  0x30   : > { %701 = vst.msk [vmem:[#allocation2 + $0x78] sm:$0xff] %vm688_vm1, %v668_v29  ;;  %702 = vst.msk [vmem:[#allocation2 + $0x80] sm:$0xff] %vm688_vm1, %v669_v34  ;;  %v744_v6 = vld [vmem:[%s19701_s17 + $0x5c] sm:$0xf]  ;;  %v684_v11 = vld [vmem:[%s13856_s2 + $0xe0] sm:$0xff]  ;;  %s19894_s6 = sld [smem:[#allocation99_spill]] }
  0x31   : > { %703 = vst.msk [vmem:[#allocation2 + $0x88] sm:$0xff] %vm688_vm1, %v670_v35  ;;  %704 = vst.msk [vmem:[#allocation2 + $0x90] sm:$0xff] %vm688_vm1, %v671_v40  ;;  %v1299_v50 = vld [vmem:[#allocation2 + $0x18] sm:$0xff]  ;;  %v1300_v51 = vld [vmem:[#allocation2 + $0x20] sm:$0xff]  ;;  %vm6956_vm12 = vcmask 785408   ;;  %vm6965_vm13 = vcmask 916480  }
  0x32   : > { %863 = vperm.xlu1 %13348, %v13762_v7   ;;  %1537 = vperm.xlu0 %13343, %v13895_v22   ;;  %705 = vst.msk [vmem:[#allocation2 + $0x98] sm:$0xff] %vm688_vm1, %v672_v41  ;;  %706 = vst.msk [vmem:[#allocation2 + $0xa0] sm:$0xff] %vm688_vm1, %v673_v44  ;;  %v14005_v54 = vpack.c.bf16 %v1300_v51, %v1299_v50  ;;  %v683_v10 = vld [vmem:[%s13856_s2 + $0xd8] sm:$0xff]  ;;  %v1348_v14 = vld [vmem:[#allocation2 + $0x21] sm:$0xff]  ;;  %vm7595_vm14 = vcmask 195648   ;;  %vm9754_vm15 = vcmask 719872  }
  0x33   : > { %707 = vst.msk [vmem:[#allocation2 + $0xa8] sm:$0xff] %vm688_vm1, %v674_v45  ;;  %708 = vst.msk [vmem:[#allocation2 + $0xb0] sm:$0xff] %vm688_vm1, %v675_v47  ;;  %v1347_v13 = vld [vmem:[#allocation2 + $0x19] sm:$0xff]  ;;  %v686_v28 = vld [vmem:[%s13856_s2 + $0xf0] sm:$0xff] }
  0x34   : > { %709 = vst.msk [vmem:[#allocation2 + $0xb8] sm:$0xff] %vm688_vm1, %v676_v48  ;;  %710 = vst.msk [vmem:[#allocation2 + $0xc0] sm:$0xff] %vm688_vm1, %v677_v52  ;;  %v14078_v18 = vpack.c.bf16 %v1348_v14, %v1347_v13  ;;  %v1859_v34 = vld [vmem:[#allocation2 + $0x27] sm:$0xff]  ;;  %v1860_v35 = vld [vmem:[#allocation2 + $0x2f] sm:$0xff] }
  0x35   : > { %711 = vst.msk [vmem:[#allocation2 + $0xc8] sm:$0xff] %vm688_vm1, %v678_v53  ;;  %712 = vst.msk [vmem:[#allocation2 + $0xd0] sm:$0xff] %vm688_vm1, %v679_v56  ;;  %v687_v40 = vld [vmem:[%s13856_s2 + $0xf8] sm:$0xff] }
  0x36   : > { %13349 = vset.pattern.permute.xlu1 %v19708_v2  ;;  %1548 = vperm.xlu0 %13343, %v13900_v23   ;;  %713 = vst.msk [vmem:[#allocation2 + $0xd8] sm:$0xff] %vm688_vm1, %v680_v57  ;;  %714 = vst.msk [vmem:[#allocation2 + $0xe0] sm:$0xff] %vm688_vm1, %v681_v59  ;;  %v752_v53 = vld [vmem:[%s19701_s17 + $0x7c] sm:$0xf]  ;;  %v1863_v57 = vld [vmem:[#allocation2 + $0x47] sm:$0xff] }
  0x37   : > { %1471 = vperm.xlu1 %13349, %v728_v25   ;;  %715 = vst.msk [vmem:[#allocation2 + $0xe8] sm:$0xff] %vm688_vm1, %v682_v60  ;;  %716 = vst.msk [vmem:[#allocation2 + $0xf0] sm:$0xff] %vm688_vm1, %v683_v10 }
  0x38   : > { %644 = vst.msk [vmem:[#allocation3] sm:$0xff] %vm643_vm2, %v13608_v8  ;;  %645 = vst.msk [vmem:[#allocation3 + $0x8] sm:$0xff] %vm643_vm2, %v13608_v8 }
  0x39   : > { %646 = vst.msk [vmem:[#allocation3 + $0x10] sm:$0xff] %vm643_vm2, %v13608_v8  ;;  %647 = vst.msk [vmem:[#allocation3 + $0x18] sm:$0xff] %vm643_vm2, %v13608_v8 }
  0x3a   : > { %1581 = vperm.xlu0 %13343, %v13914_v27   ;;  %648 = vst.msk [vmem:[#allocation3 + $0x20] sm:$0xff] %vm643_vm2, %v13608_v8  ;;  %649 = vst.msk [vmem:[#allocation3 + $0x28] sm:$0xff] %vm643_vm2, %v13608_v8 }
  0x3b   : > { %13350 = vset.pattern.permute.xlu1 %v19710_v3  ;;  %650 = vst.msk [vmem:[#allocation3 + $0x30] sm:$0xff] %vm643_vm2, %v13608_v8  ;;  %651 = vst.msk [vmem:[#allocation3 + $0x38] sm:$0xff] %vm643_vm2, %v13608_v8 }
  0x3c   : > { %887 = vperm.xlu1 %13350, %v728_v25   ;;  %652 = vst.msk [vmem:[#allocation3 + $0x40] sm:$0xff] %vm643_vm2, %v13608_v8  ;;  %653 = vst.msk [vmem:[#allocation3 + $0x48] sm:$0xff] %vm643_vm2, %v13608_v8 }
  0x3d   : > { %654 = vst.msk [vmem:[#allocation3 + $0x50] sm:$0xff] %vm643_vm2, %v13608_v8  ;;  %655 = vst.msk [vmem:[#allocation3 + $0x58] sm:$0xff] %vm643_vm2, %v13608_v8 }
  0x3e   : > { %1592 = vperm.xlu0 %13343, %v739_v30   ;;  %717 = vst.msk [vmem:[#allocation2 + $0xf8] sm:$0xff] %vm688_vm1, %v684_v11  ;;  %719 = vst.msk [vmem:[#allocation2 + $0x108] sm:$0xff] %vm688_vm1, %v686_v28  ;;  %v1858_v28 = vld [vmem:[#allocation2 + $0x1f] sm:$0xff] }
  0x3f   : > { %720 = vst.msk [vmem:[#allocation2 + $0x110] sm:$0xff] %vm688_vm1, %v687_v40 }
  0x40   : > { %13351 = vset.pattern.permute.xlu1 %v19708_v2 }
  0x41   : > { %1482 = vperm.xlu1 %13351, %v729_v31  }
  0x42   : > { %1625 = vperm.xlu0 %13343, %v13933_v32  }
  0x45   : > { %13352 = vset.pattern.permute.xlu1 %v19710_v3  ;;  %v1885_v44 = vld [vmem:[#allocation2 + $0xf7] sm:$0xff] }
  0x46   : > { %899 = vperm.xlu1 %13352, %v729_v31   ;;  %1636 = vperm.xlu0 %13343, %v743_v33   ;;  %v748_v31 = vld [vmem:[%s19701_s17 + $0x6c] sm:$0xf] }
  0x4a   : > { %911 = vperm.xlu1 %13352, %v730_v19   ;;  %1669 = vperm.xlu0 %13343, %v13946_v36  }
  0x4e   : > { %13353 = vset.pattern.permute.xlu1 %v19708_v2  ;;  %1680 = vperm.xlu0 %13343, %v747_v37  }
  0x4f   : > { %1515 = vperm.xlu1 %13353, %v732_v38  }
  0x52   : > { %1713 = vperm.xlu0 %13343, %v13961_v39  }
  0x53   : > { %13354 = vset.pattern.permute.xlu1 %v19710_v3 }
  0x54   : > { %935 = vperm.xlu1 %13354, %v732_v38  }
  0x56   : > { %1724 = vperm.xlu0 %13343, %v751_v42  }
  0x58   : > { %13355 = vset.pattern.permute.xlu1 %v19708_v2 }
  0x59   : > { %1526 = vperm.xlu1 %13355, %v733_v43  }
  0x5a   : > { %13373 = vset.pattern.permute.xlu0 %v19710_v3 }
  0x5b   : > { %827 = vperm.xlu0 %13373, %v13746_v5   ;;  %v14034_v5 = vshrl.u32 %v19707_v63, 7 }
  0x5d   : > { %13356 = vset.pattern.permute.xlu1 %v19710_v3  ;;  %19789 = vst [vmem:[#allocation5_spill] sm:$0xff] %v14034_v5  ;;  %v14071_v12 = vsub.s32 %v808_v4, %v14034_v5  ;;  %v1297_v4 = vld [vmem:[#allocation2 + $0x8] sm:$0xff] }
  0x5e   : > { %947 = vperm.xlu1 %13356, %v733_v43  }
  0x5f   : > { %875 = vperm.xlu0 %13373, %v13849_v9  }
  0x62   : > { %959 = vperm.xlu1 %13356, %v13895_v22  }
  0x63   : > { %923 = vperm.xlu0 %13373, %v13888_v21   ;;  %v745_v21 = vld [vmem:[%s19701_s17 + $0x60] sm:$0xf] }
  0x66   : > { %13357 = vset.pattern.permute.xlu1 %v19708_v2 }
  0x67   : > { %1559 = vperm.xlu1 %13357, %v736_v46   ;;  %971 = vperm.xlu0 %13373, %v13900_v23  }
  0x6b   : > { %13358 = vset.pattern.permute.xlu1 %v19710_v3  ;;  %1019 = vperm.xlu0 %13373, %v739_v30  }
  0x6c   : > { %983 = vperm.xlu1 %13358, %v736_v46   ;;  %v749_v46 = vld [vmem:[%s19701_s17 + $0x70] sm:$0xf] }
  0x6f   : > { %1067 = vperm.xlu0 %13373, %v743_v33  }
  0x70   : > { %13359 = vset.pattern.permute.xlu1 %v19708_v2 }
  0x71   : > { %1570 = vperm.xlu1 %13359, %v737_v49  }
  0x73   : > { %1115 = vperm.xlu0 %13373, %v747_v37  }
  0x75   : > { %13360 = vset.pattern.permute.xlu1 %v19710_v3 }
  0x76   : > { %995 = vperm.xlu1 %13360, %v737_v49  }
  0x77   : > { %1163 = vperm.xlu0 %13373, %v751_v42  }
  0x7a   : > { %1007 = vperm.xlu1 %13360, %v13914_v27   ;;  %v685_v27 = vld [vmem:[%s13856_s2 + $0xe8] sm:$0xff]  ;;  %s19841_s2 = smov 56  }
  0x7b   : > { %2092 = vrot.lane.b32.xlu0 %v14005_v54, %s19761_s14  ;;  %718 = vst.msk [vmem:[#allocation2 + $0x100] sm:$0xff] %vm688_vm1, %v685_v27  ;;  %v1857_v27 = vld [vmem:[#allocation2 + $0x17] sm:$0xff]  ;;  %vm9494_vm1 = vcmask 982016  }
  0x7e   : > { %13361 = vset.pattern.permute.xlu1 %v19708_v2 }
  0x7f   : > { %1603 = vperm.xlu1 %13361, %v740_v55  }
  0x83   : > { %13362 = vset.pattern.permute.xlu1 %v19710_v3 }
  0x84   : > { %1031 = vperm.xlu1 %13362, %v740_v55  }
  0x88   : > { %13363 = vset.pattern.permute.xlu1 %v19708_v2 }
  0x89   : > { %1614 = vperm.xlu1 %13363, %v741_v58  }
  0x8d   : > { %13364 = vset.pattern.permute.xlu1 %v19710_v3 }
  0x8e   : > { %1043 = vperm.xlu1 %13364, %v741_v58   ;;  %v1864_v58 = vld [vmem:[#allocation2 + $0x4f] sm:$0xff] }
  0x8f   : > { %v14156_v62 = vpack.c.bf16 %v1864_v58, %v1863_v57  ;;  %v1923_v58 = vld [vmem:[#allocation2 + $0x28] sm:$0xff] }
  0x91   : > { %v14028_v0 = vpop.permute.xlu1 %803  ;;  %v14030_v1 = vpop.permute.xlu0 %1394 }
  0x92   : > { %1055 = vperm.xlu1 %13364, %v13933_v32   ;;  %v1403_v10 = vrot.slane %v14030_v1, %v14071_v12 }
  0x95   : > { %v14039_v7 = vpop.permute.xlu1 %815  ;;  %v14041_v9 = vpop.permute.xlu0 %1405 }
  0x96   : > { %13365 = vset.pattern.permute.xlu1 %v19708_v2  ;;  %v1414_v11 = vrot.slane %v14041_v9, %v14071_v12 }
  0x97   : > { %1647 = vperm.xlu1 %13365, %v744_v6  }
  0x98   : > { %v14173_v1 = vcombine.low %v1403_v10, %v1414_v11  ;;  %v1971_v11 = vld [vmem:[#allocation2 + $0x29] sm:$0xff] }
  0x99   : > { %v1417_v15 = vpop.permute.xlu0 %1416 }
  0x9a   : > { %v1425_v16 = vrot.slane %v1417_v15, %v14071_v12  ;;  %v1428_v17 = vpop.permute.xlu1 %1427  ;;  %v1345_v15 = vld [vmem:[#allocation2 + $0x9] sm:$0xff] }
  0x9b   : > { %v1436_v8 = vrot.slane %v1428_v17, %v14071_v12  ;;  %13366 = vset.pattern.permute.xlu1 %v19710_v3 }
  0x9c   : > { %1079 = vperm.xlu1 %13366, %v744_v6   ;;  %v1298_v6 = vld [vmem:[#allocation2 + $0x10] sm:$0xff] }
  0x9d   : > { %v14080_v19 = vcombine.low %v1425_v16, %v1436_v8  ;;  %v14082_v20 = vpop.permute.xlu0 %1449  ;;  %v1346_v16 = vld [vmem:[#allocation2 + $0x11] sm:$0xff]  ;;  %v1329_v17 = vpack.c.bf16 %v1298_v6, %v1297_v4 }
  0x9f   : > { %v14087_v22 = vpop.permute.xlu1 %839  ;;  %v1842_v23 = vmul.bf16 %v14080_v19, %v14078_v18 }
  0xa0   : > { %13367 = vset.pattern.permute.xlu1 %v19708_v2 }
  0xa1   : > { %1658 = vperm.xlu1 %13367, %v745_v21   ;;  %v14092_v24 = vpop.permute.xlu0 %1460  ;;  %2140 = vrot.lane.b32.xlu0 %v1842_v23, %s19757_s0  ;;  %v1377_v23 = vpack.c.bf16 %v1346_v16, %v1345_v15  ;;  %v1972_v15 = vld [vmem:[#allocation2 + $0x31] sm:$0xff] }
  0xa2   : > { %v13483_v16 = vld [vmem:[%s19790_s27 + $0x18] sm:$0xff]  }
  0xa4   : > { %v14095_v25 = vpop.permute.xlu1 %1438 }
  0xa5   : > { %13368 = vset.pattern.permute.xlu1 %v19710_v3  ;;  %v14098_v26 = vpop.permute.xlu0 %1493 }
  0xa6   : > { %1091 = vperm.xlu1 %13368, %v745_v21   ;;  %v824_v21 = vrot.slane %v14039_v7, %v14071_v12  ;;  %v1841_v7 = vmul.bf16 %v14173_v1, %v1377_v23 }
  0xa9   : > { %v852_v29 = vpop.permute.xlu1 %851  ;;  %v14104_v30 = vpop.permute.xlu0 %1504 }
  0xaa   : > { %1103 = vperm.xlu1 %13368, %v13946_v36   ;;  %v860_v37 = vrot.slane %v852_v29, %v14071_v12  ;;  %v14118_v36 = vpack.c.bf16 %v1860_v35, %v1859_v34  ;;  %v812_v29 = vrot.slane %v14028_v0, %v14071_v12  ;;  %v14186_v34 = vpack.c.bf16 %v1858_v28, %v1857_v27  ;;  %v1867_v27 = vld [vmem:[#allocation2 + $0x67] sm:$0xff]  ;;  %v1868_v28 = vld [vmem:[#allocation2 + $0x6f] sm:$0xff] }
  0xad   : > { %v864_v32 = vpop.permute.xlu1 %863  ;;  %v14110_v33 = vpop.permute.xlu0 %1537 }
  0xae   : > { %v872_v38 = vrot.slane %v864_v32, %v14071_v12  ;;  %13369 = vset.pattern.permute.xlu1 %v19708_v2  ;;  %v14183_v32 = vcombine.low %v812_v29, %v824_v21 }
  0xaf   : > { %1691 = vperm.xlu1 %13369, %v748_v31  }
  0xb0   : > { %v14116_v41 = vcombine.low %v860_v37, %v872_v38  ;;  %v1905_v0 = vmul.bf16 %v14183_v32, %v14186_v34  ;;  %v848_v38 = vrot.slane %v14087_v22, %v14071_v12 }
  0xb1   : > { %v14121_v42 = vpop.permute.xlu0 %1548 }
  0xb2   : > { %v14123_v43 = vpop.permute.xlu1 %1471 }
  0xb3   : > { %13370 = vset.pattern.permute.xlu1 %v19710_v3 }
  0xb4   : > { %1127 = vperm.xlu1 %13370, %v748_v31  }
  0xb5   : > { %v14128_v45 = vpop.permute.xlu0 %1581 }
  0xb7   : > { %v14133_v47 = vpop.permute.xlu1 %887 }
  0xb8   : > { %13371 = vset.pattern.permute.xlu1 %v19708_v2  ;;  %v896_v4 = vrot.slane %v14133_v47, %v14071_v12 }
  0xb9   : > { %1702 = vperm.xlu1 %13371, %v749_v46   ;;  %v14136_v48 = vpop.permute.xlu0 %1592 }
  0xbc   : > { %v14138_v49 = vpop.permute.xlu1 %1482 }
  0xbd   : > { %13372 = vset.pattern.permute.xlu1 %v19710_v3  ;;  %v14141_v50 = vpop.permute.xlu0 %1625 }
  0xbe   : > { %1139 = vperm.xlu1 %13372, %v749_v46   ;;  %v13482_v46 = vld [vmem:[%s19790_s27 + $0x20] ss:$0 sps:$4 sm:$0xff]  }
  0xbf   : > { %13304 = vmatprep.subr.msk.bf16.mxu0 %vm2797_vm3, %v13482_v46  ;;  %v2799_v22 = vsel %vm2797_vm3, %v13482_v46, 0  ;;  %v1865_v46 = vld [vmem:[#allocation2 + $0x57] sm:$0xff] }
  0xc0   : > { %13111 = vmatpush3.bf16.msra.mxu0 %v2799_v22 }
  0xc1   : > { %v900_v51 = vpop.permute.xlu1 %899  ;;  %v14143_v52 = vpop.permute.xlu0 %1636  ;;  %13112 = vmatprep.subr.bf16.mxu0 %v13483_v16 }
  0xc2   : > { %1151 = vperm.xlu1 %13372, %v13961_v39   ;;  %v908_v59 = vrot.slane %v900_v51, %v14071_v12 }
  0xc4   : > { %13113 = vmatpush3.bf16.msra.mxu0 %v13483_v16  ;;  %v1973_v16 = vld [vmem:[#allocation2 + $0x39] sm:$0xff] }
  0xc5   : > { %v912_v55 = vpop.permute.xlu1 %911  ;;  %v14149_v56 = vpop.permute.xlu0 %1669 }
  0xc6   : > { %v920_v60 = vrot.slane %v912_v55, %v14071_v12  ;;  %13374 = vset.pattern.permute.xlu1 %v19708_v2  ;;  %v1861_v55 = vld [vmem:[#allocation2 + $0x37] sm:$0xff] }
  0xc7   : > { %1735 = vperm.xlu1 %13374, %v752_v53  }
  0xc8   : > { %v14154_v61 = vcombine.low %v908_v59, %v920_v60  ;;  %v1924_v59 = vld [vmem:[#allocation2 + $0x30] sm:$0xff]  ;;  %v1862_v60 = vld [vmem:[#allocation2 + $0x3f] sm:$0xff] }
  0xc9   : > { %v14158_v39 = vpop.permute.xlu0 %1680  ;;  %v14217_v47 = vpack.c.bf16 %v1924_v59, %v1923_v58  ;;  %v14219_v23 = vpack.c.bf16 %v1862_v60, %v1861_v55  ;;  %v1866_v55 = vld [vmem:[#allocation2 + $0x5f] sm:$0xff]  ;;  %v2036_v60 = vmul.bf16 %v14183_v32, %v14118_v36 }
  0xca   : > { %v14164_v13 = vpop.permute.xlu1 %1515  ;;  %v14248_v22 = vpack.c.bf16 %v1866_v55, %v1865_v46  ;;  %v13486_v46 = vld [vmem:[%s19790_s27] sm:$0xff]  }
  0xcb   : > { %13375 = vset.pattern.permute.xlu1 %v19710_v3  ;;  %v1876_v3 = vld [vmem:[#allocation2 + $0xaf] sm:$0xff] }
  0xcc   : > { %1175 = vperm.xlu1 %13375, %v752_v53  }
  0xcd   : > { %v14169_v8 = vpop.permute.xlu0 %1713 }
  0xcf   : > { %v14175_v9 = vpop.permute.xlu1 %935 }
  0xd0   : > { %2090 = vrot.lane.b32.xlu1 %v1329_v17, %s19761_s14 }
  0xd1   : > { %v14180_v31 = vpop.permute.xlu0 %1724  ;;  %13376 = vset.pattern.permute.xlu1 %v19708_v2  ;;  %v1875_v2 = vld [vmem:[#allocation2 + $0xa7] sm:$0xff] }
  0xd4   : > { %v14188_v35 = vpop.permute.xlu1 %1526  ;;  %2138 = vrot.lane.b32.xlu1 %v1841_v7, %s19757_s0 }
  0xd6   : > { %v828_v37 = vpop.permute.xlu0 %827 }
  0xd7   : > { %v836_v40 = vrot.slane %v828_v37, %v14071_v12  ;;  %v2017_v37 = vmul.bf16 %v14173_v1, %v14078_v18  ;;  %v14235_v18 = vpack.c.bf16 %v1868_v28, %v1867_v27  ;;  %v1926_v27 = vld [vmem:[#allocation2 + $0x40] sm:$0xff] }
  0xd8   : > { %2186 = vrot.lane.b32.xlu1 %v1905_v0, %s19755_s25  ;;  %v944_v0 = vrot.slane %v14175_v9, %v14071_v12  ;;  %v13484_v9 = vld [vmem:[%s19790_s27 + $0x10] sm:$0xff]   ;;  %v1974_v28 = vld [vmem:[#allocation2 + $0x41] sm:$0xff] }
  0xd9   : > { %v14200_v51 = vcombine.low %v836_v40, %v848_v38  ;;  %v948_v53 = vpop.permute.xlu1 %947  ;;  %v14228_v40 = vpack.c.bf16 %v1972_v15, %v1971_v11  ;;  %19792 = vst [vmem:[#allocation7_spill] sm:$0xff] %v14235_v18  ;;  %13114 = vmatprep.subr.bf16.mxu0 %v13484_v9 }
  0xda   : > { %v876_v57 = vpop.permute.xlu0 %875  ;;  %v956_v29 = vrot.slane %v948_v53, %v14071_v12  ;;  %13115 = vmatpush3.bf16.msra.mxu0 %v13484_v9  ;;  %v2003_v9 = vpack.c.bf16 %v1974_v28, %v1973_v16 }
  0xdb   : > { %v884_v6 = vrot.slane %v876_v57, %v14071_v12  ;;  %v1906_v10 = vmul.bf16 %v14200_v51, %v14118_v36 }
  0xdc   : > { %2234 = vrot.lane.b32.xlu1 %v14005_v54, %s19759_s28 }
  0xdd   : > { %v14214_v17 = vcombine.low %v884_v6, %v896_v4  ;;  %v960_v21 = vpop.permute.xlu1 %959  ;;  %2188 = vrot.lane.b32.xlu0 %v1906_v10, %s19755_s25  ;;  %v2018_v6 = vmul.bf16 %v14080_v19, %v14228_v40  ;;  %v13485_v10 = vld [vmem:[%s19790_s27 + $0x8] sm:$0xff]   ;;  %s13618_s27 = smov 112  }
  0xde   : > { %v968_v54 = vrot.slane %v960_v21, %v14071_v12  ;;  %v924_v7 = vpop.permute.xlu0 %923  ;;  %v1925_v21 = vld [vmem:[#allocation2 + $0x38] sm:$0xff]  ;;  %13116 = vmatprep.subr.bf16.mxu0 %v13485_v10 }
  0xdf   : > { %v932_v38 = vrot.slane %v924_v7, %v14071_v12  ;;  %v1869_v7 = vld [vmem:[#allocation2 + $0x77] sm:$0xff]  ;;  %13117 = vmatpush3.bf16.msra.mxu0 %v13485_v10  ;;  %v1955_v55 = vpack.c.bf16 %v1926_v27, %v1925_v21  ;;  %v2058_v10 = vmul.bf16 %v14173_v1, %v14228_v40  ;;  %v2059_v1 = vmul.bf16 %v14080_v19, %v2003_v9 }
  0xe0   : > { %v14232_v57 = vcombine.low %v956_v29, %v968_v54  ;;  %2282 = vrot.lane.b32.xlu1 %v2017_v37, %s19753_s1  ;;  %v2037_v54 = vmul.bf16 %v14200_v51, %v14219_v23  ;;  %v1870_v37 = vld [vmem:[#allocation2 + $0x7f] sm:$0xff]  ;;  %13118 = vmatprep.subr.bf16.mxu0 %v13486_v46  ;;  %v1480_v21 = vrot.slane %v14123_v43, %v14071_v12  ;;  %v1871_v43 = vld [vmem:[#allocation2 + $0x87] sm:$0xff] }
  0xe1   : > { %v14240_v58 = vcombine.low %v932_v38, %v944_v0  ;;  %2236 = vrot.lane.b32.xlu0 %v14217_v47, %s19759_s28 }
  0xe2   : > { %19791 = vst [vmem:[#allocation6_spill] sm:$0xff] %v14232_v57  ;;  %v14244_v59 = vpop.permute.xlu1 %1559  ;;  %v972_v15 = vpop.permute.xlu0 %971 }
  0xe3   : > { %v980_v0 = vrot.slane %v972_v15, %v14071_v12  ;;  %v14277_v15 = vpack.c.bf16 %v1870_v37, %v1869_v7  ;;  %13119 = vmatpush3.bf16.msra.mxu0 %v13486_v46  ;;  %v1872_v7 = vld [vmem:[#allocation2 + $0x8f] sm:$0xff] }
  0xe4   : > { %2330 = vrot.lane.b32.xlu1 %v2036_v60, %s19751_s23  ;;  %v1447_v60 = vrot.slane %v14095_v25, %v14071_v12 }
  0xe5   : > { %2284 = vrot.lane.b32.xlu0 %v2018_v6, %s19753_s1  ;;  %19794 = vst [vmem:[#allocation9_spill] sm:$0xff] %v14277_v15 }
  0xe7   : > { %v984_v29 = vpop.permute.xlu1 %983 }
  0xe8   : > { %v992_v38 = vrot.slane %v984_v29, %v14071_v12  ;;  %2363 = vrot.lane.b32.xlu1 %v14217_v47, %s19724_s26  ;;  %v1458_v29 = vrot.slane %v14082_v20, %v14071_v12  ;;  %v1469_v20 = vrot.slane %v14092_v24, %v14071_v12 }
  0xe9   : > { %2332 = vrot.lane.b32.xlu0 %v2037_v54, %s19751_s23 }
  0xea   : > { %v14273_v6 = vcombine.low %v980_v0, %v992_v38  ;;  %v14287_v16 = vcombine.low %v1447_v60, %v1458_v29  ;;  %v14299_v54 = vcombine.low %v1469_v20, %v1480_v21  ;;  %v1907_v0 = vmul.bf16 %v14116_v41, %v14219_v23  ;;  %v1927_v60 = vld [vmem:[#allocation2 + $0x48] sm:$0xff]  ;;  %v1020_v21 = vpop.permute.xlu0 %1019 }
  0xec   : > { %19793 = vst [vmem:[#allocation8_spill] sm:$0xff] %v14273_v6  ;;  %v14281_v63 = vpop.permute.xlu1 %1570  ;;  %2411 = vrot.lane.b32.xlu1 %v2058_v10, %s19726_s22  ;;  %v1843_v28 = vmul.bf16 %v14287_v16, %v14228_v40  ;;  %v14311_v40 = vpack.c.bf16 %v1872_v7, %v1871_v43  ;;  %v1928_v10 = vld [vmem:[#allocation2 + $0x50] sm:$0xff] }
  0xed   : > { %2365 = vrot.lane.b32.xlu0 %v1955_v55, %s19724_s26  ;;  %v1956_v20 = vpack.c.bf16 %v1928_v10, %v1927_v60  ;;  %v1873_v7 = vld [vmem:[#allocation2 + $0x97] sm:$0xff]  ;;  %v2038_v60 = vmul.bf16 %v14116_v41, %v14156_v62  ;;  %v1579_v5 = vrot.slane %v14281_v63, %v14071_v12 }
  0xee   : > { %19795 = vst [vmem:[#allocation10_spill] sm:$0xff] %v14311_v40 }
  0xf0   : > { %2413 = vrot.lane.b32.xlu1 %v2059_v1, %s19726_s22  ;;  %v1908_v1 = vmul.bf16 %v14214_v17, %v14156_v62 }
  0xf1   : > { %v996_v27 = vpop.permute.xlu1 %995  ;;  %2094 = vrot.lane.b32.xlu0 %v14217_v47, %s19761_s14  ;;  %v1844_v47 = vmul.bf16 %v14299_v54, %v2003_v9 }
  0xf2   : > { %v1004_v37 = vrot.slane %v996_v27, %v14071_v12  ;;  %v2019_v27 = vmul.bf16 %v14287_v16, %v2003_v9 }
  0xf4   : > { %2142 = vrot.lane.b32.xlu1 %v1843_v28, %s19757_s0  ;;  %v1975_v28 = vld [vmem:[#allocation2 + $0x49] sm:$0xff] }
  0xf5   : > { %v1008_v19 = vpop.permute.xlu1 %1007  ;;  %2096 = vrot.lane.b32.xlu0 %v1955_v55, %s19761_s14 }
  0xf6   : > { %v1016_v24 = vrot.slane %v1008_v19, %v14071_v12  ;;  %v1976_v19 = vld [vmem:[#allocation2 + $0x51] sm:$0xff] }
  0xf8   : > { %v14308_v38 = vcombine.low %v1004_v37, %v1016_v24  ;;  %2190 = vrot.lane.b32.xlu1 %v1907_v0, %s19755_s25  ;;  %v1874_v37 = vld [vmem:[#allocation2 + $0x9f] sm:$0xff]  ;;  %v1028_v24 = vrot.slane %v1020_v21, %v14071_v12 }
  0xf9   : > { %2144 = vrot.lane.b32.xlu0 %v1844_v47, %s19757_s0  ;;  %v14331_v9 = vpack.c.bf16 %v1874_v37, %v1873_v7 }
  0xfa   : > { %v14314_v46 = vpop.permute.xlu1 %1603 }
  0xfb   : > { %19796 = vst [vmem:[#allocation11_spill] sm:$0xff] %v14331_v9 }
  0xfc   : > { %2238 = vrot.lane.b32.xlu1 %v1955_v55, %s19759_s28  ;;  %v2004_v55 = vpack.c.bf16 %v1976_v19, %v1975_v28  ;;  %v1930_v28 = vld [vmem:[#allocation2 + $0x60] sm:$0xff]  ;;  %v2039_v19 = vmul.bf16 %v14214_v17, %v14248_v22 }
  0xfd   : > { %2192 = vrot.lane.b32.xlu0 %v1908_v1, %s19755_s25 }
  0xfe   : > { %v2020_v10 = vmul.bf16 %v14299_v54, %v2004_v55 }
  0xff   : > { %v1032_v43 = vpop.permute.xlu1 %1031 }
 0x100   : > { %v1040_v0 = vrot.slane %v1032_v43, %v14071_v12  ;;  %2286 = vrot.lane.b32.xlu1 %v2019_v27, %s19753_s1  ;;  %v1929_v27 = vld [vmem:[#allocation2 + $0x58] sm:$0xff] }
 0x101   : > { %2240 = vrot.lane.b32.xlu0 %v1956_v20, %s19759_s28  ;;  %v1977_v43 = vld [vmem:[#allocation2 + $0x59] sm:$0xff]  ;;  %v1957_v37 = vpack.c.bf16 %v1930_v28, %v1929_v27 }
 0x102   : > { %v14327_v47 = vcombine.low %v1028_v24, %v1040_v0  ;;  %v1978_v24 = vld [vmem:[#allocation2 + $0x61] sm:$0xff]  ;;  %v1491_v0 = vrot.slane %v14138_v49, %v14071_v12 }
 0x103   : > { %v2005_v21 = vpack.c.bf16 %v1978_v24, %v1977_v43  ;;  %v1513_v43 = vrot.slane %v14104_v30, %v14071_v12 }
 0x104   : > { %v14334_v1 = vpop.permute.xlu1 %1614  ;;  %2334 = vrot.lane.b32.xlu1 %v2038_v60, %s19751_s23  ;;  %v2060_v60 = vmul.bf16 %v14287_v16, %v2004_v55  ;;  %v1524_v16 = vrot.slane %v14164_v13, %v14071_v12  ;;  %v1068_v13 = vpop.permute.xlu0 %1067 }
 0x105   : > { %2288 = vrot.lane.b32.xlu0 %v2020_v10, %s19753_s1  ;;  %v1502_v10 = vrot.slane %v14098_v26, %v14071_v12  ;;  %v2061_v49 = vmul.bf16 %v14299_v54, %v2005_v21  ;;  %v14361_v26 = vpack.c.bf16 %v1876_v3, %v1875_v2  ;;  %v1909_v2 = vmul.bf16 %v14154_v61, %v14248_v22  ;;  %v1982_v54 = vld [vmem:[#allocation2 + $0x81] sm:$0xff] }
 0x107   : > { %v14351_v25 = vcombine.low %v1491_v0, %v1502_v10  ;;  %v1878_v0 = vld [vmem:[#allocation2 + $0xbf] sm:$0xff] }
 0x108   : > { %2367 = vrot.lane.b32.xlu1 %v1956_v20, %s19724_s26 }
 0x109   : > { %v1044_v7 = vpop.permute.xlu1 %1043  ;;  %2336 = vrot.lane.b32.xlu0 %v2039_v19, %s19751_s23 }
 0x10a   : > { %v1052_v27 = vrot.slane %v1044_v7, %v14071_v12  ;;  %v14371_v7 = vcombine.low %v1513_v43, %v1524_v16  ;;  %v1910_v16 = vmul.bf16 %v14240_v58, %v14235_v18 }
 0x10c   : > { %2415 = vrot.lane.b32.xlu1 %v2060_v60, %s19726_s22  ;;  %v1846_v30 = vmul.bf16 %v14371_v7, %v2005_v21 }
 0x10d   : > { %v1056_v29 = vpop.permute.xlu1 %1055  ;;  %2369 = vrot.lane.b32.xlu0 %v1957_v37, %s19724_s26 }
 0x10e   : > { %v1064_v28 = vrot.slane %v1056_v29, %v14071_v12  ;;  %v1845_v29 = vmul.bf16 %v14351_v25, %v2004_v55  ;;  %v1076_v55 = vrot.slane %v1068_v13, %v14071_v12 }
 0x110   : > { %v14358_v19 = vcombine.low %v1052_v27, %v1064_v28  ;;  %2417 = vrot.lane.b32.xlu1 %v2061_v49, %s19726_s22  ;;  %v1931_v27 = vld [vmem:[#allocation2 + $0x68] sm:$0xff]  ;;  %v1932_v28 = vld [vmem:[#allocation2 + $0x70] sm:$0xff] }
 0x111   : > { %2098 = vrot.lane.b32.xlu0 %v1956_v20, %s19761_s14  ;;  %v1877_v20 = vld [vmem:[#allocation2 + $0xb7] sm:$0xff]  ;;  %v1958_v13 = vpack.c.bf16 %v1932_v28, %v1931_v27  ;;  %v1879_v27 = vld [vmem:[#allocation2 + $0xc7] sm:$0xff] }
 0x112   : > { %v14366_v24 = vpop.permute.xlu1 %1647  ;;  %v14384_v49 = vpack.c.bf16 %v1878_v0, %v1877_v20 }
 0x114   : > { %2146 = vrot.lane.b32.xlu1 %v1845_v29, %s19757_s0  ;;  %v1934_v29 = vld [vmem:[#allocation2 + $0x80] sm:$0xff] }
 0x115   : > { %2100 = vrot.lane.b32.xlu0 %v1957_v37, %s19761_s14 }
 0x117   : > { %v1080_v3 = vpop.permute.xlu1 %1079 }
 0x118   : > { %v1088_v60 = vrot.slane %v1080_v3, %v14071_v12  ;;  %2194 = vrot.lane.b32.xlu1 %v1909_v2, %s19755_s25  ;;  %v2021_v2 = vmul.bf16 %v14351_v25, %v2005_v21  ;;  %v1979_v3 = vld [vmem:[#allocation2 + $0x69] sm:$0xff] }
 0x119   : > { %2148 = vrot.lane.b32.xlu0 %v1846_v30, %s19757_s0  ;;  %v1980_v30 = vld [vmem:[#allocation2 + $0x71] sm:$0xff] }
 0x11a   : > { %v14382_v10 = vcombine.low %v1076_v55, %v1088_v60  ;;  %v2006_v0 = vpack.c.bf16 %v1980_v30, %v1979_v3  ;;  %v2040_v55 = vmul.bf16 %v14154_v61, %v14235_v18  ;;  %v1880_v21 = vld [vmem:[#allocation2 + $0xcf] sm:$0xff]  ;;  %v2041_v3 = vmul.bf16 %v14240_v58, %v14277_v15  ;;  %v1981_v30 = vld [vmem:[#allocation2 + $0x79] sm:$0xff] }
 0x11b   : > { %v2007_v14 = vpack.c.bf16 %v1982_v54, %v1981_v30  ;;  %v1881_v54 = vld [vmem:[#allocation2 + $0xd7] sm:$0xff] }
 0x11c   : > { %v14388_v43 = vpop.permute.xlu1 %1658  ;;  %2242 = vrot.lane.b32.xlu1 %v1957_v37, %s19759_s28  ;;  %v2022_v37 = vmul.bf16 %v14371_v7, %v2006_v0  ;;  %v2062_v11 = vmul.bf16 %v14351_v25, %v2006_v0 }
 0x11d   : > { %2196 = vrot.lane.b32.xlu0 %v1910_v16, %s19755_s25 }
 0x120   : > { %2290 = vrot.lane.b32.xlu1 %v2021_v2, %s19753_s1  ;;  %v1933_v2 = vld [vmem:[#allocation2 + $0x78] sm:$0xff] }
 0x121   : > { %v1092_v20 = vpop.permute.xlu1 %1091  ;;  %2244 = vrot.lane.b32.xlu0 %v1958_v13, %s19759_s28 }
 0x122   : > { %v1100_v28 = vrot.slane %v1092_v20, %v14071_v12  ;;  %v1535_v20 = vrot.slane %v14188_v35, %v14071_v12  ;;  %v2063_v35 = vmul.bf16 %v14371_v7, %v2007_v14 }
 0x124   : > { %2338 = vrot.lane.b32.xlu1 %v2040_v55, %s19751_s23  ;;  %v14409_v55 = vpack.c.bf16 %v1880_v21, %v1879_v27  ;;  %v1116_v27 = vpop.permute.xlu0 %1115  ;;  %v1568_v21 = vrot.slane %v14244_v59, %v14071_v12 }
 0x125   : > { %v1104_v60 = vpop.permute.xlu1 %1103  ;;  %2292 = vrot.lane.b32.xlu0 %v2022_v37, %s19753_s1  ;;  %v1959_v37 = vpack.c.bf16 %v1934_v29, %v1933_v2  ;;  %v1124_v2 = vrot.slane %v1116_v27, %v14071_v12  ;;  %v1935_v27 = vld [vmem:[#allocation2 + $0x88] sm:$0xff] }
 0x126   : > { %v1112_v16 = vrot.slane %v1104_v60, %v14071_v12 }
 0x128   : > { %v14406_v4 = vcombine.low %v1100_v28, %v1112_v16  ;;  %2371 = vrot.lane.b32.xlu1 %v1958_v13, %s19724_s26  ;;  %v1546_v28 = vrot.slane %v14110_v33, %v14071_v12  ;;  %v1882_v16 = vld [vmem:[#allocation2 + $0xdf] sm:$0xff]  ;;  %v1557_v33 = vrot.slane %v14121_v42, %v14071_v12  ;;  %v1911_v42 = vmul.bf16 %v14232_v57, %v14277_v15 }
 0x129   : > { %2340 = vrot.lane.b32.xlu0 %v2041_v3, %s19751_s23  ;;  %v14437_v30 = vpack.c.bf16 %v1882_v16, %v1881_v54  ;;  %v1883_v16 = vld [vmem:[#allocation2 + $0xe7] sm:$0xff] }
 0x12a   : > { %v14414_v60 = vpop.permute.xlu1 %1691  ;;  %v14423_v29 = vcombine.low %v1535_v20, %v1546_v28  ;;  %v14439_v59 = vcombine.low %v1557_v33, %v1568_v21  ;;  %v1912_v21 = vmul.bf16 %v14273_v6, %v14311_v40 }
 0x12c   : > { %2419 = vrot.lane.b32.xlu1 %v2062_v11, %s19726_s22  ;;  %v1847_v7 = vmul.bf16 %v14423_v29, %v2006_v0 }
 0x12d   : > { %2373 = vrot.lane.b32.xlu0 %v1959_v37, %s19724_s26 }
 0x12f   : > { %v1128_v25 = vpop.permute.xlu1 %1127 }
 0x130   : > { %v1136_v3 = vrot.slane %v1128_v25, %v14071_v12  ;;  %2421 = vrot.lane.b32.xlu1 %v2063_v35, %s19726_s22  ;;  %v1936_v35 = vld [vmem:[#allocation2 + $0x90] sm:$0xff] }
 0x131   : > { %2102 = vrot.lane.b32.xlu0 %v1958_v13, %s19761_s14  ;;  %v1848_v13 = vmul.bf16 %v14439_v59, %v2007_v14  ;;  %v1960_v54 = vpack.c.bf16 %v1936_v35, %v1935_v27 }
 0x132   : > { %v14434_v11 = vcombine.low %v1124_v2, %v1136_v3  ;;  %v1884_v2 = vld [vmem:[#allocation2 + $0xef] sm:$0xff] }
 0x133   : > { %v14462_v53 = vpack.c.bf16 %v1884_v2, %v1883_v16  ;;  %v1938_v16 = vld [vmem:[#allocation2 + $0xa0] sm:$0xff] }
 0x134   : > { %v14441_v20 = vpop.permute.xlu1 %1702  ;;  %2150 = vrot.lane.b32.xlu1 %v1847_v7, %s19757_s0  ;;  %v2023_v7 = vmul.bf16 %v14423_v29, %v2007_v14 }
 0x135   : > { %2104 = vrot.lane.b32.xlu0 %v1959_v37, %s19761_s14 }
 0x138   : > { %2198 = vrot.lane.b32.xlu1 %v1911_v42, %s19755_s25  ;;  %v1983_v42 = vld [vmem:[#allocation2 + $0x89] sm:$0xff] }
 0x139   : > { %v1140_v0 = vpop.permute.xlu1 %1139  ;;  %2152 = vrot.lane.b32.xlu0 %v1848_v13, %s19757_s0  ;;  %v1984_v13 = vld [vmem:[#allocation2 + $0x91] sm:$0xff] }
 0x13a   : > { %v1148_v3 = vrot.slane %v1140_v0, %v14071_v12  ;;  %v2008_v27 = vpack.c.bf16 %v1984_v13, %v1983_v42  ;;  %v2042_v0 = vmul.bf16 %v14232_v57, %v14311_v40  ;;  %v1986_v42 = vld [vmem:[#allocation2 + $0xa1] sm:$0xff] }
 0x13c   : > { %2246 = vrot.lane.b32.xlu1 %v1959_v37, %s19759_s28  ;;  %v1164_v37 = vpop.permute.xlu0 %1163  ;;  %v2064_v15 = vmul.bf16 %v14423_v29, %v2008_v27 }
 0x13d   : > { %v1152_v25 = vpop.permute.xlu1 %1151  ;;  %2200 = vrot.lane.b32.xlu0 %v1912_v21, %s19755_s25  ;;  %v2024_v21 = vmul.bf16 %v14439_v59, %v2008_v27  ;;  %v1172_v13 = vrot.slane %v1164_v37, %v14071_v12 }
 0x13e   : > { %v1160_v33 = vrot.slane %v1152_v25, %v14071_v12  ;;  %v1937_v25 = vld [vmem:[#allocation2 + $0x98] sm:$0xff] }
 0x140   : > { %v14459_v28 = vcombine.low %v1148_v3, %v1160_v33  ;;  %2294 = vrot.lane.b32.xlu1 %v2023_v7, %s19753_s1  ;;  %v14474_v2 = vpop.permute.xlu0 %2092  ;;  %v2043_v33 = vmul.bf16 %v14273_v6, %v14331_v9  ;;  %v1985_v7 = vld [vmem:[#allocation2 + $0x99] sm:$0xff] }
 0x141   : > { %2248 = vrot.lane.b32.xlu0 %v1960_v54, %s19759_s28  ;;  %v2009_v6 = vpack.c.bf16 %v1986_v42, %v1985_v7 }
 0x142   : > { %19797 = vst [vmem:[#allocation12_spill] sm:$0xff] %v14459_v28  ;;  %v14465_v35 = vpop.permute.xlu1 %1735 }
 0x143   : > { %v2065_v29 = vmul.bf16 %v14439_v59, %v2009_v6 }
 0x144   : > { %2342 = vrot.lane.b32.xlu1 %v2042_v0, %s19751_s23  ;;  %v1886_v0 = vld [vmem:[#allocation2 + $0xff] sm:$0xff]  ;;  %v14487_v18 = vpop.permute.xlu0 %2140 }
 0x145   : > { %2296 = vrot.lane.b32.xlu0 %v2024_v21, %s19753_s1  ;;  %v1961_v21 = vpack.c.bf16 %v1938_v16, %v1937_v25  ;;  %v14489_v57 = vpack.c.bf16 %v1886_v0, %v1885_v44  ;;  %v1612_v25 = vrot.slane %v14314_v46, %v14071_v12  ;;  %v1913_v46 = vmul.bf16 %v14308_v38, %v14331_v9  ;;  %v754_v0 = vld [vmem:[#allocation2 + $0xf] sm:$0xff] }
 0x146   : > { %v1987_v9 = vld [vmem:[#allocation2 + $0xa9] sm:$0xff] }
 0x147   : > { %v1176_v3 = vpop.permute.xlu1 %1175 }
 0x148   : > { %v1184_v14 = vrot.slane %v1176_v3, %v14071_v12  ;;  %2375 = vrot.lane.b32.xlu1 %v1960_v54, %s19724_s26  ;;  %v1590_v3 = vrot.slane %v14128_v45, %v14071_v12  ;;  %v1601_v45 = vrot.slane %v14136_v48, %v14071_v12  ;;  %v753_v48 = vld [vmem:[#allocation2 + $0x7] sm:$0xff] }
 0x149   : > { %2344 = vrot.lane.b32.xlu0 %v2043_v33, %s19751_s23 }
 0x14a   : > { %v14484_v40 = vcombine.low %v1172_v13, %v1184_v14  ;;  %v14497_v14 = vcombine.low %v1579_v5, %v1590_v3  ;;  %v14507_v33 = vcombine.low %v1601_v45, %v1612_v25  ;;  %v785_v3 = vpack.c.bf16 %v754_v0, %v753_v48 }
 0x14b   : > { %v2091_v37 = vpop.permute.xlu1 %2090  ;;  %v1914_v45 = vmul.bf16 %v14327_v47, %v14361_v26 }
 0x14c   : > { %19798 = vst [vmem:[#allocation13_spill] sm:$0xff] %v14484_v40  ;;  %2423 = vrot.lane.b32.xlu1 %v2064_v15, %s19726_s22  ;;  %v1849_v15 = vmul.bf16 %v14497_v14, %v2008_v27  ;;  %v1850_v13 = vmul.bf16 %v14507_v33, %v2009_v6  ;;  %v1940_v27 = vld [vmem:[#allocation2 + $0xb0] sm:$0xff]  ;;  %v2025_v63 = vmul.bf16 %v14497_v14, %v2009_v6 }
 0x14d   : > { %2377 = vrot.lane.b32.xlu0 %v1961_v21, %s19724_s26  ;;  %v2044_v6 = vmul.bf16 %v14308_v38, %v14361_v26 }
 0x14f   : > { %v2139_v16 = vpop.permute.xlu1 %2138  ;;  %v2189_v44 = vpop.permute.xlu0 %2188 }
 0x150   : > { %2425 = vrot.lane.b32.xlu1 %v2065_v29, %s19726_s22 }
 0x151   : > { %2106 = vrot.lane.b32.xlu0 %v1960_v54, %s19761_s14  ;;  %v1939_v54 = vld [vmem:[#allocation2 + $0xa8] sm:$0xff] }
 0x153   : > { %v2187_v5 = vpop.permute.xlu1 %2186  ;;  %v2237_v7 = vpop.permute.xlu0 %2236 }
 0x154   : > { %2154 = vrot.lane.b32.xlu1 %v1849_v15, %s19757_s0  ;;  %v14520_v15 = vpack.c.bf16 %v1940_v27, %v1939_v54  ;;  %v1282_v54 = vmul.bf16 %v14200_v51, %v14186_v34 }
 0x155   : > { %2108 = vrot.lane.b32.xlu0 %v1961_v21, %s19761_s14 }
 0x157   : > { %v2235_v59 = vpop.permute.xlu1 %2234  ;;  %v2285_v42 = vpop.permute.xlu0 %2284 }
 0x158   : > { %2202 = vrot.lane.b32.xlu1 %v1913_v46, %s19755_s25  ;;  %v1988_v46 = vld [vmem:[#allocation2 + $0xb1] sm:$0xff] }
 0x159   : > { %2156 = vrot.lane.b32.xlu0 %v1850_v13, %s19757_s0  ;;  %v1281_v13 = vmul.bf16 %v14183_v32, %v785_v3 }
 0x15b   : > { %v2283_v29 = vpop.permute.xlu1 %2282  ;;  %v2333_v25 = vpop.permute.xlu0 %2332  ;;  %v2446_v48 = vsel %vm2443_vm4, %v1281_v13, %v2091_v37 }
 0x15c   : > { %2250 = vrot.lane.b32.xlu1 %v1961_v21, %s19759_s28  ;;  %v2010_v21 = vpack.c.bf16 %v1988_v46, %v1987_v9  ;;  %v2493_v0 = vsel %vm643_vm2, %v2446_v48, %v2139_v16  ;;  %v2449_v9 = vsel %vm2443_vm4, %v1282_v54, %v14474_v2  ;;  %v1989_v48 = vld [vmem:[#allocation2 + $0xb9] sm:$0xff]  ;;  %v1623_v54 = vrot.slane %v14334_v1, %v14071_v12 }
 0x15d   : > { %2204 = vrot.lane.b32.xlu0 %v1914_v45, %s19755_s25  ;;  %v2525_v32 = vsel %vm604_vm0, %v2493_v0, %v2187_v5  ;;  %v2495_v34 = vsel %vm643_vm2, %v2449_v9, %v14487_v18  ;;  %v1941_v5 = vld [vmem:[#allocation2 + $0xb8] sm:$0xff]  ;;  %v1990_v0 = vld [vmem:[#allocation2 + $0xc1] sm:$0xff] }
 0x15e   : > { %v2026_v37 = vmul.bf16 %v14507_v33, %v2010_v21  ;;  %v2527_v45 = vsel %vm604_vm0, %v2495_v34, %v2189_v44 }
 0x15f   : > { %v2331_v40 = vpop.permute.xlu1 %2330  ;;  %v2366_v28 = vpop.permute.xlu0 %2365  ;;  %v2560_v18 = vsel %vm2556_vm5, %v2527_v45, %v2237_v7  ;;  %v2011_v7 = vpack.c.bf16 %v1990_v0, %v1989_v48  ;;  %v1916_v48 = vmul.bf16 %v14382_v10, %v14409_v55 }
 0x160   : > { %2298 = vrot.lane.b32.xlu1 %v2025_v63, %s19753_s1  ;;  %v2558_v63 = vsel %vm2556_vm5, %v2525_v32, %v2235_v59  ;;  %v1942_v59 = vld [vmem:[#allocation2 + $0xc0] sm:$0xff] }
 0x161   : > { %2252 = vrot.lane.b32.xlu0 %v14520_v15, %s19759_s28  ;;  %v2591_v16 = vsel %vm2589_vm6, %v2558_v63, %v2283_v29  ;;  %v2045_v29 = vmul.bf16 %v14327_v47, %v14384_v49  ;;  %v1963_v44 = vpack.c.bf16 %v1942_v59, %v1941_v5 }
 0x162   : > { %v2624_v51 = vsel %vm2622_vm7, %v2591_v16, %v2331_v40 }
 0x163   : > { %v2364_v27 = vpop.permute.xlu1 %2363  ;;  %v14534_v3 = vpop.permute.xlu0 %2094 }
 0x164   : > { %2346 = vrot.lane.b32.xlu1 %v2044_v6, %s19751_s23  ;;  %v2657_v46 = vsel %vm2655_vm9, %v2624_v51, %v2364_v27  ;;  %v2593_v6 = vsel %vm2589_vm6, %v2560_v18, %v2285_v42  ;;  %v2066_v27 = vmul.bf16 %v14497_v14, %v2010_v21  ;;  %v1634_v42 = vrot.slane %v14141_v50, %v14071_v12 }
 0x165   : > { %2300 = vrot.lane.b32.xlu0 %v2026_v37, %s19753_s1  ;;  %v2626_v32 = vsel %vm2622_vm7, %v2593_v6, %v2333_v25  ;;  %v2067_v14 = vmul.bf16 %v14507_v33, %v2011_v7  ;;  %v1645_v50 = vrot.slane %v14143_v52, %v14071_v12  ;;  %v1992_v6 = vld [vmem:[#allocation2 + $0xd1] sm:$0xff] }
 0x166   : > { %v2659_v37 = vsel %vm2655_vm9, %v2626_v32, %v2366_v28  ;;  %v14570_v1 = vcombine.low %v1623_v54, %v1634_v42  ;;  %v1656_v28 = vrot.slane %v14366_v24, %v14071_v12  ;;  %v1915_v24 = vmul.bf16 %v14358_v19, %v14384_v49 }
 0x167   : > { %v2412_v2 = vpop.permute.xlu1 %2411  ;;  %v14548_v13 = vpop.permute.xlu0 %2096 }
 0x168   : > { %2379 = vrot.lane.b32.xlu1 %v14520_v15, %s19724_s26  ;;  %v2690_v40 = vsel %vm2688_vm8, %v2657_v46, %v2412_v2  ;;  %v1851_v51 = vmul.bf16 %v14570_v1, %v2010_v21  ;;  %v14581_v5 = vcombine.low %v1645_v50, %v1656_v28  ;;  %v1944_v21 = vld [vmem:[#allocation2 + $0xd0] sm:$0xff]  ;;  %v2027_v18 = vmul.bf16 %v14570_v1, %v2011_v7 }
 0x169   : > { %13120 = vmatprep.mubr.msk.bf16.mxu0 %vm2764_vm10, %v2690_v40  ;;  %2348 = vrot.lane.b32.xlu0 %v2045_v29, %s19751_s23  ;;  %v1991_v40 = vld [vmem:[#allocation2 + $0xc9] sm:$0xff] }
 0x16a   : > { %v1852_v52 = vmul.bf16 %v14581_v5, %v2011_v7  ;;  %v2046_v7 = vmul.bf16 %v14358_v19, %v14409_v55 }
 0x16b   : > { %v2414_v63 = vpop.permute.xlu1 %2413  ;;  %v2145_v9 = vpop.permute.xlu0 %2144 }
 0x16c   : > { %v2692_v16 = vsel %vm2688_vm8, %v2659_v37, %v2414_v63  ;;  %2427 = vrot.lane.b32.xlu1 %v2066_v27, %s19726_s22  ;;  %v19799_v27 = vmul.bf16 %v14116_v41, %v14118_v36  ;;  %v19800_v41 = vmul.bf16 %v14214_v17, %v14219_v23  ;;  %v2047_v17 = vmul.bf16 %v14382_v10, %v14437_v30  ;;  %v1993_v23 = vld [vmem:[#allocation2 + $0xd9] sm:$0xff] }
 0x16d   : > { %2381 = vrot.lane.b32.xlu0 %v1963_v44, %s19724_s26  ;;  %13121 = vmatmul.mubr.msk.bf16.vlgmr.msra.gmra.mxu0 %vm2764_vm10, %v2692_v16 }
 0x16e   : > { %v2452_v37 = vsel %vm2443_vm4, %v19799_v27, %v14534_v3  ;;  %v2455_v36 = vsel %vm2443_vm4, %v19800_v41, %v14548_v13  ;;  %v1994_v13 = vld [vmem:[#allocation2 + $0xe1] sm:$0xff] }
 0x16f   : > { %v2143_v25 = vpop.permute.xlu1 %2142  ;;  %v2193_v34 = vpop.permute.xlu0 %2192 }
 0x170   : > { %2429 = vrot.lane.b32.xlu1 %v2067_v14, %s19726_s22  ;;  %v2497_v63 = vsel %vm643_vm2, %v2452_v37, %v2143_v25  ;;  %v2499_v25 = vsel %vm643_vm2, %v2455_v36, %v2145_v9 }
 0x171   : > { %2110 = vrot.lane.b32.xlu0 %v14520_v15, %s19761_s14  ;;  %v1943_v15 = vld [vmem:[#allocation2 + $0xc8] sm:$0xff] }
 0x172   : > { %v1964_v0 = vpack.c.bf16 %v1944_v21, %v1943_v15 }
 0x173   : > { %v2191_v59 = vpop.permute.xlu1 %2190  ;;  %v2241_v45 = vpop.permute.xlu0 %2240 }
 0x174   : > { %2158 = vrot.lane.b32.xlu1 %v1851_v51, %s19757_s0  ;;  %v2529_v42 = vsel %vm604_vm0, %v2497_v63, %v2191_v59  ;;  %v1945_v59 = vld [vmem:[#allocation2 + $0xd8] sm:$0xff] }
 0x175   : > { %2112 = vrot.lane.b32.xlu0 %v1963_v44, %s19761_s14 }
 0x177   : > { %v2239_v33 = vpop.permute.xlu1 %2238  ;;  %v2289_v46 = vpop.permute.xlu0 %2288 }
 0x178   : > { %2206 = vrot.lane.b32.xlu1 %v1915_v24, %s19755_s25  ;;  %v2562_v50 = vsel %vm2556_vm5, %v2529_v42, %v2239_v33  ;;  %v1946_v24 = vld [vmem:[#allocation2 + $0xe0] sm:$0xff]  ;;  %v2531_v33 = vsel %vm604_vm0, %v2499_v25, %v2193_v34  ;;  %v1918_v25 = vmul.bf16 %v14434_v11, %v14462_v53 }
 0x179   : > { %2160 = vrot.lane.b32.xlu0 %v1852_v52, %s19757_s0  ;;  %v1965_v34 = vpack.c.bf16 %v1946_v24, %v1945_v59  ;;  %v1995_v24 = vld [vmem:[#allocation2 + $0xe9] sm:$0xff] }
 0x17b   : > { %v2287_v2 = vpop.permute.xlu1 %2286  ;;  %v2337_v29 = vpop.permute.xlu0 %2336 }
 0x17c   : > { %2254 = vrot.lane.b32.xlu1 %v1963_v44, %s19759_s28  ;;  %v2012_v44 = vpack.c.bf16 %v1992_v6, %v1991_v40  ;;  %v2595_v3 = vsel %vm2589_vm6, %v2562_v50, %v2287_v2  ;;  %v2564_v2 = vsel %vm2556_vm5, %v2531_v33, %v2241_v45  ;;  %v1996_v33 = vld [vmem:[#allocation2 + $0xf1] sm:$0xff] }
 0x17d   : > { %2208 = vrot.lane.b32.xlu0 %v1916_v48, %s19755_s25  ;;  %v2597_v48 = vsel %vm2589_vm6, %v2564_v2, %v2289_v46  ;;  %v1678_v46 = vrot.slane %v14149_v56, %v14071_v12  ;;  %v1689_v56 = vrot.slane %v14158_v39, %v14071_v12  ;;  %v1947_v39 = vld [vmem:[#allocation2 + $0xe8] sm:$0xff] }
 0x17e   : > { %v2028_v28 = vmul.bf16 %v14581_v5, %v2012_v44  ;;  %v2630_v40 = vsel %vm2622_vm7, %v2597_v48, %v2337_v29  ;;  %v2068_v6 = vmul.bf16 %v14570_v1, %v2012_v44  ;;  %v1700_v29 = vrot.slane %v14414_v60, %v14071_v12 }
 0x17f   : > { %v2335_v54 = vpop.permute.xlu1 %2334  ;;  %v2370_v32 = vpop.permute.xlu0 %2369  ;;  %v1917_v60 = vmul.bf16 %v14406_v4, %v14437_v30 }
 0x180   : > { %2302 = vrot.lane.b32.xlu1 %v2027_v18, %s19753_s1  ;;  %v2628_v51 = vsel %vm2622_vm7, %v2595_v3, %v2335_v54  ;;  %v1667_v18 = vrot.slane %v14388_v43, %v14071_v12  ;;  %v2013_v54 = vpack.c.bf16 %v1994_v13, %v1993_v23  ;;  %v2663_v45 = vsel %vm2655_vm9, %v2630_v40, %v2370_v32 }
 0x181   : > { %2256 = vrot.lane.b32.xlu0 %v1964_v0, %s19759_s28  ;;  %v2014_v13 = vpack.c.bf16 %v1996_v33, %v1995_v24 }
 0x182   : > { %v14643_v43 = vcombine.low %v1667_v18, %v1678_v46  ;;  %v2069_v1 = vmul.bf16 %v14581_v5, %v2013_v54  ;;  %v1950_v46 = vld [vmem:[#allocation2 + $0x100] sm:$0xff] }
 0x183   : > { %v2368_v16 = vpop.permute.xlu1 %2367  ;;  %v14606_v14 = vpop.permute.xlu0 %2098 }
 0x184   : > { %2350 = vrot.lane.b32.xlu1 %v2046_v7, %s19751_s23  ;;  %v2661_v52 = vsel %vm2655_vm9, %v2628_v51, %v2368_v16  ;;  %v1853_v42 = vmul.bf16 %v14643_v43, %v2012_v44  ;;  %v14653_v16 = vcombine.low %v1689_v56, %v1700_v29  ;;  %v2029_v59 = vmul.bf16 %v14643_v43, %v2013_v54 }
 0x185   : > { %2304 = vrot.lane.b32.xlu0 %v2028_v28, %s19753_s1 }
 0x186   : > { %v1854_v36 = vmul.bf16 %v14653_v16, %v2013_v54  ;;  %v2030_v40 = vmul.bf16 %v14653_v16, %v2014_v13 }
 0x187   : > { %v2416_v15 = vpop.permute.xlu1 %2415  ;;  %v14622_v21 = vpop.permute.xlu0 %2100 }
 0x188   : > { %v2694_v9 = vsel %vm2688_vm8, %v2661_v52, %v2416_v15  ;;  %2383 = vrot.lane.b32.xlu1 %v1964_v0, %s19724_s26 }
 0x189   : > { %2352 = vrot.lane.b32.xlu0 %v2047_v17, %s19751_s23  ;;  %13124 = vmatprep.mubr.msk.bf16.mxu0 %vm2764_vm10, %v2694_v9  ;;  %v19801_v17 = vmul.bf16 %v14154_v61, %v14156_v62  ;;  %v2048_v9 = vmul.bf16 %v14406_v4, %v14462_v53  ;;  %v19802_v61 = vmul.bf16 %v14240_v58, %v14248_v22  ;;  %v1997_v22 = vld [vmem:[#allocation2 + $0xf9] sm:$0xff] }
 0x18a   : > { %v2049_v58 = vmul.bf16 %v14434_v11, %v14489_v57 }
 0x18b   : > { %v2418_v27 = vpop.permute.xlu1 %2417  ;;  %v2149_v37 = vpop.permute.xlu0 %2148  ;;  %v2458_v23 = vsel %vm2443_vm4, %v19801_v17, %v14606_v14  ;;  %v2461_v62 = vsel %vm2443_vm4, %v19802_v61, %v14622_v21  ;;  %v1998_v21 = vld [vmem:[#allocation2 + $0x101] sm:$0xff] }
 0x18c   : > { %v2696_v63 = vsel %vm2688_vm8, %v2663_v45, %v2418_v27  ;;  %2431 = vrot.lane.b32.xlu1 %v2068_v6, %s19726_s22  ;;  %v2503_v54 = vsel %vm643_vm2, %v2461_v62, %v2149_v37  ;;  %v1949_v27 = vld [vmem:[#allocation2 + $0xf8] sm:$0xff]  ;;  %v1887_v17 = vld [vmem:[#allocation2 + $0x107] sm:$0xff] }
 0x18d   : > { %2385 = vrot.lane.b32.xlu0 %v1965_v34, %s19724_s26  ;;  %13125 = vmatmul.mubr.msk.bf16.gmra.mxu0 %vm2764_vm10, %v2696_v63 }
 0x18f   : > { %v2147_v32 = vpop.permute.xlu1 %2146  ;;  %v2197_v7 = vpop.permute.xlu0 %2196 }
 0x190   : > { %2433 = vrot.lane.b32.xlu1 %v2069_v1, %s19726_s22  ;;  %v2501_v2 = vsel %vm643_vm2, %v2458_v23, %v2147_v32  ;;  %v2535_v63 = vsel %vm604_vm0, %v2503_v54, %v2197_v7  ;;  %v1967_v7 = vpack.c.bf16 %v1950_v46, %v1949_v27  ;;  %v1888_v23 = vld [vmem:[#allocation2 + $0x10f] sm:$0xff] }
 0x191   : > { %2114 = vrot.lane.b32.xlu0 %v1964_v0, %s19761_s14  ;;  %v1948_v0 = vld [vmem:[#allocation2 + $0xf0] sm:$0xff] }
 0x192   : > { %v1966_v51 = vpack.c.bf16 %v1948_v0, %v1947_v39  ;;  %v1999_v54 = vld [vmem:[#allocation2 + $0x109] sm:$0xff] }
 0x193   : > { %v2195_v28 = vpop.permute.xlu1 %2194  ;;  %v2245_v50 = vpop.permute.xlu0 %2244 }
 0x194   : > { %2162 = vrot.lane.b32.xlu1 %v1853_v42, %s19757_s0  ;;  %v2533_v48 = vsel %vm604_vm0, %v2501_v2, %v2195_v28  ;;  %v2568_v56 = vsel %vm2556_vm5, %v2535_v63, %v2245_v50  ;;  %v1711_v28 = vrot.slane %v14441_v20, %v14071_v12  ;;  %v2033_v63 = vld [vmem:[#allocation2 + $0x117] sm:$0xff] }
 0x195   : > { %2116 = vrot.lane.b32.xlu0 %v1965_v34, %s19761_s14 }
 0x197   : > { %v2243_v5 = vpop.permute.xlu1 %2242  ;;  %v2293_v41 = vpop.permute.xlu0 %2292 }
 0x198   : > { %2210 = vrot.lane.b32.xlu1 %v1917_v60, %s19755_s25  ;;  %v2566_v6 = vsel %vm2556_vm5, %v2533_v48, %v2243_v5  ;;  %v2601_v42 = vsel %vm2589_vm6, %v2568_v56, %v2293_v41  ;;  %v2070_v5 = vmul.bf16 %v14643_v43, %v2014_v13  ;;  %v1722_v41 = vrot.slane %v14169_v8, %v14071_v12  ;;  %v1952_v48 = vld [vmem:[#allocation2 + $0x110] sm:$0xff] }
 0x199   : > { %2164 = vrot.lane.b32.xlu0 %v1854_v36, %s19757_s0  ;;  %v2015_v36 = vpack.c.bf16 %v1998_v21, %v1997_v22  ;;  %v1733_v8 = vrot.slane %v14180_v31, %v14071_v12 }
 0x19a   : > { %v14715_v20 = vcombine.low %v1711_v28, %v1722_v41 }
 0x19b   : > { %v2291_v44 = vpop.permute.xlu1 %2290  ;;  %v2341_v3 = vpop.permute.xlu0 %2340  ;;  %v2071_v43 = vmul.bf16 %v14653_v16, %v2015_v36 }
 0x19c   : > { %2258 = vrot.lane.b32.xlu1 %v1965_v34, %s19759_s28  ;;  %v2599_v14 = vsel %vm2589_vm6, %v2566_v6, %v2291_v44  ;;  %v2634_v60 = vsel %vm2622_vm7, %v2601_v42, %v2341_v3  ;;  %v1744_v3 = vrot.slane %v14465_v35, %v14071_v12  ;;  %v1855_v24 = vmul.bf16 %v14715_v20, %v2014_v13  ;;  %v19803_v35 = vld [vmem:[#allocation12_spill] sm:$0xff]  ;;  %v19804_v6 = vld [vmem:[#allocation13_spill] sm:$0xff] }
 0x19d   : > { %2212 = vrot.lane.b32.xlu0 %v1918_v25, %s19755_s25  ;;  %v1919_v16 = vmul.bf16 %v19803_v35, %v14489_v57  ;;  %v1951_v13 = vld [vmem:[#allocation2 + $0x108] sm:$0xff] }
 0x19e   : > { %v14725_v33 = vcombine.low %v1733_v8, %v1744_v3  ;;  %v1968_v62 = vpack.c.bf16 %v1952_v48, %v1951_v13  ;;  %v2052_v8 = vld [vmem:[#allocation2 + $0x118] sm:$0xff] }
 0x19f   : > { %v2339_v52 = vpop.permute.xlu1 %2338  ;;  %v2374_v15 = vpop.permute.xlu0 %2373 }
 0x1a0   : > { %2306 = vrot.lane.b32.xlu1 %v2029_v59, %s19753_s1  ;;  %v2632_v45 = vsel %vm2622_vm7, %v2599_v14, %v2339_v52  ;;  %v2667_v50 = vsel %vm2655_vm9, %v2634_v60, %v2374_v15  ;;  %v1856_v31 = vmul.bf16 %v14725_v33, %v2015_v36  ;;  %v2031_v14 = vmul.bf16 %v14715_v20, %v2015_v36 }
 0x1a1   : > { %2260 = vrot.lane.b32.xlu0 %v1966_v51, %s19759_s28 }
 0x1a3   : > { %v2372_v34 = vpop.permute.xlu1 %2371  ;;  %v14678_v18 = vpop.permute.xlu0 %2102 }
 0x1a4   : > { %2354 = vrot.lane.b32.xlu1 %v2048_v9, %s19751_s23  ;;  %v2665_v1 = vsel %vm2655_vm9, %v2632_v45, %v2372_v34  ;;  %v2000_v45 = vld [vmem:[#allocation2 + $0x111] sm:$0xff] }
 0x1a5   : > { %2308 = vrot.lane.b32.xlu0 %v2030_v40, %s19753_s1  ;;  %v2016_v56 = vpack.c.bf16 %v2000_v45, %v1999_v54 }
 0x1a7   : > { %v2420_v29 = vpop.permute.xlu1 %2419  ;;  %v14694_v32 = vpop.permute.xlu0 %2104 }
 0x1a8   : > { %v2698_v37 = vsel %vm2688_vm8, %v2665_v1, %v2420_v29  ;;  %2387 = vrot.lane.b32.xlu1 %v1966_v51, %s19724_s26  ;;  %v2034_v1 = vld [vmem:[#allocation2 + $0x11f] sm:$0xff] }
 0x1a9   : > { %2356 = vrot.lane.b32.xlu0 %v2049_v58, %s19751_s23  ;;  %13128 = vmatprep.mubr.msk.bf16.mxu0 %vm2764_vm10, %v2698_v37  ;;  %v19805_v29 = vld [vmem:[#allocation6_spill] sm:$0xff]  ;;  %v19806_v58 = vld [vmem:[#allocation7_spill] sm:$0xff]  ;;  %v2035_v36 = vpack.c.bf16 %v2034_v1, %v2033_v63  ;;  %v19811_v1 = vmov 0  }
 0x1aa   : > { %v19807_v22 = vmul.bf16 %v19805_v29, %v19806_v58  ;;  %v14793_v29 = vld [vmem:[%s19701_s17 + $0x44] sm:$0xf] }
 0x1ab   : > { %v2422_v39 = vpop.permute.xlu1 %2421  ;;  %v2153_v0 = vpop.permute.xlu0 %2152 }
 0x1ac   : > { %v2700_v44 = vsel %vm2688_vm8, %v2667_v50, %v2422_v39  ;;  %2435 = vrot.lane.b32.xlu1 %v2070_v5, %s19726_s22  ;;  %v2464_v21 = vsel %vm2443_vm4, %v19807_v22, %v14678_v18  ;;  %v2032_v5 = vmul.bf16 %v14725_v33, %v2016_v56  ;;  %v19808_v18 = vld [vmem:[#allocation8_spill] sm:$0xff]  ;;  %v19809_v39 = vld [vmem:[#allocation9_spill] sm:$0xff] }
 0x1ad   : > { %2389 = vrot.lane.b32.xlu0 %v1967_v7, %s19724_s26  ;;  %13129 = vmatmul.mubr.msk.bf16.gmra.mxu0 %vm2764_vm10, %v2700_v44  ;;  %v19810_v41 = vmul.bf16 %v19808_v18, %v19809_v39 }
 0x1af   : > { %v2151_v25 = vpop.permute.xlu1 %2150  ;;  %v2201_v59 = vpop.permute.xlu0 %2200  ;;  %v2467_v44 = vsel %vm2443_vm4, %v19810_v41, %v14694_v32 }
 0x1b0   : > { %2437 = vrot.lane.b32.xlu1 %v2071_v43, %s19726_s22  ;;  %v2505_v37 = vsel %vm643_vm2, %v2464_v21, %v2151_v25  ;;  %v2507_v3 = vsel %vm643_vm2, %v2467_v44, %v2153_v0  ;;  %v2056_v0 = vld [vmem:[#allocation2 + $0x121] sm:$0xff]  ;;  %v14802_v21 = vld [vmem:[%s19701_s17 + $0x50] sm:$0xf]  ;;  %v14824_v44 = vld [vmem:[%s19701_s17 + $0x5c] sm:$0xf] }
 0x1b1   : > { %2118 = vrot.lane.b32.xlu0 %v1966_v51, %s19761_s14  ;;  %v1904_v51 = vpack.c.bf16 %v1888_v23, %v1887_v17 }
 0x1b3   : > { %v2199_v52 = vpop.permute.xlu1 %2198  ;;  %v2249_v15 = vpop.permute.xlu0 %2248  ;;  %v1920_v61 = vmul.bf16 %v19804_v6, %v1904_v51  ;;  %v2050_v42 = vmul.bf16 %v19803_v35, %v1904_v51  ;;  %v2055_v51 = vld [vmem:[#allocation2 + $0x119] sm:$0xff] }
 0x1b4   : > { %2166 = vrot.lane.b32.xlu1 %v1855_v24, %s19757_s0  ;;  %v2053_v24 = vld [vmem:[#allocation2 + $0x120] sm:$0xff]  ;;  %v2057_v54 = vpack.c.bf16 %v2056_v0, %v2055_v51 }
 0x1b5   : > { %2120 = vrot.lane.b32.xlu0 %v1967_v7, %s19761_s14 }
 0x1b7   : > { %v2247_v2 = vpop.permute.xlu1 %2246  ;;  %v2297_v9 = vpop.permute.xlu0 %2296 }
 0x1b8   : > { %2214 = vrot.lane.b32.xlu1 %v1919_v16, %s19755_s25 }
 0x1b9   : > { %2168 = vrot.lane.b32.xlu0 %v1856_v31, %s19757_s0 }
 0x1bb   : > { %v2295_v34 = vpop.permute.xlu1 %2294  ;;  %v2345_v40 = vpop.permute.xlu0 %2344 }
 0x1bc   : > { %2262 = vrot.lane.b32.xlu1 %v1967_v7, %s19759_s28  ;;  %v2537_v7 = vsel %vm604_vm0, %v2505_v37, %v2199_v52  ;;  %v2539_v52 = vsel %vm604_vm0, %v2507_v3, %v2201_v59  ;;  %v2054_v59 = vpack.c.bf16 %v2053_v24, %v2052_v8 }
 0x1bd   : > { %2216 = vrot.lane.b32.xlu0 %v1920_v61, %s19755_s25  ;;  %v2570_v50 = vsel %vm2556_vm5, %v2537_v7, %v2247_v2  ;;  %v2051_v2 = vmul.bf16 %v19804_v6, %v2035_v36  ;;  %v2572_v32 = vsel %vm2556_vm5, %v2539_v52, %v2249_v15  ;;  %v19812_v7 = vmov 1  }
 0x1be   : > { %v2603_v43 = vsel %vm2589_vm6, %v2570_v50, %v2295_v34  ;;  %v2605_v13 = vsel %vm2589_vm6, %v2572_v32, %v2297_v9  ;;  %v2072_v34 = vmul.bf16 %v14715_v20, %v2016_v56  ;;  %v3042_v9 = vld [vmem:[%s19701_s17 + $0x40] sm:$0xf]  ;;  %v2073_v20 = vmul.bf16 %v14725_v33, %v2057_v54  ;;  %v3045_v33 = vld [vmem:[%s19701_s17 + $0x4c] sm:$0xf] }
 0x1bf   : > { %v2343_v27 = vpop.permute.xlu1 %2342  ;;  %v2378_v46 = vpop.permute.xlu0 %2377  ;;  %v2638_v48 = vsel %vm2622_vm7, %v2605_v13, %v2345_v40  ;;  %v19813_v50 = vld [vmem:[#allocation10_spill] sm:$0xff]  ;;  %v14849_v13 = vld [vmem:[%s19701_s17 + $0x48] sm:$0xf] }
 0x1c0   : > { %2310 = vrot.lane.b32.xlu1 %v2031_v14, %s19753_s1  ;;  %v2636_v25 = vsel %vm2622_vm7, %v2603_v43, %v2343_v27  ;;  %v2671_v61 = vsel %vm2655_vm9, %v2638_v48, %v2378_v46  ;;  %v14786_v27 = vld [vmem:[%s19701_s17] sm:$0xf]  ;;  %v19814_v18 = vmul.bf16 %v14308_v38, %v19813_v50 }
 0x1c1   : > { %2264 = vrot.lane.b32.xlu0 %v1968_v62, %s19759_s28  ;;  %v19815_v38 = vld [vmem:[#allocation11_spill] sm:$0xff] }
 0x1c2   : > { %v19816_v24 = vmul.bf16 %v14327_v47, %v19815_v38 }
 0x1c3   : > { %v2376_v28 = vpop.permute.xlu1 %2375  ;;  %v14748_v60 = vpop.permute.xlu0 %2106 }
 0x1c4   : > { %2358 = vrot.lane.b32.xlu1 %v2050_v42, %s19751_s23  ;;  %v2669_v16 = vsel %vm2655_vm9, %v2636_v25, %v2376_v28  ;;  %v3027_v42 = vld [vmem:[%s19701_s17 + $0x4] sm:$0xf]  ;;  %v14812_v28 = vld [vmem:[%s19701_s17 + $0x10] sm:$0xf]  ;;  %v2470_v39 = vsel %vm2443_vm4, %v19814_v18, %v14748_v60 }
 0x1c5   : > { %2312 = vrot.lane.b32.xlu0 %v2032_v5, %s19753_s1 }
 0x1c7   : > { %v2424_v17 = vpop.permute.xlu1 %2423  ;;  %v2109_v23 = vpop.permute.xlu0 %2108 }
 0x1c8   : > { %v2702_v31 = vsel %vm2688_vm8, %v2669_v16, %v2424_v17  ;;  %2391 = vrot.lane.b32.xlu1 %v1968_v62, %s19724_s26  ;;  %v2473_v60 = vsel %vm2443_vm4, %v19816_v24, %v2109_v23 }
 0x1c9   : > { %2360 = vrot.lane.b32.xlu0 %v2051_v2, %s19751_s23  ;;  %13132 = vmatprep.mubr.msk.bf16.mxu0 %vm2764_vm10, %v2702_v31  ;;  %v14840_v2 = vld [vmem:[%s19701_s17 + $0x60] sm:$0xf] }
 0x1cb   : > { %v2426_v15 = vpop.permute.xlu1 %2425  ;;  %v2157_v14 = vpop.permute.xlu0 %2156 }
 0x1cc   : > { %v2704_v62 = vsel %vm2688_vm8, %v2671_v61, %v2426_v15  ;;  %2439 = vrot.lane.b32.xlu1 %v2072_v34, %s19726_s22  ;;  %v2511_v16 = vsel %vm643_vm2, %v2473_v60, %v2157_v14  ;;  %v14858_v34 = vld [vmem:[%s19701_s17 + $0x20] sm:$0xf] }
 0x1cd   : > { %2393 = vrot.lane.b32.xlu0 %v2054_v59, %s19724_s26  ;;  %13133 = vmatmul.mubr.msk.bf16.gmra.mxu0 %vm2764_vm10, %v2704_v62  ;;  %v3028_v62 = vld [vmem:[%s19701_s17 + $0x8] sm:$0xf] }
 0x1cf   : > { %v2155_v40 = vpop.permute.xlu1 %2154  ;;  %v2205_v45 = vpop.permute.xlu0 %2204 }
 0x1d0   : > { %3875 = vperm.xlu1 %13376, %v3042_v9   ;;  %v2509_v41 = vsel %vm643_vm2, %v2470_v39, %v2155_v40  ;;  %v2543_v32 = vsel %vm604_vm0, %v2511_v16, %v2205_v45  ;;  %v19817_v39 = vmul.bf16 %v14358_v19, %v14361_v26  ;;  %v19818_v19 = vmul.bf16 %v14382_v10, %v14384_v49 }
 0x1d1   : > { %2441 = vrot.lane.b32.xlu0 %v2073_v20, %s19726_s22  ;;  %v14878_v20 = vld [vmem:[%s19701_s17 + $0x70] sm:$0xf]  ;;  %s19842_s22 = smov 64  }
 0x1d3   : > { %v2203_v46 = vpop.permute.xlu1 %2202  ;;  %v2253_v63 = vpop.permute.xlu0 %2252 }
 0x1d4   : > { %13377 = vset.pattern.permute.xlu1 %v19811_v1  ;;  %v2541_v43 = vsel %vm604_vm0, %v2509_v41, %v2203_v46  ;;  %v2576_v51 = vsel %vm2556_vm5, %v2543_v32, %v2253_v63 }
 0x1d5   : > { %3300 = vperm.xlu1 %13377, %v3042_v9   ;;  %3108 = vperm.xlu0 %13373, %v14786_v27   ;;  %v14871_v9 = vld [vmem:[%s19701_s17 + $0x6c] sm:$0xf] }
 0x1d7   : > { %v2251_v58 = vpop.permute.xlu1 %2250  ;;  %v2301_v22 = vpop.permute.xlu0 %2300 }
 0x1d8   : > { %v2574_v8 = vsel %vm2556_vm5, %v2541_v43, %v2251_v58  ;;  %v2609_v59 = vsel %vm2589_vm6, %v2576_v51, %v2301_v22  ;;  %v14888_v58 = vld [vmem:[%s19701_s17 + $0x30] sm:$0xf] }
 0x1d9   : > { %3312 = vperm.xlu1 %13377, %v14793_v29   ;;  %3336 = vperm.xlu0 %13373, %v3045_v33  }
 0x1db   : > { %v2299_v56 = vpop.permute.xlu1 %2298  ;;  %v2349_v37 = vpop.permute.xlu0 %2348 }
 0x1dc   : > { %v2607_v52 = vsel %vm2589_vm6, %v2574_v8, %v2299_v56  ;;  %v2642_v48 = vsel %vm2622_vm7, %v2609_v59, %v2349_v37  ;;  %v14894_v37 = vld [vmem:[%s19701_s17 + $0x7c] sm:$0xf] }
 0x1dd   : > { %13378 = vset.pattern.permute.xlu1 %v19812_v7  ;;  %3348 = vperm.xlu0 %13373, %v14802_v21  }
 0x1de   : > { %3710 = vperm.xlu1 %13378, %v3027_v42  }
 0x1df   : > { %v2347_v5 = vpop.permute.xlu1 %2346  ;;  %v2382_v36 = vpop.permute.xlu0 %2381 }
 0x1e0   : > { %v2640_v17 = vsel %vm2622_vm7, %v2607_v52, %v2347_v5  ;;  %v2675_v61 = vsel %vm2655_vm9, %v2642_v48, %v2382_v36  ;;  %v3047_v36 = vld [vmem:[%s19701_s17 + $0x54] sm:$0xf] }
 0x1e1   : > { %3156 = vperm.xlu0 %13373, %v14812_v28  }
 0x1e2   : > { %3908 = vperm.xlu1 %13378, %v3045_v33   ;;  %v3029_v33 = vld [vmem:[%s19701_s17 + $0xc] sm:$0xf] }
 0x1e3   : > { %v2380_v3 = vpop.permute.xlu1 %2379  ;;  %v2111_v25 = vpop.permute.xlu0 %2110 }
 0x1e4   : > { %v2673_v47 = vsel %vm2655_vm9, %v2640_v17, %v2380_v3  ;;  %v2476_v41 = vsel %vm2443_vm4, %v19817_v39, %v2111_v25 }
 0x1e5   : > { %3384 = vperm.xlu0 %13373, %v14824_v44  }
 0x1e6   : > { %13379 = vset.pattern.permute.xlu1 %v19811_v1 }
 0x1e7   : > { %3120 = vperm.xlu1 %13379, %v3027_v42   ;;  %v2428_v23 = vpop.permute.xlu1 %2427  ;;  %v2113_v31 = vpop.permute.xlu0 %2112 }
 0x1e8   : > { %v2706_v0 = vsel %vm2688_vm8, %v2673_v47, %v2428_v23  ;;  %v2479_v26 = vsel %vm2443_vm4, %v19818_v19, %v2113_v31  ;;  %v3051_v19 = vld [vmem:[%s19701_s17 + $0x64] sm:$0xf] }
 0x1e9   : > { %3396 = vperm.xlu0 %13373, %v14840_v2   ;;  %13136 = vmatprep.mubr.msk.bf16.mxu0 %vm2764_vm10, %v2706_v0 }
 0x1eb   : > { %3324 = vperm.xlu1 %13379, %v14849_v13   ;;  %v2430_v15 = vpop.permute.xlu1 %2429  ;;  %v2161_v14 = vpop.permute.xlu0 %2160 }
 0x1ec   : > { %v2708_v54 = vsel %vm2688_vm8, %v2675_v61, %v2430_v15  ;;  %v2515_v60 = vsel %vm643_vm2, %v2479_v26, %v2161_v14 }
 0x1ed   : > { %3204 = vperm.xlu0 %13373, %v14858_v34   ;;  %13137 = vmatmul.mubr.msk.bf16.gmra.mxu0 %vm2764_vm10, %v2708_v54 }
 0x1ef   : > { %13380 = vset.pattern.permute.xlu1 %v19812_v7  ;;  %v2159_v40 = vpop.permute.xlu1 %2158  ;;  %v2209_v45 = vpop.permute.xlu0 %2208 }
 0x1f0   : > { %3721 = vperm.xlu1 %13380, %v3028_v62   ;;  %v2513_v43 = vsel %vm643_vm2, %v2476_v41, %v2159_v40  ;;  %v3032_v40 = vld [vmem:[%s19701_s17 + $0x18] sm:$0xf] }
 0x1f1   : > { %3432 = vperm.xlu0 %13373, %v14871_v9  }
 0x1f3   : > { %v2207_v46 = vpop.permute.xlu1 %2206  ;;  %v2257_v63 = vpop.permute.xlu0 %2256 }
 0x1f4   : > { %13381 = vset.pattern.permute.xlu1 %v19811_v1  ;;  %v2545_v3 = vsel %vm604_vm0, %v2513_v43, %v2207_v46 }
 0x1f5   : > { %3132 = vperm.xlu1 %13381, %v3028_v62   ;;  %3444 = vperm.xlu0 %13373, %v14878_v20   ;;  %v3033_v62 = vld [vmem:[%s19701_s17 + $0x1c] sm:$0xf] }
 0x1f7   : > { %v2255_v22 = vpop.permute.xlu1 %2254  ;;  %v2305_v56 = vpop.permute.xlu0 %2304 }
 0x1f8   : > { %v2578_v24 = vsel %vm2556_vm5, %v2545_v3, %v2255_v22 }
 0x1f9   : > { %3144 = vperm.xlu1 %13381, %v3029_v33   ;;  %3252 = vperm.xlu0 %13373, %v14888_v58  }
 0x1fb   : > { %v2303_v42 = vpop.permute.xlu1 %2302  ;;  %v2353_v5 = vpop.permute.xlu0 %2352 }
 0x1fc   : > { %v2611_v25 = vsel %vm2589_vm6, %v2578_v24, %v2303_v42 }
 0x1fd   : > { %13382 = vset.pattern.permute.xlu1 %v19812_v7  ;;  %3480 = vperm.xlu0 %13373, %v14894_v37  }
 0x1fe   : > { %3930 = vperm.xlu1 %13382, %v3047_v36  }
 0x1ff   : > { %v2351_v50 = vpop.permute.xlu1 %2350  ;;  %v2386_v18 = vpop.permute.xlu0 %2385 }
 0x200   : > { %v2644_v52 = vsel %vm2622_vm7, %v2611_v25, %v2351_v50 }
 0x201   : > { %13398 = vset.pattern.permute.xlu0 %v19812_v7 }
 0x202   : > { %13383 = vset.pattern.permute.xlu1 %v19811_v1  ;;  %3886 = vperm.xlu0 %13398, %v14793_v29   ;;  %v2547_v29 = vsel %vm604_vm0, %v2515_v60, %v2209_v45 }
 0x203   : > { %3360 = vperm.xlu1 %13383, %v3047_v36   ;;  %v2384_v8 = vpop.permute.xlu1 %2383  ;;  %v2115_v38 = vpop.permute.xlu0 %2114  ;;  %v2580_v10 = vsel %vm2556_vm5, %v2547_v29, %v2257_v63  ;;  %v14952_v63 = vld [vmem:[%s19701_s17 + $0x24] sm:$0xf]  ;;  %v14967_v36 = vld [vmem:[%s19701_s17 + $0x2c] sm:$0xf]  ;;  %v14994_v29 = vld [vmem:[%s19821_s29] ss:$0 sm:$0xff] }
 0x204   : > { %v2677_v16 = vsel %vm2655_vm9, %v2644_v52, %v2384_v8  ;;  %v2613_v47 = vsel %vm2589_vm6, %v2580_v10, %v2305_v56 }
 0x205   : > { %v2646_v23 = vsel %vm2622_vm7, %v2613_v47, %v2353_v5  ;;  %v15008_v47 = vld [vmem:[%s19701_s17 + $0x3c] sm:$0xf] }
 0x206   : > { %3699 = vperm.xlu0 %13398, %v14786_v27   ;;  %v3048_v27 = vld [vmem:[%s19701_s17 + $0x58] sm:$0xf]  ;;  %v2679_v31 = vsel %vm2655_vm9, %v2646_v23, %v2386_v18 }
 0x207   : > { %13384 = vset.pattern.permute.xlu1 %v19812_v7  ;;  %v2432_v17 = vpop.permute.xlu1 %2431  ;;  %v2117_v32 = vpop.permute.xlu0 %2116 }
 0x208   : > { %v2710_v49 = vsel %vm2688_vm8, %v2677_v16, %v2432_v17  ;;  %3743 = vperm.xlu1 %13384, %v14812_v28   ;;  %v14999_v16 = vld [vmem:[%s19701_s17 + $0x34] sm:$0xf] }
 0x209   : > { %13140 = vmatprep.mubr.msk.bf16.mxu0 %vm2764_vm10, %v2710_v49 }
 0x20a   : > { %3897 = vperm.xlu0 %13398, %v14849_v13   ;;  %v3031_v13 = vld [vmem:[%s19701_s17 + $0x14] sm:$0xf] }
 0x20b   : > { %v2434_v51 = vpop.permute.xlu1 %2433  ;;  %v2165_v0 = vpop.permute.xlu0 %2164 }
 0x20c   : > { %v2712_v59 = vsel %vm2688_vm8, %v2679_v31, %v2434_v51  ;;  %3941 = vperm.xlu1 %13384, %v3048_v27  }
 0x20d   : > { %13141 = vmatmul.mubr.msk.bf16.gmra.mxu0 %vm2764_vm10, %v2712_v59 }
 0x20e   : > { %3732 = vperm.xlu0 %13398, %v3029_v33   ;;  %v19819_v33 = vmul.bf16 %v14406_v4, %v14409_v55  ;;  %v19820_v55 = vmul.bf16 %v14434_v11, %v14437_v30 }
 0x20f   : > { %v2163_v28 = vpop.permute.xlu1 %2162  ;;  %v2213_v48 = vpop.permute.xlu0 %2212 }
 0x210   : > { %3952 = vperm.xlu1 %13384, %v14824_v44   ;;  %v2482_v22 = vsel %vm2443_vm4, %v19819_v33, %v2115_v38  ;;  %v2485_v50 = vsel %vm2443_vm4, %v19820_v55, %v2117_v32 }
 0x211   : > { %v2517_v56 = vsel %vm643_vm2, %v2482_v22, %v2163_v28  ;;  %v2519_v39 = vsel %vm643_vm2, %v2485_v50, %v2165_v0  ;;  %v19823_v22 = vmul.bf16 %v19804_v6, %v14489_v57 }
 0x212   : > { %3919 = vperm.xlu0 %13398, %v14802_v21   ;;  %v2551_v43 = vsel %vm604_vm0, %v2519_v39, %v2213_v48 }
 0x213   : > { %v2211_v61 = vpop.permute.xlu1 %2210  ;;  %v2261_v15 = vpop.permute.xlu0 %2260 }
 0x214   : > { %13385 = vset.pattern.permute.xlu1 %v19811_v1  ;;  %v2584_v24 = vsel %vm2556_vm5, %v2551_v43, %v2261_v15 }
 0x215   : > { %3168 = vperm.xlu1 %13385, %v3031_v13  }
 0x216   : > { %3754 = vperm.xlu0 %13398, %v3031_v13  }
 0x217   : > { %v2259_v14 = vpop.permute.xlu1 %2258  ;;  %v2309_v54 = vpop.permute.xlu0 %2308 }
 0x218   : > { %v2617_v30 = vsel %vm2589_vm6, %v2584_v24, %v2309_v54 }
 0x219   : > { %3372 = vperm.xlu1 %13385, %v3048_v27  }
 0x21a   : > { %3776 = vperm.xlu0 %13398, %v3033_v62  }
 0x21b   : > { %v2307_v44 = vpop.permute.xlu1 %2306  ;;  %v2357_v21 = vpop.permute.xlu0 %2356 }
 0x21c   : > { %v2650_v26 = vsel %vm2622_vm7, %v2617_v30, %v2357_v21 }
 0x21d   : > { %13386 = vset.pattern.permute.xlu1 %v19812_v7 }
 0x21e   : > { %3765 = vperm.xlu1 %13386, %v3032_v40   ;;  %3963 = vperm.xlu0 %13398, %v14840_v2   ;;  %v2549_v2 = vsel %vm604_vm0, %v2517_v56, %v2211_v61 }
 0x21f   : > { %v2355_v45 = vpop.permute.xlu1 %2354  ;;  %v2390_v46 = vpop.permute.xlu0 %2389  ;;  %v2582_v4 = vsel %vm2556_vm5, %v2549_v2, %v2259_v14 }
 0x220   : > { %v2615_v18 = vsel %vm2589_vm6, %v2582_v4, %v2307_v44  ;;  %v2683_v25 = vsel %vm2655_vm9, %v2650_v26, %v2390_v46  ;;  %v3052_v44 = vld [vmem:[%s19701_s17 + $0x68] sm:$0xf] }
 0x221   : > { %v2648_v41 = vsel %vm2622_vm7, %v2615_v18, %v2355_v45 }
 0x222   : > { %13387 = vset.pattern.permute.xlu1 %v19811_v1  ;;  %3798 = vperm.xlu0 %13398, %v14952_v63  }
 0x223   : > { %3180 = vperm.xlu1 %13387, %v3032_v40   ;;  %v2388_v42 = vpop.permute.xlu1 %2387  ;;  %v14962_v5 = vpop.permute.xlu0 %2118 }
 0x224   : > { %v2681_v3 = vsel %vm2655_vm9, %v2648_v41, %v2388_v42 }
 0x226   : > { %3820 = vperm.xlu0 %13398, %v14967_v36  }
 0x227   : > { %3192 = vperm.xlu1 %13387, %v3033_v62   ;;  %v2436_v8 = vpop.permute.xlu1 %2435  ;;  %v2121_v38 = vpop.permute.xlu0 %2120 }
 0x228   : > { %v2714_v11 = vsel %vm2688_vm8, %v2681_v3, %v2436_v8  ;;  %v2491_v56 = vsel %vm2443_vm4, %v19823_v22, %v2121_v38  ;;  %v3036_v8 = vld [vmem:[%s19701_s17 + $0x28] sm:$0xf] }
 0x229   : > { %13144 = vmatprep.mubr.msk.bf16.mxu0 %vm2764_vm10, %v2714_v11 }
 0x22a   : > { %4007 = vperm.xlu0 %13398, %v14878_v20  }
 0x22b   : > { %13388 = vset.pattern.permute.xlu1 %v19812_v7  ;;  %v2438_v60 = vpop.permute.xlu1 %2437  ;;  %v2169_v52 = vpop.permute.xlu0 %2168 }
 0x22c   : > { %v2716_v17 = vsel %vm2688_vm8, %v2683_v25, %v2438_v60  ;;  %3974 = vperm.xlu1 %13388, %v3051_v19   ;;  %v2523_v42 = vsel %vm643_vm2, %v2491_v56, %v2169_v52 }
 0x22d   : > { %v13122_v20 = vpop.f32.mrf.mxu0  ;;  %13145 = vmatmul.mubr.msk.bf16.gmra.mxu0 %vm2764_vm10, %v2716_v17 }
 0x22e   : > { %v2844_v32 = vadd.f32 %v13122_v20, %v14994_v29  ;;  %3842 = vperm.xlu0 %13398, %v14999_v16  }
 0x22f   : > { %v2167_v10 = vpop.permute.xlu1 %2166  ;;  %v2217_v49 = vpop.permute.xlu0 %2216 }
 0x230   : > { %v2964_v27 = vmax.f32 %v2844_v32, 0.0  ;;  %v2835_v23 = vpop.f32.mrf.mxu0  ;;  %13389 = vset.pattern.permute.xlu1 %v19811_v1 }
 0x231   : > { %v2836_v31 = vadd.f32 %v14994_v29, %v2835_v23  ;;  %3408 = vperm.xlu1 %13389, %v3051_v19   ;;  %v3055_v23 = vld [vmem:[%s19701_s17 + $0x74] sm:$0xf] }
 0x232   : > { %2996 = vst.msk [vmem:[#allocation2 + $0x28] sm:$0xff] %vm2443_vm4, %v2964_v27  ;;  %v13123_v51 = vpop.f32.mrf.mxu0  ;;  %3864 = vperm.xlu0 %13398, %v15008_v47  }
 0x233   : > { %v2962_v0 = vmax.f32 %v2836_v31, 0.0  ;;  %v2847_v59 = vadd.f32 %v13123_v51, %v14994_v29  ;;  %v2215_v28 = vpop.permute.xlu1 %2214  ;;  %v2265_v48 = vpop.permute.xlu0 %2264 }
 0x234   : > { %v2838_v13 = vpop.f32.mrf.mxu0 }
 0x235   : > { %2994 = vst.msk [vmem:[#allocation2 + $0x18] sm:$0xff] %vm2443_vm4, %v2962_v0  ;;  %v2965_v61 = vmax.f32 %v2847_v59, 0.0  ;;  %v2839_v15 = vadd.f32 %v14994_v29, %v2838_v13  ;;  %13390 = vset.pattern.permute.xlu1 %v19812_v7  ;;  %v3056_v0 = vld [vmem:[%s19701_s17 + $0x78] sm:$0xf] }
 0x236   : > { %3787 = vperm.xlu1 %13390, %v14858_v34   ;;  %v19822_v34 = vmul.bf16 %v19803_v35, %v14462_v53  ;;  %v2555_v53 = vsel %vm604_vm0, %v2523_v42, %v2217_v49 }
 0x237   : > { %2997 = vst.msk [vmem:[#allocation2 + $0x30] sm:$0xff] %vm2443_vm4, %v2965_v61  ;;  %v2963_v14 = vmax.f32 %v2839_v15, 0.0  ;;  %v2263_v54 = vpop.permute.xlu1 %2262  ;;  %v2313_v62 = vpop.permute.xlu0 %2312 }
 0x238   : > { %v2488_v33 = vsel %vm2443_vm4, %v19822_v34, %v14962_v5  ;;  %v2588_v5 = vsel %vm2556_vm5, %v2555_v53, %v2265_v48 }
 0x239   : > { %2995 = vst.msk [vmem:[#allocation2 + $0x20] sm:$0xff] %vm2443_vm4, %v2963_v14  ;;  %v2521_v2 = vsel %vm643_vm2, %v2488_v33, %v2167_v10  ;;  %v2621_v6 = vsel %vm2589_vm6, %v2588_v5, %v2313_v62 }
 0x23a   : > { %3985 = vperm.xlu1 %13390, %v3052_v44  }
 0x23b   : > { %v2311_v21 = vpop.permute.xlu1 %2310  ;;  %v2361_v40 = vpop.permute.xlu0 %2360 }
 0x23c   : > { %v2654_v18 = vsel %vm2622_vm7, %v2621_v6, %v2361_v40 }
 0x23e   : > { %3996 = vperm.xlu1 %13390, %v14871_v9   ;;  %v2553_v9 = vsel %vm604_vm0, %v2521_v2, %v2215_v28  ;;  %v4162_v2 = vld [vmem:[#allocation2 + $0x17] sm:$0xff]  ;;  %v4276_v5 = vld [vmem:[#allocation2 + $0x29] sm:$0xff] }
 0x23f   : > { %v2359_v45 = vpop.permute.xlu1 %2358  ;;  %v2394_v46 = vpop.permute.xlu0 %2393  ;;  %v2586_v35 = vsel %vm2556_vm5, %v2553_v9, %v2263_v54  ;;  %v3040_v9 = vld [vmem:[%s19701_s17 + $0x38] sm:$0xf] }
 0x240   : > { %v2619_v57 = vsel %vm2589_vm6, %v2586_v35, %v2311_v21  ;;  %v2687_v41 = vsel %vm2655_vm9, %v2654_v18, %v2394_v46  ;;  %v4163_v22 = vld [vmem:[#allocation2 + $0x1f] sm:$0xff] }
 0x241   : > { %v2652_v55 = vsel %vm2622_vm7, %v2619_v57, %v2359_v45 }
 0x242   : > { %13391 = vset.pattern.permute.xlu1 %v19811_v1 }
 0x243   : > { %3216 = vperm.xlu1 %13391, %v14952_v63   ;;  %v2392_v4 = vpop.permute.xlu1 %2391  ;;  %v2442_v50 = vpop.permute.xlu0 %2441 }
 0x244   : > { %v2685_v39 = vsel %vm2655_vm9, %v2652_v55, %v2392_v4  ;;  %v2720_v3 = vsel %vm2688_vm8, %v2687_v41, %v2442_v50  ;;  %v15113_v4 = vpack.c.bf16 %v4163_v22, %v4162_v2  ;;  %v3602_v55 = vld [vmem:[#allocation2 + $0x8] sm:$0xff]  ;;  %v3603_v50 = vld [vmem:[#allocation2 + $0x10] sm:$0xff] }
 0x247   : > { %3420 = vperm.xlu1 %13391, %v3052_v44   ;;  %v2440_v63 = vpop.permute.xlu1 %2439 }
 0x248   : > { %v2718_v43 = vsel %vm2688_vm8, %v2685_v39, %v2440_v63  ;;  %v3634_v39 = vpack.c.bf16 %v3603_v50, %v3602_v55 }
 0x249   : > { %13148 = vmatprep.mubr.msk.bf16.mxu0 %vm2764_vm10, %v2718_v43 }
 0x24a   : > { %13149 = vmatmul.mubr.msk.bf16.gmra.mxu0 %vm2764_vm10, %v2720_v3 }
 0x24b   : > { %13392 = vset.pattern.permute.xlu1 %v19812_v7  ;;  %v15056_v38 = vpop.permute.xlu1 %3875 }
 0x24c   : > { %3809 = vperm.xlu1 %13392, %v3036_v8  }
 0x24d   : > { %v13126_v24 = vpop.f32.mrf.mxu0 }
 0x24e   : > { %v2860_v11 = vadd.f32 %v13126_v24, %v14994_v29 }
 0x24f   : > { %v2851_v30 = vpop.f32.mrf.mxu0 }
 0x250   : > { %v2968_v19 = vmax.f32 %v2860_v11, 0.0  ;;  %v2852_v26 = vadd.f32 %v14994_v29, %v2851_v30  ;;  %13393 = vset.pattern.permute.xlu1 %v19811_v1  ;;  %v15061_v25 = vpop.permute.xlu1 %3300  ;;  %v15093_v48 = vpop.permute.xlu0 %3108 }
 0x251   : > { %3228 = vperm.xlu1 %13393, %v3036_v8   ;;  %v13127_v60 = vpop.f32.mrf.mxu0 }
 0x252   : > { %3000 = vst.msk [vmem:[#allocation2 + $0x48] sm:$0xff] %vm2443_vm4, %v2968_v19  ;;  %v2966_v52 = vmax.f32 %v2852_v26, 0.0  ;;  %v2863_v17 = vadd.f32 %v13127_v60, %v14994_v29  ;;  %v4164_v26 = vld [vmem:[#allocation2 + $0x27] sm:$0xff] }
 0x253   : > { %v2854_v20 = vpop.f32.mrf.mxu0 }
 0x254   : > { %2998 = vst.msk [vmem:[#allocation2 + $0x38] sm:$0xff] %vm2443_vm4, %v2966_v52  ;;  %v2969_v32 = vmax.f32 %v2863_v17, 0.0  ;;  %v2855_v10 = vadd.f32 %v14994_v29, %v2854_v20  ;;  %v15067_v49 = vpop.permute.xlu1 %3312  ;;  %v15101_v21 = vpop.permute.xlu0 %3336 }
 0x255   : > { %3240 = vperm.xlu1 %13393, %v14967_v36  }
 0x256   : > { %3001 = vst.msk [vmem:[#allocation2 + $0x50] sm:$0xff] %vm2443_vm4, %v2969_v32  ;;  %v2967_v27 = vmax.f32 %v2855_v10, 0.0 }
 0x258   : > { %2999 = vst.msk [vmem:[#allocation2 + $0x40] sm:$0xff] %vm2443_vm4, %v2967_v27  ;;  %v15116_v53 = vpop.permute.xlu0 %3348  ;;  %v4165_v27 = vld [vmem:[#allocation2 + $0x2f] sm:$0xff] }
 0x259   : > { %13394 = vset.pattern.permute.xlu1 %v19812_v7  ;;  %v15076_v31 = vpop.permute.xlu1 %3710 }
 0x25a   : > { %4018 = vperm.xlu1 %13394, %v3055_v23  }
 0x25c   : > { %v3157_v57 = vpop.permute.xlu0 %3156 }
 0x25d   : > { %v15078_v51 = vpop.permute.xlu1 %3908  ;;  %v3165_v60 = vrot.slane %v3157_v57, %v14071_v12 }
 0x25e   : > { %13395 = vset.pattern.permute.xlu1 %v19811_v1 }
 0x25f   : > { %3456 = vperm.xlu1 %13395, %v3055_v23  }
 0x260   : > { %v15129_v63 = vpop.permute.xlu0 %3384 }
 0x262   : > { %v15081_v36 = vpop.permute.xlu1 %3120 }
 0x263   : > { %13396 = vset.pattern.permute.xlu1 %v19812_v7 }
 0x264   : > { %3831 = vperm.xlu1 %13396, %v14888_v58   ;;  %v15135_v43 = vpop.permute.xlu0 %3396 }
 0x266   : > { %v15088_v59 = vpop.permute.xlu1 %3324 }
 0x268   : > { %4029 = vperm.xlu1 %13396, %v3056_v0   ;;  %v15142_v52 = vpop.permute.xlu0 %3204 }
 0x26b   : > { %v15090_v28 = vpop.permute.xlu1 %3721 }
 0x26c   : > { %4040 = vperm.xlu1 %13396, %v14894_v37  }
 0x26d   : > { %v13130_v13 = vpop.f32.mrf.mxu0 }
 0x26e   : > { %v2876_v61 = vadd.f32 %v13130_v13, %v14994_v29  ;;  %v15149_v13 = vpack.c.bf16 %v4165_v27, %v4164_v26 }
 0x26f   : > { %v2867_v15 = vpop.f32.mrf.mxu0 }
 0x270   : > { %v2972_v14 = vmax.f32 %v2876_v61, 0.0  ;;  %v2868_v58 = vadd.f32 %v14994_v29, %v2867_v15  ;;  %13397 = vset.pattern.permute.xlu1 %v19811_v1  ;;  %v3133_v54 = vpop.permute.xlu1 %3132  ;;  %19825 = vst [vmem:[#allocation13_spill] sm:$0xff] %v15149_v13 }
 0x271   : > { %3264 = vperm.xlu1 %13397, %v14999_v16   ;;  %v13131_v62 = vpop.f32.mrf.mxu0  ;;  %v3141_v40 = vrot.slane %v3133_v54, %v14071_v12 }
 0x272   : > { %3004 = vst.msk [vmem:[#allocation2 + $0x68] sm:$0xff] %vm2443_vm4, %v2972_v14  ;;  %v2970_v44 = vmax.f32 %v2868_v58, 0.0  ;;  %v2879_v37 = vadd.f32 %v13131_v62, %v14994_v29  ;;  %v15158_v62 = vpop.permute.xlu0 %3432 }
 0x273   : > { %v2870_v45 = vpop.f32.mrf.mxu0 }
 0x274   : > { %3002 = vst.msk [vmem:[#allocation2 + $0x58] sm:$0xff] %vm2443_vm4, %v2970_v44  ;;  %v2973_v46 = vmax.f32 %v2879_v37, 0.0  ;;  %v2871_v34 = vadd.f32 %v14994_v29, %v2870_v45  ;;  %v3145_v33 = vpop.permute.xlu1 %3144 }
 0x275   : > { %v3153_v16 = vrot.slane %v3145_v33, %v14071_v12  ;;  %3468 = vperm.xlu1 %13397, %v3056_v0  }
 0x276   : > { %3005 = vst.msk [vmem:[#allocation2 + $0x70] sm:$0xff] %vm2443_vm4, %v2973_v46  ;;  %v2971_v56 = vmax.f32 %v2871_v34, 0.0  ;;  %v15163_v37 = vpop.permute.xlu0 %3444 }
 0x277   : > { %v15108_v42 = vcombine.low %v3141_v40, %v3153_v16  ;;  %v4167_v16 = vld [vmem:[#allocation2 + $0x3f] sm:$0xff] }
 0x278   : > { %3003 = vst.msk [vmem:[#allocation2 + $0x60] sm:$0xff] %vm2443_vm4, %v2971_v56 }
 0x279   : > { %13399 = vset.pattern.permute.xlu1 %v19812_v7  ;;  %v15119_v35 = vpop.permute.xlu1 %3930 }
 0x27a   : > { %3853 = vperm.xlu1 %13399, %v3040_v9   ;;  %v15167_v56 = vpop.permute.xlu0 %3252 }
 0x27e   : > { %13400 = vset.pattern.permute.xlu1 %v19811_v1  ;;  %v15124_v6 = vpop.permute.xlu1 %3360 }
 0x27f   : > { %3276 = vperm.xlu1 %13400, %v3040_v9   ;;  %v4166_v9 = vld [vmem:[#allocation2 + $0x37] sm:$0xff] }
 0x280   : > { %v15172_v55 = vpack.c.bf16 %v4167_v16, %v4166_v9 }
 0x282   : > { %19827 = vst [vmem:[#allocation7_spill] sm:$0xff] %v15172_v55 }
 0x283   : > { %3288 = vperm.xlu1 %13400, %v15008_v47   ;;  %v15127_v18 = vpop.permute.xlu1 %3743 }
 0x287   : > { %v15131_v41 = vpop.permute.xlu1 %3941  ;;  %4395 = vrot.lane.b32.xlu1 %v3634_v39, %s19761_s14 }
 0x288   : > { %13401 = vset.pattern.permute.xlu1 %v19812_v7 }
 0x28b   : > { %v15137_v3 = vpop.permute.xlu1 %3952 }
 0x28d   : > { %v13134_v8 = vpop.f32.mrf.mxu0 }
 0x28e   : > { %v2892_v24 = vadd.f32 %v13134_v8, %v14994_v29  ;;  %v15178_v8 = vpop.permute.xlu0 %3480 }
 0x28f   : > { %v2883_v11 = vpop.f32.mrf.mxu0 }
 0x290   : > { %v2976_v47 = vmax.f32 %v2892_v24, 0.0  ;;  %v2884_v30 = vadd.f32 %v14994_v29, %v2883_v11  ;;  %v3169_v19 = vpop.permute.xlu1 %3168 }
 0x291   : > { %v3177_v17 = vrot.slane %v3169_v19, %v14071_v12  ;;  %v13135_v20 = vpop.f32.mrf.mxu0 }
 0x292   : > { %3008 = vst.msk [vmem:[#allocation2 + $0x88] sm:$0xff] %vm2443_vm4, %v2976_v47  ;;  %v2974_v32 = vmax.f32 %v2884_v30, 0.0  ;;  %v2895_v10 = vadd.f32 %v13135_v20, %v14994_v29  ;;  %v3887_v30 = vpop.permute.xlu0 %3886 }
 0x293   : > { %v15147_v23 = vcombine.low %v3165_v60, %v3177_v17  ;;  %v2886_v0 = vpop.f32.mrf.mxu0 }
 0x294   : > { %3006 = vst.msk [vmem:[#allocation2 + $0x78] sm:$0xff] %vm2443_vm4, %v2974_v32  ;;  %v2977_v61 = vmax.f32 %v2895_v10, 0.0  ;;  %v2887_v15 = vadd.f32 %v14994_v29, %v2886_v0  ;;  %v15153_v14 = vpop.permute.xlu1 %3372 }
 0x295   : > { %19824 = vst [vmem:[#allocation12_spill] sm:$0xff] %v15147_v23 }
 0x296   : > { %3009 = vst.msk [vmem:[#allocation2 + $0x90] sm:$0xff] %vm2443_vm4, %v2977_v61  ;;  %v2975_v54 = vmax.f32 %v2887_v15, 0.0  ;;  %v3700_v15 = vpop.permute.xlu0 %3699 }
 0x298   : > { %3007 = vst.msk [vmem:[#allocation2 + $0x80] sm:$0xff] %vm2443_vm4, %v2975_v54 }
 0x299   : > { %v15161_v44 = vpop.permute.xlu1 %3765  ;;  %v3618_v40 = vld [vmem:[#allocation2 + $0x88] sm:$0xff] }
 0x29a   : > { %v3898_v16 = vpop.permute.xlu0 %3897 }
 0x29d   : > { %v3619_v45 = vld [vmem:[#allocation2 + $0x90] sm:$0xff] }
 0x29e   : > { %v3181_v46 = vpop.permute.xlu1 %3180  ;;  %v3642_v34 = vpack.c.bf16 %v3619_v45, %v3618_v40  ;;  %v3895_v45 = vrot.slane %v3887_v30, %v14071_v12  ;;  %v3651_v30 = vld [vmem:[#allocation2 + $0x11] sm:$0xff] }
 0x29f   : > { %v3189_v33 = vrot.slane %v3181_v46, %v14071_v12 }
 0x2a0   : > { %4411 = vrot.lane.b32.xlu0 %v3642_v34, %s19761_s14  ;;  %v3884_v34 = vrot.slane %v15056_v38, %v14071_v12 }
 0x2a2   : > { %v3193_v22 = vpop.permute.xlu1 %3192 }
 0x2a3   : > { %v3201_v2 = vrot.slane %v3193_v22, %v14071_v12  ;;  %v3708_v22 = vrot.slane %v3700_v15, %v14071_v12 }
 0x2a5   : > { %v15170_v57 = vcombine.low %v3189_v33, %v3201_v2  ;;  %v3719_v33 = vrot.slane %v15076_v31, %v14071_v12  ;;  %v3666_v2 = vld [vmem:[#allocation2 + $0x89] sm:$0xff]  ;;  %v3309_v31 = vrot.slane %v15061_v25, %v14071_v12 }
 0x2a7   : > { %19826 = vst [vmem:[#allocation6_spill] sm:$0xff] %v15170_v57  ;;  %v15174_v50 = vpop.permute.xlu1 %3974 }
 0x2ac   : > { %v15180_v24 = vpop.permute.xlu1 %3408 }
 0x2ad   : > { %v13138_v11 = vpop.f32.mrf.mxu0 }
 0x2ae   : > { %v2908_v47 = vadd.f32 %v13138_v11, %v14994_v29  ;;  %v15202_v11 = vcombine.low %v3884_v34, %v3895_v45 }
 0x2af   : > { %v2899_v19 = vpop.f32.mrf.mxu0 }
 0x2b0   : > { %v2980_v26 = vmax.f32 %v2908_v47, 0.0  ;;  %v2900_v60 = vadd.f32 %v14994_v29, %v2899_v19  ;;  %v3650_v19 = vld [vmem:[#allocation2 + $0x9] sm:$0xff] }
 0x2b1   : > { %v15184_v17 = vpop.permute.xlu1 %3787  ;;  %v13139_v20 = vpop.f32.mrf.mxu0  ;;  %v3682_v34 = vpack.c.bf16 %v3651_v30, %v3650_v19  ;;  %v3906_v19 = vrot.slane %v3898_v16, %v14071_v12  ;;  %v3730_v16 = vrot.slane %v15090_v28, %v14071_v12 }
 0x2b2   : > { %3012 = vst.msk [vmem:[#allocation2 + $0xa8] sm:$0xff] %vm2443_vm4, %v2980_v26  ;;  %v2978_v32 = vmax.f32 %v2900_v60, 0.0  ;;  %v2911_v10 = vadd.f32 %v13139_v20, %v14994_v29  ;;  %v3369_v26 = vrot.slane %v15124_v6, %v14071_v12  ;;  %v15206_v60 = vcombine.low %v3708_v22, %v3719_v33  ;;  %v4168_v22 = vld [vmem:[#allocation2 + $0x47] sm:$0xff] }
 0x2b3   : > { %v2902_v27 = vpop.f32.mrf.mxu0 }
 0x2b4   : > { %3010 = vst.msk [vmem:[#allocation2 + $0x98] sm:$0xff] %vm2443_vm4, %v2978_v32  ;;  %v2981_v0 = vmax.f32 %v2911_v10, 0.0  ;;  %v2903_v61 = vadd.f32 %v14994_v29, %v2902_v27  ;;  %v3605_v32 = vld [vmem:[#allocation2 + $0x20] sm:$0xff]  ;;  %v3321_v10 = vrot.slane %v15067_v49, %v14071_v12  ;;  %v3213_v27 = vrot.slane %v15142_v52, %v14071_v12 }
 0x2b5   : > { %v15190_v54 = vpop.permute.xlu1 %3985  ;;  %v3917_v49 = vrot.slane %v15078_v51, %v14071_v12  ;;  %v3129_v52 = vrot.slane %v15081_v36, %v14071_v12  ;;  %v4146_v51 = vmul.bf16 %v15206_v60, %v3682_v34  ;;  %v3604_v36 = vld [vmem:[#allocation2 + $0x18] sm:$0xff] }
 0x2b6   : > { %3013 = vst.msk [vmem:[#allocation2 + $0xb0] sm:$0xff] %vm2443_vm4, %v2981_v0  ;;  %v2979_v40 = vmax.f32 %v2903_v61, 0.0 }
 0x2b8   : > { %3011 = vst.msk [vmem:[#allocation2 + $0xa0] sm:$0xff] %vm2443_vm4, %v2979_v40  ;;  %v3357_v40 = vrot.slane %v15116_v53, %v14071_v12 }
 0x2b9   : > { %v15195_v46 = vpop.permute.xlu1 %3996 }
 0x2bb   : > { %v3667_v9 = vld [vmem:[#allocation2 + $0x91] sm:$0xff] }
 0x2bc   : > { %v3690_v47 = vpack.c.bf16 %v3667_v9, %v3666_v2  ;;  %v3620_v61 = vld [vmem:[#allocation2 + $0x98] sm:$0xff]  ;;  %v3733_v2 = vpop.permute.xlu0 %3732 }
 0x2bd   : > { %v4181_v33 = vld [vmem:[#allocation2 + $0xaf] sm:$0xff] }
 0x2be   : > { %v3217_v20 = vpop.permute.xlu1 %3216  ;;  %v4154_v38 = vmul.bf16 %v15202_v11, %v3690_v47  ;;  %v4178_v47 = vld [vmem:[#allocation2 + $0x97] sm:$0xff] }
 0x2bf   : > { %v3225_v0 = vrot.slane %v3217_v20, %v14071_v12  ;;  %v3621_v15 = vld [vmem:[#allocation2 + $0xa0] sm:$0xff] }
 0x2c0   : > { %v4179_v6 = vld [vmem:[#allocation2 + $0x9f] sm:$0xff]  ;;  %4459 = vrot.lane.b32.xlu1 %v4154_v38, %s19757_s0  ;;  %v15219_v45 = vpack.c.bf16 %v3621_v15, %v3620_v61  ;;  %v4180_v25 = vld [vmem:[#allocation2 + $0xa7] sm:$0xff]  ;;  %v15229_v38 = vcombine.low %v3357_v40, %v3369_v26  ;;  %v15241_v15 = vcombine.low %v3309_v31, %v3321_v10  ;;  %v3635_v26 = vpack.c.bf16 %v3605_v32, %v3604_v36 }
 0x2c1   : > { %v15225_v9 = vcombine.low %v3213_v27, %v3225_v0  ;;  %v3668_v20 = vld [vmem:[#allocation2 + $0x99] sm:$0xff]  ;;  %v3669_v53 = vld [vmem:[#allocation2 + $0xa1] sm:$0xff]  ;;  %v15227_v39 = vpack.c.bf16 %v4181_v33, %v4180_v25  ;;  %v15237_v61 = vpack.c.bf16 %v4179_v6, %v4178_v47  ;;  %v4169_v27 = vld [vmem:[#allocation2 + $0x4f] sm:$0xff]  ;;  %v3117_v0 = vrot.slane %v15093_v48, %v14071_v12 }
 0x2c2   : > { %19828 = vst [vmem:[#allocation8_spill] sm:$0xff] %v15219_v45  ;;  %19830 = vst [vmem:[#allocation10_spill] sm:$0xff] %v15229_v38  ;;  %v15232_v30 = vpop.permute.xlu1 %3420  ;;  %4413 = vrot.lane.b32.xlu0 %v15219_v45, %s19761_s14  ;;  %v15243_v40 = vpack.c.bf16 %v4169_v27, %v4168_v22  ;;  %v3741_v25 = vrot.slane %v3733_v2, %v14071_v12  ;;  %v15249_v34 = vpack.c.bf16 %v3669_v53, %v3668_v20  ;;  %v3652_v33 = vld [vmem:[#allocation2 + $0x19] sm:$0xff]  ;;  %v3653_v22 = vld [vmem:[#allocation2 + $0x21] sm:$0xff] }
 0x2c3   : > { %19829 = vst [vmem:[#allocation9_spill] sm:$0xff] %v15227_v39  ;;  %v15255_v31 = vcombine.low %v3117_v0, %v3129_v52  ;;  %v15257_v32 = vcombine.low %v3906_v19, %v3917_v49  ;;  %v4218_v28 = vmul.bf16 %v15241_v15, %v15237_v61  ;;  %v3333_v49 = vrot.slane %v15088_v59, %v14071_v12 }
 0x2c4   : > { %19831 = vst [vmem:[#allocation11_spill] sm:$0xff] %v15243_v40  ;;  %4443 = vrot.lane.b32.xlu1 %v4146_v51, %s19757_s0  ;;  %19832 = vst [vmem:[#allocation14_spill] sm:$0xff] %v15249_v34  ;;  %v15264_v2 = vcombine.low %v3730_v16, %v3741_v25  ;;  %v3683_v20 = vpack.c.bf16 %v3653_v22, %v3652_v33  ;;  %v3345_v53 = vrot.slane %v15101_v21, %v14071_v12  ;;  %v4171_v22 = vld [vmem:[#allocation2 + $0x5f] sm:$0xff] }
 0x2c5   : > { %v4155_v47 = vmul.bf16 %v15257_v32, %v15249_v34  ;;  %v4210_v52 = vmul.bf16 %v15255_v31, %v15113_v4  ;;  %v3405_v6 = vrot.slane %v15135_v43, %v14071_v12 }
 0x2c6   : > { %4397 = vrot.lane.b32.xlu0 %v3635_v26, %s19761_s14  ;;  %v4147_v51 = vmul.bf16 %v15264_v2, %v3683_v20  ;;  %v15278_v27 = vcombine.low %v3333_v49, %v3345_v53 }
 0x2c7   : > { %v15262_v10 = vpop.permute.xlu1 %3809 }
 0x2c8   : > { %4507 = vrot.lane.b32.xlu1 %v4218_v28, %s19755_s25  ;;  %v4219_v21 = vmul.bf16 %v15278_v27, %v15227_v39 }
 0x2ca   : > { %4461 = vrot.lane.b32.xlu0 %v4155_v47, %s19757_s0 }
 0x2cc   : > { %v3229_v19 = vpop.permute.xlu1 %3228  ;;  %4491 = vrot.lane.b32.xlu1 %v4210_v52, %s19755_s25 }
 0x2cd   : > { %v13142_v36 = vpop.f32.mrf.mxu0  ;;  %v3237_v59 = vrot.slane %v3229_v19, %v14071_v12  ;;  %v4170_v19 = vld [vmem:[#allocation2 + $0x57] sm:$0xff] }
 0x2ce   : > { %v2924_v0 = vadd.f32 %v13142_v36, %v14994_v29  ;;  %4445 = vrot.lane.b32.xlu0 %v4147_v51, %s19757_s0 }
 0x2cf   : > { %v2915_v16 = vpop.f32.mrf.mxu0 }
 0x2d0   : > { %v2984_v25 = vmax.f32 %v2924_v0, 0.0  ;;  %v2916_v28 = vadd.f32 %v14994_v29, %v2915_v16  ;;  %v3241_v33 = vpop.permute.xlu1 %3240  ;;  %4555 = vrot.lane.b32.xlu1 %v15219_v45, %s19759_s28  ;;  %v15294_v0 = vpack.c.bf16 %v4171_v22, %v4170_v19  ;;  %v4330_v22 = vmul.bf16 %v15202_v11, %v15249_v34 }
 0x2d1   : > { %v3249_v47 = vrot.slane %v3241_v33, %v14071_v12  ;;  %v13143_v49 = vpop.f32.mrf.mxu0  ;;  %v4245_v33 = vld [vmem:[#allocation2 + $0xb0] sm:$0xff]  ;;  %v4322_v19 = vmul.bf16 %v15206_v60, %v3683_v20  ;;  %v4349_v20 = vmul.bf16 %v15241_v15, %v15227_v39 }
 0x2d2   : > { %3016 = vst.msk [vmem:[#allocation2 + $0xc8] sm:$0xff] %vm2443_vm4, %v2984_v25  ;;  %v2982_v52 = vmax.f32 %v2916_v28, 0.0  ;;  %v2927_v53 = vadd.f32 %v13143_v49, %v14994_v29  ;;  %4509 = vrot.lane.b32.xlu0 %v4219_v21, %s19755_s25  ;;  %19833 = vst [vmem:[#allocation15_spill] sm:$0xff] %v15294_v0  ;;  %v4211_v25 = vmul.bf16 %v15108_v42, %v15149_v13 }
 0x2d3   : > { %v15292_v51 = vcombine.low %v3237_v59, %v3249_v47  ;;  %v2918_v36 = vpop.f32.mrf.mxu0  ;;  %v4244_v47 = vld [vmem:[#allocation2 + $0xa8] sm:$0xff] }
 0x2d4   : > { %3014 = vst.msk [vmem:[#allocation2 + $0xb8] sm:$0xff] %vm2443_vm4, %v2982_v52  ;;  %v2985_v16 = vmax.f32 %v2927_v53, 0.0  ;;  %v2919_v48 = vadd.f32 %v14994_v29, %v2918_v36  ;;  %4539 = vrot.lane.b32.xlu1 %v3635_v26, %s19759_s28  ;;  %v13487_v26 = vld [vmem:[%s19834_s24 + $0x20] ss:$0 sps:$4 sm:$0xff]   ;;  %v15314_v49 = vpack.c.bf16 %v4245_v33, %v4244_v47  ;;  %v4229_v52 = vld [vmem:[#allocation2 + $0x30] sm:$0xff]  ;;  %v4228_v36 = vld [vmem:[#allocation2 + $0x28] sm:$0xff]  ;;  %v3381_v47 = vrot.slane %v15153_v14, %v14071_v12 }
 0x2d5   : > { %v15301_v28 = vpop.permute.xlu1 %4018  ;;  %13306 = vmatprep.subr.msk.bf16.mxu1 %vm2797_vm3, %v13487_v26  ;;  %13305 = vmatprep.subr.msk.bf16.mxu0 %vm2797_vm3, %v13487_v26  ;;  %v15325_v33 = vpack.c.bf16 %v4229_v52, %v4228_v36 }
 0x2d6   : > { %3017 = vst.msk [vmem:[#allocation2 + $0xd0] sm:$0xff] %vm2443_vm4, %v2985_v16  ;;  %v2983_v21 = vmax.f32 %v2919_v48, 0.0  ;;  %4493 = vrot.lane.b32.xlu0 %v4211_v25, %s19755_s25  ;;  %v5096_v48 = vsel %vm2797_vm3, %v13487_v26, 0  ;;  %v4292_v16 = vld [vmem:[#allocation2 + $0xa9] sm:$0xff]  ;;  %v3417_v26 = vrot.slane %v15180_v24, %v14071_v12 }
 0x2d7   : > { %13299 = vmatpush3.bf16.msra.mxu1 %v5096_v48  ;;  %13153 = vmatpush3.bf16.msra.mxu0 %v5096_v48  ;;  %v4277_v48 = vld [vmem:[#allocation2 + $0x31] sm:$0xff] }
 0x2d8   : > { %3015 = vst.msk [vmem:[#allocation2 + $0xc0] sm:$0xff] %vm2443_vm4, %v2983_v21  ;;  %4603 = vrot.lane.b32.xlu1 %v4330_v22, %s19753_s1  ;;  %v13488_v22 = vld [vmem:[%s19834_s24 + $0x18] sm:$0xff]   ;;  %v13489_v24 = vld [vmem:[%s19834_s24 + $0x10] sm:$0xff]   ;;  %v15366_v1 = vcombine.low %v3405_v6, %v3417_v26 }
 0x2d9   : > { %13295 = vmatprep.subr.bf16.mxu1 %v13488_v22  ;;  %13154 = vmatprep.subr.bf16.mxu0 %v13488_v22 }
 0x2da   : > { %v15319_v53 = vpop.permute.xlu1 %3456  ;;  %4557 = vrot.lane.b32.xlu0 %v15314_v49, %s19759_s28 }
 0x2db   : > { %v4293_v25 = vld [vmem:[#allocation2 + $0xb1] sm:$0xff]  ;;  %13300 = vmatpush3.bf16.msra.mxu1 %v13488_v22  ;;  %13155 = vmatpush3.bf16.msra.mxu0 %v13488_v22  ;;  %v13491_v22 = vld [vmem:[%s19834_s24] sm:$0xff]  }
 0x2dc   : > { %4587 = vrot.lane.b32.xlu1 %v4322_v19, %s19753_s1  ;;  %v15327_v21 = vpack.c.bf16 %v4293_v25, %v4292_v16  ;;  %v4182_v19 = vld [vmem:[#allocation2 + $0xb7] sm:$0xff]  ;;  %v3393_v16 = vrot.slane %v15129_v63, %v14071_v12  ;;  %13296 = vmatprep.subr.bf16.mxu1 %v13489_v24 }
 0x2dd   : > { %v4185_v58 = vld [vmem:[#allocation2 + $0xcf] sm:$0xff]  ;;  %13156 = vmatprep.subr.bf16.mxu0 %v13489_v24 }
 0x2de   : > { %4541 = vrot.lane.b32.xlu0 %v15325_v33, %s19759_s28  ;;  %v4331_v14 = vmul.bf16 %v15257_v32, %v15327_v21  ;;  %v15356_v63 = vcombine.low %v3381_v47, %v3393_v16  ;;  %v4172_v16 = vld [vmem:[#allocation2 + $0x67] sm:$0xff] }
 0x2df   : > { %v15340_v52 = vpop.permute.xlu1 %3831  ;;  %v4183_v36 = vld [vmem:[#allocation2 + $0xbf] sm:$0xff]  ;;  %v4184_v59 = vld [vmem:[#allocation2 + $0xc7] sm:$0xff]  ;;  %13301 = vmatpush3.bf16.msra.mxu1 %v13489_v24  ;;  %13157 = vmatpush3.bf16.msra.mxu0 %v13489_v24 }
 0x2e0   : > { %19835 = vst [vmem:[#allocation16_spill] sm:$0xff] %v15340_v52  ;;  %4651 = vrot.lane.b32.xlu1 %v4349_v20, %s19751_s23  ;;  %v15347_v25 = vpack.c.bf16 %v4183_v36, %v4182_v19  ;;  %v15354_v7 = vpack.c.bf16 %v4185_v58, %v4184_v59  ;;  %19838 = vst [vmem:[#allocation19_spill] sm:$0xff] %v15356_v63  ;;  %v4341_v20 = vmul.bf16 %v15255_v31, %v15149_v13  ;;  %v13490_v36 = vld [vmem:[%s19834_s24 + $0x8] sm:$0xff]   ;;  %v4231_v59 = vld [vmem:[#allocation2 + $0x40] sm:$0xff]  ;;  %s19765_s24 = smov 96  }
 0x2e1   : > { %v15361_v19 = vpack.c.bf16 %v4277_v48, %v4276_v5  ;;  %13297 = vmatprep.subr.bf16.mxu1 %v13490_v36  ;;  %13158 = vmatprep.subr.bf16.mxu0 %v13490_v36  ;;  %v4342_v48 = vmul.bf16 %v15108_v42, %v15172_v55  ;;  %v4173_v5 = vld [vmem:[#allocation2 + $0x6f] sm:$0xff]  ;;  %v4246_v13 = vld [vmem:[#allocation2 + $0xb8] sm:$0xff] }
 0x2e2   : > { %19836 = vst [vmem:[#allocation17_spill] sm:$0xff] %v15347_v25  ;;  %19837 = vst [vmem:[#allocation18_spill] sm:$0xff] %v15354_v7  ;;  %4605 = vrot.lane.b32.xlu0 %v4331_v14, %s19753_s1  ;;  %v4350_v47 = vmul.bf16 %v15278_v27, %v15347_v25  ;;  %v3261_v14 = vrot.slane %v15167_v56, %v14071_v12  ;;  %v4294_v39 = vld [vmem:[#allocation2 + $0xb9] sm:$0xff]  ;;  %v4295_v56 = vld [vmem:[#allocation2 + $0xc1] sm:$0xff] }
 0x2e3   : > { %v15368_v43 = vpop.permute.xlu1 %4029  ;;  %v4323_v58 = vmul.bf16 %v15264_v2, %v15361_v19  ;;  %13302 = vmatpush3.bf16.msra.mxu1 %v13490_v36  ;;  %13159 = vmatpush3.bf16.msra.mxu0 %v13490_v36  ;;  %v4230_v52 = vld [vmem:[#allocation2 + $0x38] sm:$0xff] }
 0x2e4   : > { %19839 = vst [vmem:[#allocation20_spill] sm:$0xff] %v15368_v43  ;;  %4635 = vrot.lane.b32.xlu1 %v4341_v20, %s19751_s23  ;;  %13298 = vmatprep.subr.bf16.mxu1 %v13491_v22 }
 0x2e5   : > { %13160 = vmatprep.subr.bf16.mxu0 %v13491_v22 }
 0x2e6   : > { %4589 = vrot.lane.b32.xlu0 %v4323_v58, %s19753_s1  ;;  %v4247_v58 = vld [vmem:[#allocation2 + $0xc0] sm:$0xff] }
 0x2e7   : > { %v15378_v6 = vpop.permute.xlu1 %4040  ;;  %13303 = vmatpush3.bf16.msra.mxu1 %v13491_v22  ;;  %13161 = vmatpush3.bf16.msra.mxu0 %v13491_v22 }
 0x2e8   : > { %19840 = vst [vmem:[#allocation21_spill] sm:$0xff] %v15378_v6  ;;  %4684 = vrot.lane.b32.xlu1 %v15314_v49, %s19841_s2  ;;  %v15401_v6 = vpack.c.bf16 %v4173_v5, %v4172_v16  ;;  %v15417_v16 = vpack.c.bf16 %v4295_v56, %v4294_v39  ;;  %v4278_v56 = vld [vmem:[#allocation2 + $0x39] sm:$0xff] }
 0x2ea   : > { %4653 = vrot.lane.b32.xlu0 %v4350_v47, %s19751_s23  ;;  %v4371_v47 = vmul.bf16 %v15202_v11, %v15327_v21  ;;  %v3920_v11 = vpop.permute.xlu0 %3919  ;;  %v4372_v39 = vmul.bf16 %v15257_v32, %v15417_v16 }
 0x2ec   : > { %v3265_v26 = vpop.permute.xlu1 %3264  ;;  %4668 = vrot.lane.b32.xlu1 %v15325_v33, %s19841_s2 }
 0x2ed   : > { %v3273_v24 = vrot.slane %v3265_v26, %v14071_v12  ;;  %v13146_v20 = vpop.f32.mrf.mxu0 }
 0x2ee   : > { %v2940_v36 = vadd.f32 %v13146_v20, %v14994_v29  ;;  %4637 = vrot.lane.b32.xlu0 %v4342_v48, %s19751_s23  ;;  %v15407_v48 = vpack.c.bf16 %v4247_v58, %v4246_v13 }
 0x2ef   : > { %v15399_v34 = vcombine.low %v3261_v14, %v3273_v24  ;;  %v2931_v45 = vpop.f32.mrf.mxu0 }
 0x2f0   : > { %v2988_v26 = vmax.f32 %v2940_v36, 0.0  ;;  %v2932_v22 = vadd.f32 %v14994_v29, %v2931_v45  ;;  %v15404_v43 = vpop.permute.xlu1 %3468  ;;  %4732 = vrot.lane.b32.xlu1 %v4371_v47, %s19842_s22  ;;  %v15415_v45 = vpack.c.bf16 %v4231_v59, %v4230_v52  ;;  %v3755_v52 = vpop.permute.xlu0 %3754  ;;  %v4363_v59 = vmul.bf16 %v15206_v60, %v15361_v19 }
 0x2f1   : > { %v13147_v20 = vpop.f32.mrf.mxu0  ;;  %v3763_v32 = vrot.slane %v3755_v52, %v14071_v12 }
 0x2f2   : > { %3020 = vst.msk [vmem:[#allocation2 + $0xe8] sm:$0xff] %vm2443_vm4, %v2988_v26  ;;  %v2986_v24 = vmax.f32 %v2932_v22, 0.0  ;;  %v2943_v5 = vadd.f32 %v13147_v20, %v14994_v29  ;;  %4686 = vrot.lane.b32.xlu0 %v15407_v48, %s19841_s2  ;;  %v4279_v22 = vld [vmem:[#allocation2 + $0x41] sm:$0xff]  ;;  %v3939_v20 = vrot.slane %v15119_v35, %v14071_v12 }
 0x2f3   : > { %v2934_v13 = vpop.f32.mrf.mxu0  ;;  %v15445_v60 = vpack.c.bf16 %v4279_v22, %v4278_v56 }
 0x2f4   : > { %3018 = vst.msk [vmem:[#allocation2 + $0xd8] sm:$0xff] %vm2443_vm4, %v2986_v24  ;;  %v2989_v58 = vmax.f32 %v2943_v5, 0.0  ;;  %v2935_v36 = vadd.f32 %v14994_v29, %v2934_v13  ;;  %4670 = vrot.lane.b32.xlu1 %v15415_v45, %s19841_s2  ;;  %v3752_v24 = vrot.slane %v15127_v18, %v14071_v12  ;;  %v3429_v13 = vrot.slane %v15232_v30, %v14071_v12 }
 0x2f5   : > { %v15423_v47 = vpop.permute.xlu1 %3853  ;;  %v3441_v18 = vrot.slane %v15158_v62, %v14071_v12  ;;  %v4364_v30 = vmul.bf16 %v15264_v2, %v15445_v60  ;;  %v3453_v2 = vrot.slane %v15163_v37, %v14071_v12 }
 0x2f6   : > { %3021 = vst.msk [vmem:[#allocation2 + $0xf0] sm:$0xff] %vm2443_vm4, %v2989_v58  ;;  %v2987_v26 = vmax.f32 %v2935_v36, 0.0  ;;  %4415 = vrot.lane.b32.xlu0 %v15314_v49, %s19761_s14  ;;  %v3928_v49 = vrot.slane %v3920_v11, %v14071_v12  ;;  %v15452_v11 = vcombine.low %v3752_v24, %v3763_v32  ;;  %v4175_v24 = vld [vmem:[#allocation2 + $0x7f] sm:$0xff] }
 0x2f7   : > { %v15461_v56 = vcombine.low %v3429_v13, %v3441_v18  ;;  %v3961_v13 = vrot.slane %v15137_v3, %v14071_v12  ;;  %v4174_v18 = vld [vmem:[#allocation2 + $0x77] sm:$0xff] }
 0x2f8   : > { %3019 = vst.msk [vmem:[#allocation2 + $0xe0] sm:$0xff] %vm2443_vm4, %v2987_v26  ;;  %4734 = vrot.lane.b32.xlu1 %v4372_v39, %s19842_s22  ;;  %v15450_v58 = vcombine.low %v3928_v49, %v3939_v20  ;;  %v3465_v26 = vrot.slane %v15319_v53, %v14071_v12  ;;  %v3777_v53 = vpop.permute.xlu0 %3776 }
 0x2fa   : > { %v3277_v5 = vpop.permute.xlu1 %3276  ;;  %4716 = vrot.lane.b32.xlu0 %v4363_v59, %s19842_s22  ;;  %v4156_v62 = vmul.bf16 %v15450_v58, %v15327_v21  ;;  %v4148_v21 = vmul.bf16 %v15452_v11, %v15361_v19  ;;  %v4234_v19 = vld [vmem:[#allocation2 + $0x58] sm:$0xff] }
 0x2fb   : > { %v3285_v35 = vrot.slane %v3277_v5, %v14071_v12  ;;  %v4186_v52 = vld [vmem:[#allocation2 + $0xd7] sm:$0xff]  ;;  %v3950_v5 = vrot.slane %v15131_v41, %v14071_v12  ;;  %v3785_v41 = vrot.slane %v3777_v53, %v14071_v12 }
 0x2fc   : > { %4417 = vrot.lane.b32.xlu1 %v15407_v48, %s19761_s14 }
 0x2fd   : > { %v4189_v20 = vld [vmem:[#allocation2 + $0xef] sm:$0xff] }
 0x2fe   : > { %v3289_v36 = vpop.permute.xlu1 %3288  ;;  %4399 = vrot.lane.b32.xlu0 %v15325_v33, %s19761_s14 }
 0x2ff   : > { %v3297_v39 = vrot.slane %v3289_v36, %v14071_v12  ;;  %v4187_v59 = vld [vmem:[#allocation2 + $0xdf] sm:$0xff]  ;;  %v4188_v33 = vld [vmem:[#allocation2 + $0xe7] sm:$0xff]  ;;  %v15483_v36 = vcombine.low %v3453_v2, %v3465_v26  ;;  %v4220_v26 = vmul.bf16 %v15229_v38, %v15347_v25 }
 0x300   : > { %4718 = vrot.lane.b32.xlu1 %v4364_v30, %s19842_s22  ;;  %v15466_v22 = vpack.c.bf16 %v4187_v59, %v4186_v52  ;;  %v15472_v32 = vpack.c.bf16 %v4189_v20, %v4188_v33  ;;  %v3774_v30 = vrot.slane %v15161_v44, %v14071_v12 }
 0x301   : > { %v15470_v49 = vcombine.low %v3285_v35, %v3297_v39  ;;  %v15485_v35 = vpack.c.bf16 %v4175_v24, %v4174_v18  ;;  %v15495_v39 = vcombine.low %v3950_v5, %v3961_v13  ;;  %v15514_v5 = vpop.permute.xlu0 %3963  ;;  %v13589_v18 = vld [vmem:[%s19821_s29] ss:$0 sm:$0xff] }
 0x302   : > { %19843 = vst [vmem:[#allocation22_spill] sm:$0xff] %v15466_v22  ;;  %19845 = vst [vmem:[#allocation24_spill] sm:$0xff] %v15472_v32  ;;  %4463 = vrot.lane.b32.xlu0 %v4156_v62, %s19757_s0  ;;  %v15501_v52 = vcombine.low %v3774_v30, %v3785_v41  ;;  %v4212_v62 = vmul.bf16 %v15147_v23, %v15172_v55 }
 0x303   : > { %19844 = vst [vmem:[#allocation23_spill] sm:$0xff] %v15470_v49  ;;  %v4157_v44 = vmul.bf16 %v15495_v39, %v15417_v16  ;;  %v3059_v49 = vld [vmem:[#allocation2 + $0xf] sm:$0xff] }
 0x304   : > { %4447 = vrot.lane.b32.xlu1 %v4148_v21, %s19757_s0  ;;  %v4149_v24 = vmul.bf16 %v15501_v52, %v15445_v60 }
 0x306   : > { %4401 = vrot.lane.b32.xlu0 %v15415_v45, %s19761_s14 }
 0x308   : > { %4511 = vrot.lane.b32.xlu1 %v4220_v26, %s19755_s25 }
 0x30a   : > { %v13150_v59 = vpop.f32.mrf.mxu0  ;;  %4465 = vrot.lane.b32.xlu0 %v4157_v44, %s19757_s0 }
 0x30b   : > { %v2956_v33 = vadd.f32 %v13150_v59, %v14994_v29 }
 0x30c   : > { %v2947_v20 = vpop.f32.mrf.mxu0  ;;  %4495 = vrot.lane.b32.xlu1 %v4212_v62, %s19755_s25  ;;  %v15528_v62 = vpop.permute.xlu0 %3798 }
 0x30d   : > { %v2992_v2 = vmax.f32 %v2956_v33, 0.0  ;;  %v2948_v53 = vadd.f32 %v14994_v29, %v2947_v20  ;;  %v4221_v29 = vmul.bf16 %v15356_v63, %v15354_v7  ;;  %v4249_v33 = vld [vmem:[#allocation2 + $0xd0] sm:$0xff]  ;;  %v4332_v20 = vmul.bf16 %v15450_v58, %v15417_v16  ;;  %v4232_v16 = vld [vmem:[#allocation2 + $0x48] sm:$0xff] }
 0x30e   : > { %v13151_v13 = vpop.f32.mrf.mxu0  ;;  %4449 = vrot.lane.b32.xlu0 %v4149_v24, %s19757_s0  ;;  %v4248_v24 = vld [vmem:[#allocation2 + $0xc8] sm:$0xff] }
 0x30f   : > { %3024 = vst.msk [vmem:[#allocation2 + $0x108] sm:$0xff] %vm2443_vm4, %v2992_v2  ;;  %v2990_v21 = vmax.f32 %v2948_v53, 0.0  ;;  %v2959_v30 = vadd.f32 %v13589_v18, %v13151_v13  ;;  %v4269_v2 = vpack.c.bf16 %v4249_v33, %v4248_v24  ;;  %v3477_v53 = vrot.slane %v15404_v43, %v14071_v12  ;;  %v4233_v13 = vld [vmem:[#allocation2 + $0x50] sm:$0xff] }
 0x310   : > { %v2950_v41 = vpop.f32.mrf.mxu0  ;;  %4559 = vrot.lane.b32.xlu1 %v15407_v48, %s19759_s28  ;;  %v4213_v48 = vmul.bf16 %v15170_v57, %v15243_v40 }
 0x311   : > { %3022 = vst.msk [vmem:[#allocation2 + $0xf8] sm:$0xff] %vm2443_vm4, %v2990_v21  ;;  %v2993_v26 = vmax.f32 %v2959_v30, 0.0  ;;  %v2951_v44 = vadd.f32 %v13589_v18, %v2950_v41  ;;  %v15541_v21 = vpop.permute.xlu0 %3820  ;;  %v4324_v18 = vmul.bf16 %v15452_v11, %v15445_v60  ;;  %v3489_v30 = vrot.slane %v15178_v8, %v14071_v12  ;;  %v4296_v41 = vld [vmem:[#allocation2 + $0xc9] sm:$0xff]  ;;  %v4281_v60 = vld [vmem:[#allocation2 + $0x51] sm:$0xff] }
 0x312   : > { %4513 = vrot.lane.b32.xlu0 %v4221_v29, %s19755_s25  ;;  %v15549_v29 = vpack.c.bf16 %v4233_v13, %v4232_v16  ;;  %v4351_v8 = vmul.bf16 %v15229_v38, %v15354_v7  ;;  %v4343_v13 = vmul.bf16 %v15147_v23, %v15243_v40  ;;  %v4352_v16 = vmul.bf16 %v15356_v63, %v15466_v22  ;;  %v4237_v23 = vld [vmem:[#allocation2 + $0x70] sm:$0xff] }
 0x313   : > { %3025 = vst.msk [vmem:[#allocation2 + $0x110] sm:$0xff] %vm2443_vm4, %v2993_v26  ;;  %v2991_v59 = vmax.f32 %v2951_v44, 0.0  ;;  %v4300_v63 = vld [vmem:[#allocation2 + $0xe9] sm:$0xff] }
 0x314   : > { %4543 = vrot.lane.b32.xlu1 %v15415_v45, %s19759_s28  ;;  %v4297_v45 = vld [vmem:[#allocation2 + $0xd1] sm:$0xff] }
 0x315   : > { %3023 = vst.msk [vmem:[#allocation2 + $0x100] sm:$0xff] %vm2443_vm4, %v2991_v59  ;;  %v15551_v26 = vpack.c.bf16 %v4297_v45, %v4296_v41  ;;  %v15553_v59 = vcombine.low %v3477_v53, %v3489_v30  ;;  %v4280_v53 = vld [vmem:[#allocation2 + $0x49] sm:$0xff] }
 0x316   : > { %4497 = vrot.lane.b32.xlu0 %v4213_v48, %s19755_s25  ;;  %v4309_v45 = vpack.c.bf16 %v4281_v60, %v4280_v53  ;;  %v4250_v53 = vld [vmem:[#allocation2 + $0xd8] sm:$0xff] }
 0x317   : > { %19846 = vst [vmem:[#allocation25_spill] sm:$0xff] %v15553_v59  ;;  %v4333_v24 = vmul.bf16 %v15495_v39, %v15551_v26  ;;  %v4373_v60 = vmul.bf16 %v15450_v58, %v15551_v26 }
 0x318   : > { %4607 = vrot.lane.b32.xlu1 %v4332_v20, %s19753_s1  ;;  %v4190_v43 = vld [vmem:[#allocation2 + $0xf7] sm:$0xff]  ;;  %v15563_v20 = vpop.permute.xlu0 %4007 }
 0x319   : > { %v4301_v25 = vld [vmem:[#allocation2 + $0xf1] sm:$0xff] }
 0x31a   : > { %4561 = vrot.lane.b32.xlu0 %v4269_v2, %s19759_s28  ;;  %v15716_v38 = vpack.c.bf16 %v4301_v25, %v4300_v63  ;;  %v4285_v25 = vld [vmem:[#allocation2 + $0x71] sm:$0xff] }
 0x31c   : > { %4591 = vrot.lane.b32.xlu1 %v4324_v18, %s19753_s1  ;;  %v4191_v44 = vld [vmem:[#allocation2 + $0xff] sm:$0xff]  ;;  %v4325_v18 = vmul.bf16 %v15501_v52, %v4309_v45  ;;  %v15573_v30 = vpop.permute.xlu0 %3842 }
 0x31d   : > { %v15555_v48 = vpack.c.bf16 %v4191_v44, %v4190_v43  ;;  %v4344_v43 = vmul.bf16 %v15170_v57, %v15294_v0  ;;  %v4251_v44 = vld [vmem:[#allocation2 + $0xe0] sm:$0xff] }
 0x31e   : > { %4545 = vrot.lane.b32.xlu0 %v15549_v29, %s19759_s28  ;;  %v4270_v33 = vpack.c.bf16 %v4251_v44, %v4250_v53  ;;  %v4365_v53 = vmul.bf16 %v15452_v11, %v4309_v45 }
 0x320   : > { %4655 = vrot.lane.b32.xlu1 %v4351_v8, %s19751_s23  ;;  %v15580_v41 = vpop.permute.xlu0 %3864  ;;  %v15586_v8 = vpop.permute.xlu1 %4395 }
 0x322   : > { %4609 = vrot.lane.b32.xlu0 %v4333_v24, %s19753_s1  ;;  %v4235_v24 = vld [vmem:[#allocation2 + $0x60] sm:$0xff] }
 0x323   : > { %v4262_v3 = vpack.c.bf16 %v4235_v24, %v4234_v19  ;;  %v4282_v19 = vld [vmem:[#allocation2 + $0x59] sm:$0xff]  ;;  %v4283_v24 = vld [vmem:[#allocation2 + $0x61] sm:$0xff] }
 0x324   : > { %4639 = vrot.lane.b32.xlu1 %v4343_v13, %s19751_s23  ;;  %v4298_v13 = vld [vmem:[#allocation2 + $0xd9] sm:$0xff] }
 0x326   : > { %4593 = vrot.lane.b32.xlu0 %v4325_v18, %s19753_s1  ;;  %v4299_v18 = vld [vmem:[#allocation2 + $0xe1] sm:$0xff] }
 0x327   : > { %v15597_v37 = vpack.c.bf16 %v4299_v18, %v4298_v13  ;;  %v3972_v13 = vrot.slane %v15514_v5, %v14071_v12  ;;  %v3983_v18 = vrot.slane %v15174_v50, %v14071_v12 }
 0x328   : > { %4688 = vrot.lane.b32.xlu1 %v4269_v2, %s19841_s2 }
 0x329   : > { %v15627_v5 = vcombine.low %v3972_v13, %v3983_v18 }
 0x32a   : > { %4657 = vrot.lane.b32.xlu0 %v4352_v16, %s19751_s23  ;;  %v15591_v16 = vpop.permute.xlu0 %4411 }
 0x32b   : > { %v4334_v55 = vmul.bf16 %v15627_v5, %v15597_v37 }
 0x32c   : > { %4672 = vrot.lane.b32.xlu1 %v15549_v29, %s19841_s2 }
 0x32e   : > { %4641 = vrot.lane.b32.xlu0 %v4344_v43, %s19751_s23 }
 0x330   : > { %4736 = vrot.lane.b32.xlu1 %v4373_v60, %s19842_s22  ;;  %v4374_v60 = vmul.bf16 %v15495_v39, %v15597_v37  ;;  %v3796_v39 = vrot.slane %v15184_v17, %v14071_v12 }
 0x332   : > { %v15594_v14 = vpop.permute.xlu1 %4459  ;;  %4690 = vrot.lane.b32.xlu0 %v4270_v33, %s19841_s2 }
 0x334   : > { %v15599_v43 = vpop.permute.xlu0 %4413  ;;  %4674 = vrot.lane.b32.xlu1 %v4262_v3, %s19841_s2 }
 0x336   : > { %v15602_v58 = vpop.permute.xlu1 %4443  ;;  %4419 = vrot.lane.b32.xlu0 %v4269_v2, %s19761_s14  ;;  %v3807_v2 = vrot.slane %v15528_v62, %v14071_v12 }
 0x338   : > { %4738 = vrot.lane.b32.xlu1 %v4374_v60, %s19842_s22  ;;  %v15608_v44 = vpop.permute.xlu0 %4397  ;;  %v15625_v60 = vpack.c.bf16 %v4283_v24, %v4282_v19  ;;  %v15629_v7 = vcombine.low %v3796_v39, %v3807_v2  ;;  %v3994_v19 = vrot.slane %v15190_v54, %v14071_v12  ;;  %v4005_v24 = vrot.slane %v15195_v46, %v14071_v12 }
 0x339   : > { %v4222_v46 = vmul.bf16 %v15366_v1, %v15466_v22 }
 0x33a   : > { %v15619_v40 = vpop.permute.xlu1 %4507  ;;  %4720 = vrot.lane.b32.xlu0 %v4365_v53, %s19842_s22  ;;  %v4366_v17 = vmul.bf16 %v15501_v52, %v15625_v60  ;;  %v4158_v53 = vmul.bf16 %v15627_v5, %v15551_v26  ;;  %v3818_v52 = vrot.slane %v15262_v10, %v14071_v12  ;;  %v3829_v26 = vrot.slane %v15541_v21, %v14071_v12 }
 0x33b   : > { %v15657_v54 = vcombine.low %v3994_v19, %v4005_v24  ;;  %v4214_v21 = vmul.bf16 %v15225_v9, %v15294_v0  ;;  %v3075_v0 = vld [vmem:[#allocation2 + $0x8f] sm:$0xff] }
 0x33c   : > { %4421 = vrot.lane.b32.xlu1 %v4270_v33, %s19761_s14  ;;  %v15623_v11 = vpop.permute.xlu0 %4461 }
 0x33d   : > { %v4159_v39 = vmul.bf16 %v15657_v54, %v15597_v37  ;;  %v4236_v37 = vld [vmem:[#allocation2 + $0x68] sm:$0xff] }
 0x33e   : > { %v15631_v50 = vpop.permute.xlu1 %4491  ;;  %4403 = vrot.lane.b32.xlu0 %v15549_v29, %s19761_s14  ;;  %v4150_v29 = vmul.bf16 %v15629_v7, %v4309_v45  ;;  %v15664_v45 = vcombine.low %v3818_v52, %v3829_v26  ;;  %v4223_v52 = vmul.bf16 %v15461_v56, %v15472_v32 }
 0x340   : > { %4722 = vrot.lane.b32.xlu1 %v4366_v17, %s19842_s22  ;;  %v15638_v62 = vpop.permute.xlu0 %4445  ;;  %v4151_v19 = vmul.bf16 %v15664_v45, %v15625_v60 }
 0x342   : > { %v15646_v13 = vpop.permute.xlu1 %4555  ;;  %4467 = vrot.lane.b32.xlu0 %v4158_v53, %s19757_s0 }
 0x344   : > { %4451 = vrot.lane.b32.xlu1 %v4150_v29, %s19757_s0  ;;  %v15653_v18 = vpop.permute.xlu0 %4509 }
 0x346   : > { %v15659_v2 = vpop.permute.xlu1 %4539  ;;  %4405 = vrot.lane.b32.xlu0 %v4262_v3, %s19761_s14 }
 0x348   : > { %4515 = vrot.lane.b32.xlu1 %v4222_v46, %s19755_s25  ;;  %v15667_v10 = vpop.permute.xlu0 %4493  ;;  %v3074_v46 = vld [vmem:[#allocation2 + $0x87] sm:$0xff] }
 0x349   : > { %v15693_v22 = vpack.c.bf16 %v3075_v0, %v3074_v46 }
 0x34a   : > { %v4604_v17 = vpop.permute.xlu1 %4603  ;;  %4469 = vrot.lane.b32.xlu0 %v4159_v39, %s19757_s0 }
 0x34b   : > { %19847 = vst [vmem:[#allocation26_spill] sm:$0xff] %v15693_v22  ;;  %v3594_v0 = vmul.bf16 %v15241_v15, %v15693_v22  ;;  %v3058_v15 = vld [vmem:[#allocation2 + $0x7] sm:$0xff] }
 0x34c   : > { %4499 = vrot.lane.b32.xlu1 %v4214_v21, %s19755_s25  ;;  %v15675_v53 = vpop.permute.xlu0 %4557  ;;  %v4215_v21 = vmul.bf16 %v15292_v51, %v15401_v6  ;;  %v3090_v63 = vpack.c.bf16 %v3059_v49, %v3058_v15  ;;  %v4345_v49 = vmul.bf16 %v15225_v9, %v15401_v6 }
 0x34e   : > { %v15679_v24 = vpop.permute.xlu1 %4587  ;;  %4453 = vrot.lane.b32.xlu0 %v4151_v19, %s19757_s0  ;;  %v4253_v19 = vld [vmem:[#allocation2 + $0xf0] sm:$0xff]  ;;  %v3586_v15 = vmul.bf16 %v15255_v31, %v3090_v63 }
 0x350   : > { %4563 = vrot.lane.b32.xlu1 %v4270_v33, %s19759_s28  ;;  %v15683_v29 = vpop.permute.xlu0 %4541 }
 0x352   : > { %v4652_v26 = vpop.permute.xlu1 %4651  ;;  %4517 = vrot.lane.b32.xlu0 %v4223_v52, %s19755_s25  ;;  %v4252_v52 = vld [vmem:[#allocation2 + $0xe8] sm:$0xff] }
 0x353   : > { %v15703_v57 = vpack.c.bf16 %v4253_v19, %v4252_v52  ;;  %v15714_v52 = vpack.c.bf16 %v4237_v23, %v4236_v37  ;;  %v3595_v37 = vmul.bf16 %v15278_v27, %v15237_v61 }
 0x354   : > { %4547 = vrot.lane.b32.xlu1 %v4262_v3, %s19759_s28  ;;  %v15689_v39 = vpop.permute.xlu0 %4605 }
 0x356   : > { %v15695_v33 = vpop.permute.xlu1 %4635  ;;  %4501 = vrot.lane.b32.xlu0 %v4215_v21, %s19755_s25  ;;  %v4326_v21 = vmul.bf16 %v15629_v7, %v15625_v60 }
 0x358   : > { %4611 = vrot.lane.b32.xlu1 %v4334_v55, %s19753_s1  ;;  %v15701_v3 = vpop.permute.xlu0 %4589  ;;  %v4774_v55 = vsel %vm2443_vm4, %v3594_v0, %v15591_v16  ;;  %v4353_v16 = vmul.bf16 %v15366_v1, %v15472_v32 }
 0x359   : > { %v4813_v22 = vsel %vm643_vm2, %v4774_v55, %v15594_v14 }
 0x35a   : > { %v4685_v46 = vpop.permute.xlu1 %4684  ;;  %4565 = vrot.lane.b32.xlu0 %v15703_v57, %s19759_s28  ;;  %v4845_v60 = vsel %vm604_vm0, %v4813_v22, %v15619_v40  ;;  %v4335_v40 = vmul.bf16 %v15657_v54, %v15716_v38 }
 0x35b   : > { %v4877_v23 = vsel %vm2556_vm5, %v4845_v60, %v15646_v13 }
 0x35c   : > { %4595 = vrot.lane.b32.xlu1 %v4326_v21, %s19753_s1  ;;  %v4654_v19 = vpop.permute.xlu0 %4653  ;;  %v4909_v0 = vsel %vm2589_vm6, %v4877_v23, %v4604_v17  ;;  %v4284_v21 = vld [vmem:[#allocation2 + $0x69] sm:$0xff] }
 0x35d   : > { %v4941_v22 = vsel %vm2622_vm7, %v4909_v0, %v4652_v26  ;;  %v15739_v13 = vpack.c.bf16 %v4285_v25, %v4284_v21  ;;  %v4777_v26 = vsel %vm2443_vm4, %v3595_v37, %v15599_v43  ;;  %v4346_v21 = vmul.bf16 %v15292_v51, %v15485_v35 }
 0x35e   : > { %v4669_v59 = vpop.permute.xlu1 %4668  ;;  %4549 = vrot.lane.b32.xlu0 %v15714_v52, %s19759_s28  ;;  %v4973_v55 = vsel %vm2655_vm9, %v4941_v22, %v4685_v46  ;;  %v4815_v60 = vsel %vm643_vm2, %v4777_v26, %v15623_v11  ;;  %v19848_v22 = vmul.bf16 %v15108_v42, %v15113_v4 }
 0x35f   : > { %v4327_v46 = vmul.bf16 %v15664_v45, %v15739_v13  ;;  %v4847_v31 = vsel %vm604_vm0, %v4815_v60, %v15653_v18  ;;  %v4354_v18 = vmul.bf16 %v15461_v56, %v15555_v48  ;;  %v4238_v60 = vld [vmem:[#allocation2 + $0x78] sm:$0xff] }
 0x360   : > { %4659 = vrot.lane.b32.xlu1 %v4353_v16, %s19751_s23  ;;  %v4638_v14 = vpop.permute.xlu0 %4637  ;;  %v4750_v16 = vsel %vm2443_vm4, %v3586_v15, %v15586_v8  ;;  %v4879_v23 = vsel %vm2556_vm5, %v4847_v31, %v15675_v53  ;;  %v4303_v15 = vld [vmem:[#allocation2 + $0x101] sm:$0xff] }
 0x361   : > { %v4797_v43 = vsel %vm643_vm2, %v4750_v16, %v15602_v58  ;;  %v4911_v11 = vsel %vm2589_vm6, %v4879_v23, %v15689_v39 }
 0x362   : > { %v4733_v32 = vpop.permute.xlu1 %4732  ;;  %4613 = vrot.lane.b32.xlu0 %v4335_v40, %s19753_s1  ;;  %v4829_v25 = vsel %vm604_vm0, %v4797_v43, %v15631_v50  ;;  %v4943_v63 = vsel %vm2622_vm7, %v4911_v11, %v4654_v19  ;;  %v4286_v11 = vld [vmem:[#allocation2 + $0x79] sm:$0xff] }
 0x363   : > { %v5005_v17 = vsel %vm2688_vm8, %v4973_v55, %v4733_v32  ;;  %v4861_v58 = vsel %vm2556_vm5, %v4829_v25, %v15659_v2  ;;  %v4753_v2 = vsel %vm2443_vm4, %v19848_v22, %v15608_v44  ;;  %v4255_v55 = vld [vmem:[#allocation2 + $0x100] sm:$0xff]  ;;  %v4367_v25 = vmul.bf16 %v15629_v7, %v15739_v13 }
 0x364   : > { %4643 = vrot.lane.b32.xlu1 %v4345_v49, %s19751_s23  ;;  %13178 = vmatprep.mubr.msk.bf16.mxu1 %vm2764_vm10, %v5005_v17  ;;  %v4687_v27 = vpop.permute.xlu0 %4686  ;;  %v4893_v53 = vsel %vm2589_vm6, %v4861_v58, %v15679_v24  ;;  %v4239_v44 = vld [vmem:[#allocation2 + $0x80] sm:$0xff]  ;;  %v4027_v58 = vrot.slane %v15301_v28, %v14071_v12 }
 0x365   : > { %v4975_v50 = vsel %vm2655_vm9, %v4943_v63, %v4687_v27  ;;  %v4925_v39 = vsel %vm2622_vm7, %v4893_v53, %v15695_v33  ;;  %v4799_v33 = vsel %vm643_vm2, %v4753_v2, %v15638_v62  ;;  %v4254_v62 = vld [vmem:[#allocation2 + $0xf8] sm:$0xff]  ;;  %v19849_v63 = vld [vmem:[#allocation16_spill] sm:$0xff] }
 0x366   : > { %v4671_v32 = vpop.permute.xlu1 %4670  ;;  %4597 = vrot.lane.b32.xlu0 %v4327_v46, %s19753_s1  ;;  %v4957_v19 = vsel %vm2655_vm9, %v4925_v39, %v4669_v59  ;;  %v4831_v42 = vsel %vm604_vm0, %v4799_v33, %v15667_v10  ;;  %v4375_v59 = vmul.bf16 %v15627_v5, %v15716_v38  ;;  %v4302_v17 = vld [vmem:[#allocation2 + $0xf9] sm:$0xff]  ;;  %v15809_v27 = vpack.c.bf16 %v4255_v55, %v4254_v62  ;;  %v19850_v2 = vld [vmem:[#allocation20_spill] sm:$0xff] }
 0x367   : > { %v4863_v49 = vsel %vm2556_vm5, %v4831_v42, %v15683_v29  ;;  %v15815_v29 = vpack.c.bf16 %v4239_v44, %v4238_v60  ;;  %v15817_v31 = vpack.c.bf16 %v4303_v15, %v4302_v17  ;;  %v3840_v53 = vrot.slane %v19849_v63, %v14071_v12  ;;  %v4193_v17 = vld [vmem:[#allocation2 + $0x10f] sm:$0xff] }
 0x368   : > { %4692 = vrot.lane.b32.xlu1 %v15703_v57, %s19841_s2  ;;  %v15766_v8 = vpop.permute.xlu0 %4415  ;;  %v4895_v26 = vsel %vm2589_vm6, %v4863_v49, %v15701_v3  ;;  %v4216_v62 = vmul.bf16 %v15399_v34, %v15485_v35  ;;  %v4257_v63 = vld [vmem:[#allocation2 + $0x110] sm:$0xff] }
 0x369   : > { %v4927_v46 = vsel %vm2622_vm7, %v4895_v26, %v4638_v14 }
 0x36a   : > { %v4735_v0 = vpop.permute.xlu1 %4734  ;;  %4661 = vrot.lane.b32.xlu0 %v4354_v18, %s19751_s23  ;;  %v4959_v5 = vsel %vm2655_vm9, %v4927_v46, %v4671_v32  ;;  %v4376_v32 = vmul.bf16 %v15657_v54, %v15817_v31  ;;  %v4287_v18 = vld [vmem:[#allocation2 + $0x81] sm:$0xff]  ;;  %v3851_v54 = vrot.slane %v15573_v30, %v14071_v12 }
 0x36b   : > { %v5007_v40 = vsel %vm2688_vm8, %v4975_v50, %v4735_v0  ;;  %v4312_v0 = vpack.c.bf16 %v4287_v18, %v4286_v11  ;;  %v19853_v11 = vld [vmem:[#allocation26_spill] sm:$0xff]  ;;  %v19854_v18 = vld [vmem:[#allocation23_spill] sm:$0xff] }
 0x36c   : > { %4676 = vrot.lane.b32.xlu1 %v15714_v52, %s19841_s2  ;;  %13179 = vmatmul.mubr.msk.bf16.vlgmr.msra.gmra.mxu1 %vm2764_vm10, %v5007_v40  ;;  %v4717_v24 = vpop.permute.xlu0 %4716  ;;  %v15853_v39 = vcombine.low %v3840_v53, %v3851_v54 }
 0x36d   : > { %v4989_v37 = vsel %vm2688_vm8, %v4957_v19, %v4717_v24  ;;  %v4038_v19 = vrot.slane %v19850_v2, %v14071_v12  ;;  %v19851_v24 = vld [vmem:[#allocation21_spill] sm:$0xff] }
 0x36e   : > { %v15796_v4 = vpop.permute.xlu1 %4417  ;;  %4645 = vrot.lane.b32.xlu0 %v4346_v21, %s19751_s23  ;;  %13162 = vmatprep.mubr.msk.bf16.mxu0 %vm2764_vm10, %v4989_v37  ;;  %v4049_v21 = vrot.slane %v19851_v24, %v14071_v12  ;;  %v4305_v2 = vld [vmem:[#allocation2 + $0x111] sm:$0xff]  ;;  %v4328_v24 = vmul.bf16 %v15853_v39, %v4312_v0 }
 0x370   : > { %4740 = vrot.lane.b32.xlu1 %v4375_v59, %s19842_s22  ;;  %v15807_v10 = vpop.permute.xlu0 %4399  ;;  %v15879_v55 = vcombine.low %v4038_v19, %v4049_v21  ;;  %v4240_v21 = vld [vmem:[#allocation2 + $0x88] sm:$0xff] }
 0x372   : > { %v4719_v16 = vpop.permute.xlu1 %4718  ;;  %4694 = vrot.lane.b32.xlu0 %v15809_v27, %s19841_s2  ;;  %v4161_v44 = vmul.bf16 %v15879_v55, %v15817_v31 }
 0x373   : > { %v4991_v3 = vsel %vm2688_vm8, %v4959_v5, %v4719_v16  ;;  %v19852_v16 = vld [vmem:[#allocation25_spill] sm:$0xff] }
 0x374   : > { %4678 = vrot.lane.b32.xlu1 %v15815_v29, %s19841_s2  ;;  %v15822_v43 = vpop.permute.xlu0 %4463  ;;  %13163 = vmatmul.mubr.msk.bf16.vlgmr.msra.gmra.mxu0 %vm2764_vm10, %v4991_v3 }
 0x376   : > { %v15825_v14 = vpop.permute.xlu1 %4447  ;;  %4423 = vrot.lane.b32.xlu0 %v15703_v57, %s19761_s14  ;;  %v4016_v57 = vrot.slane %v15563_v20, %v14071_v12  ;;  %v4368_v20 = vmul.bf16 %v15664_v45, %v4312_v0  ;;  %v3862_v45 = vrot.slane %v15423_v47, %v14071_v12 }
 0x378   : > { %4742 = vrot.lane.b32.xlu1 %v4376_v32, %s19842_s22  ;;  %v15832_v23 = vpop.permute.xlu0 %4401  ;;  %v15851_v28 = vcombine.low %v4016_v57, %v4027_v58  ;;  %v4217_v58 = vmul.bf16 %v19854_v18, %v19853_v11  ;;  %v4256_v57 = vld [vmem:[#allocation2 + $0x108] sm:$0xff] }
 0x37a   : > { %v15840_v50 = vpop.permute.xlu1 %4511  ;;  %4724 = vrot.lane.b32.xlu0 %v4367_v25, %s19842_s22  ;;  %v4160_v22 = vmul.bf16 %v15851_v28, %v15716_v38  ;;  %v3873_v38 = vrot.slane %v15580_v41, %v14071_v12  ;;  %v4192_v41 = vld [vmem:[#allocation2 + $0x107] sm:$0xff] }
 0x37b   : > { %v4209_v46 = vpack.c.bf16 %v4193_v17, %v4192_v41 }
 0x37c   : > { %4425 = vrot.lane.b32.xlu1 %v15809_v27, %s19761_s14  ;;  %v15849_v7 = vpop.permute.xlu0 %4465  ;;  %v15887_v59 = vcombine.low %v3862_v45, %v3873_v38  ;;  %v19856_v45 = vld [vmem:[#allocation9_spill] sm:$0xff] }
 0x37d   : > { %v4225_v3 = vmul.bf16 %v19852_v16, %v4209_v46 }
 0x37e   : > { %v15855_v40 = vpop.permute.xlu1 %4495  ;;  %4407 = vrot.lane.b32.xlu0 %v15714_v52, %s19761_s14  ;;  %v4152_v52 = vmul.bf16 %v15853_v39, %v15739_v13  ;;  %v4224_v13 = vmul.bf16 %v15483_v36, %v15555_v48  ;;  %v4153_v26 = vmul.bf16 %v15887_v59, %v4312_v0 }
 0x380   : > { %4726 = vrot.lane.b32.xlu1 %v4368_v20, %s19842_s22  ;;  %v15861_v30 = vpop.permute.xlu0 %4449  ;;  %v4273_v20 = vpack.c.bf16 %v4257_v63, %v4256_v57  ;;  %v4288_v57 = vld [vmem:[#allocation2 + $0x89] sm:$0xff] }
 0x382   : > { %v4560_v33 = vpop.permute.xlu1 %4559  ;;  %4471 = vrot.lane.b32.xlu0 %v4160_v22, %s19757_s0  ;;  %v4241_v22 = vld [vmem:[#allocation2 + $0x90] sm:$0xff] }
 0x384   : > { %4455 = vrot.lane.b32.xlu1 %v4152_v52, %s19757_s0  ;;  %v15875_v37 = vpop.permute.xlu0 %4513  ;;  %v19855_v52 = vld [vmem:[#allocation10_spill] sm:$0xff] }
 0x385   : > { %v19857_v38 = vmul.bf16 %v19855_v52, %v19856_v45 }
 0x386   : > { %v15881_v42 = vpop.permute.xlu1 %4543  ;;  %4409 = vrot.lane.b32.xlu0 %v15815_v29, %s19761_s14  ;;  %s19890_s14 = smov 24  }
 0x388   : > { %4519 = vrot.lane.b32.xlu1 %v4224_v13, %s19755_s25  ;;  %v15890_v47 = vpop.permute.xlu0 %4497 }
 0x38a   : > { %v4608_v49 = vpop.permute.xlu1 %4607  ;;  %4473 = vrot.lane.b32.xlu0 %v4161_v44, %s19757_s0  ;;  %v4265_v44 = vpack.c.bf16 %v4241_v22, %v4240_v21  ;;  %v4339_v22 = vld [vmem:[#allocation2 + $0x11f] sm:$0xff]  ;;  %v19859_v21 = vld [vmem:[#allocation17_spill] sm:$0xff] }
 0x38c   : > { %4503 = vrot.lane.b32.xlu1 %v4216_v62, %s19755_s25  ;;  %v15898_v15 = vpop.permute.xlu0 %4561 }
 0x38e   : > { %v15901_v60 = vpop.permute.xlu1 %4591  ;;  %4457 = vrot.lane.b32.xlu0 %v4153_v26, %s19757_s0  ;;  %v4355_v26 = vmul.bf16 %v15483_v36, %v4209_v46  ;;  %s13620_s0 = smov 80  }
 0x390   : > { %4567 = vrot.lane.b32.xlu1 %v15809_v27, %s19759_s28  ;;  %v15906_v5 = vpop.permute.xlu0 %4545  ;;  %v4336_v27 = vmul.bf16 %v15851_v28, %v15817_v31  ;;  %v4780_v31 = vsel %vm2443_vm4, %v19857_v38, %v15766_v8  ;;  %v4289_v8 = vld [vmem:[#allocation2 + $0x91] sm:$0xff] }
 0x391   : > { %v4817_v62 = vsel %vm643_vm2, %v4780_v31, %v15822_v43  ;;  %v19861_v31 = vld [vmem:[#allocation12_spill] sm:$0xff] }
 0x392   : > { %v4656_v32 = vpop.permute.xlu1 %4655  ;;  %4521 = vrot.lane.b32.xlu0 %v4225_v3, %s19755_s25  ;;  %v4849_v17 = vsel %vm604_vm0, %v4817_v62, %v15840_v50  ;;  %v4338_v50 = vld [vmem:[#allocation2 + $0x117] sm:$0xff] }
 0x393   : > { %v4881_v3 = vsel %vm2556_vm5, %v4849_v17, %v4560_v33  ;;  %v4347_v33 = vmul.bf16 %v15399_v34, %v19853_v11  ;;  %v4340_v38 = vpack.c.bf16 %v4339_v22, %v4338_v50  ;;  %v19862_v62 = vld [vmem:[#allocation13_spill] sm:$0xff]  ;;  %v4358_v22 = vld [vmem:[#allocation2 + $0x120] sm:$0xff] }
 0x394   : > { %4551 = vrot.lane.b32.xlu1 %v15815_v29, %s19759_s28  ;;  %v4610_v25 = vpop.permute.xlu0 %4609  ;;  %v4304_v29 = vld [vmem:[#allocation2 + $0x109] sm:$0xff]  ;;  %v19863_v17 = vmul.bf16 %v19861_v31, %v19862_v62  ;;  %v19868_v31 = vld [vmem:[#allocation14_spill] sm:$0xff] }
 0x395   : > { %v15930_v41 = vpack.c.bf16 %v4305_v2, %v4304_v29  ;;  %v4370_v62 = vmul.bf16 %v15887_v59, %v19868_v31 }
 0x396   : > { %v15914_v53 = vpop.permute.xlu1 %4639  ;;  %4505 = vrot.lane.b32.xlu0 %v4217_v58, %s19755_s25  ;;  %v4913_v58 = vsel %vm2589_vm6, %v4881_v3, %v4608_v49  ;;  %v4313_v49 = vpack.c.bf16 %v4289_v8, %v4288_v57  ;;  %s19889_s25 = smov 16  }
 0x397   : > { %v4945_v43 = vsel %vm2622_vm7, %v4913_v58, %v4656_v32 }
 0x398   : > { %4615 = vrot.lane.b32.xlu1 %v4336_v27, %s19753_s1  ;;  %v15920_v54 = vpop.permute.xlu0 %4593  ;;  %v4337_v27 = vmul.bf16 %v15879_v55, %v15930_v41  ;;  %v4329_v45 = vmul.bf16 %v15887_v59, %v4313_v49 }
 0x39a   : > { %v4689_v19 = vpop.permute.xlu1 %4688  ;;  %4569 = vrot.lane.b32.xlu0 %v4273_v20, %s19759_s28 }
 0x39b   : > { %v4977_v29 = vsel %vm2655_vm9, %v4945_v43, %v4689_v19 }
 0x39c   : > { %4599 = vrot.lane.b32.xlu1 %v4328_v24, %s19753_s1  ;;  %v4658_v13 = vpop.permute.xlu0 %4657  ;;  %v19858_v24 = vld [vmem:[#allocation19_spill] sm:$0xff] }
 0x39d   : > { %v19860_v52 = vmul.bf16 %v19858_v24, %v19859_v21 }
 0x39e   : > { %v4673_v0 = vpop.permute.xlu1 %4672  ;;  %4553 = vrot.lane.b32.xlu0 %v4265_v44, %s19759_s28 }
 0x39f   : > { %v4783_v32 = vsel %vm2443_vm4, %v19860_v52, %v15796_v4 }
 0x3a0   : > { %4663 = vrot.lane.b32.xlu1 %v4355_v26, %s19751_s23  ;;  %v4642_v63 = vpop.permute.xlu0 %4641  ;;  %v4819_v11 = vsel %vm643_vm2, %v4783_v32, %v15849_v7  ;;  %v4756_v26 = vsel %vm2443_vm4, %v19863_v17, %v15807_v10  ;;  %v4360_v32 = vld [vmem:[#allocation2 + $0x119] sm:$0xff] }
 0x3a1   : > { %v4851_v4 = vsel %vm604_vm0, %v4819_v11, %v15875_v37  ;;  %v4801_v8 = vsel %vm643_vm2, %v4756_v26, %v15825_v14  ;;  %v4356_v37 = vmul.bf16 %v19852_v16, %v4340_v38 }
 0x3a2   : > { %v4737_v2 = vpop.permute.xlu1 %4736  ;;  %4617 = vrot.lane.b32.xlu0 %v4337_v27, %s19753_s1  ;;  %v4883_v58 = vsel %vm2556_vm5, %v4851_v4, %v15898_v15  ;;  %v4833_v7 = vsel %vm604_vm0, %v4801_v8, %v15855_v40  ;;  %v5826_v4 = vld [vmem:[%s19702_s18] sm:$0xf]  ;;  %v5829_v8 = vld [vmem:[%s19702_s18 + $0xc] sm:$0xf] }
 0x3a3   : > { %v5009_v46 = vsel %vm2688_vm8, %v4977_v29, %v4737_v2  ;;  %v4915_v27 = vsel %vm2589_vm6, %v4883_v58, %v4610_v25  ;;  %v4865_v43 = vsel %vm2556_vm5, %v4833_v7, %v15881_v42  ;;  %v19864_v29 = vld [vmem:[#allocation6_spill] sm:$0xff]  ;;  %v19865_v42 = vld [vmem:[#allocation7_spill] sm:$0xff] }
 0x3a4   : > { %4647 = vrot.lane.b32.xlu1 %v4347_v33, %s19751_s23  ;;  %13182 = vmatprep.mubr.msk.bf16.mxu1 %vm2764_vm10, %v5009_v46  ;;  %v4691_v19 = vpop.permute.xlu0 %4690  ;;  %v4947_v57 = vsel %vm2622_vm7, %v4915_v27, %v4658_v13  ;;  %v4897_v14 = vsel %vm2589_vm6, %v4865_v43, %v15901_v60  ;;  %v19866_v2 = vmul.bf16 %v19864_v29, %v19865_v42  ;;  %v5828_v27 = vld [vmem:[%s19702_s18 + $0x8] sm:$0xf]  ;;  %v19870_v43 = vmov 1  }
 0x3a5   : > { %v4979_v15 = vsel %vm2655_vm9, %v4947_v57, %v4691_v19  ;;  %v4929_v40 = vsel %vm2622_vm7, %v4897_v14, %v15914_v53  ;;  %v4348_v53 = vmul.bf16 %v19854_v18, %v15237_v61  ;;  %v4361_v19 = vld [vmem:[#allocation2 + $0x121] sm:$0xff] }
 0x3a6   : > { %v4675_v3 = vpop.permute.xlu1 %4674  ;;  %4601 = vrot.lane.b32.xlu0 %v4329_v45, %s19753_s1  ;;  %v4759_v13 = vsel %vm2443_vm4, %v19866_v2, %v15832_v23  ;;  %v4961_v60 = vsel %vm2655_vm9, %v4929_v40, %v4673_v0  ;;  %v4377_v23 = vmul.bf16 %v15851_v28, %v15930_v41  ;;  %v4369_v28 = vmul.bf16 %v15853_v39, %v4313_v49  ;;  %v5827_v49 = vld [vmem:[%s19702_s18 + $0x4] sm:$0xf]  ;;  %s19891_s1 = smov 40  }
 0x3a7   : > { %v4803_v46 = vsel %vm643_vm2, %v4759_v13, %v15861_v30  ;;  %v4362_v41 = vpack.c.bf16 %v4361_v19, %v4360_v32  ;;  %v19871_v13 = vld [vmem:[#allocation18_spill] sm:$0xff] }
 0x3a8   : > { %4696 = vrot.lane.b32.xlu1 %v4273_v20, %s19841_s2  ;;  %v15975_v10 = vpop.permute.xlu0 %4419  ;;  %v4357_v20 = vld [vmem:[#allocation2 + $0x118] sm:$0xff]  ;;  %v4835_v21 = vsel %vm604_vm0, %v4803_v46, %v15890_v47 }
 0x3a9   : > { %v4867_v61 = vsel %vm2556_vm5, %v4835_v21, %v15906_v5  ;;  %v4378_v39 = vmul.bf16 %v15879_v55, %v4362_v41  ;;  %v19869_v55 = vmov 0  }
 0x3aa   : > { %v4739_v50 = vpop.permute.xlu1 %4738  ;;  %4665 = vrot.lane.b32.xlu0 %v4356_v37, %s19751_s23  ;;  %v4899_v30 = vsel %vm2589_vm6, %v4867_v61, %v15920_v54 }
 0x3ab   : > { %v5011_v25 = vsel %vm2688_vm8, %v4979_v15, %v4739_v50  ;;  %v4931_v47 = vsel %vm2622_vm7, %v4899_v30, %v4642_v63  ;;  %v19867_v63 = vld [vmem:[#allocation8_spill] sm:$0xff] }
 0x3ac   : > { %4680 = vrot.lane.b32.xlu1 %v4265_v44, %s19841_s2  ;;  %13183 = vmatmul.mubr.msk.bf16.gmra.mxu1 %vm2764_vm10, %v5011_v25  ;;  %v4721_v33 = vpop.permute.xlu0 %4720  ;;  %v4359_v44 = vpack.c.bf16 %v4358_v22, %v4357_v20  ;;  %v4963_v45 = vsel %vm2655_vm9, %v4931_v47, %v4675_v3 }
 0x3ad   : > { %v4993_v24 = vsel %vm2688_vm8, %v4961_v60, %v4721_v33  ;;  %v19872_v60 = vmul.bf16 %v15366_v1, %v19871_v13 }
 0x3ae   : > { %v16003_v52 = vpop.permute.xlu1 %4421  ;;  %4649 = vrot.lane.b32.xlu0 %v4348_v53, %s19751_s23  ;;  %13166 = vmatprep.mubr.msk.bf16.mxu0 %vm2764_vm10, %v4993_v24  ;;  %s19886_s23 = smov 8  }
 0x3af   : > { %v4786_v33 = vsel %vm2443_vm4, %v19872_v60, %v15975_v10  ;;  %v19873_v10 = vld [vmem:[#allocation22_spill] sm:$0xff] }
 0x3b0   : > { %4744 = vrot.lane.b32.xlu1 %v4377_v23, %s19842_s22  ;;  %v16014_v0 = vpop.permute.xlu0 %4403  ;;  %v19874_v19 = vmul.bf16 %v15461_v56, %v19873_v10 }
 0x3b2   : > { %v4723_v38 = vpop.permute.xlu1 %4722  ;;  %4698 = vrot.lane.b32.xlu0 %v4359_v44, %s19841_s2 }
 0x3b3   : > { %v4995_v5 = vsel %vm2688_vm8, %v4963_v45, %v4723_v38  ;;  %v4789_v45 = vsel %vm2443_vm4, %v19874_v19, %v16003_v52 }
 0x3b4   : > { %4728 = vrot.lane.b32.xlu1 %v4369_v28, %s19842_s22  ;;  %v4468_v54 = vpop.permute.xlu0 %4467  ;;  %13167 = vmatmul.mubr.msk.bf16.gmra.mxu0 %vm2764_vm10, %v4995_v5  ;;  %v19875_v5 = vld [vmem:[#allocation11_spill] sm:$0xff] }
 0x3b5   : > { %v4821_v46 = vsel %vm643_vm2, %v4786_v33, %v4468_v54  ;;  %v19876_v54 = vmul.bf16 %v15225_v9, %v19875_v5 }
 0x3b6   : > { %v4452_v11 = vpop.permute.xlu1 %4451  ;;  %4682 = vrot.lane.b32.xlu0 %v19867_v63, %s19841_s2 }
 0x3b7   : > { %v4762_v41 = vsel %vm2443_vm4, %v19876_v54, %v16014_v0 }
 0x3b8   : > { %4730 = vrot.lane.b32.xlu1 %v4370_v62, %s19842_s22  ;;  %v16028_v17 = vpop.permute.xlu0 %4405  ;;  %v4805_v62 = vsel %vm643_vm2, %v4762_v41, %v4452_v11 }
 0x3ba   : > { %v4516_v26 = vpop.permute.xlu1 %4515  ;;  %4746 = vrot.lane.b32.xlu0 %v4378_v39, %s19842_s22 }
 0x3bb   : > { %v4853_v24 = vsel %vm604_vm0, %v4821_v46, %v4516_v26 }
 0x3bc   : > { %6006 = vperm.xlu1 %13401, %v5827_v49   ;;  %v4470_v3 = vpop.permute.xlu0 %4469 }
 0x3bd   : > { %v4823_v28 = vsel %vm643_vm2, %v4789_v45, %v4470_v3 }
 0x3be   : > { %v4500_v59 = vpop.permute.xlu1 %4499  ;;  %5995 = vperm.xlu0 %13398, %v5826_v4  }
 0x3bf   : > { %v4837_v52 = vsel %vm604_vm0, %v4805_v62, %v4500_v59 }
 0x3c0   : > { %13402 = vset.pattern.permute.xlu1 %v19869_v55  ;;  %v4454_v58 = vpop.permute.xlu0 %4453 }
 0x3c1   : > { %5860 = vperm.xlu1 %13402, %v5827_v49  }
 0x3c2   : > { %v4564_v7 = vpop.permute.xlu1 %4563  ;;  %6028 = vperm.xlu0 %13398, %v5829_v8  }
 0x3c3   : > { %v4885_v23 = vsel %vm2556_vm5, %v4853_v24, %v4564_v7  ;;  %v19877_v7 = vld [vmem:[#allocation15_spill] sm:$0xff] }
 0x3c4   : > { %v4518_v37 = vpop.permute.xlu0 %4517  ;;  %v19878_v59 = vmul.bf16 %v15292_v51, %v19877_v7 }
 0x3c5   : > { %13403 = vset.pattern.permute.xlu1 %v19870_v43  ;;  %v4855_v63 = vsel %vm604_vm0, %v4823_v28, %v4518_v37  ;;  %v19879_v28 = vld [vmem:[#allocation24_spill] sm:$0xff] }
 0x3c6   : > { %6017 = vperm.xlu1 %13403, %v5828_v27   ;;  %v4548_v57 = vpop.permute.xlu1 %4547  ;;  %13404 = vset.pattern.permute.xlu0 %v19869_v55  ;;  %v19880_v5 = vmul.bf16 %v15483_v36, %v19879_v28 }
 0x3c7   : > { %5848 = vperm.xlu0 %13404, %v5826_v4   ;;  %v4869_v26 = vsel %vm2556_vm5, %v4837_v52, %v4548_v57  ;;  %v19881_v52 = vmul.bf16 %v15399_v34, %v15401_v6 }
 0x3c8   : > { %v4502_v14 = vpop.permute.xlu0 %4501 }
 0x3ca   : > { %v4612_v15 = vpop.permute.xlu1 %4611  ;;  %13405 = vset.pattern.permute.xlu1 %v19869_v55 }
 0x3cb   : > { %5872 = vperm.xlu1 %13405, %v5828_v27   ;;  %v4917_v44 = vsel %vm2589_vm6, %v4885_v23, %v4612_v15  ;;  %v4765_v27 = vsel %vm2443_vm4, %v19878_v59, %v16028_v17 }
 0x3cc   : > { %v4566_v50 = vpop.permute.xlu0 %4565  ;;  %v4807_v15 = vsel %vm643_vm2, %v4765_v27, %v4454_v58 }
 0x3cd   : > { %v4887_v56 = vsel %vm2556_vm5, %v4855_v63, %v4566_v50 }
 0x3ce   : > { %v4596_v40 = vpop.permute.xlu1 %4595 }
 0x3cf   : > { %5884 = vperm.xlu1 %13405, %v5829_v8   ;;  %v4901_v9 = vsel %vm2589_vm6, %v4869_v26, %v4596_v40  ;;  %v4839_v40 = vsel %vm604_vm0, %v4807_v15, %v4502_v14 }
 0x3d0   : > { %v4550_v25 = vpop.permute.xlu0 %4549 }
 0x3d2   : > { %v4660_v20 = vpop.permute.xlu1 %4659 }
 0x3d3   : > { %13406 = vset.pattern.permute.xlu1 %v19870_v43  ;;  %v4949_v30 = vsel %vm2622_vm7, %v4917_v44, %v4660_v20 }
 0x3d4   : > { %v4614_v22 = vpop.permute.xlu0 %4613 }
 0x3d5   : > { %v4919_v39 = vsel %vm2589_vm6, %v4887_v56, %v4614_v22  ;;  %v4871_v22 = vsel %vm2556_vm5, %v4839_v40, %v4550_v25 }
 0x3d6   : > { %v4644_v29 = vpop.permute.xlu1 %4643 }
 0x3d7   : > { %v4933_v8 = vsel %vm2622_vm7, %v4901_v9, %v4644_v29 }
 0x3d8   : > { %v4598_v42 = vpop.permute.xlu0 %4597 }
 0x3d9   : > { %v4903_v51 = vsel %vm2589_vm6, %v4871_v22, %v4598_v42 }
 0x3da   : > { %v4693_v2 = vpop.permute.xlu1 %4692 }
 0x3db   : > { %v4981_v47 = vsel %vm2655_vm9, %v4949_v30, %v4693_v2 }
 0x3dc   : > { %v4662_v53 = vpop.permute.xlu0 %4661 }
 0x3dd   : > { %v4951_v4 = vsel %vm2622_vm7, %v4919_v39, %v4662_v53 }
 0x3de   : > { %v4677_v21 = vpop.permute.xlu1 %4676 }
 0x3df   : > { %v4965_v37 = vsel %vm2655_vm9, %v4933_v8, %v4677_v21  ;;  %v19882_v8 = vmul.bf16 %v19854_v18, %v15485_v35  ;;  %v19883_v35 = vmul.bf16 %v19852_v16, %v15555_v48 }
 0x3e0   : > { %v4646_v61 = vpop.permute.xlu0 %4645 }
 0x3e1   : > { %v4935_v17 = vsel %vm2622_vm7, %v4903_v51, %v4646_v61 }
 0x3e2   : > { %v4741_v32 = vpop.permute.xlu1 %4740 }
 0x3e3   : > { %v5013_v1 = vsel %vm2688_vm8, %v4981_v47, %v4741_v32 }
 0x3e4   : > { %13186 = vmatprep.mubr.msk.bf16.mxu1 %vm2764_vm10, %v5013_v1  ;;  %v4695_v38 = vpop.permute.xlu0 %4694 }
 0x3e5   : > { %v4983_v0 = vsel %vm2655_vm9, %v4951_v4, %v4695_v38 }
 0x3e6   : > { %v4679_v31 = vpop.permute.xlu1 %4678 }
 0x3e7   : > { %v4967_v2 = vsel %vm2655_vm9, %v4935_v17, %v4679_v31 }
 0x3e8   : > { %v4424_v49 = vpop.permute.xlu0 %4423 }
 0x3e9   : > { %v4792_v54 = vsel %vm2443_vm4, %v19880_v5, %v4424_v49 }
 0x3ea   : > { %v4743_v3 = vpop.permute.xlu1 %4742 }
 0x3eb   : > { %v5015_v11 = vsel %vm2688_vm8, %v4983_v0, %v4743_v3 }
 0x3ec   : > { %13187 = vmatmul.mubr.msk.bf16.gmra.mxu1 %vm2764_vm10, %v5015_v11  ;;  %v4725_v57 = vpop.permute.xlu0 %4724 }
 0x3ed   : > { %v4997_v50 = vsel %vm2688_vm8, %v4965_v37, %v4725_v57 }
 0x3ee   : > { %v4426_v20 = vpop.permute.xlu1 %4425  ;;  %13170 = vmatprep.mubr.msk.bf16.mxu0 %vm2764_vm10, %v4997_v50 }
 0x3ef   : > { %v4795_v18 = vsel %vm2443_vm4, %v19883_v35, %v4426_v20 }
 0x3f0   : > { %v4408_v29 = vpop.permute.xlu0 %4407 }
 0x3f1   : > { %v4768_v39 = vsel %vm2443_vm4, %v19881_v52, %v4408_v29 }
 0x3f2   : > { %v4727_v13 = vpop.permute.xlu1 %4726 }
 0x3f3   : > { %v4999_v60 = vsel %vm2688_vm8, %v4967_v2, %v4727_v13 }
 0x3f4   : > { %v4472_v58 = vpop.permute.xlu0 %4471  ;;  %13171 = vmatmul.mubr.msk.bf16.gmra.mxu0 %vm2764_vm10, %v4999_v60 }
 0x3f5   : > { %v4825_v63 = vsel %vm643_vm2, %v4792_v54, %v4472_v58  ;;  %v16146_v58 = vld [vmem:[%s19884_s4] ss:$0 sm:$0xff]  ;;  %s19892_s4 = smov 48  }
 0x3f6   : > { %v4456_v33 = vpop.permute.xlu1 %4455 }
 0x3f7   : > { %v4809_v36 = vsel %vm643_vm2, %v4768_v39, %v4456_v33 }
 0x3f8   : > { %v4410_v14 = vpop.permute.xlu0 %4409 }
 0x3f9   : > { %v4771_v11 = vsel %vm2443_vm4, %v19882_v8, %v4410_v14 }
 0x3fa   : > { %v4520_v53 = vpop.permute.xlu1 %4519 }
 0x3fb   : > { %v4857_v31 = vsel %vm604_vm0, %v4825_v63, %v4520_v53 }
 0x3fc   : > { %v4474_v46 = vpop.permute.xlu0 %4473 }
 0x3fd   : > { %v4827_v22 = vsel %vm643_vm2, %v4795_v18, %v4474_v46 }
 0x3fe   : > { %v4504_v24 = vpop.permute.xlu1 %4503 }
 0x3ff   : > { %v4841_v9 = vsel %vm604_vm0, %v4809_v36, %v4504_v24 }
 0x400   : > { %v4458_v21 = vpop.permute.xlu0 %4457 }
 0x401   : > { %v4811_v7 = vsel %vm643_vm2, %v4771_v11, %v4458_v21 }
 0x402   : > { %v4568_v25 = vpop.permute.xlu1 %4567 }
 0x403   : > { %v4889_v56 = vsel %vm2556_vm5, %v4857_v31, %v4568_v25 }
 0x404   : > { %v4522_v23 = vpop.permute.xlu0 %4521 }
 0x405   : > { %v4859_v17 = vsel %vm604_vm0, %v4827_v22, %v4522_v23 }
 0x406   : > { %v4552_v42 = vpop.permute.xlu1 %4551 }
 0x407   : > { %v4873_v34 = vsel %vm2556_vm5, %v4841_v9, %v4552_v42 }
 0x408   : > { %v4506_v44 = vpop.permute.xlu0 %4505 }
 0x409   : > { %v4843_v37 = vsel %vm604_vm0, %v4811_v7, %v4506_v44 }
 0x40a   : > { %v4616_v30 = vpop.permute.xlu1 %4615 }
 0x40b   : > { %v4921_v26 = vsel %vm2589_vm6, %v4889_v56, %v4616_v30 }
 0x40c   : > { %v4570_v61 = vpop.permute.xlu0 %4569 }
 0x40d   : > { %v4891_v48 = vsel %vm2556_vm5, %v4859_v17, %v4570_v61 }
 0x40e   : > { %v4600_v47 = vpop.permute.xlu1 %4599 }
 0x40f   : > { %v4905_v59 = vsel %vm2589_vm6, %v4873_v34, %v4600_v47 }
 0x410   : > { %v4554_v32 = vpop.permute.xlu0 %4553 }
 0x411   : > { %v4875_v15 = vsel %vm2556_vm5, %v4843_v37, %v4554_v32 }
 0x412   : > { %v4664_v1 = vpop.permute.xlu1 %4663 }
 0x413   : > { %v4953_v49 = vsel %vm2622_vm7, %v4921_v26, %v4664_v1 }
 0x414   : > { %v4618_v10 = vpop.permute.xlu0 %4617 }
 0x415   : > { %v4923_v20 = vsel %vm2589_vm6, %v4891_v48, %v4618_v10 }
 0x416   : > { %v4648_v19 = vpop.permute.xlu1 %4647 }
 0x417   : > { %v4937_v57 = vsel %vm2622_vm7, %v4905_v59, %v4648_v19 }
 0x418   : > { %v4602_v45 = vpop.permute.xlu0 %4601 }
 0x419   : > { %v4907_v51 = vsel %vm2589_vm6, %v4875_v15, %v4602_v45 }
 0x41a   : > { %v4697_v38 = vpop.permute.xlu1 %4696 }
 0x41b   : > { %v4985_v0 = vsel %vm2655_vm9, %v4953_v49, %v4697_v38 }
 0x41c   : > { %v4666_v41 = vpop.permute.xlu0 %4665 }
 0x41d   : > { %v4955_v33 = vsel %vm2622_vm7, %v4923_v20, %v4666_v41 }
 0x41e   : > { %v4681_v62 = vpop.permute.xlu1 %4680 }
 0x41f   : > { %v4969_v50 = vsel %vm2655_vm9, %v4937_v57, %v4681_v62 }
 0x420   : > { %v4650_v4 = vpop.permute.xlu0 %4649 }
 0x421   : > { %v4939_v2 = vsel %vm2622_vm7, %v4907_v51, %v4650_v4 }
 0x422   : > { %v4745_v3 = vpop.permute.xlu1 %4744 }
 0x423   : > { %v5017_v6 = vsel %vm2688_vm8, %v4985_v0, %v4745_v3 }
 0x424   : > { %13190 = vmatprep.mubr.msk.bf16.mxu1 %vm2764_vm10, %v5017_v6  ;;  %v4699_v27 = vpop.permute.xlu0 %4698 }
 0x425   : > { %v4987_v53 = vsel %vm2655_vm9, %v4955_v33, %v4699_v27 }
 0x426   : > { %v4729_v40 = vpop.permute.xlu1 %4728 }
 0x427   : > { %v5001_v29 = vsel %vm2688_vm8, %v4969_v50, %v4729_v40 }
 0x428   : > { %v4683_v13 = vpop.permute.xlu0 %4682  ;;  %13174 = vmatprep.mubr.msk.bf16.mxu0 %vm2764_vm10, %v5001_v29 }
 0x429   : > { %v4971_v16 = vsel %vm2655_vm9, %v4939_v2, %v4683_v13 }
 0x42a   : > { %v4731_v60 = vpop.permute.xlu1 %4730 }
 0x42b   : > { %v5003_v14 = vsel %vm2688_vm8, %v4971_v16, %v4731_v60 }
 0x42c   : > { %v13180_v46 = vpop.f32.mrf.mxu1  ;;  %v4747_v24 = vpop.permute.xlu0 %4746  ;;  %13175 = vmatmul.mubr.msk.bf16.gmra.mxu0 %vm2764_vm10, %v5003_v14  ;;  %v13494_v14 = vld [vmem:[%s19885_s15 + $0x4] ss:$8 sps:$4 sm:$0xff]  }
 0x42d   : > { %v5205_v21 = vadd.f32 %v13180_v46, %v16146_v58  ;;  %v5019_v25 = vsel %vm2688_vm8, %v4987_v53, %v4747_v24  ;;  %v13497_v53 = vld [vmem:[%s19885_s15 + $0x44] ss:$8 sps:$4 sm:$0xff]   ;;  %5419 = vmatprep.mubr.bf16.mxu0 %v13494_v14 }
 0x42e   : > { %v5196_v23 = vpop.f32.mrf.mxu1  ;;  %13191 = vmatmul.mubr.msk.bf16.gmra.mxu1 %vm2764_vm10, %v5019_v25 }
 0x42f   : > { %v5277_v42 = vmax.f32 %v5205_v21, 0.0  ;;  %v5197_v44 = vadd.f32 %v16146_v58, %v5196_v23  ;;  %5533 = vmatprep.mubr.bf16.mxu1 %v13497_v53 }
 0x430   : > { %v13181_v30 = vpop.f32.mrf.mxu1 }
 0x431   : > { %5309 = vst.msk [vmem:[#allocation2 + $0xa8] sm:$0xff] %vm2443_vm4, %v5277_v42  ;;  %v5275_v61 = vmax.f32 %v5197_v44, 0.0  ;;  %v5208_v47 = vadd.f32 %v13181_v30, %v16146_v58 }
 0x432   : > { %v5199_v32 = vpop.f32.mrf.mxu1 }
 0x433   : > { %5307 = vst.msk [vmem:[#allocation2 + $0x98] sm:$0xff] %vm2443_vm4, %v5275_v61  ;;  %v5278_v1 = vmax.f32 %v5208_v47, 0.0  ;;  %v5200_v10 = vadd.f32 %v16146_v58, %v5199_v32 }
 0x434   : > { %v13164_v19 = vpop.f32.mrf.mxu0 }
 0x435   : > { %v16160_v45 = vpack.c.bf16 %v5278_v1, %v5277_v42  ;;  %5310 = vst.msk [vmem:[#allocation2 + $0xb0] sm:$0xff] %vm2443_vm4, %v5278_v1  ;;  %v5276_v38 = vmax.f32 %v5200_v10, 0.0  ;;  %v5141_v28 = vadd.f32 %v13164_v19, %v16146_v58 }
 0x436   : > { %v5132_v5 = vpop.f32.mrf.mxu0 }
 0x437   : > { %v16164_v54 = vpack.c.bf16 %v5276_v38, %v5275_v61  ;;  %5308 = vst.msk [vmem:[#allocation2 + $0xa0] sm:$0xff] %vm2443_vm4, %v5276_v38  ;;  %v5261_v41 = vmax.f32 %v5141_v28, 0.0  ;;  %v5133_v63 = vadd.f32 %v16146_v58, %v5132_v5 }
 0x438   : > { %v13165_v31 = vpop.f32.mrf.mxu0 }
 0x439   : > { %5293 = vst.msk [vmem:[#allocation2 + $0x28] sm:$0xff] %vm2443_vm4, %v5261_v41  ;;  %v5259_v62 = vmax.f32 %v5133_v63, 0.0  ;;  %v5144_v56 = vadd.f32 %v13165_v31, %v16146_v58 }
 0x43a   : > { %v5135_v52 = vpop.f32.mrf.mxu0 }
 0x43b   : > { %5291 = vst.msk [vmem:[#allocation2 + $0x18] sm:$0xff] %vm2443_vm4, %v5259_v62  ;;  %v5262_v39 = vmax.f32 %v5144_v56, 0.0  ;;  %v5136_v26 = vadd.f32 %v16146_v58, %v5135_v52 }
 0x43d   : > { %v16172_v4 = vpack.c.bf16 %v5262_v39, %v5261_v41  ;;  %5294 = vst.msk [vmem:[#allocation2 + $0x30] sm:$0xff] %vm2443_vm4, %v5262_v39  ;;  %v5260_v36 = vmax.f32 %v5136_v26, 0.0 }
 0x43f   : > { %v16175_v49 = vpack.c.bf16 %v5260_v36, %v5259_v62  ;;  %5292 = vst.msk [vmem:[#allocation2 + $0x20] sm:$0xff] %vm2443_vm4, %v5260_v36 }
 0x46c   : > { %v13184_v9 = vpop.f32.mrf.mxu1 }
 0x46d   : > { %v5221_v0 = vadd.f32 %v13184_v9, %v16146_v58 }
 0x46e   : > { %v5212_v3 = vpop.f32.mrf.mxu1 }
 0x46f   : > { %v5281_v8 = vmax.f32 %v5221_v0, 0.0  ;;  %v5213_v11 = vadd.f32 %v16146_v58, %v5212_v3  ;;  %v5831_v3 = vld [vmem:[%s19702_s18 + $0x14] sm:$0xf] }
 0x470   : > { %v13185_v34 = vpop.f32.mrf.mxu1  ;;  %6050 = vperm.xlu1 %13406, %v5831_v3  }
 0x471   : > { %5313 = vst.msk [vmem:[#allocation2 + $0xc8] sm:$0xff] %vm2443_vm4, %v5281_v8  ;;  %v5279_v6 = vmax.f32 %v5213_v11, 0.0  ;;  %v5224_v7 = vadd.f32 %v13185_v34, %v16146_v58  ;;  %v5832_v11 = vld [vmem:[%s19702_s18 + $0x18] sm:$0xf]  ;;  %v5833_v34 = vld [vmem:[%s19702_s18 + $0x1c] sm:$0xf] }
 0x472   : > { %v5215_v59 = vpop.f32.mrf.mxu1 }
 0x473   : > { %5311 = vst.msk [vmem:[#allocation2 + $0xb8] sm:$0xff] %vm2443_vm4, %v5279_v6  ;;  %v5282_v27 = vmax.f32 %v5224_v7, 0.0  ;;  %v5216_v37 = vadd.f32 %v16146_v58, %v5215_v59 }
 0x474   : > { %v13168_v57 = vpop.f32.mrf.mxu0  ;;  %13408 = vset.pattern.permute.xlu1 %v19869_v55 }
 0x475   : > { %v16184_v35 = vpack.c.bf16 %v5282_v27, %v5281_v8  ;;  %5314 = vst.msk [vmem:[#allocation2 + $0xd0] sm:$0xff] %vm2443_vm4, %v5282_v27  ;;  %v5280_v18 = vmax.f32 %v5216_v37, 0.0  ;;  %v5157_v15 = vadd.f32 %v13168_v57, %v16146_v58  ;;  %v5830_v8 = vld [vmem:[%s19702_s18 + $0x10] sm:$0xf]  ;;  %5908 = vperm.xlu1 %13408, %v5831_v3  }
 0x476   : > { %v5148_v50 = vpop.f32.mrf.mxu0  ;;  %5896 = vperm.xlu0 %13404, %v5830_v8   ;;  %v13539_v3 = vld [vmem:[%s19885_s15 + $0xf0] ss:$8 sps:$4 sm:$0xff]  }
 0x477   : > { %v16188_v40 = vpack.c.bf16 %v5280_v18, %v5279_v6  ;;  %5312 = vst.msk [vmem:[#allocation2 + $0xc0] sm:$0xff] %vm2443_vm4, %v5280_v18  ;;  %v5265_v22 = vmax.f32 %v5157_v15, 0.0  ;;  %v5149_v51 = vadd.f32 %v16146_v58, %v5148_v50 }
 0x478   : > { %v13169_v29 = vpop.f32.mrf.mxu0 }
 0x479   : > { %5297 = vst.msk [vmem:[#allocation2 + $0x48] sm:$0xff] %vm2443_vm4, %v5265_v22  ;;  %v5263_v17 = vmax.f32 %v5149_v51, 0.0  ;;  %v5160_v2 = vadd.f32 %v13169_v29, %v16146_v58  ;;  %13409 = vset.pattern.permute.xlu1 %v19870_v43 }
 0x47a   : > { %v5151_v13 = vpop.f32.mrf.mxu0  ;;  %13407 = vset.pattern.permute.xlu0 %v19870_v43  ;;  %6061 = vperm.xlu1 %13409, %v5832_v11  }
 0x47b   : > { %5295 = vst.msk [vmem:[#allocation2 + $0x38] sm:$0xff] %vm2443_vm4, %v5263_v17  ;;  %v5266_v48 = vmax.f32 %v5160_v2, 0.0  ;;  %v5152_v16 = vadd.f32 %v16146_v58, %v5151_v13  ;;  %6039 = vperm.xlu0 %13407, %v5830_v8  }
 0x47d   : > { %v16196_v20 = vpack.c.bf16 %v5266_v48, %v5265_v22  ;;  %5298 = vst.msk [vmem:[#allocation2 + $0x50] sm:$0xff] %vm2443_vm4, %v5266_v48  ;;  %v5264_v60 = vmax.f32 %v5152_v16, 0.0 }
 0x47e   : > { %13410 = vset.pattern.permute.xlu1 %v19869_v55 }
 0x47f   : > { %v16199_v33 = vpack.c.bf16 %v5264_v60, %v5263_v17  ;;  %5296 = vst.msk [vmem:[#allocation2 + $0x40] sm:$0xff] %vm2443_vm4, %v5264_v60  ;;  %6072 = vperm.xlu0 %13407, %v5833_v34   ;;  %5920 = vperm.xlu1 %13410, %v5832_v11  }
 0x483   : > { %13412 = vset.pattern.permute.xlu0 %v19869_v55  ;;  %5932 = vperm.xlu1 %13410, %v5833_v34  }
 0x487   : > { %13411 = vset.pattern.permute.xlu1 %v19870_v43 }
 0x4ac   : > { %v13188_v46 = vpop.f32.mrf.mxu1 }
 0x4ad   : > { %v5237_v24 = vadd.f32 %v13188_v46, %v16146_v58 }
 0x4ae   : > { %v5228_v21 = vpop.f32.mrf.mxu1 }
 0x4af   : > { %v5285_v25 = vmax.f32 %v5237_v24, 0.0  ;;  %v5229_v23 = vadd.f32 %v16146_v58, %v5228_v21 }
 0x4b0   : > { %v13189_v42 = vpop.f32.mrf.mxu1 }
 0x4b1   : > { %5317 = vst.msk [vmem:[#allocation2 + $0xe8] sm:$0xff] %vm2443_vm4, %v5285_v25  ;;  %v5283_v44 = vmax.f32 %v5229_v23, 0.0  ;;  %v5240_v30 = vadd.f32 %v13189_v42, %v16146_v58 }
 0x4b2   : > { %v5231_v61 = vpop.f32.mrf.mxu1 }
 0x4b3   : > { %5315 = vst.msk [vmem:[#allocation2 + $0xd8] sm:$0xff] %vm2443_vm4, %v5283_v44  ;;  %v5286_v47 = vmax.f32 %v5240_v30, 0.0  ;;  %v5232_v32 = vadd.f32 %v16146_v58, %v5231_v61  ;;  %v13495_v61 = vld [vmem:[%s19885_s15 + $0x40] ss:$8 sps:$4 sm:$0xff]  }
 0x4b4   : > { %v13172_v1 = vpop.f32.mrf.mxu0 }
 0x4b5   : > { %v16214_v10 = vpack.c.bf16 %v5286_v47, %v5285_v25  ;;  %5318 = vst.msk [vmem:[#allocation2 + $0xf0] sm:$0xff] %vm2443_vm4, %v5286_v47  ;;  %v5284_v19 = vmax.f32 %v5232_v32, 0.0  ;;  %v5173_v38 = vadd.f32 %v13172_v1, %v16146_v58  ;;  %v13498_v47 = vld [vmem:[%s19885_s15 + $0x14] ss:$8 sps:$4 sm:$0xff]   ;;  %v13502_v1 = vld [vmem:[%s19885_s15 + $0x10] ss:$8 sps:$4 sm:$0xff]  }
 0x4b6   : > { %v5164_v28 = vpop.f32.mrf.mxu0  ;;  %v13500_v32 = vld [vmem:[%s19885_s15 + $0x54] ss:$8 sps:$4 sm:$0xff]  }
 0x4b7   : > { %v16218_v5 = vpack.c.bf16 %v5284_v19, %v5283_v44  ;;  %5316 = vst.msk [vmem:[#allocation2 + $0xe0] sm:$0xff] %vm2443_vm4, %v5284_v19  ;;  %v5269_v41 = vmax.f32 %v5173_v38, 0.0  ;;  %v5165_v63 = vadd.f32 %v16146_v58, %v5164_v28  ;;  %v13503_v19 = vld [vmem:[%s19885_s15 + $0x50] ss:$8 sps:$4 sm:$0xff]   ;;  %v13504_v38 = vld [vmem:[%s19885_s15 + $0x24] ss:$8 sps:$4 sm:$0xff]  }
 0x4b8   : > { %v13173_v31 = vpop.f32.mrf.mxu0  ;;  %v13506_v28 = vld [vmem:[%s19885_s15 + $0x64] ss:$8 sps:$4 sm:$0xff]  }
 0x4b9   : > { %5301 = vst.msk [vmem:[#allocation2 + $0x68] sm:$0xff] %vm2443_vm4, %v5269_v41  ;;  %v5267_v62 = vmax.f32 %v5165_v63, 0.0  ;;  %v5176_v56 = vadd.f32 %v13173_v31, %v16146_v58  ;;  %v13512_v63 = vld [vmem:[%s19885_s15 + $0x74] ss:$8 sps:$4 sm:$0xff]   ;;  %v13515_v31 = vld [vmem:[%s19885_s15 + $0x70] ss:$8 sps:$4 sm:$0xff]  }
 0x4ba   : > { %v5167_v52 = vpop.f32.mrf.mxu0 }
 0x4bb   : > { %5299 = vst.msk [vmem:[#allocation2 + $0x58] sm:$0xff] %vm2443_vm4, %v5267_v62  ;;  %v5270_v39 = vmax.f32 %v5176_v56, 0.0  ;;  %v5168_v26 = vadd.f32 %v16146_v58, %v5167_v52  ;;  %v13528_v56 = vld [vmem:[%s19885_s15 + $0xa4] ss:$8 sps:$4 sm:$0xff]  }
 0x4bc   : > { %v13530_v52 = vld [vmem:[%s19885_s15 + $0xe4] ss:$8 sps:$4 sm:$0xff]  }
 0x4bd   : > { %v16226_v36 = vpack.c.bf16 %v5270_v39, %v5269_v41  ;;  %5302 = vst.msk [vmem:[#allocation2 + $0x70] sm:$0xff] %vm2443_vm4, %v5270_v39  ;;  %v5268_v9 = vmax.f32 %v5168_v26, 0.0  ;;  %v13509_v41 = vld [vmem:[%s19885_s15 + $0x60] ss:$8 sps:$4 sm:$0xff]  }
 0x4be   : > { %v13532_v39 = vld [vmem:[%s19885_s15 + $0xa0] ss:$8 sps:$4 sm:$0xff]  }
 0x4bf   : > { %v16229_v0 = vpack.c.bf16 %v5268_v9, %v5267_v62  ;;  %5300 = vst.msk [vmem:[#allocation2 + $0x60] sm:$0xff] %vm2443_vm4, %v5268_v9  ;;  %v13526_v62 = vld [vmem:[%s19885_s15 + $0x90] ss:$8 sps:$4 sm:$0xff]   ;;  %v13533_v26 = vld [vmem:[%s19885_s15 + $0xe0] ss:$8 sps:$4 sm:$0xff]  }
 0x4c0   : > { %v13536_v9 = vld [vmem:[%s19885_s15 + $0xf4] ss:$8 sps:$4 sm:$0xff]  }
 0x4ec   : > { %v13176_v6 = vpop.f32.mrf.mxu0 }
 0x4ed   : > { %v5189_v7 = vadd.f32 %v13176_v6, %v16146_v58 }
 0x4ee   : > { %v5180_v59 = vpop.f32.mrf.mxu0  ;;  %v13192_v27 = vpop.f32.mrf.mxu1 }
 0x4ef   : > { %v5273_v37 = vmax.f32 %v5189_v7, 0.0  ;;  %v5181_v57 = vadd.f32 %v16146_v58, %v5180_v59  ;;  %v5253_v18 = vadd.f32 %v13192_v27, %v16146_v58 }
 0x4f0   : > { %v13177_v15 = vpop.f32.mrf.mxu0  ;;  %v5244_v50 = vpop.f32.mrf.mxu1 }
 0x4f1   : > { %5305 = vst.msk [vmem:[#allocation2 + $0x88] sm:$0xff] %vm2443_vm4, %v5273_v37  ;;  %v5271_v22 = vmax.f32 %v5181_v57, 0.0  ;;  %v5289_v51 = vmax.f32 %v5253_v18, 0.0  ;;  %v5192_v29 = vadd.f32 %v13177_v15, %v16146_v58  ;;  %v5245_v17 = vadd.f32 %v16146_v58, %v5244_v50 }
 0x4f2   : > { %v5183_v2 = vpop.f32.mrf.mxu0  ;;  %v13193_v13 = vpop.f32.mrf.mxu1 }
 0x4f3   : > { %5303 = vst.msk [vmem:[#allocation2 + $0x78] sm:$0xff] %vm2443_vm4, %v5271_v22  ;;  %5321 = vst.msk [vmem:[#allocation2 + $0x108] sm:$0xff] %vm2443_vm4, %v5289_v51  ;;  %v5274_v48 = vmax.f32 %v5192_v29, 0.0  ;;  %v5287_v16 = vmax.f32 %v5245_v17, 0.0  ;;  %v5184_v60 = vadd.f32 %v16146_v58, %v5183_v2  ;;  %v5256_v14 = vadd.f32 %v13193_v13, %v16146_v58 }
 0x4f4   : > { %v5247_v53 = vpop.f32.mrf.mxu1 }
 0x4f5   : > { %5306 = vst.msk [vmem:[#allocation2 + $0x90] sm:$0xff] %vm2443_vm4, %v5274_v48  ;;  %5319 = vst.msk [vmem:[#allocation2 + $0xf8] sm:$0xff] %vm2443_vm4, %v5287_v16  ;;  %v5272_v46 = vmax.f32 %v5184_v60, 0.0  ;;  %v5290_v24 = vmax.f32 %v5256_v14, 0.0  ;;  %v5248_v21 = vadd.f32 %v16146_v58, %v5247_v53  ;;  %v5330_v42 = vpack.c.bf16 %v5274_v48, %v5273_v37  ;;  %v13492_v58 = vld [vmem:[%s19885_s15] ss:$8 sps:$4 sm:$0xff]  }
 0x4f7   : > { %5304 = vst.msk [vmem:[#allocation2 + $0x80] sm:$0xff] %vm2443_vm4, %v5272_v46  ;;  %v5338_v25 = vpack.c.bf16 %v5290_v24, %v5289_v51  ;;  %5322 = vst.msk [vmem:[#allocation2 + $0x110] sm:$0xff] %vm2443_vm4, %v5290_v24  ;;  %v5288_v23 = vmax.f32 %v5248_v21, 0.0  ;;  %v5329_v30 = vpack.c.bf16 %v5272_v46, %v5271_v22  ;;  %v16405_v22 = vpop.permute.xlu1 %6006 }
 0x4f9   : > { %v5337_v44 = vpack.c.bf16 %v5288_v23, %v5287_v16  ;;  %5320 = vst.msk [vmem:[#allocation2 + $0x100] sm:$0xff] %vm2443_vm4, %v5288_v23  ;;  %12882 = vmatprep.subr.bf16.mxu0 %v5338_v25  ;;  %12922 = vmatprep.subr.bf16.mxu1 %v5338_v25 }
 0x4fa   : > { %12883 = vmatpush3.bf16.msra.mxu0 %v5330_v42  ;;  %12923 = vmatpush3.bf16.msra.mxu1 %v5330_v42 }
 0x4fb   : > { %12884 = vmatprep.subr.bf16.mxu0 %v5337_v44  ;;  %12924 = vmatprep.subr.bf16.mxu1 %v5337_v44  ;;  %v16411_v16 = vpop.permute.xlu1 %5860 }
 0x4fe   : > { %12885 = vmatpush3.bf16.msra.mxu0 %v5329_v30  ;;  %12925 = vmatpush3.bf16.msra.mxu1 %v5329_v30 }
 0x4ff   : > { %12886 = vmatprep.subr.bf16.mxu0 %v16214_v10  ;;  %12926 = vmatprep.subr.bf16.mxu1 %v16214_v10 }
 0x502   : > { %12887 = vmatpush3.bf16.msra.mxu0 %v16226_v36  ;;  %12927 = vmatpush3.bf16.msra.mxu1 %v16226_v36 }
 0x503   : > { %12888 = vmatprep.subr.bf16.mxu0 %v16218_v5  ;;  %12928 = vmatprep.subr.bf16.mxu1 %v16218_v5 }
 0x506   : > { %12889 = vmatpush3.bf16.msra.mxu0 %v16229_v0  ;;  %12929 = vmatpush3.bf16.msra.mxu1 %v16229_v0 }
 0x507   : > { %12890 = vmatprep.subr.bf16.mxu0 %v16184_v35  ;;  %12930 = vmatprep.subr.bf16.mxu1 %v16184_v35 }
 0x50a   : > { %12891 = vmatpush3.bf16.msra.mxu0 %v16196_v20  ;;  %12931 = vmatpush3.bf16.msra.mxu1 %v16196_v20 }
 0x50b   : > { %12892 = vmatprep.subr.bf16.mxu0 %v16188_v40  ;;  %12932 = vmatprep.subr.bf16.mxu1 %v16188_v40 }
 0x50e   : > { %12893 = vmatpush3.bf16.msra.mxu0 %v16199_v33  ;;  %12933 = vmatpush3.bf16.msra.mxu1 %v16199_v33 }
 0x50f   : > { %12894 = vmatprep.subr.bf16.mxu0 %v16160_v45  ;;  %12934 = vmatprep.subr.bf16.mxu1 %v16160_v45 }
 0x512   : > { %12895 = vmatpush3.bf16.msra.mxu0 %v16172_v4  ;;  %12935 = vmatpush3.bf16.msra.mxu1 %v16172_v4 }
 0x513   : > { %12896 = vmatprep.subr.bf16.mxu0 %v16164_v54  ;;  %12936 = vmatprep.subr.bf16.mxu1 %v16164_v54 }
 0x516   : > { %12897 = vmatpush3.bf16.msra.mxu0 %v16175_v49  ;;  %12937 = vmatpush3.bf16.msra.mxu1 %v16175_v49 }
 0x517   : > { %12962 = vmatprep.subr.bf16.mxu0 %v5338_v25  ;;  %13002 = vmatprep.subr.bf16.mxu1 %v5338_v25  ;;  %v16425_v25 = vpop.permute.xlu1 %6017 }
 0x519   : > { %5420 = vmatmul.mubr.bf16.vlgmr.msra.gmra.mxu0 %v13492_v58  ;;  %5534 = vmatmul.mubr.bf16.vlgmr.msra.gmra.mxu1 %v13495_v61 }
 0x51a   : > { %12963 = vmatpush3.bf16.msra.mxu0 %v5330_v42  ;;  %13003 = vmatpush3.bf16.msra.mxu1 %v5330_v42 }
 0x51b   : > { %12964 = vmatprep.subr.bf16.mxu0 %v5337_v44  ;;  %13004 = vmatprep.subr.bf16.mxu1 %v5337_v44  ;;  %v16435_v58 = vpop.permute.xlu1 %5872 }
 0x51c   : > { %5427 = vmatprep.mubr.bf16.mxu0 %v13498_v47  ;;  %5541 = vmatprep.mubr.bf16.mxu1 %v13500_v32 }
 0x51e   : > { %12965 = vmatpush3.bf16.msra.mxu0 %v5329_v30  ;;  %13005 = vmatpush3.bf16.msra.mxu1 %v5329_v30 }
 0x51f   : > { %12966 = vmatprep.subr.bf16.mxu0 %v16214_v10  ;;  %13006 = vmatprep.subr.bf16.mxu1 %v16214_v10  ;;  %v13508_v10 = vld [vmem:[%s19885_s15 + $0x20] ss:$8 sps:$4 sm:$0xff]  }
 0x521   : > { %5428 = vmatmul.mubr.bf16.gmra.mxu0 %v13502_v1  ;;  %5542 = vmatmul.mubr.bf16.gmra.mxu1 %v13503_v19 }
 0x522   : > { %12967 = vmatpush3.bf16.msra.mxu0 %v16226_v36  ;;  %13007 = vmatpush3.bf16.msra.mxu1 %v16226_v36  ;;  %v13534_v36 = vld [vmem:[%s19885_s15 + $0xb4] ss:$8 sps:$4 sm:$0xff]  }
 0x523   : > { %12968 = vmatprep.subr.bf16.mxu0 %v16218_v5  ;;  %13008 = vmatprep.subr.bf16.mxu1 %v16218_v5  ;;  %v13510_v5 = vld [vmem:[%s19885_s15 + $0x34] ss:$8 sps:$4 sm:$0xff]  }
 0x524   : > { %5435 = vmatprep.mubr.bf16.mxu0 %v13504_v38  ;;  %5549 = vmatprep.mubr.bf16.mxu1 %v13506_v28 }
 0x526   : > { %12969 = vmatpush3.bf16.msra.mxu0 %v16229_v0  ;;  %13009 = vmatpush3.bf16.msra.mxu1 %v16229_v0  ;;  %v13538_v0 = vld [vmem:[%s19885_s15 + $0xb0] ss:$8 sps:$4 sm:$0xff]  }
 0x527   : > { %12970 = vmatprep.subr.bf16.mxu0 %v16184_v35  ;;  %13010 = vmatprep.subr.bf16.mxu1 %v16184_v35  ;;  %v13514_v35 = vld [vmem:[%s19885_s15 + $0x30] ss:$8 sps:$4 sm:$0xff]  }
 0x529   : > { %5436 = vmatmul.mubr.bf16.gmra.mxu0 %v13508_v10  ;;  %5550 = vmatmul.mubr.bf16.gmra.mxu1 %v13509_v41  ;;  %v16445_v41 = vpop.permute.xlu1 %5884 }
 0x52a   : > { %12971 = vmatpush3.bf16.msra.mxu0 %v16196_v20  ;;  %13011 = vmatpush3.bf16.msra.mxu1 %v16196_v20  ;;  %v13521_v20 = vld [vmem:[%s19885_s15 + $0xc4] ss:$8 sps:$4 sm:$0xff]  }
 0x52b   : > { %12972 = vmatprep.subr.bf16.mxu0 %v16188_v40  ;;  %13012 = vmatprep.subr.bf16.mxu1 %v16188_v40  ;;  %v13518_v40 = vld [vmem:[%s19885_s15 + $0x84] ss:$8 sps:$4 sm:$0xff]  }
 0x52c   : > { %5443 = vmatprep.mubr.bf16.mxu0 %v13510_v5  ;;  %5557 = vmatprep.mubr.bf16.mxu1 %v13512_v63 }
 0x52e   : > { %12973 = vmatpush3.bf16.msra.mxu0 %v16199_v33  ;;  %13013 = vmatpush3.bf16.msra.mxu1 %v16199_v33  ;;  %v13519_v33 = vld [vmem:[%s19885_s15 + $0xc0] ss:$8 sps:$4 sm:$0xff]  }
 0x52f   : > { %12974 = vmatprep.subr.bf16.mxu0 %v16160_v45  ;;  %13014 = vmatprep.subr.bf16.mxu1 %v16160_v45  ;;  %v13516_v45 = vld [vmem:[%s19885_s15 + $0x80] ss:$8 sps:$4 sm:$0xff]  }
 0x531   : > { %5444 = vmatmul.mubr.bf16.gmra.mxu0 %v13514_v35  ;;  %5558 = vmatmul.mubr.bf16.gmra.mxu1 %v13515_v31 }
 0x532   : > { %12975 = vmatpush3.bf16.msra.mxu0 %v16172_v4  ;;  %13015 = vmatpush3.bf16.msra.mxu1 %v16172_v4  ;;  %v13522_v4 = vld [vmem:[%s19885_s15 + $0x94] ss:$8 sps:$4 sm:$0xff]  }
 0x533   : > { %12976 = vmatprep.subr.bf16.mxu0 %v16164_v54  ;;  %13016 = vmatprep.subr.bf16.mxu1 %v16164_v54  ;;  %v13524_v54 = vld [vmem:[%s19885_s15 + $0xd4] ss:$8 sps:$4 sm:$0xff]  }
 0x534   : > { %5655 = vmatprep.mubr.bf16.mxu0 %v13518_v40  ;;  %5769 = vmatprep.mubr.bf16.mxu1 %v13521_v20 }
 0x536   : > { %12977 = vmatpush3.bf16.msra.mxu0 %v16175_v49  ;;  %13017 = vmatpush3.bf16.msra.mxu1 %v16175_v49  ;;  %v13527_v49 = vld [vmem:[%s19885_s15 + $0xd0] ss:$8 sps:$4 sm:$0xff]  }
 0x537   : > { %7069 = vmatprep.subr.bf16.mxu1 %v19869_v55 }
 0x539   : > { %5656 = vmatmul.mubr.bf16.vlgmr.msra.gmra.mxu0 %v13516_v45  ;;  %5770 = vmatmul.mubr.bf16.vlgmr.msra.gmra.mxu1 %v13519_v33 }
 0x53a   : > { %5663 = vmatprep.mubr.bf16.mxu0 %v13522_v4  ;;  %5777 = vmatprep.mubr.bf16.mxu1 %v13524_v54 }
 0x541   : > { %5664 = vmatmul.mubr.bf16.gmra.mxu0 %v13526_v62  ;;  %5778 = vmatmul.mubr.bf16.gmra.mxu1 %v13527_v49 }
 0x542   : > { %5671 = vmatprep.mubr.bf16.mxu0 %v13528_v56  ;;  %5785 = vmatprep.mubr.bf16.mxu1 %v13530_v52 }
 0x549   : > { %5672 = vmatmul.mubr.bf16.gmra.mxu0 %v13532_v39  ;;  %5786 = vmatmul.mubr.bf16.gmra.mxu1 %v13533_v26  ;;  %v16447_v26 = vpop.permute.xlu1 %6050 }
 0x54a   : > { %5679 = vmatprep.mubr.bf16.mxu0 %v13534_v36  ;;  %5793 = vmatprep.mubr.bf16.mxu1 %v13536_v9 }
 0x551   : > { %5680 = vmatmul.mubr.bf16.gmra.mxu0 %v13538_v0  ;;  %5794 = vmatmul.mubr.bf16.gmra.mxu1 %v13539_v3  ;;  %v5996_v0 = vpop.permute.xlu0 %5995 }
 0x5d9   : > { %v12898_v8 = vpop.f32.mrf.mxu0  ;;  %v12938_v11 = vpop.f32.mrf.mxu1 }
 0x5db   : > { %v12899_v34 = vpop.f32.mrf.mxu0  ;;  %v12939_v6 = vpop.f32.mrf.mxu1 }
 0x5dc   : > { %v12900_v28 = vadd.f32 %v12899_v34, %v12898_v8  ;;  %v12940_v10 = vadd.f32 %v12939_v6, %v12938_v11 }
 0x5dd   : > { %v12901_v7 = vpop.f32.mrf.mxu0  ;;  %v12941_v59 = vpop.f32.mrf.mxu1 }
 0x5de   : > { %v5566_v45 = vmax.f32 %v12900_v28, %v12940_v10 }
 0x5df   : > { %v12902_v27 = vpop.f32.mrf.mxu0  ;;  %v12942_v37 = vpop.f32.mrf.mxu1 }
 0x5e0   : > { %v12903_v33 = vadd.f32 %v12902_v27, %v12901_v7  ;;  %v12943_v4 = vadd.f32 %v12942_v37, %v12941_v59 }
 0x5e1   : > { %v12904_v57 = vpop.f32.mrf.mxu0  ;;  %v12944_v18 = vpop.f32.mrf.mxu1 }
 0x5e2   : > { %v5567_v3 = vmax.f32 %v12903_v33, %v12943_v4 }
 0x5e3   : > { %v12905_v15 = vpop.f32.mrf.mxu0  ;;  %v12945_v50 = vpop.f32.mrf.mxu1 }
 0x5e4   : > { %v12906_v8 = vadd.f32 %v12905_v15, %v12904_v57  ;;  %v12946_v11 = vadd.f32 %v12945_v50, %v12944_v18  ;;  %v16453_v15 = vld [vmem:[#allocation3 + $0x8] sm:$0xff]  ;;  %v16455_v50 = vpop.permute.xlu0 %6028 }
 0x5e5   : > { %v12907_v51 = vpop.f32.mrf.mxu0  ;;  %v12947_v29 = vpop.f32.mrf.mxu1 }
 0x5e7   : > { %v12908_v17 = vpop.f32.mrf.mxu0  ;;  %v12948_v2 = vpop.f32.mrf.mxu1 }
 0x5e9   : > { %v16407_v13 = vpop.f32.mrf.mxu0  ;;  %v16409_v48 = vpop.f32.mrf.mxu1 }
 0x5eb   : > { %v16413_v60 = vpop.f32.mrf.mxu0  ;;  %v16415_v14 = vpop.f32.mrf.mxu1 }
 0x5ec   : > { %v12912_v4 = vadd.f32 %v16413_v60, %v16407_v13 }
 0x5ed   : > { %v16417_v53 = vpop.f32.mrf.mxu0  ;;  %v16419_v46 = vpop.f32.mrf.mxu1 }
 0x5ef   : > { %v16421_v24 = vpop.f32.mrf.mxu0  ;;  %v16423_v21 = vpop.f32.mrf.mxu1 }
 0x5f0   : > { %v12955_v13 = vadd.f32 %v16423_v21, %v16419_v46 }
 0x5f1   : > { %v16427_v23 = vpop.f32.mrf.mxu0  ;;  %v16429_v42 = vpop.f32.mrf.mxu1 }
 0x5f3   : > { %v16431_v44 = vpop.f32.mrf.mxu0  ;;  %v16433_v30 = vpop.f32.mrf.mxu1 }
 0x5f5   : > { %v16437_v61 = vpop.f32.mrf.mxu0  ;;  %v16439_v47 = vpop.f32.mrf.mxu1 }
 0x5f7   : > { %v16441_v32 = vpop.f32.mrf.mxu0  ;;  %v16443_v1 = vpop.f32.mrf.mxu1 }
 0x5f9   : > { %v12978_v19 = vpop.f32.mrf.mxu0  ;;  %v13018_v38 = vpop.f32.mrf.mxu1 }
 0x5fb   : > { %v12979_v5 = vpop.f32.mrf.mxu0  ;;  %v13019_v63 = vpop.f32.mrf.mxu1 }
 0x5fc   : > { %v12980_v35 = vadd.f32 %v12979_v5, %v12978_v19  ;;  %v13020_v31 = vadd.f32 %v13019_v63, %v13018_v38  ;;  %v12909_v19 = vadd.f32 %v12908_v17, %v12907_v51  ;;  %v12949_v38 = vadd.f32 %v12948_v2, %v12947_v29 }
 0x5fd   : > { %v12981_v40 = vpop.f32.mrf.mxu0  ;;  %v13021_v20 = vpop.f32.mrf.mxu1  ;;  %v5568_v5 = vmax.f32 %v12906_v8, %v12946_v11  ;;  %v6015_v51 = vrot.slane %v16405_v22, %v14071_v12  ;;  %v6004_v29 = vrot.slane %v5996_v0, %v14071_v12  ;;  %v12915_v22 = vadd.f32 %v16421_v24, %v16417_v53 }
 0x5fe   : > { %v5802_v54 = vmax.f32 %v12980_v35, %v13020_v31  ;;  %v16451_v35 = vpop.permute.xlu1 %5908  ;;  %v5569_v17 = vmax.f32 %v12909_v19, %v12949_v38 }
 0x5ff   : > { %v12982_v62 = vpop.f32.mrf.mxu0  ;;  %v13022_v49 = vpop.f32.mrf.mxu1  ;;  %v16477_v53 = vcombine.low %v6004_v29, %v6015_v51 }
 0x600   : > { %v5810_v56 = vmax.f32 %v5566_v45, %v5802_v54  ;;  %v12983_v52 = vadd.f32 %v12982_v62, %v12981_v40  ;;  %v13023_v39 = vadd.f32 %v13022_v49, %v13021_v20  ;;  %v12952_v54 = vadd.f32 %v16415_v14, %v16409_v48  ;;  %v5849_v48 = vpop.permute.xlu0 %5848 }
 0x601   : > { %v12984_v36 = vpop.f32.mrf.mxu0  ;;  %v13024_v9 = vpop.f32.mrf.mxu1 }
 0x602   : > { %5818 = vst.msk [vmem:[#allocation3 + $0x10] sm:$0xff] %vm2443_vm4, %v5810_v56  ;;  %v5803_v34 = vmax.f32 %v12983_v52, %v13023_v39  ;;  %v5881_v56 = vrot.slane %v16435_v58, %v14071_v12  ;;  %v5893_v52 = vrot.slane %v16445_v41, %v14071_v12  ;;  %v16475_v0 = vpop.permute.xlu1 %6061  ;;  %v5570_v11 = vmax.f32 %v12912_v4, %v12952_v54 }
 0x603   : > { %v12985_v6 = vpop.f32.mrf.mxu0  ;;  %v13025_v7 = vpop.f32.mrf.mxu1  ;;  %v5917_v54 = vrot.slane %v16451_v35, %v14071_v12  ;;  %v12961_v35 = vadd.f32 %v16443_v1, %v16439_v47 }
 0x604   : > { %v5811_v59 = vmax.f32 %v5567_v3, %v5803_v34  ;;  %v12986_v27 = vadd.f32 %v12985_v6, %v12984_v36  ;;  %v13026_v37 = vadd.f32 %v13025_v7, %v13024_v9  ;;  %v5869_v7 = vrot.slane %v16411_v16, %v14071_v12  ;;  %v5897_v16 = vpop.permute.xlu0 %5896 }
 0x605   : > { %v12987_v28 = vpop.f32.mrf.mxu0  ;;  %v13027_v10 = vpop.f32.mrf.mxu1 }
 0x606   : > { %5819 = vst.msk [vmem:[#allocation3 + $0x18] sm:$0xff] %vm2443_vm4, %v5811_v59  ;;  %v5804_v63 = vmax.f32 %v12986_v27, %v13026_v37  ;;  %v6037_v59 = vrot.slane %v16455_v50, %v14071_v12  ;;  %v5857_v27 = vrot.slane %v5849_v48, %v14071_v12  ;;  %v16488_v37 = vcombine.low %v5881_v56, %v5893_v52  ;;  %v13541_v56 = vld [vmem:[%s19887_s5 + $0x18] sm:$0xff]  }
 0x607   : > { %v12988_v57 = vpop.f32.mrf.mxu0  ;;  %v13028_v18 = vpop.f32.mrf.mxu1  ;;  %v12918_v50 = vadd.f32 %v16431_v44, %v16427_v23 }
 0x608   : > { %v5812_v31 = vmax.f32 %v5568_v5, %v5804_v63  ;;  %v12989_v40 = vadd.f32 %v12988_v57, %v12987_v28  ;;  %v13029_v20 = vadd.f32 %v13028_v18, %v13027_v10  ;;  %v13540_v28 = vld [vmem:[%s19887_s5 + $0x20] ss:$0 sps:$4 sm:$0xff]   ;;  %v5571_v10 = vmax.f32 %v12915_v22, %v12955_v13  ;;  %v16507_v44 = vpop.permute.xlu1 %5920 }
 0x609   : > { %v12990_v2 = vpop.f32.mrf.mxu0  ;;  %v13030_v45 = vpop.f32.mrf.mxu1  ;;  %v5971_v33 = vld [vmem:[#allocation3 + $0x10] sm:$0xff]  ;;  %13307 = vmatprep.subr.msk.bf16.mxu0 %vm2797_vm3, %v13540_v28  ;;  %v16514_v4 = vcombine.low %v5857_v27, %v5869_v7  ;;  %v5905_v22 = vrot.slane %v5897_v16, %v14071_v12  ;;  %v12921_v13 = vadd.f32 %v16441_v32, %v16437_v61  ;;  %v13543_v16 = vld [vmem:[%s19887_s5 + $0x8] sm:$0xff]  }
 0x60a   : > { %5820 = vst.msk [vmem:[#allocation3 + $0x20] sm:$0xff] %vm2443_vm4, %v5812_v31  ;;  %v5805_v62 = vmax.f32 %v12989_v40, %v13029_v20  ;;  %v5978_v49 = vpack.c.bf16 %v5971_v33, %v16453_v15  ;;  %v5982_v8 = vld [vmem:[#allocation3 + $0x9] sm:$0xff]  ;;  %v12958_v31 = vadd.f32 %v16433_v30, %v16429_v42  ;;  %v6026_v30 = vrot.slane %v16425_v25, %v14071_v12 }
 0x60b   : > { %v12991_v39 = vpop.f32.mrf.mxu0  ;;  %v13031_v36 = vpop.f32.mrf.mxu1  ;;  %v16494_v18 = vld [vmem:[#allocation3 + $0xf] sm:$0xff]  ;;  %v5573_v27 = vmax.f32 %v12921_v13, %v12961_v35 }
 0x60c   : > { %v5813_v60 = vmax.f32 %v5569_v17, %v5805_v62  ;;  %v12992_v14 = vadd.f32 %v12991_v39, %v12990_v2  ;;  %v13032_v9 = vadd.f32 %v13031_v36, %v13030_v45  ;;  %6181 = vrot.lane.b32.xlu0 %v5978_v49, %s19886_s23  ;;  %v6393_v2 = vsel %vm2797_vm3, %v13540_v28, 0 }
 0x60d   : > { %v12993_v24 = vpop.f32.mrf.mxu0  ;;  %v13033_v58 = vpop.f32.mrf.mxu1  ;;  %v6127_v3 = vld [vmem:[#allocation3 + $0x18] sm:$0xff]  ;;  %13195 = vmatpush3.bf16.msra.mxu0 %v6393_v2  ;;  %v5572_v25 = vmax.f32 %v12918_v50, %v12958_v31  ;;  %v16532_v61 = vcombine.low %v6026_v30, %v6037_v59  ;;  %v13544_v2 = vld [vmem:[%s19887_s5] sm:$0xff]  }
 0x60e   : > { %v16479_v41 = vld [vmem:[#allocation3 + $0x11] sm:$0xff]  ;;  %5821 = vst.msk [vmem:[#allocation3 + $0x28] sm:$0xff] %vm2443_vm4, %v5813_v60  ;;  %v5806_v46 = vmax.f32 %v12992_v14, %v13032_v9  ;;  %v6134_v21 = vpack.c.bf16 %v6127_v3, %v5971_v33  ;;  %13196 = vmatprep.subr.bf16.mxu0 %v13541_v56 }
 0x60f   : > { %v5990_v34 = vpack.c.bf16 %v16479_v41, %v5982_v8  ;;  %v6111_v6 = vld [vmem:[#allocation3 + $0x17] sm:$0xff]  ;;  %v12994_v19 = vpop.f32.mrf.mxu0  ;;  %v13034_v38 = vpop.f32.mrf.mxu1 }
 0x610   : > { %v5814_v5 = vmax.f32 %v5570_v11, %v5806_v46  ;;  %v12995_v63 = vadd.f32 %v12994_v19, %v12993_v24  ;;  %v13035_v57 = vadd.f32 %v13034_v38, %v13033_v58  ;;  %6217 = vrot.lane.b32.xlu0 %v6134_v21, %s19888_s3  ;;  %v6118_v29 = vpack.c.bf16 %v6111_v6, %v16494_v18  ;;  %v13542_v21 = vld [vmem:[%s19887_s5 + $0x10] sm:$0xff]   ;;  %v5933_v38 = vpop.permute.xlu1 %5932 }
 0x611   : > { %v12996_v40 = vpop.f32.mrf.mxu0  ;;  %v13036_v20 = vpop.f32.mrf.mxu1  ;;  %v5973_v51 = vld [vmem:[#allocation3 + $0x20] sm:$0xff]  ;;  %v6106_v23 = vmul.bf16 %v16477_v53, %v5990_v34  ;;  %13197 = vmatpush3.bf16.msra.mxu0 %v13541_v56  ;;  %v16539_v19 = vcombine.low %v5905_v22, %v5917_v54  ;;  %v5941_v31 = vrot.slane %v5933_v38, %v14071_v12 }
 0x612   : > { %v16501_v17 = vld [vmem:[#allocation3 + $0x1f] sm:$0xff]  ;;  %5822 = vst.msk [vmem:[#allocation3 + $0x30] sm:$0xff] %vm2443_vm4, %v5814_v5  ;;  %v5807_v45 = vmax.f32 %v12995_v63, %v13035_v57  ;;  %v5979_v33 = vpack.c.bf16 %v5973_v51, %v6127_v3  ;;  %v6122_v11 = vmul.bf16 %v16514_v4, %v6118_v29  ;;  %13198 = vmatprep.subr.bf16.mxu0 %v13542_v21 }
 0x613   : > { %v16510_v42 = vpack.c.bf16 %v16501_v17, %v6111_v6  ;;  %v12997_v62 = vpop.f32.mrf.mxu0  ;;  %v13037_v49 = vpop.f32.mrf.mxu1  ;;  %v5984_v9 = vld [vmem:[#allocation3 + $0x19] sm:$0xff] }
 0x614   : > { %v5815_v52 = vmax.f32 %v5571_v10, %v5807_v45  ;;  %v12998_v39 = vadd.f32 %v12997_v62, %v12996_v40  ;;  %v13038_v36 = vadd.f32 %v13037_v49, %v13036_v20  ;;  %6183 = vrot.lane.b32.xlu1 %v5979_v33, %s19886_s23  ;;  %6193 = vrot.lane.b32.xlu0 %v6106_v23, %s19889_s25 }
 0x615   : > { %v12999_v48 = vpop.f32.mrf.mxu0  ;;  %v13039_v60 = vpop.f32.mrf.mxu1  ;;  %v6129_v14 = vld [vmem:[#allocation3 + $0x28] sm:$0xff]  ;;  %v5967_v58 = vmul.bf16 %v16488_v37, %v16510_v42  ;;  %v6146_v59 = vpack.c.bf16 %v5984_v9, %v16479_v41  ;;  %13199 = vmatpush3.bf16.msra.mxu0 %v13542_v21  ;;  %v5929_v41 = vrot.slane %v16507_v44, %v14071_v12  ;;  %v6159_v30 = vmul.bf16 %v16514_v4, %v16510_v42 }
 0x616   : > { %v5985_v24 = vld [vmem:[#allocation3 + $0x21] sm:$0xff]  ;;  %5823 = vst.msk [vmem:[#allocation3 + $0x38] sm:$0xff] %vm2443_vm4, %v5815_v52  ;;  %v5808_v3 = vmax.f32 %v12998_v39, %v13038_v36  ;;  %v6135_v8 = vpack.c.bf16 %v6129_v14, %v5973_v51  ;;  %13200 = vmatprep.subr.bf16.mxu0 %v13543_v16  ;;  %v6040_v52 = vpop.permute.xlu0 %6039  ;;  %v6059_v36 = vrot.slane %v16447_v26, %v14071_v12 }
 0x617   : > { %v5991_v46 = vpack.c.bf16 %v5985_v24, %v5984_v9  ;;  %v13000_v47 = vpop.f32.mrf.mxu0  ;;  %v13040_v32 = vpop.f32.mrf.mxu1  ;;  %v6113_v1 = vld [vmem:[#allocation3 + $0x27] sm:$0xff]  ;;  %v6150_v51 = vmul.bf16 %v16477_v53, %v6146_v59  ;;  %v16566_v45 = vcombine.low %v5929_v41, %v5941_v31 }
 0x618   : > { %v5816_v34 = vmax.f32 %v5572_v25, %v5808_v3  ;;  %v13001_v6 = vadd.f32 %v13000_v47, %v12999_v48  ;;  %v13041_v7 = vadd.f32 %v13040_v32, %v13039_v60  ;;  %6219 = vrot.lane.b32.xlu1 %v6135_v8, %s19888_s3  ;;  %6205 = vrot.lane.b32.xlu0 %v6122_v11, %s19890_s14 }
 0x619   : > { %v16542_v28 = vld [vmem:[#allocation3 + $0x2f] sm:$0xff]  ;;  %v6107_v5 = vmul.bf16 %v16532_v61, %v5991_v46  ;;  %v6119_v63 = vpack.c.bf16 %v6113_v1, %v16501_v17  ;;  %13201 = vmatpush3.bf16.msra.mxu0 %v13543_v16  ;;  %v6173_v56 = vmul.bf16 %v16477_v53, %v5991_v46  ;;  %v6048_v25 = vrot.slane %v6040_v52, %v14071_v12  ;;  %v6481_v52 = vld [vmem:[%s19702_s18 + $0x14] sm:$0xf] }
 0x61a   : > { %5824 = vst.msk [vmem:[#allocation3 + $0x40] sm:$0xff] %vm2443_vm4, %v5816_v34  ;;  %v5809_v10 = vmax.f32 %v13001_v6, %v13041_v7  ;;  %v16548_v57 = vpack.c.bf16 %v16542_v28, %v6113_v1  ;;  %v6130_v29 = vld [vmem:[#allocation3 + $0x30] sm:$0xff]  ;;  %13202 = vmatprep.subr.bf16.mxu0 %v13544_v2  ;;  %v6073_v8 = vpop.permute.xlu0 %6072  ;;  %v6070_v46 = vrot.slane %v16475_v0, %v14071_v12 }
 0x61b   : > { %v6123_v20 = vmul.bf16 %v16488_v37, %v6119_v63  ;;  %v6141_v17 = vld [vmem:[#allocation3 + $0x29] sm:$0xff]  ;;  %v6165_v44 = vpack.c.bf16 %v6130_v29, %v6129_v14  ;;  %v12653_v53 = vcombine.low %v6048_v25, %v6059_v36 }
 0x61c   : > { %v5817_v50 = vmax.f32 %v5573_v27, %v5809_v10  ;;  %6195 = vrot.lane.b32.xlu1 %v6107_v5, %s19889_s25  ;;  %6253 = vrot.lane.b32.xlu0 %v5979_v33, %s19841_s2  ;;  %v5968_v40 = vmul.bf16 %v16539_v19, %v16548_v57  ;;  %v6147_v54 = vpack.c.bf16 %v6141_v17, %v5985_v24  ;;  %v16599_v1 = vld [vmem:[#allocation3 + $0x50] sm:$0xff] }
 0x61d   : > { %v6115_v33 = vld [vmem:[#allocation3 + $0x37] sm:$0xff]  ;;  %13203 = vmatpush3.bf16.msra.mxu0 %v13544_v2  ;;  %v6160_v13 = vmul.bf16 %v16488_v37, %v16548_v57 }
 0x61e   : > { %5825 = vst.msk [vmem:[#allocation3 + $0x48] sm:$0xff] %vm2443_vm4, %v5817_v50  ;;  %v6151_v22 = vmul.bf16 %v16532_v61, %v6147_v54  ;;  %v6142_v39 = vld [vmem:[#allocation3 + $0x31] sm:$0xff]  ;;  %v6120_v3 = vpack.c.bf16 %v6115_v33, %v16542_v28  ;;  %v6480_v54 = vld [vmem:[%s19702_s18 + $0x10] sm:$0xf] }
 0x61f   : > { %v6170_v35 = vpack.c.bf16 %v6142_v39, %v6141_v17  ;;  %v6131_v48 = vld [vmem:[#allocation3 + $0x38] sm:$0xff]  ;;  %v6476_v17 = vld [vmem:[%s19702_s18] sm:$0xf] }
 0x620   : > { %6207 = vrot.lane.b32.xlu1 %v6123_v20, %s19890_s14  ;;  %6229 = vrot.lane.b32.xlu0 %v6150_v51, %s19891_s1  ;;  %v6136_v14 = vpack.c.bf16 %v6131_v48, %v6130_v29  ;;  %v6124_v32 = vmul.bf16 %v16539_v19, %v6120_v3  ;;  %v6168_v29 = vld [vmem:[#allocation3 + $0x51] sm:$0xff] }
 0x621   : > { %v6116_v23 = vld [vmem:[#allocation3 + $0x3f] sm:$0xff]  ;;  %v6174_v60 = vmul.bf16 %v16532_v61, %v6170_v35  ;;  %v6108_v24 = vmul.bf16 %v12653_v53, %v6170_v35  ;;  %v6081_v61 = vrot.slane %v6073_v8, %v14071_v12 }
 0x622   : > { %v16572_v62 = vpack.c.bf16 %v6116_v23, %v6115_v33  ;;  %v5977_v9 = vld [vmem:[#allocation3 + $0x40] sm:$0xff] }
 0x623   : > { %v5981_v26 = vpack.c.bf16 %v5977_v9, %v6131_v48  ;;  %v5988_v21 = vld [vmem:[#allocation3 + $0x39] sm:$0xff]  ;;  %v12654_v6 = vcombine.low %v6070_v46, %v6081_v61  ;;  %v16653_v48 = vld [vmem:[#allocation3 + $0x7] sm:$0xff] }
 0x624   : > { %6255 = vrot.lane.b32.xlu1 %v6165_v44, %s19841_s2  ;;  %6241 = vrot.lane.b32.xlu0 %v6159_v30, %s19892_s4  ;;  %v5969_v49 = vmul.bf16 %v16566_v45, %v16572_v62  ;;  %v6148_v38 = vpack.c.bf16 %v5988_v21, %v6142_v39  ;;  %v6161_v16 = vmul.bf16 %v16539_v19, %v16572_v62  ;;  %v6479_v30 = vld [vmem:[%s19702_s18 + $0xc] sm:$0xf]  ;;  %v6482_v39 = vld [vmem:[%s19702_s18 + $0x18] sm:$0xf] }
 0x625   : > { %v6133_v11 = vld [vmem:[#allocation3 + $0x48] sm:$0xff] }
 0x626   : > { %v6137_v47 = vpack.c.bf16 %v6133_v11, %v5977_v9  ;;  %v5989_v34 = vld [vmem:[#allocation3 + $0x41] sm:$0xff]  ;;  %v6167_v7 = vpack.c.bf16 %v16599_v1, %v6133_v11  ;;  %v6152_v28 = vmul.bf16 %v12653_v53, %v6148_v38  ;;  %v6145_v5 = vld [vmem:[#allocation3 + $0x49] sm:$0xff] }
 0x627   : > { %v5993_v27 = vpack.c.bf16 %v5989_v34, %v5988_v21  ;;  %v6117_v59 = vld [vmem:[#allocation3 + $0x47] sm:$0xff]  ;;  %v6149_v50 = vpack.c.bf16 %v6145_v5, %v5989_v34  ;;  %v6154_v41 = vld [vmem:[#allocation3 + $0x4f] sm:$0xff]  ;;  %v6172_v33 = vpack.c.bf16 %v6168_v29, %v6145_v5 }
 0x628   : > { %6231 = vrot.lane.b32.xlu1 %v6151_v22, %s19891_s1  ;;  %6265 = vrot.lane.b32.xlu0 %v6173_v56, %s19842_s22  ;;  %v6121_v10 = vpack.c.bf16 %v6117_v59, %v6116_v23  ;;  %v6158_v51 = vpack.c.bf16 %v6154_v41, %v6117_v59  ;;  %v6478_v22 = vld [vmem:[%s19702_s18 + $0x8] sm:$0xf]  ;;  %v6483_v56 = vld [vmem:[%s19702_s18 + $0x1c] sm:$0xf] }
 0x629   : > { %v6109_v0 = vmul.bf16 %v12654_v6, %v5993_v27  ;;  %v6153_v31 = vmul.bf16 %v12654_v6, %v6149_v50  ;;  %v6175_v20 = vmul.bf16 %v12653_v53, %v5993_v27  ;;  %v6176_v23 = vmul.bf16 %v12654_v6, %v6172_v33 }
 0x62a   : > { %v6125_v63 = vmul.bf16 %v16566_v45, %v6121_v10  ;;  %v6162_v2 = vmul.bf16 %v16566_v45, %v6158_v51  ;;  %v5842_v53 = vpack.c.bf16 %v16494_v18, %v16653_v48 }
 0x62c   : > { %6243 = vrot.lane.b32.xlu1 %v6160_v13, %s19892_s4  ;;  %6185 = vrot.lane.b32.xlu0 %v6165_v44, %s19886_s23  ;;  %v6477_v44 = vld [vmem:[%s19702_s18 + $0x4] sm:$0xf]  ;;  %v5966_v9 = vmul.bf16 %v16514_v4, %v5842_v53 }
 0x630   : > { %6267 = vrot.lane.b32.xlu1 %v6174_v60, %s19842_s22  ;;  %6221 = vrot.lane.b32.xlu0 %v6136_v14, %s19888_s3 }
 0x634   : > { %6187 = vrot.lane.b32.xlu1 %v5981_v26, %s19886_s23  ;;  %6197 = vrot.lane.b32.xlu0 %v6108_v24, %s19889_s25 }
 0x638   : > { %6223 = vrot.lane.b32.xlu1 %v6137_v47, %s19888_s3  ;;  %6209 = vrot.lane.b32.xlu0 %v6124_v32, %s19890_s14 }
 0x63c   : > { %6259 = vrot.lane.b32.xlu1 %v6167_v7, %s19841_s2  ;;  %6257 = vrot.lane.b32.xlu0 %v5981_v26, %s19841_s2 }
 0x640   : > { %6199 = vrot.lane.b32.xlu1 %v6109_v0, %s19889_s25  ;;  %6233 = vrot.lane.b32.xlu0 %v6152_v28, %s19891_s1 }
 0x644   : > { %6211 = vrot.lane.b32.xlu1 %v6125_v63, %s19890_s14  ;;  %6245 = vrot.lane.b32.xlu0 %v6161_v16, %s19892_s4 }
 0x648   : > { %6235 = vrot.lane.b32.xlu1 %v6153_v31, %s19891_s1  ;;  %6269 = vrot.lane.b32.xlu0 %v6175_v20, %s19842_s22 }
 0x64c   : > { %6247 = vrot.lane.b32.xlu1 %v6162_v2, %s19892_s4  ;;  %6498 = vperm.xlu0 %13412, %v6476_v17  }
 0x650   : > { %6271 = vrot.lane.b32.xlu1 %v6176_v23, %s19842_s22  ;;  %13413 = vset.pattern.permute.xlu0 %v19870_v43 }
 0x651   : > { %6645 = vperm.xlu0 %13413, %v6476_v17  }
 0x654   : > { %6656 = vperm.xlu1 %13411, %v6477_v44  }
 0x655   : > { %6678 = vperm.xlu0 %13413, %v6479_v30  }
 0x658   : > { %13414 = vset.pattern.permute.xlu1 %v19869_v55 }
 0x659   : > { %6510 = vperm.xlu1 %13414, %v6477_v44   ;;  %6689 = vperm.xlu0 %13413, %v6480_v54  }
 0x65d   : > { %13415 = vset.pattern.permute.xlu1 %v19870_v43  ;;  %13418 = vset.pattern.permute.xlu0 %v19869_v55 }
 0x65e   : > { %6667 = vperm.xlu1 %13415, %v6478_v22   ;;  %6546 = vperm.xlu0 %13418, %v6480_v54  }
 0x662   : > { %13416 = vset.pattern.permute.xlu1 %v19869_v55  ;;  %13421 = vset.pattern.permute.xlu0 %v19870_v43 }
 0x663   : > { %6522 = vperm.xlu1 %13416, %v6478_v22   ;;  %6722 = vperm.xlu0 %13421, %v6483_v56  }
 0x667   : > { %6534 = vperm.xlu1 %13416, %v6479_v30   ;;  %13423 = vset.pattern.permute.xlu0 %v19869_v55 }
 0x66b   : > { %13417 = vset.pattern.permute.xlu1 %v19870_v43 }
 0x66c   : > { %6700 = vperm.xlu1 %13417, %v6481_v52  }
 0x670   : > { %13419 = vset.pattern.permute.xlu1 %v19869_v55 }
 0x671   : > { %6558 = vperm.xlu1 %13419, %v6481_v52  }
 0x675   : > { %13420 = vset.pattern.permute.xlu1 %v19870_v43 }
 0x676   : > { %6711 = vperm.xlu1 %13420, %v6482_v39  }
 0x67a   : > { %13422 = vset.pattern.permute.xlu1 %v19869_v55 }
 0x67b   : > { %6570 = vperm.xlu1 %13422, %v6482_v39  }
 0x67e   : > { %v6182_v36 = vpop.permute.xlu0 %6181 }
 0x67f   : > { %6582 = vperm.xlu1 %13422, %v6483_v56   ;;  %v6275_v3 = vsel %vm2443_vm4, %v5966_v9, %v6182_v36 }
 0x682   : > { %v6218_v25 = vpop.permute.xlu0 %6217 }
 0x686   : > { %v6184_v13 = vpop.permute.xlu1 %6183  ;;  %v6194_v35 = vpop.permute.xlu0 %6193 }
 0x687   : > { %v6286_v8 = vsel %vm643_vm2, %v6275_v3, %v6194_v35  ;;  %v6278_v4 = vsel %vm2443_vm4, %v5967_v58, %v6184_v13  ;;  %v13546_v3 = vld [vmem:[%s19893_s7 + $0x30] sm:$0xff]  }
 0x68a   : > { %v6220_v60 = vpop.permute.xlu1 %6219  ;;  %v6206_v14 = vpop.permute.xlu0 %6205 }
 0x68b   : > { %v6294_v11 = vsel %vm604_vm0, %v6286_v8, %v6206_v14 }
 0x68c   : > { %v6302_v47 = vsel %vm2556_vm5, %v6294_v11, %v6218_v25  ;;  %v13547_v11 = vld [vmem:[%s19893_s7 + $0x28] sm:$0xff]  }
 0x68e   : > { %v6196_v26 = vpop.permute.xlu1 %6195  ;;  %v6254_v24 = vpop.permute.xlu0 %6253 }
 0x68f   : > { %v6288_v6 = vsel %vm643_vm2, %v6278_v4, %v6196_v26  ;;  %v13545_v26 = vld [vmem:[%s19893_s7 + $0x38] sm:$0xff]  }
 0x690   : > { %7070 = vmatpush1.bf16.msra.mxu1 %v13545_v26 }
 0x691   : > { %7071 = vmatprep.subr.bf16.mxu1 %v19869_v55 }
 0x692   : > { %v6208_v46 = vpop.permute.xlu1 %6207  ;;  %v6230_v61 = vpop.permute.xlu0 %6229 }
 0x693   : > { %v6310_v32 = vsel %vm2589_vm6, %v6302_v47, %v6230_v61  ;;  %v6296_v7 = vsel %vm604_vm0, %v6288_v6, %v6208_v46  ;;  %v16717_v46 = vld [vmem:[%s19894_s6] ss:$0 sm:$0xff] }
 0x694   : > { %v6304_v28 = vsel %vm2556_vm5, %v6296_v7, %v6220_v60  ;;  %7072 = vmatpush1.bf16.msra.mxu1 %v13546_v3  ;;  %v13548_v61 = vld [vmem:[%s19893_s7 + $0x20] sm:$0xff]   ;;  %v13549_v7 = vld [vmem:[%s19893_s7 + $0x18] sm:$0xff]  }
 0x695   : > { %7073 = vmatprep.subr.bf16.mxu1 %v19869_v55 }
 0x696   : > { %v6256_v21 = vpop.permute.xlu1 %6255  ;;  %v6242_v18 = vpop.permute.xlu0 %6241 }
 0x697   : > { %v6318_v34 = vsel %vm2622_vm7, %v6310_v32, %v6242_v18 }
 0x698   : > { %v6326_v59 = vsel %vm2655_vm9, %v6318_v34, %v6254_v24  ;;  %7074 = vmatpush1.bf16.msra.mxu1 %v13547_v11 }
 0x699   : > { %7075 = vmatprep.subr.bf16.mxu1 %v19869_v55 }
 0x69a   : > { %v6232_v27 = vpop.permute.xlu1 %6231  ;;  %v6266_v38 = vpop.permute.xlu0 %6265 }
 0x69b   : > { %v6334_v0 = vsel %vm2688_vm8, %v6326_v59, %v6266_v38  ;;  %v6312_v10 = vsel %vm2589_vm6, %v6304_v28, %v6232_v27 }
 0x69c   : > { %13204 = vmatprep.mubr.msk.bf16.mxu0 %vm2764_vm10, %v6334_v0  ;;  %7076 = vmatpush1.bf16.msra.mxu1 %v13548_v61 }
 0x69d   : > { %7077 = vmatprep.subr.bf16.mxu1 %v19869_v55 }
 0x69e   : > { %v6244_v5 = vpop.permute.xlu1 %6243  ;;  %v6186_v37 = vpop.permute.xlu0 %6185 }
 0x69f   : > { %v6320_v42 = vsel %vm2622_vm7, %v6312_v10, %v6244_v5  ;;  %v6281_v2 = vsel %vm2443_vm4, %v5968_v40, %v6186_v37  ;;  %v13550_v37 = vld [vmem:[%s19893_s7 + $0x10] sm:$0xff]  }
 0x6a0   : > { %v6328_v63 = vsel %vm2655_vm9, %v6320_v42, %v6256_v21  ;;  %7078 = vmatpush1.bf16.msra.mxu1 %v13549_v7 }
 0x6a1   : > { %7079 = vmatprep.subr.bf16.mxu1 %v19869_v55 }
 0x6a2   : > { %v6268_v58 = vpop.permute.xlu1 %6267  ;;  %v6222_v16 = vpop.permute.xlu0 %6221 }
 0x6a3   : > { %v6336_v50 = vsel %vm2688_vm8, %v6328_v63, %v6268_v58 }
 0x6a4   : > { %13205 = vmatmul.mubr.msk.bf16.vlgmr.msra.gmra.mxu0 %vm2764_vm10, %v6336_v50  ;;  %7080 = vmatpush1.bf16.msra.mxu1 %v13550_v37 }
 0x6a5   : > { %7081 = vmatprep.subr.bf16.mxu1 %v19869_v55 }
 0x6a6   : > { %v6188_v41 = vpop.permute.xlu1 %6187  ;;  %v6198_v31 = vpop.permute.xlu0 %6197 }
 0x6a7   : > { %v6290_v33 = vsel %vm643_vm2, %v6281_v2, %v6198_v31  ;;  %v6284_v19 = vsel %vm2443_vm4, %v5969_v49, %v6188_v41  ;;  %v13551_v41 = vld [vmem:[%s19893_s7 + $0x8] sm:$0xff]  }
 0x6a8   : > { %7082 = vmatpush1.bf16.msra.mxu1 %v13551_v41 }
 0x6a9   : > { %7083 = vmatprep.subr.bf16.mxu1 %v19869_v55 }
 0x6aa   : > { %v6224_v20 = vpop.permute.xlu1 %6223  ;;  %v6210_v51 = vpop.permute.xlu0 %6209 }
 0x6ab   : > { %v6298_v23 = vsel %vm604_vm0, %v6290_v33, %v6210_v51 }
 0x6ac   : > { %v6306_v54 = vsel %vm2556_vm5, %v6298_v23, %v6222_v16 }
 0x6ae   : > { %v6260_v29 = vpop.permute.xlu1 %6259  ;;  %v6258_v17 = vpop.permute.xlu0 %6257 }
 0x6b2   : > { %v6200_v44 = vpop.permute.xlu1 %6199  ;;  %v6234_v30 = vpop.permute.xlu0 %6233 }
 0x6b3   : > { %v6314_v22 = vsel %vm2589_vm6, %v6306_v54, %v6234_v30  ;;  %v6292_v57 = vsel %vm643_vm2, %v6284_v19, %v6200_v44 }
 0x6b6   : > { %v6212_v56 = vpop.permute.xlu1 %6211  ;;  %v6246_v52 = vpop.permute.xlu0 %6245 }
 0x6b7   : > { %v6322_v39 = vsel %vm2622_vm7, %v6314_v22, %v6246_v52  ;;  %v6300_v40 = vsel %vm604_vm0, %v6292_v57, %v6212_v56  ;;  %v13552_v52 = vld [vmem:[%s19893_s7] sm:$0xff]  }
 0x6b8   : > { %v6330_v25 = vsel %vm2655_vm9, %v6322_v39, %v6258_v17  ;;  %v6308_v53 = vsel %vm2556_vm5, %v6300_v40, %v6224_v20  ;;  %7084 = vmatpush1.bf16.msra.mxu1 %v13552_v52 }
 0x6b9   : > { %7099 = vmatprep.subr.bf16.mxu1 %v19869_v55 }
 0x6ba   : > { %v6236_v36 = vpop.permute.xlu1 %6235  ;;  %v6270_v13 = vpop.permute.xlu0 %6269 }
 0x6bb   : > { %v6338_v35 = vsel %vm2688_vm8, %v6330_v25, %v6270_v13  ;;  %v6316_v60 = vsel %vm2589_vm6, %v6308_v53, %v6236_v36 }
 0x6bc   : > { %13208 = vmatprep.mubr.msk.bf16.mxu0 %vm2764_vm10, %v6338_v35 }
 0x6be   : > { %v6248_v14 = vpop.permute.xlu1 %6247 }
 0x6bf   : > { %v6324_v45 = vsel %vm2622_vm7, %v6316_v60, %v6248_v14  ;;  %v13553_v14 = vld [vmem:[%s19893_s7 + $0x40] sm:$0xff]   ;;  %s19976_s7 = smov 96  }
 0x6c0   : > { %v6332_v62 = vsel %vm2655_vm9, %v6324_v45, %v6260_v29  ;;  %7100 = vmatpush2.bf16.msra.mxu1 %v13553_v14 }
 0x6c1   : > { %9790 = vmatprep.subr.bf16.mxu1 %v19869_v55 }
 0x6c2   : > { %v6272_v49 = vpop.permute.xlu1 %6271 }
 0x6c3   : > { %v6340_v9 = vsel %vm2688_vm8, %v6332_v62, %v6272_v49 }
 0x6c4   : > { %13209 = vmatmul.mubr.msk.bf16.gmra.mxu0 %vm2764_vm10, %v6340_v9 }
 0x6c7   : > { %v6499_v59 = vpop.permute.xlu0 %6498 }
 0x6c8   : > { %v6507_v63 = vrot.slane %v6499_v59, %v14071_v12 }
 0x6cc   : > { %v6646_v16 = vpop.permute.xlu0 %6645 }
 0x6cd   : > { %v6654_v51 = vrot.slane %v6646_v16, %v14071_v12 }
 0x6cf   : > { %v6657_v24 = vpop.permute.xlu1 %6656 }
 0x6d0   : > { %v6665_v31 = vrot.slane %v6657_v24, %v14071_v12  ;;  %v6679_v3 = vpop.permute.xlu0 %6678 }
 0x6d1   : > { %v6687_v11 = vrot.slane %v6679_v3, %v14071_v12 }
 0x6d2   : > { %v12669_v54 = vcombine.low %v6654_v51, %v6665_v31 }
 0x6d4   : > { %v6511_v8 = vpop.permute.xlu1 %6510 }
 0x6d5   : > { %v6519_v42 = vrot.slane %v6511_v8, %v14071_v12 }
 0x6d7   : > { %v12665_v20 = vcombine.low %v6507_v63, %v6519_v42 }
 0x6d9   : > { %v16723_v32 = vpop.permute.xlu1 %6667 }
 0x6da   : > { %v6676_v8 = vrot.slane %v16723_v32, %v14071_v12 }
 0x6de   : > { %v6523_v28 = vpop.permute.xlu1 %6522 }
 0x6df   : > { %v6531_v2 = vrot.slane %v6523_v28, %v14071_v12 }
 0x6e2   : > { %v6535_v50 = vpop.permute.xlu1 %6534 }
 0x6e3   : > { %v6543_v33 = vrot.slane %v6535_v50, %v14071_v12 }
 0x6e7   : > { %v16776_v49 = vpop.permute.xlu1 %6700 }
 0x764   : > { %v13206_v47 = vpop.f32.mrf.mxu0 }
 0x765   : > { %v6438_v21 = vadd.f32 %v13206_v47, %v16717_v46 }
 0x766   : > { %v6429_v18 = vpop.f32.mrf.mxu0 }
 0x767   : > { %v6462_v34 = vmax.f32 %v6438_v21, 0.0  ;;  %v6430_v4 = vadd.f32 %v16717_v46, %v6429_v18  ;;  %v6559_v18 = vpop.permute.xlu1 %6558 }
 0x768   : > { %v13207_v6 = vpop.f32.mrf.mxu0 }
 0x769   : > { %6470 = vst.msk [vmem:[#allocation3 + $0x20] sm:$0xff] %vm643_vm2, %v6462_v34  ;;  %v6460_v27 = vmax.f32 %v6430_v4, 0.0  ;;  %v6441_v38 = vadd.f32 %v13207_v6, %v16717_v46  ;;  %v16789_v4 = vcombine.low %v6676_v8, %v6687_v11 }
 0x76a   : > { %v6432_v0 = vpop.f32.mrf.mxu0 }
 0x76b   : > { %6468 = vst.msk [vmem:[#allocation3 + $0x10] sm:$0xff] %vm643_vm2, %v6460_v27  ;;  %v6463_v10 = vmax.f32 %v6441_v38, 0.0  ;;  %v6433_v5 = vadd.f32 %v16717_v46, %v6432_v0  ;;  %v6712_v0 = vpop.permute.xlu1 %6711 }
 0x76d   : > { %6471 = vst.msk [vmem:[#allocation3 + $0x28] sm:$0xff] %vm643_vm2, %v6463_v10  ;;  %v6461_v58 = vmax.f32 %v6433_v5, 0.0 }
 0x76f   : > { %6469 = vst.msk [vmem:[#allocation3 + $0x18] sm:$0xff] %vm643_vm2, %v6461_v58  ;;  %v6690_v58 = vpop.permute.xlu0 %6689 }
 0x770   : > { %v6778_v22 = vld [vmem:[#allocation3 + $0x20] sm:$0xff] }
 0x772   : > { %v6621_v29 = vld [vmem:[#allocation3 + $0x10] sm:$0xff] }
 0x773   : > { %v6760_v17 = vld [vmem:[#allocation3 + $0xf] sm:$0xff]  ;;  %v6628_v23 = vpack.c.bf16 %v6621_v29, %v16453_v15  ;;  %v16764_v15 = vcombine.low %v6531_v2, %v6543_v33 }
 0x774   : > { %v6492_v44 = vpack.c.bf16 %v6760_v17, %v16653_v48  ;;  %v16754_v30 = vld [vmem:[#allocation3 + $0x28] sm:$0xff] }
 0x775   : > { %6831 = vrot.lane.b32.xlu0 %v6628_v23, %s19889_s25  ;;  %v16762_v57 = vld [vmem:[#allocation3 + $0x21] sm:$0xff]  ;;  %v6785_v40 = vpack.c.bf16 %v16754_v30, %v6778_v22  ;;  %v6632_v62 = vld [vmem:[#allocation3 + $0x9] sm:$0xff] }
 0x776   : > { %v16757_v56 = vmul.bf16 %v12665_v20, %v6492_v44  ;;  %v6777_v39 = vld [vmem:[#allocation3 + $0x18] sm:$0xff]  ;;  %v6763_v34 = vld [vmem:[#allocation3 + $0x27] sm:$0xff] }
 0x777   : > { %v6789_v19 = vld [vmem:[#allocation3 + $0x19] sm:$0xff]  ;;  %v6784_v48 = vpack.c.bf16 %v6777_v39, %v6621_v29  ;;  %v6633_v35 = vld [vmem:[#allocation3 + $0x11] sm:$0xff]  ;;  %v6629_v45 = vpack.c.bf16 %v6778_v22, %v6777_v39  ;;  %v6547_v29 = vpop.permute.xlu0 %6546 }
 0x778   : > { %v6819_v36 = vpack.c.bf16 %v16762_v57, %v6789_v19  ;;  %v6761_v25 = vld [vmem:[#allocation3 + $0x17] sm:$0xff]  ;;  %v6762_v13 = vld [vmem:[#allocation3 + $0x1f] sm:$0xff]  ;;  %v6640_v9 = vpack.c.bf16 %v6633_v35, %v6632_v62  ;;  %v6796_v21 = vpack.c.bf16 %v6789_v19, %v6633_v35  ;;  %v6555_v2 = vrot.slane %v6547_v29, %v14071_v12 }
 0x779   : > { %v16768_v53 = vpack.c.bf16 %v6762_v13, %v6761_v25  ;;  %6867 = vrot.lane.b32.xlu1 %v6784_v48, %s19842_s22  ;;  %6869 = vrot.lane.b32.xlu0 %v6785_v40, %s19842_s22  ;;  %v6768_v26 = vpack.c.bf16 %v6761_v25, %v6760_v17  ;;  %v6769_v27 = vpack.c.bf16 %v6763_v34, %v6762_v13 }
 0x77a   : > { %v6823_v60 = vmul.bf16 %v12669_v54, %v6819_v36  ;;  %v6756_v61 = vmul.bf16 %v12669_v54, %v6640_v9  ;;  %v6800_v7 = vmul.bf16 %v12669_v54, %v6796_v21  ;;  %v6757_v37 = vmul.bf16 %v16789_v4, %v6819_v36 }
 0x77b   : > { %v6617_v24 = vmul.bf16 %v16764_v15, %v16768_v53  ;;  %v6772_v47 = vmul.bf16 %v12665_v20, %v6768_v26  ;;  %v6809_v6 = vmul.bf16 %v12665_v20, %v16768_v53  ;;  %v6773_v5 = vmul.bf16 %v16764_v15, %v6769_v27  ;;  %v6571_v20 = vpop.permute.xlu1 %6570  ;;  %v6723_v52 = vpop.permute.xlu0 %6722 }
 0x77c   : > { %12683 = vmatprep.mubr.msk.bf16.mxu1 %vm643_vm2, %v6823_v60  ;;  %v6567_v17 = vrot.slane %v6559_v18, %v14071_v12  ;;  %v6709_v48 = vrot.slane %v16776_v49, %v14071_v12  ;;  %v6698_v40 = vrot.slane %v6690_v58, %v14071_v12  ;;  %v6579_v36 = vrot.slane %v6571_v20, %v14071_v12 }
 0x77d   : > { %6833 = vrot.lane.b32.xlu1 %v6629_v45, %s19889_s25  ;;  %6903 = vrot.lane.b32.xlu0 %v6629_v45, %s13618_s27  ;;  %v6720_v13 = vrot.slane %v6712_v0, %v14071_v12 }
 0x77e   : > { %v16808_v33 = vcombine.low %v6555_v2, %v6567_v17 }
 0x77f   : > { %v6583_v23 = vpop.permute.xlu1 %6582 }
 0x780   : > { %v6591_v25 = vrot.slane %v6583_v23, %v14071_v12 }
 0x781   : > { %6843 = vrot.lane.b32.xlu1 %v6756_v61, %s19888_s3  ;;  %6855 = vrot.lane.b32.xlu0 %v6772_v47, %s19892_s4  ;;  %v16834_v61 = vcombine.low %v6698_v40, %v6709_v48  ;;  %v7632_v48 = vld [vmem:[%s19701_s17 + $0x10] sm:$0xf]  ;;  %v7635_v40 = vld [vmem:[%s19701_s17 + $0x1c] sm:$0xf] }
 0x782   : > { %v16836_v47 = vcombine.low %v6579_v36, %v6591_v25  ;;  %v7634_v36 = vld [vmem:[%s19701_s17 + $0x18] sm:$0xf]  ;;  %v7636_v25 = vld [vmem:[%s19701_s17 + $0x20] sm:$0xf] }
 0x784   : > { %v13210_v38 = vpop.f32.mrf.mxu0 }
 0x785   : > { %v6454_v32 = vadd.f32 %v13210_v38, %v16717_v46  ;;  %6891 = vrot.lane.b32.xlu1 %v6809_v6, %s19765_s24  ;;  %6879 = vrot.lane.b32.xlu0 %v6800_v7, %s13620_s0 }
 0x786   : > { %v6445_v59 = vpop.f32.mrf.mxu0 }
 0x787   : > { %v6466_v28 = vmax.f32 %v6454_v32, 0.0  ;;  %v6446_v10 = vadd.f32 %v16717_v46, %v6445_v59 }
 0x788   : > { %v13211_v42 = vpop.f32.mrf.mxu0 }
 0x789   : > { %6474 = vst.msk [vmem:[#allocation3 + $0x40] sm:$0xff] %vm643_vm2, %v6466_v28  ;;  %v6464_v63 = vmax.f32 %v6446_v10, 0.0  ;;  %v6457_v16 = vadd.f32 %v13211_v42, %v16717_v46  ;;  %6857 = vrot.lane.b32.xlu1 %v6773_v5, %s19892_s4  ;;  %6845 = vrot.lane.b32.xlu0 %v6757_v37, %s19888_s3 }
 0x78a   : > { %v6448_v50 = vpop.f32.mrf.mxu0 }
 0x78b   : > { %6472 = vst.msk [vmem:[#allocation3 + $0x30] sm:$0xff] %vm643_vm2, %v6464_v63  ;;  %v6467_v41 = vmax.f32 %v6457_v16, 0.0  ;;  %v6449_v31 = vadd.f32 %v16717_v46, %v6448_v50 }
 0x78d   : > { %6475 = vst.msk [vmem:[#allocation3 + $0x48] sm:$0xff] %vm643_vm2, %v6467_v41  ;;  %v6465_v51 = vmax.f32 %v6449_v31, 0.0 }
 0x78f   : > { %6473 = vst.msk [vmem:[#allocation3 + $0x38] sm:$0xff] %vm643_vm2, %v6465_v51 }
 0x790   : > { %v6782_v21 = vld [vmem:[#allocation3 + $0x40] sm:$0xff] }
 0x792   : > { %v6780_v44 = vld [vmem:[#allocation3 + $0x30] sm:$0xff] }
 0x793   : > { %v6791_v54 = vld [vmem:[#allocation3 + $0x29] sm:$0xff]  ;;  %v6815_v46 = vpack.c.bf16 %v6780_v44, %v16754_v30  ;;  %v6731_v30 = vrot.slane %v6723_v52, %v14071_v12  ;;  %v7629_v52 = vld [vmem:[%s19701_s17 + $0x4] sm:$0xf] }
 0x794   : > { %v6764_v22 = vld [vmem:[#allocation3 + $0x2f] sm:$0xff]  ;;  %v6797_v39 = vpack.c.bf16 %v6791_v54, %v16762_v57  ;;  %v6794_v60 = vld [vmem:[#allocation3 + $0x41] sm:$0xff] }
 0x795   : > { %v16812_v19 = vpack.c.bf16 %v6764_v22, %v6763_v34  ;;  %6905 = vrot.lane.b32.xlu1 %v6815_v46, %s13618_s27  ;;  %6835 = vrot.lane.b32.xlu0 %v6815_v46, %s19889_s25  ;;  %v6795_v18 = vld [vmem:[#allocation3 + $0x49] sm:$0xff]  ;;  %v6818_v34 = vld [vmem:[#allocation3 + $0x51] sm:$0xff]  ;;  %v12672_v6 = vcombine.low %v6720_v13, %v6731_v30  ;;  %v7631_v46 = vld [vmem:[%s19701_s17 + $0xc] sm:$0xf] }
 0x796   : > { %v6765_v57 = vld [vmem:[#allocation3 + $0x37] sm:$0xff]  ;;  %v6801_v45 = vmul.bf16 %v16789_v4, %v6797_v39  ;;  %v6766_v3 = vld [vmem:[#allocation3 + $0x3f] sm:$0xff]  ;;  %v6822_v28 = vpack.c.bf16 %v6818_v34, %v6795_v18  ;;  %v6783_v63 = vld [vmem:[#allocation3 + $0x48] sm:$0xff]  ;;  %v6799_v41 = vpack.c.bf16 %v6795_v18, %v6794_v60 }
 0x797   : > { %v6637_v35 = vld [vmem:[#allocation3 + $0x31] sm:$0xff]  ;;  %v6618_v14 = vmul.bf16 %v16808_v33, %v16812_v19  ;;  %v6810_v62 = vmul.bf16 %v16764_v15, %v16812_v19  ;;  %v6793_v26 = vld [vmem:[#allocation3 + $0x39] sm:$0xff]  ;;  %v16830_v8 = vpack.c.bf16 %v6766_v3, %v6765_v57  ;;  %v6770_v38 = vpack.c.bf16 %v6765_v57, %v6764_v22  ;;  %v6767_v31 = vld [vmem:[#allocation3 + $0x47] sm:$0xff] }
 0x798   : > { %v6781_v49 = vld [vmem:[#allocation3 + $0x38] sm:$0xff]  ;;  %v16828_v9 = vpack.c.bf16 %v6637_v35, %v6791_v54  ;;  %v16832_v11 = vpack.c.bf16 %v6794_v60, %v6793_v26  ;;  %v16848_v10 = vmul.bf16 %v12672_v6, %v6822_v28  ;;  %v6798_v37 = vpack.c.bf16 %v6793_v26, %v6637_v35  ;;  %v6804_v20 = vld [vmem:[#allocation3 + $0x4f] sm:$0xff]  ;;  %v16901_v13 = vld [vmem:[%s19701_s17 + $0x30] sm:$0xf] }
 0x799   : > { %6881 = vrot.lane.b32.xlu1 %v6801_v45, %s13620_s0  ;;  %6893 = vrot.lane.b32.xlu0 %v6810_v62, %s19765_s24  ;;  %v6786_v7 = vpack.c.bf16 %v6781_v49, %v6780_v44  ;;  %v6816_v27 = vpack.c.bf16 %v6782_v21, %v6781_v49  ;;  %v6619_v0 = vmul.bf16 %v16836_v47, %v16830_v8  ;;  %v7628_v54 = vld [vmem:[%s19701_s17] sm:$0xf]  ;;  %v7630_v39 = vld [vmem:[%s19701_s17 + $0x8] sm:$0xf] }
 0x79a   : > { %v6824_v32 = vmul.bf16 %v16789_v4, %v16828_v9  ;;  %v6825_v59 = vmul.bf16 %v16834_v61, %v16832_v11  ;;  %v6774_v5 = vmul.bf16 %v16808_v33, %v6770_v38  ;;  %v6758_v42 = vmul.bf16 %v16834_v61, %v16828_v9  ;;  %v16908_v30 = vld [vmem:[%s19701_s17 + $0x40] sm:$0xf]  ;;  %v16914_v57 = vld [vmem:[%s19701_s17 + $0x48] sm:$0xf]  ;;  %v16920_v35 = vld [vmem:[%s19701_s17 + $0x50] sm:$0xf] }
 0x79b   : > { %v6802_v58 = vmul.bf16 %v16834_v61, %v6798_v37  ;;  %v6811_v16 = vmul.bf16 %v16808_v33, %v16830_v8  ;;  %v6787_v50 = vpack.c.bf16 %v6783_v63, %v6782_v21  ;;  %v6803_v51 = vmul.bf16 %v12672_v6, %v6799_v41  ;;  %v16926_v60 = vld [vmem:[%s19701_s17 + $0x58] sm:$0xf]  ;;  %v16932_v45 = vld [vmem:[%s19701_s17 + $0x60] sm:$0xf]  ;;  %v7637_v62 = vld [vmem:[%s19701_s17 + $0x24] sm:$0xf] }
 0x79c   : > { %v6759_v29 = vmul.bf16 %v12672_v6, %v16832_v11  ;;  %v6771_v17 = vpack.c.bf16 %v6767_v31, %v6766_v3  ;;  %v6808_v2 = vpack.c.bf16 %v6804_v20, %v6767_v31  ;;  %v6817_v22 = vpack.c.bf16 %v16599_v1, %v6783_v63  ;;  %v7633_v1 = vld [vmem:[%s19701_s17 + $0x14] sm:$0xf]  ;;  %v16942_v49 = vld [vmem:[%s19701_s17 + $0x68] sm:$0xf]  ;;  %v16948_v26 = vld [vmem:[%s19701_s17 + $0x70] sm:$0xf] }
 0x79d   : > { %6871 = vrot.lane.b32.xlu1 %v6786_v7, %s19842_s22  ;;  %6907 = vrot.lane.b32.xlu0 %v6816_v27, %s13618_s27  ;;  %v7638_v3 = vld [vmem:[%s19701_s17 + $0x28] sm:$0xf]  ;;  %v16958_v21 = vld [vmem:[%s19701_s17 + $0x78] sm:$0xf] }
 0x79e   : > { %v6775_v23 = vmul.bf16 %v16836_v47, %v6771_v17  ;;  %v6812_v44 = vmul.bf16 %v16836_v47, %v6808_v2  ;;  %v7639_v34 = vld [vmem:[%s19701_s17 + $0x2c] sm:$0xf]  ;;  %v7643_v17 = vld [vmem:[%s19701_s17 + $0x3c] sm:$0xf] }
 0x7a1   : > { %6837 = vrot.lane.b32.xlu1 %v6816_v27, %s19889_s25  ;;  %6859 = vrot.lane.b32.xlu0 %v6774_v5, %s19892_s4 }
 0x7a5   : > { %6847 = vrot.lane.b32.xlu1 %v6758_v42, %s19888_s3  ;;  %6883 = vrot.lane.b32.xlu0 %v6802_v58, %s13620_s0  ;;  %v7641_v58 = vld [vmem:[%s19701_s17 + $0x34] sm:$0xf] }
 0x7a9   : > { %6895 = vrot.lane.b32.xlu1 %v6811_v16, %s19765_s24  ;;  %6873 = vrot.lane.b32.xlu0 %v6787_v50, %s19842_s22 }
 0x7ad   : > { %6885 = vrot.lane.b32.xlu1 %v6803_v51, %s13620_s0  ;;  %6849 = vrot.lane.b32.xlu0 %v6759_v29, %s19888_s3  ;;  %v7642_v51 = vld [vmem:[%s19701_s17 + $0x38] sm:$0xf] }
 0x7b1   : > { %6861 = vrot.lane.b32.xlu1 %v6775_v23, %s19892_s4  ;;  %6897 = vrot.lane.b32.xlu0 %v6812_v44, %s19765_s24  ;;  %s13621_s24 = smov 120  }
 0x7b5   : > { %6909 = vrot.lane.b32.xlu1 %v6817_v22, %s13618_s27  ;;  %7710 = vperm.xlu0 %13423, %v7628_v54   ;;  %s13622_s27 = smov 72  }
 0x7b9   : > { %7722 = vperm.xlu1 %13422, %v7629_v52   ;;  %7746 = vperm.xlu0 %13423, %v7631_v46  }
 0x7bd   : > { %7734 = vperm.xlu1 %13422, %v7630_v39   ;;  %7770 = vperm.xlu0 %13423, %v7633_v1  }
 0x7c1   : > { %7758 = vperm.xlu1 %13422, %v7632_v48   ;;  %7794 = vperm.xlu0 %13423, %v7635_v40  }
 0x7c5   : > { %7782 = vperm.xlu1 %13422, %v7634_v36   ;;  %7806 = vperm.xlu0 %13423, %v7636_v25  }
 0x7c9   : > { %13424 = vset.pattern.permute.xlu1 %v19870_v43  ;;  %7854 = vperm.xlu0 %13423, %v16901_v13  }
 0x7ca   : > { %8301 = vperm.xlu1 %13424, %v7628_v54   ;;  %v7645_v54 = vld [vmem:[%s19701_s17 + $0x44] sm:$0xf] }
 0x7cd   : > { %7902 = vperm.xlu0 %13423, %v16908_v30  }
 0x7ce   : > { %8323 = vperm.xlu1 %13424, %v7630_v39  }
 0x7d1   : > { %7926 = vperm.xlu0 %13423, %v16914_v57  }
 0x7d2   : > { %8334 = vperm.xlu1 %13424, %v7631_v46   ;;  %v7647_v46 = vld [vmem:[%s19701_s17 + $0x4c] sm:$0xf] }
 0x7d5   : > { %7950 = vperm.xlu0 %13423, %v16920_v35  }
 0x7d6   : > { %8356 = vperm.xlu1 %13424, %v7633_v1  }
 0x7d9   : > { %7974 = vperm.xlu0 %13423, %v16926_v60  }
 0x7da   : > { %8378 = vperm.xlu1 %13424, %v7635_v40   ;;  %v7649_v40 = vld [vmem:[%s19701_s17 + $0x54] sm:$0xf] }
 0x7dd   : > { %7998 = vperm.xlu0 %13423, %v16932_v45  }
 0x7de   : > { %13425 = vset.pattern.permute.xlu1 %v19869_v55 }
 0x7df   : > { %7818 = vperm.xlu1 %13425, %v7637_v62  }
 0x7e1   : > { %8022 = vperm.xlu0 %13423, %v16942_v49  }
 0x7e3   : > { %13426 = vset.pattern.permute.xlu1 %v19870_v43 }
 0x7e4   : > { %8389 = vperm.xlu1 %13426, %v7636_v25   ;;  %v8205_v25 = vld [vmem:[#allocation2 + $0x10] sm:$0xff] }
 0x7e5   : > { %8046 = vperm.xlu0 %13423, %v16948_v26  }
 0x7e7   : > { %v6832_v18 = vpop.permute.xlu0 %6831 }
 0x7e8   : > { %13427 = vset.pattern.permute.xlu1 %v19869_v55  ;;  %v6913_v28 = vsel %vm643_vm2, %v16757_v56, %v6832_v18 }
 0x7e9   : > { %7830 = vperm.xlu1 %13427, %v7638_v3   ;;  %8070 = vperm.xlu0 %13423, %v16958_v21  }
 0x7eb   : > { %v6868_v6 = vpop.permute.xlu1 %6867  ;;  %v6870_v7 = vpop.permute.xlu0 %6869 }
 0x7ed   : > { %7842 = vperm.xlu1 %13427, %v7639_v34   ;;  %13447 = vset.pattern.permute.xlu0 %v19870_v43 }
 0x7ee   : > { %8312 = vperm.xlu0 %13447, %v7629_v52  }
 0x7ef   : > { %v6834_v27 = vpop.permute.xlu1 %6833  ;;  %v6904_v38 = vpop.permute.xlu0 %6903 }
 0x7f0   : > { %v6916_v4 = vsel %vm643_vm2, %v6617_v24, %v6834_v27  ;;  %v7655_v27 = vld [vmem:[%s19701_s17 + $0x6c] sm:$0xf] }
 0x7f1   : > { %13428 = vset.pattern.permute.xlu1 %v19870_v43 }
 0x7f2   : > { %8422 = vperm.xlu1 %13428, %v7639_v34   ;;  %8345 = vperm.xlu0 %13447, %v7632_v48   ;;  %v7653_v34 = vld [vmem:[%s19701_s17 + $0x64] sm:$0xf] }
 0x7f3   : > { %v6844_v5 = vpop.permute.xlu1 %6843  ;;  %v6856_v37 = vpop.permute.xlu0 %6855 }
 0x7f4   : > { %v6924_v42 = vsel %vm2556_vm5, %v6913_v28, %v6844_v5 }
 0x7f5   : > { %v6932_v63 = vsel %vm2622_vm7, %v6924_v42, %v6856_v37  ;;  %v17045_v37 = vld [vmem:[%s19701_s17 + $0x74] sm:$0xf] }
 0x7f6   : > { %13429 = vset.pattern.permute.xlu1 %v19869_v55  ;;  %v6940_v16 = vsel %vm2688_vm8, %v6932_v63, %v6868_v6  ;;  %8367 = vperm.xlu0 %13447, %v7634_v36   ;;  %v8204_v36 = vld [vmem:[#allocation2 + $0x8] sm:$0xff] }
 0x7f7   : > { %7866 = vperm.xlu1 %13429, %v7641_v58   ;;  %v6892_v50 = vpop.permute.xlu1 %6891  ;;  %v6880_v56 = vpop.permute.xlu0 %6879  ;;  %v8236_v18 = vpack.c.bf16 %v8205_v25, %v8204_v36  ;;  %v17163_v36 = vld [vmem:[%s19701_s17 + $0x5c] sm:$0xf] }
 0x7f8   : > { %v6949_v41 = vsel %vm6947_vm11, %v6940_v16, %v6880_v56  ;;  %v17058_v16 = vld [vmem:[%s19701_s17 + $0x7c] sm:$0xf] }
 0x7f9   : > { %v6958_v31 = vsel %vm6956_vm12, %v6949_v41, %v6892_v50  ;;  %v10015_v41 = vld [vmem:[%s19701_s17] sm:$0xf] }
 0x7fa   : > { %v6967_v20 = vsel %vm6965_vm13, %v6958_v31, %v6904_v38  ;;  %8400 = vperm.xlu0 %13447, %v7637_v62  }
 0x7fb   : > { %13430 = vset.pattern.permute.xlu1 %v19870_v43  ;;  %7102 = vmatmul.mubr.bf16.vlgmr.msra.gmra.mxu1 %v6967_v20  ;;  %v6846_v29 = vpop.permute.xlu0 %6845  ;;  %v6858_v2 = vpop.permute.xlu1 %6857  ;;  %v17075_v20 = vld [vmem:[%s19701_s17 + $0xc] sm:$0xf] }
 0x7fc   : > { %8433 = vperm.xlu1 %13430, %v16901_v13   ;;  %12684 = vmatprep.mubr.msk.bf16.mxu1 %vm643_vm2, %v6824_v32  ;;  %v6926_v9 = vsel %vm2556_vm5, %v6916_v4, %v6846_v29  ;;  %v10023_v4 = vld [vmem:[%s19701_s17 + $0x20] sm:$0xf] }
 0x7fd   : > { %v6934_v44 = vsel %vm2622_vm7, %v6926_v9, %v6858_v2 }
 0x7fe   : > { %8411 = vperm.xlu0 %13447, %v7638_v3   ;;  %v6942_v15 = vsel %vm2688_vm8, %v6934_v44, %v6870_v7  ;;  %v7651_v3 = vld [vmem:[%s19701_s17 + $0x5c] sm:$0xf]  ;;  %v10027_v44 = vld [vmem:[%s19701_s17 + $0x30] sm:$0xf] }
 0x800   : > { %13431 = vset.pattern.permute.xlu1 %v19869_v55 }
 0x801   : > { %7878 = vperm.xlu1 %13431, %v7642_v51  }
 0x802   : > { %8444 = vperm.xlu0 %13447, %v7641_v58  }
 0x805   : > { %7890 = vperm.xlu1 %13431, %v7643_v17  }
 0x806   : > { %8455 = vperm.xlu0 %13447, %v7642_v51   ;;  %v10019_v51 = vld [vmem:[%s19701_s17 + $0x10] sm:$0xf] }
 0x807   : > { %v6906_v32 = vpop.permute.xlu1 %6905  ;;  %v6836_v23 = vpop.permute.xlu0 %6835 }
 0x808   : > { %v6919_v11 = vsel %vm643_vm2, %v6618_v14, %v6836_v23 }
 0x809   : > { %13432 = vset.pattern.permute.xlu1 %v19870_v43 }
 0x80a   : > { %8466 = vperm.xlu1 %13432, %v7643_v17   ;;  %8488 = vperm.xlu0 %13447, %v7645_v54  }
 0x80b   : > { %v6882_v22 = vpop.permute.xlu1 %6881  ;;  %v6894_v53 = vpop.permute.xlu0 %6893 }
 0x80c   : > { %v6951_v24 = vsel %vm6947_vm11, %v6942_v15, %v6882_v22  ;;  %v17125_v15 = vld [vmem:[%s19701_s17 + $0x3c] sm:$0xf] }
 0x80d   : > { %v6960_v52 = vsel %vm6956_vm12, %v6951_v24, %v6894_v53  ;;  %v10031_v24 = vld [vmem:[%s19701_s17 + $0x40] sm:$0xf] }
 0x80e   : > { %13433 = vset.pattern.permute.xlu1 %v19869_v55  ;;  %v6970_v39 = vsel %vm6965_vm13, %v6960_v52, %v6906_v32  ;;  %8510 = vperm.xlu0 %13447, %v7647_v46   ;;  %v17105_v32 = vld [vmem:[%s19701_s17 + $0x2c] sm:$0xf] }
 0x80f   : > { %7914 = vperm.xlu1 %13433, %v7645_v54   ;;  %v6872_v1 = vpop.permute.xlu1 %6871  ;;  %v6908_v48 = vpop.permute.xlu0 %6907  ;;  %7110 = vmatmul.mubr.bf16.gmra.mxu1 %v6970_v39 }
 0x810   : > { %12685 = vmatprep.mubr.msk.bf16.mxu1 %vm643_vm2, %v6825_v59 }
 0x812   : > { %8532 = vperm.xlu0 %13447, %v7649_v40  }
 0x813   : > { %13434 = vset.pattern.permute.xlu1 %v19870_v43  ;;  %v6838_v13 = vpop.permute.xlu1 %6837  ;;  %v6860_v62 = vpop.permute.xlu0 %6859 }
 0x814   : > { %8477 = vperm.xlu1 %13434, %v16908_v30   ;;  %v6922_v58 = vsel %vm643_vm2, %v6619_v0, %v6838_v13  ;;  %v10039_v13 = vld [vmem:[%s19701_s17 + $0x60] sm:$0xf] }
 0x816   : > { %8554 = vperm.xlu0 %13447, %v7651_v3  }
 0x817   : > { %v6848_v61 = vpop.permute.xlu1 %6847  ;;  %v6884_v59 = vpop.permute.xlu0 %6883 }
 0x818   : > { %v6928_v6 = vsel %vm2556_vm5, %v6919_v11, %v6848_v61  ;;  %8997 = vrot.lane.b32.xlu1 %v8236_v18, %s19890_s14  ;;  %v8960_v18 = vld [vmem:[#allocation2 + $0x120] sm:$0xff] }
 0x819   : > { %v6936_v7 = vsel %vm2622_vm7, %v6928_v6, %v6860_v62  ;;  %13435 = vset.pattern.permute.xlu1 %v19869_v55 }
 0x81a   : > { %v6944_v30 = vsel %vm2688_vm8, %v6936_v7, %v6872_v1  ;;  %8576 = vperm.xlu0 %13447, %v7653_v34  }
 0x81b   : > { %v6953_v33 = vsel %vm6947_vm11, %v6944_v30, %v6884_v59  ;;  %v6896_v19 = vpop.permute.xlu1 %6895  ;;  %v6874_v14 = vpop.permute.xlu0 %6873 }
 0x81c   : > { %v6962_v38 = vsel %vm6956_vm12, %v6953_v33, %v6896_v19  ;;  %7938 = vperm.xlu1 %13435, %v7647_v46   ;;  %v17142_v46 = vld [vmem:[%s19701_s17 + $0x4c] sm:$0xf] }
 0x81d   : > { %v6973_v28 = vsel %vm6965_vm13, %v6962_v38, %v6908_v48 }
 0x81e   : > { %7118 = vmatmul.mubr.bf16.gmra.mxu1 %v6973_v28  ;;  %8598 = vperm.xlu0 %13447, %v7655_v27  }
 0x81f   : > { %v6886_v5 = vpop.permute.xlu1 %6885  ;;  %12686 = vmatprep.mubr.msk.bf16.mxu1 %vm643_vm2, %v16848_v10  ;;  %v6850_v42 = vpop.permute.xlu0 %6849 }
 0x820   : > { %13436 = vset.pattern.permute.xlu1 %v19870_v43  ;;  %v6930_v63 = vsel %vm2556_vm5, %v6922_v58, %v6850_v42 }
 0x821   : > { %8499 = vperm.xlu1 %13436, %v16914_v57  }
 0x822   : > { %8620 = vperm.xlu0 %13447, %v17045_v37  }
 0x823   : > { %v6862_v10 = vpop.permute.xlu1 %6861  ;;  %v6898_v47 = vpop.permute.xlu0 %6897 }
 0x824   : > { %v6938_v50 = vsel %vm2622_vm7, %v6930_v63, %v6862_v10 }
 0x825   : > { %v6946_v56 = vsel %vm2688_vm8, %v6938_v50, %v6874_v14  ;;  %13437 = vset.pattern.permute.xlu1 %v19869_v55 }
 0x826   : > { %v6955_v8 = vsel %vm6947_vm11, %v6946_v56, %v6886_v5  ;;  %7962 = vperm.xlu1 %13437, %v7649_v40   ;;  %8642 = vperm.xlu0 %13447, %v17058_v16  }
 0x827   : > { %v6964_v0 = vsel %vm6956_vm12, %v6955_v8, %v6898_v47  ;;  %v6910_v57 = vpop.permute.xlu1 %6909 }
 0x828   : > { %v6976_v31 = vsel %vm6965_vm13, %v6964_v0, %v6910_v57 }
 0x829   : > { %7126 = vmatmul.mubr.bf16.gmra.mxu1 %v6976_v31 }
 0x82a   : > { %13438 = vset.pattern.permute.xlu1 %v19870_v43  ;;  %10688 = vperm.xlu0 %13447, %v10015_v41  }
 0x82b   : > { %8521 = vperm.xlu1 %13438, %v16920_v35   ;;  %v17087_v35 = vld [vmem:[%s19701_s17 + $0x1c] sm:$0xf] }
 0x82e   : > { %10721 = vperm.xlu0 %13447, %v17075_v20  }
 0x82f   : > { %13439 = vset.pattern.permute.xlu1 %v19869_v55 }
 0x830   : > { %7986 = vperm.xlu1 %13439, %v7651_v3   ;;  %v17082_v29 = vpop.permute.xlu0 %7710  ;;  %v8959_v3 = vld [vmem:[#allocation2 + $0x118] sm:$0xff] }
 0x831   : > { %v8961_v11 = vpack.c.bf16 %v8960_v18, %v8959_v3 }
 0x832   : > { %10732 = vperm.xlu0 %13447, %v10019_v51  }
 0x834   : > { %13440 = vset.pattern.permute.xlu1 %v19870_v43  ;;  %v17090_v17 = vpop.permute.xlu1 %7722  ;;  %v17093_v2 = vpop.permute.xlu0 %7746 }
 0x835   : > { %8543 = vperm.xlu1 %13440, %v16926_v60  }
 0x836   : > { %10765 = vperm.xlu0 %13447, %v17087_v35  }
 0x838   : > { %v17099_v9 = vpop.permute.xlu1 %7734  ;;  %v17109_v23 = vpop.permute.xlu0 %7770 }
 0x839   : > { %13441 = vset.pattern.permute.xlu1 %v19869_v55 }
 0x83a   : > { %8010 = vperm.xlu1 %13441, %v7653_v34   ;;  %10776 = vperm.xlu0 %13447, %v10023_v4  }
 0x83c   : > { %v17107_v60 = vpop.permute.xlu1 %7758  ;;  %v17119_v22 = vpop.permute.xlu0 %7794 }
 0x83e   : > { %13442 = vset.pattern.permute.xlu1 %v19870_v43  ;;  %10809 = vperm.xlu0 %13447, %v17105_v32  }
 0x83f   : > { %8565 = vperm.xlu1 %13442, %v16932_v45  }
 0x840   : > { %v17117_v54 = vpop.permute.xlu1 %7782  ;;  %v17129_v45 = vpop.permute.xlu0 %7806 }
 0x842   : > { %10820 = vperm.xlu0 %13447, %v10027_v44  }
 0x843   : > { %13443 = vset.pattern.permute.xlu1 %v19869_v55 }
 0x844   : > { %8034 = vperm.xlu1 %13443, %v7655_v27   ;;  %v17144_v39 = vpop.permute.xlu0 %7854 }
 0x845   : > { %v17127_v53 = vpop.permute.xlu1 %8301 }
 0x846   : > { %10853 = vperm.xlu0 %13447, %v17125_v15  }
 0x848   : > { %13444 = vset.pattern.permute.xlu1 %v19870_v43  ;;  %v17157_v40 = vpop.permute.xlu0 %7902 }
 0x849   : > { %8587 = vperm.xlu1 %13444, %v16942_v49   ;;  %v17137_v52 = vpop.permute.xlu1 %8323  ;;  %v10035_v49 = vld [vmem:[%s19701_s17 + $0x50] sm:$0xf] }
 0x84a   : > { %10864 = vperm.xlu0 %13447, %v10031_v24  }
 0x84c   : > { %v17173_v62 = vpop.permute.xlu0 %7926 }
 0x84d   : > { %13445 = vset.pattern.permute.xlu1 %v19869_v55  ;;  %v17147_v1 = vpop.permute.xlu1 %8334 }
 0x84e   : > { %8058 = vperm.xlu1 %13445, %v17045_v37   ;;  %10897 = vperm.xlu0 %13447, %v17142_v46   ;;  %v13554_v37 = vld [vmem:[%s19700_s16] sm:$0xff]  }
 0x84f   : > { %13220 = vmatprep.mubr.msk.bf16.mxu0 %vm2688_vm8, %v13554_v37 }
 0x850   : > { %v17179_v61 = vpop.permute.xlu0 %7950 }
 0x851   : > { %v17154_v48 = vpop.permute.xlu1 %8356 }
 0x852   : > { %13446 = vset.pattern.permute.xlu1 %v19870_v43  ;;  %10908 = vperm.xlu0 %13447, %v10035_v49  }
 0x853   : > { %8609 = vperm.xlu1 %13446, %v16948_v26  }
 0x854   : > { %v17184_v34 = vpop.permute.xlu0 %7974 }
 0x855   : > { %v17165_v25 = vpop.permute.xlu1 %8378  ;;  %19896 = vst [vmem:[#allocation20_spill] sm:$0xff] %v17184_v34 }
 0x856   : > { %10941 = vperm.xlu0 %13447, %v17163_v36  }
 0x857   : > { %13448 = vset.pattern.permute.xlu1 %v19869_v55 }
 0x858   : > { %8082 = vperm.xlu1 %13448, %v17058_v16   ;;  %v17190_v30 = vpop.permute.xlu0 %7998 }
 0x859   : > { %19897 = vst [vmem:[#allocation21_spill] sm:$0xff] %v17190_v30 }
 0x85a   : > { %v17175_v26 = vpop.permute.xlu1 %7818  ;;  %10952 = vperm.xlu0 %13447, %v10039_v13  }
 0x85c   : > { %13449 = vset.pattern.permute.xlu1 %v19870_v43  ;;  %v17194_v19 = vpop.permute.xlu0 %8022 }
 0x85d   : > { %8631 = vperm.xlu1 %13449, %v16958_v21   ;;  %19899 = vst [vmem:[#allocation26_spill] sm:$0xff] %v17194_v19 }
 0x85f   : > { %v17181_v59 = vpop.permute.xlu1 %8389 }
 0x860   : > { %19895 = vst [vmem:[#allocation16_spill] sm:$0xff] %v17181_v59  ;;  %v17198_v14 = vpop.permute.xlu0 %8046 }
 0x861   : > { %9300 = vrot.lane.b32.xlu1 %v8961_v11, %s19891_s1  ;;  %19900 = vst [vmem:[#allocation23_spill] sm:$0xff] %v17198_v14 }
 0x864   : > { %v17186_v6 = vpop.permute.xlu1 %7830  ;;  %v17202_v38 = vpop.permute.xlu0 %8070 }
 0x865   : > { %19902 = vst [vmem:[#allocation9_spill] sm:$0xff] %v17202_v38  ;;  %v8963_v38 = vld [vmem:[#allocation2 + $0x121] sm:$0xff] }
 0x868   : > { %v17188_v7 = vpop.permute.xlu1 %7842 }
 0x869   : > { %v17211_v42 = vpop.permute.xlu0 %8312 }
 0x86d   : > { %v17192_v33 = vpop.permute.xlu1 %8422  ;;  %v17216_v63 = vpop.permute.xlu0 %8345 }
 0x86e   : > { %19898 = vst [vmem:[#allocation25_spill] sm:$0xff] %v17192_v33 }
 0x871   : > { %v17220_v16 = vpop.permute.xlu0 %8367 }
 0x872   : > { %v17196_v21 = vpop.permute.xlu1 %7866 }
 0x875   : > { %v17226_v8 = vpop.permute.xlu0 %8400 }
 0x876   : > { %19906 = vst [vmem:[#allocation13_spill] sm:$0xff] %v17226_v8 }
 0x877   : > { %v17200_v27 = vpop.permute.xlu1 %8433 }
 0x878   : > { %19901 = vst [vmem:[#allocation10_spill] sm:$0xff] %v17200_v27 }
 0x879   : > { %v17230_v0 = vpop.permute.xlu0 %8411 }
 0x87a   : > { %19907 = vst [vmem:[#allocation6_spill] sm:$0xff] %v17230_v0 }
 0x87c   : > { %v17204_v28 = vpop.permute.xlu1 %7878 }
 0x87d   : > { %v17234_v41 = vpop.permute.xlu0 %8444 }
 0x87e   : > { %19909 = vst [vmem:[#allocation8_spill] sm:$0xff] %v17234_v41 }
 0x880   : > { %v17206_v5 = vpop.permute.xlu1 %7890 }
 0x881   : > { %v17238_v51 = vpop.permute.xlu0 %8455 }
 0x882   : > { %19910 = vst [vmem:[#allocation14_spill] sm:$0xff] %v17238_v51 }
 0x885   : > { %v17214_v58 = vpop.permute.xlu1 %8466  ;;  %v17244_v24 = vpop.permute.xlu0 %8488 }
 0x886   : > { %19903 = vst [vmem:[#allocation19_spill] sm:$0xff] %v17214_v58  ;;  %19913 = vst [vmem:[#allocation11_spill] sm:$0xff] %v17244_v24 }
 0x889   : > { %v17248_v13 = vpop.permute.xlu0 %8510 }
 0x88a   : > { %v17218_v10 = vpop.permute.xlu1 %7914  ;;  %19915 = vst [vmem:[#allocation24_spill] sm:$0xff] %v17248_v13 }
 0x88d   : > { %v17252_v18 = vpop.permute.xlu0 %8532 }
 0x88e   : > { %19917 = vst [vmem:[#allocation28_spill] sm:$0xff] %v17252_v18 }
 0x88f   : > { %v17222_v50 = vpop.permute.xlu1 %8477 }
 0x890   : > { %19904 = vst [vmem:[#allocation17_spill] sm:$0xff] %v17222_v50 }
 0x893   : > { %v17224_v56 = vpop.permute.xlu1 %8997 }
 0x894   : > { %19905 = vst [vmem:[#allocation12_spill] sm:$0xff] %v17224_v56 }
 0x897   : > { %v17228_v47 = vpop.permute.xlu1 %7938 }
 0x89c   : > { %v17232_v57 = vpop.permute.xlu1 %8499 }
 0x89d   : > { %19908 = vst [vmem:[#allocation7_spill] sm:$0xff] %v17232_v57  ;;  %v17256_v57 = vpop.permute.xlu0 %8554 }
 0x89e   : > { %19919 = vst [vmem:[#allocation30_spill] sm:$0xff] %v17256_v57 }
 0x8a1   : > { %v17236_v31 = vpop.permute.xlu1 %7962  ;;  %v17260_v58 = vpop.permute.xlu0 %8576 }
 0x8a2   : > { %19921 = vst [vmem:[#allocation32_spill] sm:$0xff] %v17260_v58 }
 0x8a6   : > { %v17240_v4 = vpop.permute.xlu1 %8521 }
 0x8a7   : > { %19911 = vst [vmem:[#allocation18_spill] sm:$0xff] %v17240_v4 }
 0x8ab   : > { %v17242_v44 = vpop.permute.xlu1 %7986 }
 0x8ac   : > { %19912 = vst [vmem:[#allocation22_spill] sm:$0xff] %v17242_v44 }
 0x8b0   : > { %v17246_v49 = vpop.permute.xlu1 %8543 }
 0x8b1   : > { %19914 = vst [vmem:[#allocation15_spill] sm:$0xff] %v17246_v49  ;;  %v17264_v49 = vpop.permute.xlu0 %8598 }
 0x8b2   : > { %19923 = vst [vmem:[#allocation34_spill] sm:$0xff] %v17264_v49 }
 0x8b5   : > { %v17250_v3 = vpop.permute.xlu1 %8010 }
 0x8b6   : > { %19916 = vst [vmem:[#allocation27_spill] sm:$0xff] %v17250_v3 }
 0x8ba   : > { %v17254_v11 = vpop.permute.xlu1 %8565 }
 0x8bb   : > { %19918 = vst [vmem:[#allocation29_spill] sm:$0xff] %v17254_v11  ;;  %v7103_v37 = vpop.f32.mrf.mxu1  ;;  %v17270_v11 = vpop.permute.xlu0 %8620 }
 0x8bc   : > { %19926 = vst [vmem:[#allocation37_spill] sm:$0xff] %v17270_v11 }
 0x8bd   : > { %v7105_v56 = vpop.f32.mrf.mxu1 }
 0x8bf   : > { %v7106_v50 = vpop.f32.mrf.mxu1  ;;  %v17258_v4 = vpop.permute.xlu1 %8034 }
 0x8c0   : > { %19920 = vst [vmem:[#allocation31_spill] sm:$0xff] %v17258_v4  ;;  %v8643_v33 = vpop.permute.xlu0 %8642 }
 0x8c1   : > { %v7108_v51 = vpop.f32.mrf.mxu1  ;;  %v8651_v58 = vrot.slane %v8643_v33, %v14071_v12 }
 0x8c2   : > { %v8962_v51 = vld [vmem:[#allocation2 + $0x119] sm:$0xff] }
 0x8c3   : > { %v8964_v14 = vpack.c.bf16 %v8963_v38, %v8962_v51  ;;  %v10017_v38 = vld [vmem:[%s19701_s17 + $0x8] sm:$0xf] }
 0x8c4   : > { %v17262_v24 = vpop.permute.xlu1 %8587 }
 0x8c5   : > { %19922 = vst [vmem:[#allocation33_spill] sm:$0xff] %v17262_v24 }
 0x8c9   : > { %v17266_v13 = vpop.permute.xlu1 %8058 }
 0x8ca   : > { %19924 = vst [vmem:[#allocation35_spill] sm:$0xff] %v17266_v13 }
 0x8ce   : > { %v17268_v41 = vpop.permute.xlu1 %8609 }
 0x8cf   : > { %19925 = vst [vmem:[#allocation36_spill] sm:$0xff] %v17268_v41  ;;  %v7111_v18 = vpop.f32.mrf.mxu1 }
 0x8d1   : > { %v7113_v56 = vpop.f32.mrf.mxu1 }
 0x8d3   : > { %v17272_v27 = vpop.permute.xlu1 %8082  ;;  %v7114_v57 = vpop.f32.mrf.mxu1 }
 0x8d4   : > { %19927 = vst [vmem:[#allocation38_spill] sm:$0xff] %v17272_v27 }
 0x8d5   : > { %v7116_v0 = vpop.f32.mrf.mxu1 }
 0x8d6   : > { %v10016_v0 = vld [vmem:[%s19701_s17 + $0x4] sm:$0xf] }
 0x8d8   : > { %v8632_v24 = vpop.permute.xlu1 %8631 }
 0x8d9   : > { %v8640_v49 = vrot.slane %v8632_v24, %v14071_v12 }
 0x8db   : > { %v17276_v19 = vcombine.low %v8640_v49, %v8651_v58 }
 0x8dd   : > { %19928 = vst [vmem:[#allocation39_spill] sm:$0xff] %v17276_v19  ;;  %v8980_v41 = vmul.bf16 %v17276_v19, %v8964_v14  ;;  %v12673_v14 = vld [vmem:[%s19692_s8] ss:$0 sm:$0xff] }
 0x8de   : > { %v7119_v13 = vpop.f32.mrf.mxu1  ;;  %v7112_v59 = vadd.f32 %v12673_v14, %v7111_v18  ;;  %v7104_v44 = vadd.f32 %v12673_v14, %v7103_v37  ;;  %v10025_v37 = vld [vmem:[%s19701_s17 + $0x28] sm:$0xf] }
 0x8df   : > { %9348 = vrot.lane.b32.xlu1 %v8980_v41, %s19842_s22 }
 0x8e0   : > { %v7121_v56 = vpop.f32.mrf.mxu1  ;;  %v7136_v34 = vmax.f32 %v7112_v59, 0.0  ;;  %v7134_v18 = vmax.f32 %v7104_v44, 0.0  ;;  %v13556_v59 = vld [vmem:[%s19700_s16 + $0x10] sm:$0xff]  }
 0x8e1   : > { %v13560_v44 = vld [vmem:[%s19700_s16 + $0x30] sm:$0xff]  }
 0x8e2   : > { %v7122_v11 = vpop.f32.mrf.mxu1 }
 0x8e3   : > { %10699 = vperm.xlu1 %13449, %v10016_v0   ;;  %v7123_v41 = vadd.f32 %v12673_v14, %v7122_v11 }
 0x8e4   : > { %v7124_v27 = vpop.f32.mrf.mxu1 }
 0x8e5   : > { %v7120_v27 = vadd.f32 %v12673_v14, %v7119_v13  ;;  %v7139_v19 = vmax.f32 %v7123_v41, 0.0  ;;  %v10020_v41 = vld [vmem:[%s19701_s17 + $0x14] sm:$0xf] }
 0x8e7   : > { %13450 = vset.pattern.permute.xlu1 %v19869_v55  ;;  %v7138_v30 = vmax.f32 %v7120_v27, 0.0  ;;  %v13566_v27 = vld [vmem:[%s19700_s16 + $0x60] sm:$0xff]  }
 0x8e8   : > { %10109 = vperm.xlu1 %13450, %v10016_v0   ;;  %v7115_v0 = vadd.f32 %v12673_v14, %v7114_v57 }
 0x8e9   : > { %v7127_v33 = vpop.f32.mrf.mxu1 }
 0x8ea   : > { %v7128_v24 = vadd.f32 %v12673_v14, %v7127_v33  ;;  %v7137_v11 = vmax.f32 %v7115_v0, 0.0  ;;  %v7176_v33 = vpack.c.bf16 %v7139_v19, %v7138_v30  ;;  %v13557_v19 = vld [vmem:[%s19700_s16 + $0x18] sm:$0xff]  }
 0x8eb   : > { %v7129_v58 = vpop.f32.mrf.mxu1  ;;  %v13569_v0 = vld [vmem:[%s19700_s16 + $0x78] sm:$0xff]  }
 0x8ec   : > { %13451 = vset.pattern.permute.xlu1 %v19870_v43  ;;  %v7140_v4 = vmax.f32 %v7128_v24, 0.0  ;;  %v7107_v58 = vadd.f32 %v12673_v14, %v7106_v50  ;;  %v7175_v13 = vpack.c.bf16 %v7137_v11, %v7136_v34  ;;  %v10021_v34 = vld [vmem:[%s19701_s17 + $0x18] sm:$0xf]  ;;  %v13558_v50 = vld [vmem:[%s19700_s16 + $0x20] sm:$0xff]   ;;  %v10028_v24 = vld [vmem:[%s19701_s17 + $0x34] sm:$0xf] }
 0x8ed   : > { %10710 = vperm.xlu1 %13451, %v10017_v38   ;;  %v7130_v49 = vpop.f32.mrf.mxu1  ;;  %v10033_v11 = vld [vmem:[%s19701_s17 + $0x48] sm:$0xf] }
 0x8ee   : > { %v7131_v51 = vadd.f32 %v12673_v14, %v7130_v49  ;;  %v7135_v57 = vmax.f32 %v7107_v58, 0.0  ;;  %v13564_v14 = vld [vmem:[%s19700_s16 + $0x50] sm:$0xff]   ;;  %v13565_v49 = vld [vmem:[%s19700_s16 + $0x58] sm:$0xff]   ;;  %v10032_v58 = vld [vmem:[%s19701_s17 + $0x44] sm:$0xf] }
 0x8ef   : > { %v7132_v56 = vpop.f32.mrf.mxu1 }
 0x8f0   : > { %v7141_v8 = vmax.f32 %v7131_v51, 0.0  ;;  %v7174_v30 = vpack.c.bf16 %v7135_v57, %v7134_v18  ;;  %v13568_v51 = vld [vmem:[%s19700_s16 + $0x70] sm:$0xff]   ;;  %v10029_v56 = vld [vmem:[%s19701_s17 + $0x38] sm:$0xf]  ;;  %v17414_v57 = vpop.permute.xlu1 %9300 }
 0x8f1   : > { %13452 = vset.pattern.permute.xlu1 %v19869_v55  ;;  %19929 = vst [vmem:[#allocation40_spill] sm:$0xff] %v17414_v57  ;;  %v19994_v57 = vld [vmem:[#allocation23_spill] sm:$0xff] }
 0x8f2   : > { %v7177_v3 = vpack.c.bf16 %v7141_v8, %v7140_v4  ;;  %10121 = vperm.xlu1 %13452, %v10017_v38   ;;  %v10024_v8 = vld [vmem:[%s19701_s17 + $0x24] sm:$0xf]  ;;  %v13559_v4 = vld [vmem:[%s19700_s16 + $0x28] sm:$0xff]  }
 0x8f3   : > { %v13563_v38 = vld [vmem:[%s19700_s16 + $0x48] sm:$0xff]  }
 0x8f4   : > { %13212 = vmatprep.subr.bf16.mxu0 %v7177_v3 }
 0x8f5   : > { %13213 = vmatpush3.bf16.msra.mxu0 %v7177_v3  ;;  %v13562_v3 = vld [vmem:[%s19700_s16 + $0x40] sm:$0xff]  }
 0x8f6   : > { %10133 = vperm.xlu1 %13452, %v17075_v20   ;;  %13214 = vmatprep.subr.bf16.mxu0 %v7176_v33  ;;  %v13555_v20 = vld [vmem:[%s19700_s16 + $0x8] sm:$0xff]  }
 0x8f9   : > { %13215 = vmatpush3.bf16.msra.mxu0 %v7176_v33  ;;  %v10037_v33 = vld [vmem:[%s19701_s17 + $0x58] sm:$0xf] }
 0x8fa   : > { %13453 = vset.pattern.permute.xlu1 %v19870_v43  ;;  %13216 = vmatprep.subr.bf16.mxu0 %v7175_v13 }
 0x8fb   : > { %10743 = vperm.xlu1 %13453, %v10020_v41  }
 0x8fd   : > { %13217 = vmatpush3.bf16.msra.mxu0 %v7175_v13 }
 0x8fe   : > { %13218 = vmatprep.subr.bf16.mxu0 %v7174_v30 }
 0x8ff   : > { %13454 = vset.pattern.permute.xlu1 %v19869_v55 }
 0x900   : > { %10157 = vperm.xlu1 %13454, %v10020_v41  }
 0x901   : > { %13219 = vmatpush3.bf16.msra.mxu0 %v7174_v30 }
 0x904   : > { %13455 = vset.pattern.permute.xlu1 %v19870_v43  ;;  %13221 = vmatmul.mubr.msk.bf16.vlgmr.msra.gmra.mxu0 %vm2688_vm8, %v13555_v20 }
 0x905   : > { %10754 = vperm.xlu1 %13455, %v10021_v34   ;;  %13224 = vmatprep.mubr.msk.bf16.mxu0 %vm2688_vm8, %v13556_v59 }
 0x909   : > { %13456 = vset.pattern.permute.xlu1 %v19869_v55 }
 0x90a   : > { %10169 = vperm.xlu1 %13456, %v10021_v34  }
 0x90c   : > { %13225 = vmatmul.mubr.msk.bf16.gmra.mxu0 %vm2688_vm8, %v13557_v19 }
 0x90d   : > { %13228 = vmatprep.mubr.msk.bf16.mxu0 %vm2688_vm8, %v13558_v50 }
 0x90e   : > { %10181 = vperm.xlu1 %13456, %v17087_v35   ;;  %v13561_v35 = vld [vmem:[%s19700_s16 + $0x38] sm:$0xff]  }
 0x912   : > { %13457 = vset.pattern.permute.xlu1 %v19870_v43 }
 0x913   : > { %10787 = vperm.xlu1 %13457, %v10024_v8  }
 0x914   : > { %13229 = vmatmul.mubr.msk.bf16.gmra.mxu0 %vm2688_vm8, %v13559_v4 }
 0x915   : > { %13232 = vmatprep.mubr.msk.bf16.mxu0 %vm2688_vm8, %v13560_v44 }
 0x917   : > { %13458 = vset.pattern.permute.xlu1 %v19869_v55 }
 0x918   : > { %10205 = vperm.xlu1 %13458, %v10024_v8  }
 0x91c   : > { %13459 = vset.pattern.permute.xlu1 %v19870_v43  ;;  %13233 = vmatmul.mubr.msk.bf16.gmra.mxu0 %vm2688_vm8, %v13561_v35 }
 0x91d   : > { %10798 = vperm.xlu1 %13459, %v10025_v37   ;;  %13236 = vmatprep.mubr.msk.bf16.mxu0 %vm2688_vm8, %v13562_v3 }
 0x921   : > { %13460 = vset.pattern.permute.xlu1 %v19869_v55 }
 0x922   : > { %10217 = vperm.xlu1 %13460, %v10025_v37  }
 0x924   : > { %13237 = vmatmul.mubr.msk.bf16.gmra.mxu0 %vm2688_vm8, %v13563_v38 }
 0x925   : > { %13240 = vmatprep.mubr.msk.bf16.mxu0 %vm2688_vm8, %v13564_v14 }
 0x926   : > { %10229 = vperm.xlu1 %13460, %v17105_v32   ;;  %v13567_v32 = vld [vmem:[%s19700_s16 + $0x68] sm:$0xff]  }
 0x92a   : > { %13461 = vset.pattern.permute.xlu1 %v19870_v43 }
 0x92b   : > { %10831 = vperm.xlu1 %13461, %v10028_v24  }
 0x92c   : > { %13241 = vmatmul.mubr.msk.bf16.gmra.mxu0 %vm2688_vm8, %v13565_v49 }
 0x92d   : > { %13244 = vmatprep.mubr.msk.bf16.mxu0 %vm2688_vm8, %v13566_v27 }
 0x92f   : > { %13462 = vset.pattern.permute.xlu1 %v19869_v55 }
 0x930   : > { %10253 = vperm.xlu1 %13462, %v10028_v24  }
 0x934   : > { %13463 = vset.pattern.permute.xlu1 %v19870_v43  ;;  %13245 = vmatmul.mubr.msk.bf16.gmra.mxu0 %vm2688_vm8, %v13567_v32 }
 0x935   : > { %10842 = vperm.xlu1 %13463, %v10029_v56   ;;  %13248 = vmatprep.mubr.msk.bf16.mxu0 %vm2688_vm8, %v13568_v51 }
 0x939   : > { %13464 = vset.pattern.permute.xlu1 %v19869_v55 }
 0x93a   : > { %10265 = vperm.xlu1 %13464, %v10029_v56  }
 0x93c   : > { %13249 = vmatmul.mubr.msk.bf16.gmra.mxu0 %vm2688_vm8, %v13569_v0 }
 0x93e   : > { %10277 = vperm.xlu1 %13464, %v17125_v15   ;;  %v10036_v15 = vld [vmem:[%s19701_s17 + $0x54] sm:$0xf] }
 0x942   : > { %13465 = vset.pattern.permute.xlu1 %v19870_v43 }
 0x943   : > { %10875 = vperm.xlu1 %13465, %v10032_v58  }
 0x947   : > { %13466 = vset.pattern.permute.xlu1 %v19869_v55 }
 0x948   : > { %10301 = vperm.xlu1 %13466, %v10032_v58  }
 0x94c   : > { %13467 = vset.pattern.permute.xlu1 %v19870_v43 }
 0x94d   : > { %10886 = vperm.xlu1 %13467, %v10033_v11  }
 0x951   : > { %13468 = vset.pattern.permute.xlu1 %v19869_v55  ;;  %v17416_v13 = vpop.permute.xlu1 %9348 }
 0x952   : > { %10313 = vperm.xlu1 %13468, %v10033_v11   ;;  %19930 = vst [vmem:[#allocation41_spill] sm:$0xff] %v17416_v13 }
 0x956   : > { %10325 = vperm.xlu1 %13468, %v17142_v46   ;;  %v10040_v46 = vld [vmem:[%s19701_s17 + $0x64] sm:$0xf] }
 0x95a   : > { %13469 = vset.pattern.permute.xlu1 %v19870_v43 }
 0x95b   : > { %10919 = vperm.xlu1 %13469, %v10036_v15  }
 0x95e   : > { %v17418_v41 = vpop.permute.xlu1 %10699 }
 0x95f   : > { %13470 = vset.pattern.permute.xlu1 %v19869_v55  ;;  %19931 = vst [vmem:[#allocation42_spill] sm:$0xff] %v17418_v41 }
 0x960   : > { %10349 = vperm.xlu1 %13470, %v10036_v15  }
 0x963   : > { %v17420_v18 = vpop.permute.xlu1 %10109 }
 0x964   : > { %13471 = vset.pattern.permute.xlu1 %v19870_v43  ;;  %19932 = vst [vmem:[#allocation43_spill] sm:$0xff] %v17420_v18  ;;  %v7661_v18 = vld [vmem:[#allocation2 + $0xf] sm:$0xff] }
 0x965   : > { %10930 = vperm.xlu1 %13471, %v10037_v33  }
 0x969   : > { %13472 = vset.pattern.permute.xlu1 %v19869_v55 }
 0x96a   : > { %10361 = vperm.xlu1 %13472, %v10037_v33  }
 0x96e   : > { %10373 = vperm.xlu1 %13472, %v17163_v36   ;;  %v17422_v36 = vpop.permute.xlu1 %10710 }
 0x96f   : > { %19933 = vst [vmem:[#allocation44_spill] sm:$0xff] %v17422_v36 }
 0x972   : > { %13473 = vset.pattern.permute.xlu1 %v19870_v43  ;;  %v17424_v30 = vpop.permute.xlu1 %10121 }
 0x973   : > { %10963 = vperm.xlu1 %13473, %v10040_v46   ;;  %19934 = vst [vmem:[#allocation45_spill] sm:$0xff] %v17424_v30 }
 0x976   : > { %v17426_v20 = vpop.permute.xlu1 %10133 }
 0x977   : > { %13474 = vset.pattern.permute.xlu1 %v19869_v55  ;;  %19935 = vst [vmem:[#allocation46_spill] sm:$0xff] %v17426_v20 }
 0x978   : > { %10397 = vperm.xlu1 %13474, %v10040_v46  }
 0x97a   : > { %v17428_v59 = vpop.permute.xlu1 %10743 }
 0x97b   : > { %19936 = vst [vmem:[#allocation47_spill] sm:$0xff] %v17428_v59 }
 0x97c   : > { %13475 = vset.pattern.permute.xlu1 %v19870_v43 }
 0x97e   : > { %v17430_v34 = vpop.permute.xlu1 %10157 }
 0x97f   : > { %19937 = vst [vmem:[#allocation48_spill] sm:$0xff] %v17430_v34 }
 0x982   : > { %v17432_v19 = vpop.permute.xlu1 %10754 }
 0x983   : > { %19938 = vst [vmem:[#allocation49_spill] sm:$0xff] %v17432_v19 }
 0x986   : > { %v17434_v50 = vpop.permute.xlu1 %10169 }
 0x987   : > { %19939 = vst [vmem:[#allocation50_spill] sm:$0xff] %v17434_v50 }
 0x98a   : > { %v17436_v8 = vpop.permute.xlu1 %10181 }
 0x98b   : > { %19940 = vst [vmem:[#allocation51_spill] sm:$0xff] %v17436_v8 }
 0x98e   : > { %v17439_v3 = vpop.permute.xlu1 %10787 }
 0x98f   : > { %19941 = vst [vmem:[#allocation52_spill] sm:$0xff] %v17439_v3  ;;  %v7779_v3 = vrot.slane %v17109_v23, %v14071_v12 }
 0x993   : > { %v17443_v14 = vpop.permute.xlu1 %10205 }
 0x994   : > { %19942 = vst [vmem:[#allocation53_spill] sm:$0xff] %v17443_v14 }
 0x998   : > { %v17449_v32 = vpop.permute.xlu1 %10798 }
 0x999   : > { %19943 = vst [vmem:[#allocation54_spill] sm:$0xff] %v17449_v32 }
 0x99d   : > { %v17453_v0 = vpop.permute.xlu1 %10217 }
 0x99e   : > { %19944 = vst [vmem:[#allocation55_spill] sm:$0xff] %v17453_v0 }
 0x9a1   : > { %v17457_v33 = vpop.permute.xlu1 %10229 }
 0x9a2   : > { %19945 = vst [vmem:[#allocation56_spill] sm:$0xff] %v17457_v33  ;;  %v7743_v33 = vrot.slane %v17099_v9, %v14071_v12 }
 0x9c4   : > { %v13222_v4 = vpop.f32.mrf.mxu0 }
 0x9c5   : > { %7503 = vrot.lane.b32.xlu0 %v13222_v4, %s19886_s23 }
 0x9c6   : > { %v7340_v44 = vpop.f32.mrf.mxu0 }
 0x9c8   : > { %v13223_v35 = vpop.f32.mrf.mxu0 }
 0x9c9   : > { %7499 = vrot.lane.b32.xlu0 %v7340_v44, %s19886_s23  ;;  %7505 = vrot.lane.b32.xlu1 %v13223_v35, %s19886_s23  ;;  %v17463_v35 = vpop.permute.xlu1 %10831 }
 0x9ca   : > { %v7343_v37 = vpop.f32.mrf.mxu0  ;;  %19946 = vst [vmem:[#allocation57_spill] sm:$0xff] %v17463_v35 }
 0x9cc   : > { %v13226_v38 = vpop.f32.mrf.mxu0 }
 0x9cd   : > { %7501 = vrot.lane.b32.xlu1 %v7343_v37, %s19886_s23  ;;  %7511 = vrot.lane.b32.xlu0 %v13226_v38, %s19886_s23 }
 0x9ce   : > { %v7356_v24 = vpop.f32.mrf.mxu0 }
 0x9d0   : > { %v13227_v49 = vpop.f32.mrf.mxu0 }
 0x9d1   : > { %7507 = vrot.lane.b32.xlu0 %v7356_v24, %s19886_s23  ;;  %7513 = vrot.lane.b32.xlu1 %v13227_v49, %s19886_s23  ;;  %v17467_v24 = vpop.permute.xlu1 %10253 }
 0x9d2   : > { %v7359_v27 = vpop.f32.mrf.mxu0  ;;  %19947 = vst [vmem:[#allocation58_spill] sm:$0xff] %v17467_v24 }
 0x9d4   : > { %v13230_v51 = vpop.f32.mrf.mxu0 }
 0x9d5   : > { %7509 = vrot.lane.b32.xlu1 %v7359_v27, %s19886_s23  ;;  %7519 = vrot.lane.b32.xlu0 %v13230_v51, %s19886_s23  ;;  %v17471_v51 = vpop.permute.xlu0 %10688 }
 0x9d6   : > { %v7372_v56 = vpop.f32.mrf.mxu0  ;;  %19948 = vst [vmem:[#allocation59_spill] sm:$0xff] %v17471_v51 }
 0x9d8   : > { %v13231_v58 = vpop.f32.mrf.mxu0 }
 0x9d9   : > { %7515 = vrot.lane.b32.xlu0 %v7372_v56, %s19886_s23  ;;  %7521 = vrot.lane.b32.xlu1 %v13231_v58, %s19886_s23  ;;  %v17473_v58 = vpop.permute.xlu1 %10842 }
 0x9da   : > { %v7375_v11 = vpop.f32.mrf.mxu0  ;;  %19949 = vst [vmem:[#allocation60_spill] sm:$0xff] %v17473_v58 }
 0x9dc   : > { %v13234_v15 = vpop.f32.mrf.mxu0 }
 0x9dd   : > { %7517 = vrot.lane.b32.xlu1 %v7375_v11, %s19886_s23  ;;  %7527 = vrot.lane.b32.xlu0 %v13234_v15, %s19886_s23 }
 0x9de   : > { %v7388_v46 = vpop.f32.mrf.mxu0 }
 0x9e0   : > { %v13235_v4 = vpop.f32.mrf.mxu0 }
 0x9e1   : > { %7523 = vrot.lane.b32.xlu0 %v7388_v46, %s19886_s23  ;;  %7529 = vrot.lane.b32.xlu1 %v13235_v4, %s19886_s23  ;;  %v17477_v46 = vpop.permute.xlu0 %10721  ;;  %v17479_v4 = vpop.permute.xlu1 %10265 }
 0x9e2   : > { %v7391_v44 = vpop.f32.mrf.mxu0  ;;  %19950 = vst [vmem:[#allocation61_spill] sm:$0xff] %v17477_v46  ;;  %19951 = vst [vmem:[#allocation62_spill] sm:$0xff] %v17479_v4 }
 0x9e4   : > { %v13238_v37 = vpop.f32.mrf.mxu0 }
 0x9e5   : > { %7525 = vrot.lane.b32.xlu1 %v7391_v44, %s19886_s23  ;;  %7535 = vrot.lane.b32.xlu0 %v13238_v37, %s19886_s23 }
 0x9e6   : > { %v7404_v38 = vpop.f32.mrf.mxu0 }
 0x9e8   : > { %v13239_v49 = vpop.f32.mrf.mxu0 }
 0x9e9   : > { %7531 = vrot.lane.b32.xlu0 %v7404_v38, %s19886_s23  ;;  %7537 = vrot.lane.b32.xlu1 %v13239_v49, %s19886_s23  ;;  %v17485_v49 = vpop.permute.xlu0 %10732 }
 0x9ea   : > { %v7407_v27 = vpop.f32.mrf.mxu0  ;;  %19952 = vst [vmem:[#allocation63_spill] sm:$0xff] %v17485_v49 }
 0x9ec   : > { %v13242_v56 = vpop.f32.mrf.mxu0 }
 0x9ed   : > { %7533 = vrot.lane.b32.xlu1 %v7407_v27, %s19886_s23  ;;  %7543 = vrot.lane.b32.xlu0 %v13242_v56, %s19886_s23  ;;  %v17487_v27 = vpop.permute.xlu1 %10277  ;;  %v17491_v35 = vpop.permute.xlu0 %10765 }
 0x9ee   : > { %v7420_v11 = vpop.f32.mrf.mxu0  ;;  %19953 = vst [vmem:[#allocation64_spill] sm:$0xff] %v17487_v27  ;;  %19954 = vst [vmem:[#allocation65_spill] sm:$0xff] %v17491_v35 }
 0x9f0   : > { %v13243_v15 = vpop.f32.mrf.mxu0 }
 0x9f1   : > { %7539 = vrot.lane.b32.xlu0 %v7420_v11, %s19886_s23  ;;  %7545 = vrot.lane.b32.xlu1 %v13243_v15, %s19886_s23  ;;  %v17493_v15 = vpop.permute.xlu1 %10875 }
 0x9f2   : > { %v7423_v44 = vpop.f32.mrf.mxu0  ;;  %19955 = vst [vmem:[#allocation66_spill] sm:$0xff] %v17493_v15 }
 0x9f4   : > { %v13246_v37 = vpop.f32.mrf.mxu0 }
 0x9f5   : > { %7541 = vrot.lane.b32.xlu1 %v7423_v44, %s19886_s23  ;;  %7551 = vrot.lane.b32.xlu0 %v13246_v37, %s19886_s23  ;;  %v17497_v4 = vpop.permute.xlu1 %10301 }
 0x9f6   : > { %v7436_v38 = vpop.f32.mrf.mxu0  ;;  %19956 = vst [vmem:[#allocation67_spill] sm:$0xff] %v17497_v4 }
 0x9f8   : > { %v13247_v56 = vpop.f32.mrf.mxu0 }
 0x9f9   : > { %7547 = vrot.lane.b32.xlu0 %v7436_v38, %s19886_s23  ;;  %7553 = vrot.lane.b32.xlu1 %v13247_v56, %s19886_s23  ;;  %v17501_v56 = vpop.permute.xlu0 %10776  ;;  %v17504_v27 = vpop.permute.xlu1 %10886 }
 0x9fa   : > { %v7439_v58 = vpop.f32.mrf.mxu0  ;;  %19957 = vst [vmem:[#allocation68_spill] sm:$0xff] %v17501_v56  ;;  %19958 = vst [vmem:[#allocation69_spill] sm:$0xff] %v17504_v27  ;;  %v13571_v27 = vld [vmem:[%s19693_s9 + $0x30] sm:$0xff]  }
 0x9fc   : > { %v13250_v11 = vpop.f32.mrf.mxu0 }
 0x9fd   : > { %7549 = vrot.lane.b32.xlu1 %v7439_v58, %s19886_s23  ;;  %7559 = vrot.lane.b32.xlu0 %v13250_v11, %s19886_s23  ;;  %v17506_v15 = vpop.permute.xlu0 %10809  ;;  %v17508_v58 = vpop.permute.xlu1 %10313 }
 0x9fe   : > { %v7452_v44 = vpop.f32.mrf.mxu0  ;;  %19959 = vst [vmem:[#allocation70_spill] sm:$0xff] %v17506_v15  ;;  %19960 = vst [vmem:[#allocation71_spill] sm:$0xff] %v17508_v58 }
 0xa00   : > { %v13251_v37 = vpop.f32.mrf.mxu0 }
 0xa01   : > { %7555 = vrot.lane.b32.xlu0 %v7452_v44, %s19886_s23  ;;  %7561 = vrot.lane.b32.xlu1 %v13251_v37, %s19886_s23  ;;  %v17510_v11 = vpop.permute.xlu0 %10820  ;;  %v17512_v24 = vpop.permute.xlu1 %10325 }
 0xa02   : > { %v7455_v38 = vpop.f32.mrf.mxu0  ;;  %19961 = vst [vmem:[#allocation72_spill] sm:$0xff] %v17510_v11  ;;  %19962 = vst [vmem:[#allocation73_spill] sm:$0xff] %v17512_v24 }
 0xa05   : > { %7557 = vrot.lane.b32.xlu1 %v7455_v38, %s19886_s23  ;;  %v17514_v4 = vpop.permute.xlu0 %10853  ;;  %v17516_v44 = vpop.permute.xlu1 %10919  ;;  %v13570_v38 = vld [vmem:[%s19693_s9 + $0x38] sm:$0xff]  }
 0xa06   : > { %19963 = vst [vmem:[#allocation74_spill] sm:$0xff] %v17514_v4  ;;  %19964 = vst [vmem:[#allocation75_spill] sm:$0xff] %v17516_v44  ;;  %9791 = vmatpush1.bf16.msra.mxu1 %v13570_v38  ;;  %v13572_v44 = vld [vmem:[%s19693_s9 + $0x28] sm:$0xff]   ;;  %v8321_v4 = vrot.slane %v17211_v42, %v14071_v12 }
 0xa07   : > { %9792 = vmatprep.subr.bf16.mxu1 %v19869_v55 }
 0xa09   : > { %v17518_v37 = vpop.permute.xlu0 %10864  ;;  %v17520_v32 = vpop.permute.xlu1 %10349 }
 0xa0a   : > { %19965 = vst [vmem:[#allocation76_spill] sm:$0xff] %v17518_v37  ;;  %19966 = vst [vmem:[#allocation77_spill] sm:$0xff] %v17520_v32  ;;  %9793 = vmatpush1.bf16.msra.mxu1 %v13571_v27  ;;  %v13574_v27 = vld [vmem:[%s19693_s9 + $0x18] sm:$0xff]  }
 0xa0b   : > { %9794 = vmatprep.subr.bf16.mxu1 %v19869_v55 }
 0xa0d   : > { %v17529_v24 = vpop.permute.xlu0 %10897  ;;  %v17531_v58 = vpop.permute.xlu1 %10930 }
 0xa0e   : > { %19967 = vst [vmem:[#allocation78_spill] sm:$0xff] %v17529_v24  ;;  %19968 = vst [vmem:[#allocation79_spill] sm:$0xff] %v17531_v58  ;;  %9795 = vmatpush1.bf16.msra.mxu1 %v13572_v44  ;;  %v13573_v24 = vld [vmem:[%s19693_s9 + $0x20] sm:$0xff]   ;;  %v13575_v44 = vld [vmem:[%s19693_s9 + $0x10] sm:$0xff]  }
 0xa0f   : > { %9796 = vmatprep.subr.bf16.mxu1 %v19869_v55 }
 0xa11   : > { %v17537_v32 = vpop.permute.xlu1 %10361  ;;  %v17539_v38 = vpop.permute.xlu0 %10908 }
 0xa12   : > { %19969 = vst [vmem:[#allocation80_spill] sm:$0xff] %v17537_v32  ;;  %19970 = vst [vmem:[#allocation81_spill] sm:$0xff] %v17539_v38  ;;  %9797 = vmatpush1.bf16.msra.mxu1 %v13573_v24 }
 0xa13   : > { %9798 = vmatprep.subr.bf16.mxu1 %v19869_v55 }
 0xa15   : > { %v17545_v58 = vpop.permute.xlu1 %10373  ;;  %v17551_v37 = vpop.permute.xlu0 %10941 }
 0xa16   : > { %19971 = vst [vmem:[#allocation82_spill] sm:$0xff] %v17545_v58  ;;  %19972 = vst [vmem:[#allocation83_spill] sm:$0xff] %v17551_v37  ;;  %9799 = vmatpush1.bf16.msra.mxu1 %v13574_v27  ;;  %v13576_v58 = vld [vmem:[%s19693_s9 + $0x8] sm:$0xff]  }
 0xa17   : > { %9800 = vmatprep.subr.bf16.mxu1 %v19869_v55 }
 0xa19   : > { %v17557_v38 = vpop.permute.xlu1 %10963  ;;  %v17559_v24 = vpop.permute.xlu0 %10952 }
 0xa1a   : > { %19973 = vst [vmem:[#allocation84_spill] sm:$0xff] %v17557_v38  ;;  %9801 = vmatpush1.bf16.msra.mxu1 %v13575_v44  ;;  %19974 = vst [vmem:[#allocation85_spill] sm:$0xff] %v17559_v24  ;;  %v13577_v44 = vld [vmem:[%s19693_s9] sm:$0xff]  }
 0xa1b   : > { %9802 = vmatprep.subr.bf16.mxu1 %v19869_v55 }
 0xa1d   : > { %v17565_v32 = vpop.permute.xlu1 %10397 }
 0xa1e   : > { %19975 = vst [vmem:[#allocation86_spill] sm:$0xff] %v17565_v32  ;;  %9803 = vmatpush1.bf16.msra.mxu1 %v13576_v58  ;;  %v13578_v58 = vld [vmem:[%s19693_s9 + $0x68] ss:$0 sps:$4 sm:$0xff]  }
 0xa1f   : > { %9804 = vmatprep.subr.bf16.mxu1 %v19869_v55  ;;  %v9788_v32 = vsel %vm2797_vm3, %v13578_v58, 0 }
 0xa22   : > { %9805 = vmatpush1.bf16.msra.mxu1 %v13577_v44  ;;  %v8310_v44 = vrot.slane %v17127_v53, %v14071_v12 }
 0xa23   : > { %9810 = vmatprep.subr.bf16.mxu1 %v19869_v55 }
 0xa24   : > { %v17589_v53 = vcombine.low %v8310_v44, %v8321_v4  ;;  %v7755_v4 = vrot.slane %v17093_v2, %v14071_v12  ;;  %v13580_v44 = vld [vmem:[%s19693_s9 + $0x58] sm:$0xff]  }
 0xa26   : > { %9811 = vmatpush2.bf16.msra.mxu1 %v9788_v32 }
 0xa27   : > { %9812 = vmatprep.subr.bf16.mxu1 %v19869_v55 }
 0xa37   : > { %v7504_v27 = vpop.permute.xlu0 %7503 }
 0xa38   : > { %7598 = vst.msk [vmem:[#allocation2 + $0x28] sm:$0xff] %vm7595_vm14, %v7504_v27 }
 0xa3b   : > { %v7500_v24 = vpop.permute.xlu0 %7499  ;;  %v7506_v38 = vpop.permute.xlu1 %7505 }
 0xa3c   : > { %7599 = vst.msk [vmem:[#allocation2 + $0x30] sm:$0xff] %vm7595_vm14, %v7506_v38  ;;  %7596 = vst.msk [vmem:[#allocation2 + $0x18] sm:$0xff] %vm7595_vm14, %v7500_v24  ;;  %v13579_v38 = vld [vmem:[%s19693_s9 + $0x60] sm:$0xff]   ;;  %v8252_v24 = vld [vmem:[#allocation2 + $0x9] sm:$0xff] }
 0xa3d   : > { %9813 = vmatpush2.bf16.msra.mxu1 %v13579_v38 }
 0xa3e   : > { %9814 = vmatprep.subr.bf16.mxu1 %v19869_v55 }
 0xa3f   : > { %v7502_v27 = vpop.permute.xlu1 %7501  ;;  %v7512_v37 = vpop.permute.xlu0 %7511  ;;  %v8830_v32 = vld [vmem:[#allocation2 + $0x28] sm:$0xff] }
 0xa40   : > { %7597 = vst.msk [vmem:[#allocation2 + $0x20] sm:$0xff] %vm7595_vm14, %v7502_v27  ;;  %7602 = vst.msk [vmem:[#allocation2 + $0x48] sm:$0xff] %vm7595_vm14, %v7512_v37  ;;  %v7767_v27 = vrot.slane %v17107_v60, %v14071_v12 }
 0xa41   : > { %9815 = vmatpush2.bf16.msra.mxu1 %v13580_v44  ;;  %v7827_v44 = vrot.slane %v17175_v26, %v14071_v12 }
 0xa42   : > { %v17612_v14 = vcombine.low %v7767_v27, %v7779_v3  ;;  %9816 = vmatprep.subr.bf16.mxu1 %v19869_v55 }
 0xa43   : > { %v7508_v58 = vpop.permute.xlu0 %7507  ;;  %v7514_v11 = vpop.permute.xlu1 %7513  ;;  %v8831_v15 = vld [vmem:[#allocation2 + $0x30] sm:$0xff] }
 0xa44   : > { %v8253_v56 = vld [vmem:[#allocation2 + $0x11] sm:$0xff]  ;;  %v8861_v42 = vpack.c.bf16 %v8831_v15, %v8830_v32  ;;  %7600 = vst.msk [vmem:[#allocation2 + $0x38] sm:$0xff] %vm7595_vm14, %v7508_v58  ;;  %7603 = vst.msk [vmem:[#allocation2 + $0x50] sm:$0xff] %vm7595_vm14, %v7514_v11 }
 0xa45   : > { %v8284_v37 = vpack.c.bf16 %v8253_v56, %v8252_v24  ;;  %v8828_v11 = vld [vmem:[#allocation2 + $0x18] sm:$0xff]  ;;  %v8767_v0 = vld [vmem:[#allocation2 + $0x2f] sm:$0xff] }
 0xa46   : > { %9143 = vrot.lane.b32.xlu0 %v8861_v42, %s19976_s7  ;;  %v8764_v56 = vld [vmem:[#allocation2 + $0x17] sm:$0xff] }
 0xa47   : > { %v8748_v15 = vmul.bf16 %v17589_v53, %v8284_v37  ;;  %v7510_v60 = vpop.permute.xlu1 %7509  ;;  %v7520_v38 = vpop.permute.xlu0 %7519  ;;  %v8829_v24 = vld [vmem:[#allocation2 + $0x20] sm:$0xff] }
 0xa48   : > { %v8876_v23 = vld [vmem:[#allocation2 + $0x19] sm:$0xff]  ;;  %v8877_v58 = vld [vmem:[#allocation2 + $0x21] sm:$0xff]  ;;  %7601 = vst.msk [vmem:[#allocation2 + $0x40] sm:$0xff] %vm7595_vm14, %v7510_v60  ;;  %7606 = vst.msk [vmem:[#allocation2 + $0x68] sm:$0xff] %vm7595_vm14, %v7520_v38  ;;  %v8860_v2 = vpack.c.bf16 %v8829_v24, %v8828_v11  ;;  %v7719_v11 = vrot.slane %v17082_v29, %v14071_v12  ;;  %v17626_v38 = vcombine.low %v7743_v33, %v7755_v4 }
 0xa49   : > { %9045 = vrot.lane.b32.xlu1 %v8748_v15, %s19892_s4  ;;  %v17610_v9 = vpack.c.bf16 %v8877_v58, %v8876_v23  ;;  %v8765_v32 = vld [vmem:[#allocation2 + $0x1f] sm:$0xff]  ;;  %v8766_v37 = vld [vmem:[#allocation2 + $0x27] sm:$0xff]  ;;  %v13581_v60 = vld [vmem:[%s19693_s9 + $0x50] sm:$0xff]   ;;  %v7731_v15 = vrot.slane %v17090_v17, %v14071_v12  ;;  %v7791_v23 = vrot.slane %v17117_v54, %v14071_v12  ;;  %v7803_v58 = vrot.slane %v17119_v22, %v14071_v12 }
 0xa4a   : > { %v17614_v35 = vpack.c.bf16 %v8765_v32, %v8764_v56  ;;  %v17616_v19 = vpack.c.bf16 %v8767_v0, %v8766_v37  ;;  %9141 = vrot.lane.b32.xlu0 %v8860_v2, %s19976_s7  ;;  %9817 = vmatpush2.bf16.msra.mxu1 %v13581_v60  ;;  %v13582_v33 = vld [vmem:[%s19693_s9 + $0x48] sm:$0xff]   ;;  %v7815_v56 = vrot.slane %v17129_v45, %v14071_v12 }
 0xa4b   : > { %v7516_v3 = vpop.permute.xlu0 %7515  ;;  %v7522_v27 = vpop.permute.xlu1 %7521  ;;  %v8924_v17 = vmul.bf16 %v17589_v53, %v17610_v9  ;;  %9818 = vmatprep.subr.bf16.mxu1 %v19869_v55  ;;  %v17642_v4 = vcombine.low %v7719_v11, %v7731_v15  ;;  %v8771_v24 = vld [vmem:[#allocation2 + $0x4f] sm:$0xff]  ;;  %v8768_v26 = vld [vmem:[#allocation2 + $0x37] sm:$0xff]  ;;  %v8332_v54 = vrot.slane %v17137_v52, %v14071_v12  ;;  %v8343_v22 = vrot.slane %v17147_v1, %v14071_v12 }
 0xa4c   : > { %7604 = vst.msk [vmem:[#allocation2 + $0x58] sm:$0xff] %vm7595_vm14, %v7516_v3  ;;  %7607 = vst.msk [vmem:[#allocation2 + $0x70] sm:$0xff] %vm7595_vm14, %v7522_v27  ;;  %v8879_v11 = vld [vmem:[#allocation2 + $0x31] sm:$0xff]  ;;  %v17673_v52 = vcombine.low %v7791_v23, %v7803_v58  ;;  %v7863_v23 = vrot.slane %v17144_v39, %v14071_v12 }
 0xa4d   : > { %9270 = vrot.lane.b32.xlu1 %v8861_v42, %s19891_s1  ;;  %v8812_v45 = vmul.bf16 %v17642_v4, %v17614_v35 }
 0xa4e   : > { %9189 = vrot.lane.b32.xlu0 %v8924_v17, %s13621_s24  ;;  %9819 = vmatpush2.bf16.msra.mxu1 %v13582_v33  ;;  %v17670_v17 = vcombine.low %v7815_v56, %v7827_v44  ;;  %v17684_v44 = vcombine.low %v8332_v54, %v8343_v22 }
 0xa4f   : > { %v7518_v32 = vpop.permute.xlu1 %7517  ;;  %v7528_v37 = vpop.permute.xlu0 %7527  ;;  %v8769_v60 = vld [vmem:[#allocation2 + $0x3f] sm:$0xff]  ;;  %v8770_v15 = vld [vmem:[#allocation2 + $0x47] sm:$0xff]  ;;  %9820 = vmatprep.subr.bf16.mxu1 %v19869_v55 }
 0xa50   : > { %7605 = vst.msk [vmem:[#allocation2 + $0x60] sm:$0xff] %vm7595_vm14, %v7518_v32  ;;  %7610 = vst.msk [vmem:[#allocation2 + $0x88] sm:$0xff] %vm7595_vm14, %v7528_v37  ;;  %v17662_v3 = vpack.c.bf16 %v8769_v60, %v8768_v26  ;;  %v17664_v27 = vpack.c.bf16 %v8771_v24, %v8770_v15  ;;  %v8878_v32 = vld [vmem:[#allocation2 + $0x29] sm:$0xff]  ;;  %v8813_v24 = vmul.bf16 %v17626_v38, %v17616_v19 }
 0xa51   : > { %9001 = vrot.lane.b32.xlu1 %v8861_v42, %s19890_s14  ;;  %v13583_v42 = vld [vmem:[%s19693_s9 + $0x40] sm:$0xff]   ;;  %v17680_v37 = vpack.c.bf16 %v8879_v11, %v8878_v32  ;;  %v7875_v26 = vrot.slane %v17196_v21, %v14071_v12  ;;  %v8943_v60 = vmul.bf16 %v17642_v4, %v17616_v19  ;;  %v8834_v11 = vld [vmem:[#allocation2 + $0x48] sm:$0xff] }
 0xa52   : > { %9093 = vrot.lane.b32.xlu0 %v8812_v45, %s13622_s27  ;;  %9821 = vmatpush2.bf16.msra.mxu1 %v13583_v42  ;;  %v7851_v45 = vrot.slane %v17188_v7, %v14071_v12  ;;  %v8835_v42 = vld [vmem:[#allocation2 + $0x50] sm:$0xff] }
 0xa53   : > { %v7524_v33 = vpop.permute.xlu0 %7523  ;;  %v7530_v1 = vpop.permute.xlu1 %7529  ;;  %v8772_v15 = vld [vmem:[#allocation2 + $0x57] sm:$0xff]  ;;  %v8775_v54 = vld [vmem:[#allocation2 + $0x6f] sm:$0xff] }
 0xa54   : > { %7608 = vst.msk [vmem:[#allocation2 + $0x78] sm:$0xff] %vm7595_vm14, %v7524_v33  ;;  %7611 = vst.msk [vmem:[#allocation2 + $0x90] sm:$0xff] %vm7595_vm14, %v7530_v1  ;;  %v8836_v0 = vld [vmem:[#allocation2 + $0x58] sm:$0xff] }
 0xa55   : > { %8999 = vrot.lane.b32.xlu1 %v8860_v2, %s19890_s14  ;;  %v7839_v2 = vrot.slane %v17186_v6, %v14071_v12  ;;  %v8925_v6 = vmul.bf16 %v17684_v44, %v17680_v37 }
 0xa56   : > { %9095 = vrot.lane.b32.xlu0 %v8813_v24, %s13622_s27  ;;  %v17710_v24 = vcombine.low %v7863_v23, %v7875_v26  ;;  %v17722_v23 = vpack.c.bf16 %v8835_v42, %v8834_v11  ;;  %v8833_v26 = vld [vmem:[#allocation2 + $0x40] sm:$0xff] }
 0xa57   : > { %v7526_v39 = vpop.permute.xlu1 %7525  ;;  %v7536_v22 = vpop.permute.xlu0 %7535  ;;  %v8773_v7 = vld [vmem:[#allocation2 + $0x5f] sm:$0xff]  ;;  %v8774_v21 = vld [vmem:[#allocation2 + $0x67] sm:$0xff]  ;;  %v17708_v32 = vcombine.low %v7839_v2, %v7851_v45  ;;  %v7911_v45 = vrot.slane %v17157_v40, %v14071_v12 }
 0xa58   : > { %7609 = vst.msk [vmem:[#allocation2 + $0x80] sm:$0xff] %vm7595_vm14, %v7526_v39  ;;  %7614 = vst.msk [vmem:[#allocation2 + $0xa8] sm:$0xff] %vm7595_vm14, %v7536_v22  ;;  %v17704_v33 = vpack.c.bf16 %v8773_v7, %v8772_v15  ;;  %v17706_v1 = vpack.c.bf16 %v8775_v54, %v8774_v21  ;;  %v8365_v39 = vrot.slane %v17154_v48, %v14071_v12  ;;  %v8832_v2 = vld [vmem:[#allocation2 + $0x38] sm:$0xff]  ;;  %v8881_v54 = vld [vmem:[#allocation2 + $0x41] sm:$0xff] }
 0xa59   : > { %9237 = vrot.lane.b32.xlu1 %v8943_v60, %s19889_s25  ;;  %19978 = vst [vmem:[#allocation88_spill] sm:$0xff] %v17710_v24  ;;  %v8749_v60 = vmul.bf16 %v17684_v44, %v17610_v9  ;;  %v8354_v15 = vrot.slane %v17216_v63, %v14071_v12  ;;  %v8880_v63 = vld [vmem:[#allocation2 + $0x39] sm:$0xff]  ;;  %v7923_v7 = vrot.slane %v17218_v10, %v14071_v12 }
 0xa5a   : > { %19977 = vst [vmem:[#allocation87_spill] sm:$0xff] %v17706_v1  ;;  %9191 = vrot.lane.b32.xlu0 %v8925_v6, %s13621_s24  ;;  %v7899_v6 = vrot.slane %v17206_v5, %v14071_v12  ;;  %v8965_v21 = vmul.bf16 %v17589_v53, %v17680_v37  ;;  %v17747_v5 = vpack.c.bf16 %v8881_v54, %v8880_v63  ;;  %v8837_v29 = vld [vmem:[#allocation2 + $0x60] sm:$0xff] }
 0xa5b   : > { %v7532_v22 = vpop.permute.xlu0 %7531  ;;  %v7538_v56 = vpop.permute.xlu1 %7537  ;;  %v8776_v11 = vld [vmem:[#allocation2 + $0x77] sm:$0xff]  ;;  %v8779_v40 = vld [vmem:[#allocation2 + $0x8f] sm:$0xff]  ;;  %v7959_v54 = vrot.slane %v17179_v61, %v14071_v12 }
 0xa5c   : > { %7612 = vst.msk [vmem:[#allocation2 + $0x98] sm:$0xff] %vm7595_vm14, %v7532_v22  ;;  %7615 = vst.msk [vmem:[#allocation2 + $0xb0] sm:$0xff] %vm7595_vm14, %v7538_v56  ;;  %v7887_v56 = vrot.slane %v17204_v28, %v14071_v12  ;;  %v17740_v22 = vcombine.low %v8354_v15, %v8365_v39  ;;  %v17745_v28 = vpack.c.bf16 %v8833_v26, %v8832_v2 }
 0xa5d   : > { %9047 = vrot.lane.b32.xlu1 %v8749_v60, %s19892_s4  ;;  %v17755_v39 = vcombine.low %v7911_v45, %v7923_v7 }
 0xa5e   : > { %9147 = vrot.lane.b32.xlu0 %v17722_v23, %s19976_s7  ;;  %v17753_v58 = vcombine.low %v7887_v56, %v7899_v6  ;;  %v8750_v15 = vmul.bf16 %v17740_v22, %v17680_v37  ;;  %v7935_v37 = vrot.slane %v17173_v62, %v14071_v12  ;;  %v7947_v56 = vrot.slane %v17228_v47, %v14071_v12 }
 0xa5f   : > { %v7534_v42 = vpop.permute.xlu1 %7533  ;;  %v7544_v60 = vpop.permute.xlu0 %7543  ;;  %v8777_v10 = vld [vmem:[#allocation2 + $0x7f] sm:$0xff]  ;;  %v8778_v9 = vld [vmem:[#allocation2 + $0x87] sm:$0xff]  ;;  %v7971_v6 = vrot.slane %v17236_v31, %v14071_v12  ;;  %v8814_v62 = vmul.bf16 %v17612_v14, %v17662_v3  ;;  %v8883_v31 = vld [vmem:[#allocation2 + $0x51] sm:$0xff] }
 0xa60   : > { %7613 = vst.msk [vmem:[#allocation2 + $0xa0] sm:$0xff] %vm7595_vm14, %v7534_v42  ;;  %7618 = vst.msk [vmem:[#allocation2 + $0xc8] sm:$0xff] %vm7595_vm14, %v7544_v60  ;;  %v17749_v48 = vpack.c.bf16 %v8777_v10, %v8776_v11  ;;  %v17751_v53 = vpack.c.bf16 %v8779_v40, %v8778_v9  ;;  %v8926_v9 = vmul.bf16 %v17740_v22, %v17747_v5  ;;  %v8882_v42 = vld [vmem:[#allocation2 + $0x49] sm:$0xff] }
 0xa61   : > { %9318 = vrot.lane.b32.xlu1 %v8965_v21, %s19842_s22 }
 0xa62   : > { %19979 = vst [vmem:[#allocation89_spill] sm:$0xff] %v17749_v48  ;;  %19980 = vst [vmem:[#allocation90_spill] sm:$0xff] %v17751_v53  ;;  %9145 = vrot.lane.b32.xlu0 %v17745_v28, %s19976_s7 }
 0xa63   : > { %v7540_v2 = vpop.permute.xlu0 %7539  ;;  %v7546_v26 = vpop.permute.xlu1 %7545  ;;  %v8780_v7 = vld [vmem:[#allocation2 + $0x97] sm:$0xff]  ;;  %v8783_v21 = vld [vmem:[#allocation2 + $0xaf] sm:$0xff] }
 0xa64   : > { %7616 = vst.msk [vmem:[#allocation2 + $0xb8] sm:$0xff] %vm7595_vm14, %v7540_v2  ;;  %7619 = vst.msk [vmem:[#allocation2 + $0xd0] sm:$0xff] %vm7595_vm14, %v7546_v26  ;;  %v8376_v2 = vrot.slane %v17220_v16, %v14071_v12  ;;  %v17793_v26 = vcombine.low %v7935_v37, %v7947_v56  ;;  %v8839_v16 = vld [vmem:[#allocation2 + $0x70] sm:$0xff] }
 0xa65   : > { %9049 = vrot.lane.b32.xlu1 %v8750_v15, %s19892_s4  ;;  %v8387_v15 = vrot.slane %v17165_v25, %v14071_v12  ;;  %v8815_v25 = vmul.bf16 %v17673_v52, %v17664_v27  ;;  %v19986_v37 = vld [vmem:[#allocation21_spill] sm:$0xff] }
 0xa66   : > { %9193 = vrot.lane.b32.xlu0 %v8926_v9, %s13621_s24  ;;  %v17795_v9 = vcombine.low %v7959_v54, %v7971_v6  ;;  %v19983_v54 = vld [vmem:[#allocation20_spill] sm:$0xff]  ;;  %v8007_v45 = vrot.slane %v19986_v37, %v14071_v12 }
 0xa67   : > { %v7542_v11 = vpop.permute.xlu1 %7541  ;;  %v7552_v40 = vpop.permute.xlu0 %7551  ;;  %v8781_v61 = vld [vmem:[#allocation2 + $0x9f] sm:$0xff]  ;;  %v8782_v47 = vld [vmem:[#allocation2 + $0xa7] sm:$0xff]  ;;  %v7983_v56 = vrot.slane %v19983_v54, %v14071_v12  ;;  %v17812_v6 = vcombine.low %v8376_v2, %v8387_v15 }
 0xa68   : > { %7617 = vst.msk [vmem:[#allocation2 + $0xc0] sm:$0xff] %vm7595_vm14, %v7542_v11  ;;  %7622 = vst.msk [vmem:[#allocation2 + $0xe8] sm:$0xff] %vm7595_vm14, %v7552_v40  ;;  %v17785_v60 = vpack.c.bf16 %v8781_v61, %v8780_v7  ;;  %v17787_v10 = vpack.c.bf16 %v8783_v21, %v8782_v47  ;;  %v17804_v7 = vpack.c.bf16 %v8883_v31, %v8882_v42  ;;  %v19984_v21 = vld [vmem:[#allocation22_spill] sm:$0xff]  ;;  %v8850_v30 = vld [vmem:[#allocation2 + $0xc8] sm:$0xff] }
 0xa69   : > { %9274 = vrot.lane.b32.xlu1 %v17722_v23, %s19891_s1 }
 0xa6a   : > { %19981 = vst [vmem:[#allocation91_spill] sm:$0xff] %v17785_v60  ;;  %19982 = vst [vmem:[#allocation92_spill] sm:$0xff] %v17787_v10  ;;  %9097 = vrot.lane.b32.xlu0 %v8814_v62, %s13622_s27  ;;  %v7995_v62 = vrot.slane %v19984_v21, %v14071_v12  ;;  %v8927_v15 = vmul.bf16 %v17812_v6, %v17804_v7  ;;  %v8821_v34 = vmul.bf16 %v17793_v26, %v17787_v10 }
 0xa6b   : > { %v7548_v11 = vpop.permute.xlu0 %7547  ;;  %v7554_v40 = vpop.permute.xlu1 %7553  ;;  %v8784_v47 = vld [vmem:[#allocation2 + $0xb7] sm:$0xff]  ;;  %v8787_v42 = vld [vmem:[#allocation2 + $0xcf] sm:$0xff] }
 0xa6c   : > { %7620 = vst.msk [vmem:[#allocation2 + $0xd8] sm:$0xff] %vm7595_vm14, %v7548_v11  ;;  %7623 = vst.msk [vmem:[#allocation2 + $0xf0] sm:$0xff] %vm7595_vm14, %v7554_v40  ;;  %v8838_v40 = vld [vmem:[#allocation2 + $0x68] sm:$0xff] }
 0xa6d   : > { %9005 = vrot.lane.b32.xlu1 %v17722_v23, %s19890_s14  ;;  %v19985_v23 = vld [vmem:[#allocation27_spill] sm:$0xff]  ;;  %v17836_v37 = vpack.c.bf16 %v8839_v16, %v8838_v40  ;;  %v19989_v16 = vld [vmem:[#allocation16_spill] sm:$0xff] }
 0xa6e   : > { %v8019_v61 = vrot.slane %v19985_v23, %v14071_v12  ;;  %9099 = vrot.lane.b32.xlu0 %v8815_v25, %s13622_s27  ;;  %v17831_v23 = vcombine.low %v7983_v56, %v7995_v62  ;;  %v8398_v62 = vrot.slane %v19989_v16, %v14071_v12  ;;  %v8885_v40 = vld [vmem:[#allocation2 + $0x61] sm:$0xff] }
 0xa6f   : > { %v7550_v31 = vpop.permute.xlu1 %7549  ;;  %v7560_v11 = vpop.permute.xlu0 %7559  ;;  %v8785_v2 = vld [vmem:[#allocation2 + $0xbf] sm:$0xff]  ;;  %v8786_v25 = vld [vmem:[#allocation2 + $0xc7] sm:$0xff] }
 0xa70   : > { %7621 = vst.msk [vmem:[#allocation2 + $0xe0] sm:$0xff] %vm7595_vm14, %v7550_v31  ;;  %7626 = vst.msk [vmem:[#allocation2 + $0x108] sm:$0xff] %vm7595_vm14, %v7560_v11  ;;  %v17827_v54 = vpack.c.bf16 %v8785_v2, %v8784_v47  ;;  %v17829_v21 = vpack.c.bf16 %v8787_v42, %v8786_v25  ;;  %v17833_v63 = vcombine.low %v8007_v45, %v8019_v61  ;;  %v19990_v61 = vld [vmem:[#allocation13_spill] sm:$0xff]  ;;  %v8884_v42 = vld [vmem:[#allocation2 + $0x59] sm:$0xff] }
 0xa71   : > { %9272 = vrot.lane.b32.xlu1 %v17745_v28, %s19891_s1  ;;  %v8409_v47 = vrot.slane %v19990_v61, %v14071_v12  ;;  %v19992_v25 = vld [vmem:[#allocation35_spill] sm:$0xff]  ;;  %v19993_v61 = vld [vmem:[#allocation26_spill] sm:$0xff] }
 0xa72   : > { %19987 = vst [vmem:[#allocation20_spill] sm:$0xff] %v17827_v54  ;;  %19988 = vst [vmem:[#allocation22_spill] sm:$0xff] %v17829_v21  ;;  %9195 = vrot.lane.b32.xlu0 %v8927_v15, %s13621_s24  ;;  %v19991_v15 = vld [vmem:[#allocation31_spill] sm:$0xff]  ;;  %v8031_v13 = vrot.slane %v19993_v61, %v14071_v12 }
 0xa73   : > { %v7556_v31 = vpop.permute.xlu0 %7555  ;;  %v7562_v11 = vpop.permute.xlu1 %7561  ;;  %v8043_v2 = vrot.slane %v19991_v15, %v14071_v12  ;;  %v8788_v16 = vld [vmem:[#allocation2 + $0xd7] sm:$0xff]  ;;  %v8791_v56 = vld [vmem:[#allocation2 + $0xef] sm:$0xff]  ;;  %v8055_v15 = vrot.slane %v19994_v57, %v14071_v12  ;;  %v8966_v57 = vmul.bf16 %v17684_v44, %v17747_v5 }
 0xa74   : > { %7624 = vst.msk [vmem:[#allocation2 + $0xf8] sm:$0xff] %vm7595_vm14, %v7556_v31  ;;  %7627 = vst.msk [vmem:[#allocation2 + $0x110] sm:$0xff] %vm7595_vm14, %v7562_v11  ;;  %v8944_v31 = vmul.bf16 %v17626_v38, %v17662_v3  ;;  %v17858_v11 = vpack.c.bf16 %v8837_v29, %v8836_v0  ;;  %v17872_v29 = vcombine.low %v8398_v62, %v8409_v47  ;;  %v19996_v47 = vld [vmem:[#allocation9_spill] sm:$0xff] }
 0xa75   : > { %9003 = vrot.lane.b32.xlu1 %v17745_v28, %s19890_s14  ;;  %v8067_v28 = vrot.slane %v19992_v25, %v14071_v12  ;;  %v17866_v25 = vpack.c.bf16 %v8885_v40, %v8884_v42  ;;  %v17874_v59 = vcombine.low %v8031_v13, %v8043_v2  ;;  %v8945_v62 = vmul.bf16 %v17612_v14, %v17664_v27 }
 0xa76   : > { %9151 = vrot.lane.b32.xlu0 %v17836_v37, %s19976_s7  ;;  %v8079_v42 = vrot.slane %v19996_v47, %v14071_v12  ;;  %v8816_v40 = vmul.bf16 %v17670_v17, %v17704_v33  ;;  %v8817_v47 = vmul.bf16 %v17708_v32, %v17706_v1 }
 0xa77   : > { %v7558_v45 = vpop.permute.xlu1 %7557  ;;  %v8789_v49 = vld [vmem:[#allocation2 + $0xdf] sm:$0xff]  ;;  %v8790_v8 = vld [vmem:[#allocation2 + $0xe7] sm:$0xff]  ;;  %v17876_v61 = vcombine.low %v8055_v15, %v8067_v28  ;;  %v19997_v15 = vld [vmem:[#allocation25_spill] sm:$0xff] }
 0xa78   : > { %7625 = vst.msk [vmem:[#allocation2 + $0x100] sm:$0xff] %vm7595_vm14, %v7558_v45  ;;  %v17868_v50 = vpack.c.bf16 %v8789_v49, %v8788_v16  ;;  %v17870_v0 = vpack.c.bf16 %v8791_v56, %v8790_v8  ;;  %v8928_v49 = vmul.bf16 %v17872_v29, %v17866_v25  ;;  %v19995_v56 = vld [vmem:[#allocation38_spill] sm:$0xff]  ;;  %v8886_v28 = vld [vmem:[#allocation2 + $0x69] sm:$0xff] }
 0xa79   : > { %9239 = vrot.lane.b32.xlu1 %v8944_v31, %s19889_s25  ;;  %v8091_v45 = vrot.slane %v19995_v56, %v14071_v12  ;;  %v8887_v31 = vld [vmem:[#allocation2 + $0x71] sm:$0xff] }
 0xa7a   : > { %9149 = vrot.lane.b32.xlu0 %v17858_v11, %s19976_s7 }
 0xa7b   : > { %v8792_v44 = vld [vmem:[#allocation2 + $0xf7] sm:$0xff]  ;;  %v17905_v8 = vcombine.low %v8079_v42, %v8091_v45  ;;  %v8967_v45 = vmul.bf16 %v17740_v22, %v17804_v7  ;;  %v8842_v42 = vld [vmem:[#allocation2 + $0x88] sm:$0xff] }
 0xa7c   : > { %v8888_v22 = vld [vmem:[#allocation2 + $0x79] sm:$0xff] }
 0xa7d   : > { %9320 = vrot.lane.b32.xlu1 %v8966_v57, %s19842_s22  ;;  %v8431_v57 = vrot.slane %v19997_v15, %v14071_v12 }
 0xa7e   : > { %9197 = vrot.lane.b32.xlu0 %v8928_v49, %s13621_s24  ;;  %v19998_v49 = vld [vmem:[#allocation6_spill] sm:$0xff] }
 0xa7f   : > { %v8793_v2 = vld [vmem:[#allocation2 + $0xff] sm:$0xff]  ;;  %v8420_v56 = vrot.slane %v19998_v49, %v14071_v12 }
 0xa80   : > { %v17899_v16 = vpack.c.bf16 %v8793_v2, %v8792_v44  ;;  %v17913_v44 = vpack.c.bf16 %v8887_v31, %v8886_v28  ;;  %v8752_v28 = vmul.bf16 %v17872_v29, %v17804_v7  ;;  %v8841_v49 = vld [vmem:[#allocation2 + $0x80] sm:$0xff]  ;;  %v8847_v2 = vld [vmem:[#allocation2 + $0xb0] sm:$0xff] }
 0xa81   : > { %9241 = vrot.lane.b32.xlu1 %v8945_v62, %s19889_s25  ;;  %v8751_v62 = vmul.bf16 %v17812_v6, %v17747_v5  ;;  %v17917_v15 = vcombine.low %v8420_v56, %v8431_v57  ;;  %v8840_v57 = vld [vmem:[#allocation2 + $0x78] sm:$0xff]  ;;  %v8889_v56 = vld [vmem:[#allocation2 + $0x81] sm:$0xff] }
 0xa82   : > { %9101 = vrot.lane.b32.xlu0 %v8816_v40, %s13622_s27  ;;  %v8843_v40 = vld [vmem:[#allocation2 + $0x90] sm:$0xff]  ;;  %v17937_v7 = vpack.c.bf16 %v8841_v49, %v8840_v57 }
 0xa83   : > { %v8929_v5 = vmul.bf16 %v17917_v15, %v17913_v44  ;;  %v8867_v31 = vpack.c.bf16 %v8843_v40, %v8842_v42  ;;  %v17941_v42 = vpack.c.bf16 %v8889_v56, %v8888_v22  ;;  %v8890_v57 = vld [vmem:[#allocation2 + $0x89] sm:$0xff]  ;;  %v8891_v49 = vld [vmem:[#allocation2 + $0x91] sm:$0xff]  ;;  %v20001_v22 = vld [vmem:[#allocation19_spill] sm:$0xff] }
 0xa84   : > { %v8475_v56 = vrot.slane %v20001_v22, %v14071_v12  ;;  %v8968_v22 = vmul.bf16 %v17812_v6, %v17866_v25  ;;  %v8753_v6 = vmul.bf16 %v17917_v15, %v17866_v25  ;;  %v20004_v25 = vld [vmem:[#allocation11_spill] sm:$0xff] }
 0xa85   : > { %9051 = vrot.lane.b32.xlu1 %v8751_v62, %s19892_s4  ;;  %v19999_v62 = vld [vmem:[#allocation10_spill] sm:$0xff] }
 0xa86   : > { %9103 = vrot.lane.b32.xlu0 %v8817_v47, %s13622_s27  ;;  %v8442_v47 = vrot.slane %v19999_v62, %v14071_v12  ;;  %v20002_v62 = vld [vmem:[#allocation14_spill] sm:$0xff] }
 0xa89   : > { %9322 = vrot.lane.b32.xlu1 %v8967_v45, %s19842_s22  ;;  %v20000_v45 = vld [vmem:[#allocation8_spill] sm:$0xff] }
 0xa8a   : > { %9199 = vrot.lane.b32.xlu0 %v8929_v5, %s13621_s24  ;;  %v8453_v5 = vrot.slane %v20000_v45, %v14071_v12  ;;  %v8946_v45 = vmul.bf16 %v17673_v52, %v17704_v33 }
 0xa8c   : > { %v17943_v40 = vcombine.low %v8442_v47, %v8453_v5  ;;  %v8464_v47 = vrot.slane %v20002_v62, %v14071_v12  ;;  %v17966_v5 = vpack.c.bf16 %v8891_v49, %v8890_v57  ;;  %v8846_v62 = vld [vmem:[#allocation2 + $0xa8] sm:$0xff]  ;;  %v8947_v57 = vmul.bf16 %v17670_v17, %v17706_v1 }
 0xa8d   : > { %9053 = vrot.lane.b32.xlu1 %v8752_v28, %s19892_s4  ;;  %v17980_v49 = vpack.c.bf16 %v8847_v2, %v8846_v62  ;;  %v8854_v1 = vld [vmem:[#allocation2 + $0xe8] sm:$0xff] }
 0xa8e   : > { %9155 = vrot.lane.b32.xlu0 %v8867_v31, %s19976_s7  ;;  %v8930_v28 = vmul.bf16 %v17943_v40, %v17941_v42 }
 0xa91   : > { %9278 = vrot.lane.b32.xlu1 %v17836_v37, %s19891_s1 }
 0xa92   : > { %9013 = vrot.lane.b32.xlu0 %v8867_v31, %s19890_s14 }
 0xa95   : > { %9009 = vrot.lane.b32.xlu1 %v17836_v37, %s19890_s14  ;;  %v8818_v37 = vmul.bf16 %v17710_v24, %v17749_v48 }
 0xa96   : > { %9153 = vrot.lane.b32.xlu0 %v17937_v7, %s19976_s7 }
 0xa99   : > { %9276 = vrot.lane.b32.xlu1 %v17858_v11, %s19891_s1 }
 0xa9a   : > { %9201 = vrot.lane.b32.xlu0 %v8930_v28, %s13621_s24  ;;  %v17968_v28 = vcombine.low %v8464_v47, %v8475_v56  ;;  %v8844_v56 = vld [vmem:[#allocation2 + $0x98] sm:$0xff]  ;;  %v8845_v47 = vld [vmem:[#allocation2 + $0xa0] sm:$0xff] }
 0xa9b   : > { %v17992_v2 = vpack.c.bf16 %v8845_v47, %v8844_v56 }
 0xa9d   : > { %9007 = vrot.lane.b32.xlu1 %v17858_v11, %s19890_s14  ;;  %v8819_v11 = vmul.bf16 %v17753_v58, %v17751_v53 }
 0xa9e   : > { %9105 = vrot.lane.b32.xlu0 %v8818_v37, %s13622_s27  ;;  %v8931_v37 = vmul.bf16 %v17968_v28, %v17966_v5 }
 0xaa1   : > { %9243 = vrot.lane.b32.xlu1 %v8946_v45, %s19889_s25  ;;  %v8969_v45 = vmul.bf16 %v17872_v29, %v17913_v44 }
 0xaa2   : > { %9107 = vrot.lane.b32.xlu0 %v8819_v11, %s13622_s27  ;;  %v8892_v11 = vld [vmem:[#allocation2 + $0x99] sm:$0xff] }
 0xaa5   : > { %9324 = vrot.lane.b32.xlu1 %v8968_v22, %s19842_s22  ;;  %v8893_v22 = vld [vmem:[#allocation2 + $0xa1] sm:$0xff] }
 0xaa6   : > { %9203 = vrot.lane.b32.xlu0 %v8931_v37, %s13621_s24  ;;  %v20003_v37 = vld [vmem:[#allocation17_spill] sm:$0xff]  ;;  %v18003_v29 = vpack.c.bf16 %v8893_v22, %v8892_v11  ;;  %v8820_v11 = vmul.bf16 %v17755_v39, %v17785_v60  ;;  %v8894_v22 = vld [vmem:[#allocation2 + $0xa9] sm:$0xff] }
 0xaa7   : > { %v8486_v62 = vrot.slane %v20003_v37, %v14071_v12 }
 0xaa9   : > { %9245 = vrot.lane.b32.xlu1 %v8947_v57, %s19889_s25  ;;  %v8497_v57 = vrot.slane %v20004_v25, %v14071_v12  ;;  %v20005_v25 = vld [vmem:[#allocation24_spill] sm:$0xff] }
 0xaaa   : > { %9159 = vrot.lane.b32.xlu0 %v17980_v49, %s19976_s7 }
 0xaab   : > { %v18005_v56 = vcombine.low %v8486_v62, %v8497_v57  ;;  %v8895_v62 = vld [vmem:[#allocation2 + $0xb1] sm:$0xff]  ;;  %v8519_v57 = vrot.slane %v20005_v25, %v14071_v12 }
 0xaac   : > { %v18028_v46 = vpack.c.bf16 %v8895_v62, %v8894_v22  ;;  %v8851_v22 = vld [vmem:[#allocation2 + $0xd0] sm:$0xff] }
 0xaad   : > { %9055 = vrot.lane.b32.xlu1 %v8753_v6, %s19892_s4  ;;  %v8754_v6 = vmul.bf16 %v17943_v40, %v17913_v44  ;;  %v18048_v51 = vpack.c.bf16 %v8851_v22, %v8850_v30  ;;  %v8848_v30 = vld [vmem:[#allocation2 + $0xb8] sm:$0xff]  ;;  %v8849_v22 = vld [vmem:[#allocation2 + $0xc0] sm:$0xff] }
 0xaae   : > { %9017 = vrot.lane.b32.xlu0 %v17980_v49, %s19890_s14 }
 0xab1   : > { %9326 = vrot.lane.b32.xlu1 %v8969_v45, %s19842_s22  ;;  %v8932_v45 = vmul.bf16 %v18005_v56, %v18003_v29 }
 0xab2   : > { %9157 = vrot.lane.b32.xlu0 %v17992_v2, %s19976_s7 }
 0xab5   : > { %9057 = vrot.lane.b32.xlu1 %v8754_v6, %s19892_s4 }
 0xab6   : > { %9015 = vrot.lane.b32.xlu0 %v17992_v2, %s19890_s14 }
 0xab8   : > { %v18009_v47 = vpop.permute.xlu0 %9143 }
 0xab9   : > { %9282 = vrot.lane.b32.xlu1 %v8867_v31, %s19891_s1  ;;  %v20006_v31 = vld [vmem:[#allocation7_spill] sm:$0xff] }
 0xaba   : > { %9205 = vrot.lane.b32.xlu0 %v8932_v45, %s13621_s24  ;;  %v8508_v6 = vrot.slane %v20006_v31, %v14071_v12  ;;  %v8948_v31 = vmul.bf16 %v17708_v32, %v17749_v48  ;;  %v20009_v48 = vld [vmem:[#allocation18_spill] sm:$0xff] }
 0xabb   : > { %v9046_v37 = vpop.permute.xlu1 %9045 }
 0xabc   : > { %v9142_v44 = vpop.permute.xlu0 %9141  ;;  %v18030_v36 = vcombine.low %v8508_v6, %v8519_v57 }
 0xabd   : > { %9280 = vrot.lane.b32.xlu1 %v17937_v7, %s19891_s1 }
 0xabe   : > { %9109 = vrot.lane.b32.xlu0 %v8820_v11, %s13622_s27  ;;  %v7660_v11 = vld [vmem:[#allocation2 + $0x7] sm:$0xff] }
 0xabf   : > { %v9271_v13 = vpop.permute.xlu1 %9270  ;;  %v7692_v62 = vpack.c.bf16 %v7661_v18, %v7660_v11  ;;  %v8949_v18 = vmul.bf16 %v17710_v24, %v17751_v53  ;;  %v20007_v11 = vld [vmem:[#allocation12_spill] sm:$0xff] }
 0xac0   : > { %v9190_v45 = vpop.permute.xlu0 %9189  ;;  %v8855_v24 = vld [vmem:[#allocation2 + $0xf0] sm:$0xff] }
 0xac1   : > { %9011 = vrot.lane.b32.xlu1 %v17937_v7, %s19890_s14  ;;  %v8933_v7 = vmul.bf16 %v18030_v36, %v18028_v46 }
 0xac2   : > { %9111 = vrot.lane.b32.xlu0 %v8821_v34, %s13622_s27  ;;  %v8970_v34 = vmul.bf16 %v17917_v15, %v17941_v42 }
 0xac3   : > { %v18033_v25 = vpop.permute.xlu1 %9001 }
 0xac4   : > { %v9094_v20 = vpop.permute.xlu0 %9093 }
 0xac5   : > { %9247 = vrot.lane.b32.xlu1 %v8948_v31, %s19889_s25  ;;  %v8188_v31 = vmul.bf16 %v17642_v4, %v7692_v62 }
 0xac6   : > { %9207 = vrot.lane.b32.xlu0 %v8933_v7, %s13621_s24 }
 0xac7   : > { %v18041_v57 = vpop.permute.xlu1 %8999  ;;  %v9352_v7 = vsel %vm604_vm0, %v8188_v31, %v20007_v11  ;;  %v8897_v11 = vld [vmem:[#allocation2 + $0xc1] sm:$0xff] }
 0xac8   : > { %v18045_v6 = vpop.permute.xlu0 %9095  ;;  %v9399_v15 = vsel %vm2622_vm7, %v9352_v7, %v9046_v37  ;;  %v20008_v7 = vld [vmem:[#allocation28_spill] sm:$0xff] }
 0xac9   : > { %9328 = vrot.lane.b32.xlu1 %v8970_v34, %s19842_s22  ;;  %v9431_v4 = vsel %vm2764_vm10, %v9399_v15, %v9094_v20  ;;  %v8755_v34 = vmul.bf16 %v17968_v28, %v17941_v42  ;;  %v8896_v20 = vld [vmem:[#allocation2 + $0xb9] sm:$0xff]  ;;  %v8541_v15 = vrot.slane %v20008_v7, %v14071_v12  ;;  %v8530_v42 = vrot.slane %v20009_v48, %v14071_v12 }
 0xaca   : > { %9163 = vrot.lane.b32.xlu0 %v18048_v51, %s19976_s7  ;;  %v9463_v37 = vsel %vm6956_vm12, %v9431_v4, %v9142_v44  ;;  %v18088_v48 = vpack.c.bf16 %v8897_v11, %v8896_v20  ;;  %v8822_v11 = vmul.bf16 %v17795_v9, %v17827_v54 }
 0xacb   : > { %v9238_v41 = vpop.permute.xlu1 %9237  ;;  %v9496_v4 = vsel %vm9494_vm1, %v9463_v37, %v9190_v45  ;;  %v18090_v7 = vcombine.low %v8530_v42, %v8541_v15  ;;  %v8899_v15 = vld [vmem:[#allocation2 + $0xd1] sm:$0xff]  ;;  %v20010_v42 = vld [vmem:[#allocation30_spill] sm:$0xff] }
 0xacc   : > { %v18057_v43 = vpop.permute.xlu0 %9191  ;;  %v9544_v53 = vsel %vm643_vm2, %v9190_v45, %v9238_v41 }
 0xacd   : > { %9249 = vrot.lane.b32.xlu1 %v8949_v18, %s19889_s25  ;;  %v18070_v18 = vpack.c.bf16 %v8849_v22, %v8848_v30  ;;  %v9576_v41 = vsel %vm2589_vm6, %v9544_v53, %v9271_v13  ;;  %v8971_v30 = vmul.bf16 %v17943_v40, %v17966_v5  ;;  %v8756_v13 = vmul.bf16 %v18005_v56, %v17966_v5  ;;  %v8898_v5 = vld [vmem:[#allocation2 + $0xc9] sm:$0xff] }
 0xace   : > { %9021 = vrot.lane.b32.xlu0 %v18048_v51, %s19890_s14  ;;  %v8934_v45 = vmul.bf16 %v18090_v7, %v18088_v48 }
 0xacf   : > { %v9048_v62 = vpop.permute.xlu1 %9047 }
 0xad0   : > { %v18067_v31 = vpop.permute.xlu0 %9147 }
 0xad1   : > { %9059 = vrot.lane.b32.xlu1 %v8755_v34, %s19892_s4 }
 0xad2   : > { %9161 = vrot.lane.b32.xlu0 %v18070_v18, %s19976_s7 }
 0xad3   : > { %v9319_v34 = vpop.permute.xlu1 %9318 }
 0xad4   : > { %v9608_v44 = vsel %vm2688_vm8, %v9576_v41, %v9319_v34  ;;  %v18083_v22 = vpop.permute.xlu0 %9145  ;;  %v8563_v41 = vrot.slane %v20010_v42, %v14071_v12  ;;  %v20011_v34 = vld [vmem:[#allocation15_spill] sm:$0xff] }
 0xad5   : > { %9330 = vrot.lane.b32.xlu1 %v8971_v30, %s19842_s22  ;;  %12766 = vmatprep.mubr.msk.bf16.mxu1 %vm9754_vm15, %v9608_v44  ;;  %v8552_v30 = vrot.slane %v20011_v34, %v14071_v12 }
 0xad6   : > { %9823 = vmatmul.mubr.bf16.vlgmr.msra.gmra.mxu1 %v9496_v4  ;;  %9019 = vrot.lane.b32.xlu0 %v18070_v18, %s19890_s14 }
 0xad7   : > { %v18094_v53 = vpop.permute.xlu1 %9049 }
 0xad8   : > { %v18098_v40 = vpop.permute.xlu0 %9193 }
 0xad9   : > { %9061 = vrot.lane.b32.xlu1 %v8756_v13, %s19892_s4  ;;  %v18125_v13 = vpack.c.bf16 %v8899_v15, %v8898_v5  ;;  %v20012_v5 = vmul.bf16 %v17626_v38, %v17614_v35 }
 0xada   : > { %9209 = vrot.lane.b32.xlu0 %v8934_v45, %s13621_s24  ;;  %v18127_v45 = vcombine.low %v8552_v30, %v8563_v41  ;;  %v8972_v30 = vmul.bf16 %v17968_v28, %v18003_v29 }
 0xadb   : > { %v18104_v37 = vpop.permute.xlu1 %9274  ;;  %v9355_v15 = vsel %vm604_vm0, %v20012_v5, %v18041_v57  ;;  %v8951_v57 = vmul.bf16 %v17755_v39, %v17787_v10 }
 0xadc   : > { %v18106_v20 = vpop.permute.xlu0 %9097 }
 0xadd   : > { %9286 = vrot.lane.b32.xlu1 %v17980_v49, %s19891_s1  ;;  %v8823_v49 = vmul.bf16 %v17831_v23, %v17829_v21 }
 0xade   : > { %9113 = vrot.lane.b32.xlu0 %v8822_v11, %s13622_s27  ;;  %v8950_v11 = vmul.bf16 %v17753_v58, %v17785_v60  ;;  %v18151_v60 = vpack.c.bf16 %v8855_v24, %v8854_v1  ;;  %v8852_v24 = vld [vmem:[#allocation2 + $0xd8] sm:$0xff] }
 0xadf   : > { %v18117_v44 = vpop.permute.xlu1 %9005 }
 0xae0   : > { %v18119_v4 = vpop.permute.xlu0 %9099 }
 0xae1   : > { %9284 = vrot.lane.b32.xlu1 %v17992_v2, %s19891_s1  ;;  %v8935_v2 = vmul.bf16 %v18127_v45, %v18125_v13 }
 0xae2   : > { %9115 = vrot.lane.b32.xlu0 %v8823_v49, %s13622_s27  ;;  %v9401_v49 = vsel %vm2622_vm7, %v9355_v15, %v9048_v62  ;;  %v8757_v15 = vmul.bf16 %v18030_v36, %v18003_v29  ;;  %v20014_v29 = vld [vmem:[#allocation29_spill] sm:$0xff] }
 0xae3   : > { %v9273_v42 = vpop.permute.xlu1 %9272  ;;  %v9433_v35 = vsel %vm2764_vm10, %v9401_v49, %v18045_v6 }
 0xae4   : > { %v18132_v34 = vpop.permute.xlu0 %9195  ;;  %v9465_v1 = vsel %vm6956_vm12, %v9433_v35, %v18009_v47 }
 0xae5   : > { %9251 = vrot.lane.b32.xlu1 %v8950_v11, %s19889_s25  ;;  %v9499_v47 = vsel %vm9494_vm1, %v9465_v1, %v18057_v43 }
 0xae6   : > { %9211 = vrot.lane.b32.xlu0 %v8935_v2, %s13621_s24  ;;  %v8853_v2 = vld [vmem:[#allocation2 + $0xe0] sm:$0xff] }
 0xae7   : > { %v18143_v41 = vpop.permute.xlu1 %9003  ;;  %v18178_v35 = vpack.c.bf16 %v8853_v2, %v8852_v24 }
 0xae8   : > { %v18148_v11 = vpop.permute.xlu0 %9151 }
 0xae9   : > { %9332 = vrot.lane.b32.xlu1 %v8972_v30, %s19842_s22 }
 0xaea   : > { %9167 = vrot.lane.b32.xlu0 %v18151_v60, %s19976_s7 }
 0xaeb   : > { %v9240_v38 = vpop.permute.xlu1 %9239 }
 0xaec   : > { %v9546_v28 = vsel %vm643_vm2, %v18057_v43, %v9240_v38  ;;  %v18161_v62 = vpop.permute.xlu0 %9149  ;;  %v8900_v38 = vld [vmem:[#allocation2 + $0xd9] sm:$0xff]  ;;  %v20015_v43 = vmul.bf16 %v17612_v14, %v17616_v19  ;;  %v8758_v14 = vmul.bf16 %v18090_v7, %v18028_v46 }
 0xaed   : > { %9253 = vrot.lane.b32.xlu1 %v8951_v57, %s19889_s25  ;;  %v9578_v6 = vsel %vm2589_vm6, %v9546_v28, %v9273_v42  ;;  %v8901_v42 = vld [vmem:[#allocation2 + $0xe1] sm:$0xff]  ;;  %v20013_v57 = vld [vmem:[#allocation32_spill] sm:$0xff] }
 0xaee   : > { %9025 = vrot.lane.b32.xlu0 %v18151_v60, %s19890_s14  ;;  %v8585_v28 = vrot.slane %v20013_v57, %v14071_v12  ;;  %v9358_v1 = vsel %vm604_vm0, %v20015_v43, %v18033_v25  ;;  %v18196_v2 = vpack.c.bf16 %v8901_v42, %v8900_v38  ;;  %v20017_v43 = vld [vmem:[#allocation33_spill] sm:$0xff] }
 0xaef   : > { %v9321_v5 = vpop.permute.xlu1 %9320 }
 0xaf0   : > { %v9610_v30 = vsel %vm2688_vm8, %v9578_v6, %v9321_v5  ;;  %v18172_v49 = vpop.permute.xlu0 %9197  ;;  %v8574_v6 = vrot.slane %v20014_v29, %v14071_v12 }
 0xaf1   : > { %9063 = vrot.lane.b32.xlu1 %v8757_v15, %s19892_s4  ;;  %12767 = vmatprep.mubr.msk.bf16.mxu1 %vm9754_vm15, %v9610_v30  ;;  %v8973_v15 = vmul.bf16 %v18005_v56, %v18028_v46  ;;  %v9403_v30 = vsel %vm2622_vm7, %v9358_v1, %v18094_v53  ;;  %v8596_v1 = vrot.slane %v20017_v43, %v14071_v12 }
 0xaf2   : > { %9831 = vmatmul.mubr.bf16.gmra.mxu1 %v9499_v47  ;;  %9165 = vrot.lane.b32.xlu0 %v18178_v35, %s19976_s7  ;;  %v18200_v47 = vcombine.low %v8574_v6, %v8585_v28  ;;  %v9435_v56 = vsel %vm2764_vm10, %v9403_v30, %v18106_v20  ;;  %v8902_v6 = vld [vmem:[#allocation2 + $0xe9] sm:$0xff]  ;;  %v8953_v43 = vmul.bf16 %v17795_v9, %v17829_v21 }
 0xaf3   : > { %v9242_v5 = vpop.permute.xlu1 %9241  ;;  %v9467_v20 = vsel %vm6956_vm12, %v9435_v56, %v18083_v22  ;;  %v8824_v22 = vmul.bf16 %v17833_v63, %v17868_v50 }
 0xaf4   : > { %v18193_v24 = vpop.permute.xlu0 %9101  ;;  %v9548_v25 = vsel %vm643_vm2, %v18098_v40, %v9242_v5  ;;  %v8936_v53 = vmul.bf16 %v18200_v47, %v18196_v2  ;;  %v9502_v29 = vsel %vm9494_vm1, %v9467_v20, %v18098_v40  ;;  %v8903_v5 = vld [vmem:[#allocation2 + $0xf1] sm:$0xff]  ;;  %v8825_v40 = vmul.bf16 %v17874_v59, %v17870_v0 }
 0xaf5   : > { %9334 = vrot.lane.b32.xlu1 %v8973_v15, %s19842_s22  ;;  %v9580_v42 = vsel %vm2589_vm6, %v9548_v25, %v18104_v37  ;;  %v20016_v37 = vld [vmem:[#allocation34_spill] sm:$0xff]  ;;  %v18243_v56 = vpack.c.bf16 %v8903_v5, %v8902_v6 }
 0xaf6   : > { %9023 = vrot.lane.b32.xlu0 %v18178_v35, %s19890_s14  ;;  %v8607_v15 = vrot.slane %v20016_v37, %v14071_v12  ;;  %v8856_v5 = vld [vmem:[#allocation2 + $0xf8] sm:$0xff]  ;;  %v8857_v37 = vld [vmem:[#allocation2 + $0x100] sm:$0xff] }
 0xaf7   : > { %v9052_v19 = vpop.permute.xlu1 %9051 }
 0xaf8   : > { %v18210_v38 = vpop.permute.xlu0 %9103 }
 0xaf9   : > { %9065 = vrot.lane.b32.xlu1 %v8758_v14, %s19892_s4  ;;  %v18245_v14 = vcombine.low %v8596_v1, %v8607_v15 }
 0xafa   : > { %9213 = vrot.lane.b32.xlu0 %v8936_v53, %s13621_s24  ;;  %v8952_v53 = vmul.bf16 %v17793_v26, %v17827_v54 }
 0xafb   : > { %v9323_v57 = vpop.permute.xlu1 %9322 }
 0xafc   : > { %v9612_v46 = vsel %vm2688_vm8, %v9580_v42, %v9323_v57  ;;  %v18221_v28 = vpop.permute.xlu0 %9199  ;;  %v8858_v42 = vld [vmem:[#allocation2 + $0x108] sm:$0xff]  ;;  %v8859_v57 = vld [vmem:[#allocation2 + $0x110] sm:$0xff] }
 0xafd   : > { %9290 = vrot.lane.b32.xlu1 %v18048_v51, %s19891_s1  ;;  %12768 = vmatprep.mubr.msk.bf16.mxu1 %vm9754_vm15, %v9612_v46  ;;  %v18265_v6 = vpack.c.bf16 %v8859_v57, %v8858_v42 }
 0xafe   : > { %9839 = vmatmul.mubr.bf16.gmra.mxu1 %v9502_v29  ;;  %9117 = vrot.lane.b32.xlu0 %v8824_v22, %s13622_s27  ;;  %v8974_v29 = vmul.bf16 %v18030_v36, %v18088_v48  ;;  %v18274_v36 = vpack.c.bf16 %v8857_v37, %v8856_v5 }
 0xaff   : > { %v18235_v51 = vpop.permute.xlu1 %9053 }
 0xb00   : > { %v18237_v30 = vpop.permute.xlu0 %9155 }
 0xb01   : > { %9288 = vrot.lane.b32.xlu1 %v18070_v18, %s19891_s1  ;;  %v8937_v18 = vmul.bf16 %v18245_v14, %v18243_v56 }
 0xb02   : > { %9119 = vrot.lane.b32.xlu0 %v8825_v40, %s13622_s27  ;;  %v8906_v40 = vld [vmem:[#allocation2 + $0x109] sm:$0xff] }
 0xb03   : > { %v18248_v25 = vpop.permute.xlu1 %9278 }
 0xb04   : > { %v18252_v20 = vpop.permute.xlu0 %9013 }
 0xb05   : > { %9255 = vrot.lane.b32.xlu1 %v8952_v53, %s19889_s25  ;;  %v8907_v53 = vld [vmem:[#allocation2 + $0x111] sm:$0xff] }
 0xb06   : > { %9215 = vrot.lane.b32.xlu0 %v8937_v18, %s13621_s24  ;;  %v20018_v18 = vmul.bf16 %v17673_v52, %v17662_v3  ;;  %v18291_v37 = vpack.c.bf16 %v8907_v53, %v8906_v40  ;;  %v20019_v40 = vld [vmem:[#allocation39_spill] sm:$0xff] }
 0xb07   : > { %v18258_v46 = vpop.permute.xlu1 %9009 }
 0xb08   : > { %v18262_v22 = vpop.permute.xlu0 %9153  ;;  %v9361_v42 = vsel %vm604_vm0, %v20018_v18, %v18143_v41  ;;  %v8975_v41 = vmul.bf16 %v18090_v7, %v18125_v13  ;;  %v8939_v53 = vmul.bf16 %v20019_v40, %v18291_v37  ;;  %v8904_v18 = vld [vmem:[#allocation2 + $0xf9] sm:$0xff]  ;;  %v20021_v7 = vld [vmem:[#allocation36_spill] sm:$0xff] }
 0xb09   : > { %9336 = vrot.lane.b32.xlu1 %v8974_v29, %s19842_s22  ;;  %v8759_v29 = vmul.bf16 %v18127_v45, %v18088_v48  ;;  %v8618_v21 = vrot.slane %v20021_v7, %v14071_v12 }
 0xb0a   : > { %9171 = vrot.lane.b32.xlu0 %v18265_v6, %s19976_s7 }
 0xb0b   : > { %v9277_v15 = vpop.permute.xlu1 %9276 }
 0xb0c   : > { %v18271_v1 = vpop.permute.xlu0 %9201 }
 0xb0d   : > { %9257 = vrot.lane.b32.xlu1 %v8953_v43, %s19889_s25  ;;  %v9405_v43 = vsel %vm2622_vm7, %v9361_v42, %v9052_v19  ;;  %v8905_v42 = vld [vmem:[#allocation2 + $0x101] sm:$0xff] }
 0xb0e   : > { %9169 = vrot.lane.b32.xlu0 %v18274_v36, %s19976_s7  ;;  %v9437_v3 = vsel %vm2764_vm10, %v9405_v43, %v18119_v4 }
 0xb0f   : > { %v18283_v57 = vpop.permute.xlu1 %9007  ;;  %v9469_v4 = vsel %vm6956_vm12, %v9437_v3, %v18067_v31  ;;  %v18320_v31 = vld [vmem:[%s19701_s17 + $0x6c] sm:$0xf] }
 0xb10   : > { %v18288_v5 = vpop.permute.xlu0 %9105 }
 0xb11   : > { %9067 = vrot.lane.b32.xlu1 %v8759_v29, %s19892_s4  ;;  %v20020_v29 = vld [vmem:[#allocation37_spill] sm:$0xff] }
 0xb12   : > { %9027 = vrot.lane.b32.xlu0 %v18274_v36, %s19890_s14  ;;  %v8629_v43 = vrot.slane %v20020_v29, %v14071_v12 }
 0xb13   : > { %v9244_v52 = vpop.permute.xlu1 %9243 }
 0xb14   : > { %v9550_v48 = vsel %vm643_vm2, %v18132_v34, %v9244_v52  ;;  %v18301_v19 = vpop.permute.xlu0 %9107 }
 0xb15   : > { %9338 = vrot.lane.b32.xlu1 %v8975_v41, %s19842_s22  ;;  %v9582_v52 = vsel %vm2589_vm6, %v9550_v48, %v9277_v15  ;;  %v8760_v41 = vmul.bf16 %v18200_v47, %v18125_v13  ;;  %v9505_v15 = vsel %vm9494_vm1, %v9469_v4, %v18132_v34  ;;  %v18328_v48 = vpack.c.bf16 %v8905_v42, %v8904_v18 }
 0xb16   : > { %9219 = vrot.lane.b32.xlu0 %v8939_v53, %s13621_s24  ;;  %v18330_v13 = vcombine.low %v8618_v21, %v8629_v43  ;;  %v8954_v18 = vmul.bf16 %v17831_v23, %v17868_v50 }
 0xb17   : > { %v9325_v54 = vpop.permute.xlu1 %9324 }
 0xb18   : > { %v9614_v10 = vsel %vm2688_vm8, %v9582_v52, %v9325_v54  ;;  %v18322_v3 = vpop.permute.xlu0 %9203  ;;  %v20022_v54 = vmul.bf16 %v17670_v17, %v17664_v27  ;;  %v8938_v21 = vmul.bf16 %v18330_v13, %v18328_v48  ;;  %v8976_v52 = vmul.bf16 %v18127_v45, %v18196_v2 }
 0xb19   : > { %9069 = vrot.lane.b32.xlu1 %v8760_v41, %s19892_s4  ;;  %12769 = vmatprep.mubr.msk.bf16.mxu1 %vm9754_vm15, %v9614_v10  ;;  %v18382_v41 = vld [vmem:[%s19701_s17 + $0x7c] sm:$0xf] }
 0xb1a   : > { %9847 = vmatmul.mubr.bf16.gmra.mxu1 %v9505_v15  ;;  %v9364_v53 = vsel %vm604_vm0, %v20022_v54, %v18117_v44  ;;  %10985 = vperm.xlu0 %13447, %v18320_v31  }
 0xb1b   : > { %v9246_v29 = vpop.permute.xlu1 %9245  ;;  %v9407_v10 = vsel %vm2622_vm7, %v9364_v53, %v18235_v51 }
 0xb1c   : > { %v18340_v7 = vpop.permute.xlu0 %9159  ;;  %v9439_v34 = vsel %vm2764_vm10, %v9407_v10, %v18193_v24  ;;  %v9552_v17 = vsel %vm643_vm2, %v18172_v49, %v9246_v29  ;;  %v8761_v29 = vmul.bf16 %v18245_v14, %v18196_v2  ;;  %v8794_v10 = vld [vmem:[#allocation2 + $0x107] sm:$0xff] }
 0xb1d   : > { %9294 = vrot.lane.b32.xlu1 %v18151_v60, %s19891_s1  ;;  %v8826_v60 = vmul.bf16 %v17876_v61, %v17899_v16  ;;  %v9471_v51 = vsel %vm6956_vm12, %v9439_v34, %v18161_v62  ;;  %v9584_v24 = vsel %vm2589_vm6, %v9552_v17, %v18248_v25  ;;  %v13590_v34 = vld [vmem:[%s19701_s17] sm:$0xf] }
 0xb1e   : > { %9217 = vrot.lane.b32.xlu0 %v8938_v21, %s13621_s24  ;;  %v9508_v62 = vsel %vm9494_vm1, %v9471_v51, %v18172_v49  ;;  %v8955_v49 = vmul.bf16 %v17833_v63, %v17870_v0  ;;  %v8795_v21 = vld [vmem:[#allocation2 + $0x10f] sm:$0xff]  ;;  %v20023_v51 = vmul.bf16 %v17708_v32, %v17704_v33 }
 0xb1f   : > { %v9056_v27 = vpop.permute.xlu1 %9055 }
 0xb20   : > { %v18351_v44 = vpop.permute.xlu0 %9017 }
 0xb21   : > { %9292 = vrot.lane.b32.xlu1 %v18178_v35, %s19891_s1  ;;  %v18368_v35 = vld [vmem:[%s19701_s17 + $0x70] sm:$0xf] }
 0xb22   : > { %9121 = vrot.lane.b32.xlu0 %v8826_v60, %s13622_s27  ;;  %v18402_v60 = vpack.c.bf16 %v8795_v21, %v8794_v10 }
 0xb23   : > { %v9327_v4 = vpop.permute.xlu1 %9326 }
 0xb24   : > { %v9616_v42 = vsel %vm2688_vm8, %v9584_v24, %v9327_v4  ;;  %v18370_v43 = vpop.permute.xlu0 %9157  ;;  %v9367_v24 = vsel %vm604_vm0, %v20023_v51, %v18283_v57  ;;  %v8977_v4 = vmul.bf16 %v18200_v47, %v18243_v56  ;;  %v8827_v33 = vmul.bf16 %v17905_v8, %v18402_v60 }
 0xb25   : > { %9259 = vrot.lane.b32.xlu1 %v8954_v18, %s19889_s25  ;;  %12770 = vmatprep.mubr.msk.bf16.mxu1 %vm9754_vm15, %v9616_v42  ;;  %v9409_v18 = vsel %vm2622_vm7, %v9367_v24, %v9056_v27  ;;  %v13591_v42 = vld [vmem:[%s19701_s17 + $0x10] sm:$0xf]  ;;  %v8762_v47 = vmul.bf16 %v18330_v13, %v18243_v56  ;;  %v13592_v56 = vld [vmem:[%s19701_s17 + $0x20] sm:$0xf] }
 0xb26   : > { %9855 = vmatmul.mubr.bf16.gmra.mxu1 %v9508_v62  ;;  %10996 = vperm.xlu0 %13447, %v18368_v35   ;;  %v9441_v32 = vsel %vm2764_vm10, %v9409_v18, %v18210_v38 }
 0xb27   : > { %v9058_v25 = vpop.permute.xlu1 %9057 }
 0xb28   : > { %v18384_v15 = vpop.permute.xlu0 %9015 }
 0xb29   : > { %9340 = vrot.lane.b32.xlu1 %v8976_v52, %s19842_s22 }
 0xb2a   : > { %11029 = vperm.xlu0 %13447, %v18382_v41  }
 0xb2b   : > { %v9283_v54 = vpop.permute.xlu1 %9282 }
 0xb2c   : > { %v18390_v53 = vpop.permute.xlu0 %9205 }
 0xb2d   : > { %9261 = vrot.lane.b32.xlu1 %v8955_v49, %s19889_s25  ;;  %v9473_v49 = vsel %vm6956_vm12, %v9441_v32, %v18148_v11 }
 0xb2e   : > { %13480 = vset.pattern.permute.xlu0 %v19869_v55  ;;  %v9511_v11 = vsel %vm9494_vm1, %v9473_v49, %v18221_v28 }
 0xb2f   : > { %v9281_v45 = vpop.permute.xlu1 %9280  ;;  %10097 = vperm.xlu0 %13480, %v13590_v34   ;;  %v20025_v34 = vld [vmem:[#allocation87_spill] sm:$0xff] }
 0xb30   : > { %v18399_v17 = vpop.permute.xlu0 %9109 }
 0xb31   : > { %9071 = vrot.lane.b32.xlu1 %v8761_v29, %s19892_s4 }
 0xb33   : > { %v18409_v2 = vpop.permute.xlu1 %9011  ;;  %10145 = vperm.xlu0 %13480, %v13591_v42   ;;  %v13593_v42 = vld [vmem:[%s19701_s17 + $0x30] sm:$0xf] }
 0xb34   : > { %v18417_v62 = vpop.permute.xlu0 %9111 }
 0xb35   : > { %9342 = vrot.lane.b32.xlu1 %v8977_v4, %s19842_s22 }
 0xb37   : > { %v9248_v57 = vpop.permute.xlu1 %9247  ;;  %9123 = vrot.lane.b32.xlu0 %v8827_v33, %s13622_s27  ;;  %v8941_v33 = vld [vmem:[#allocation2 + $0x11f] sm:$0xff] }
 0xb38   : > { %v9554_v27 = vsel %vm643_vm2, %v18221_v28, %v9248_v57  ;;  %v18429_v52 = vpop.permute.xlu0 %9207 }
 0xb39   : > { %9073 = vrot.lane.b32.xlu1 %v8762_v47, %s19892_s4  ;;  %v9586_v29 = vsel %vm2589_vm6, %v9554_v27, %v9281_v45  ;;  %v20024_v45 = vld [vmem:[#allocation88_spill] sm:$0xff]  ;;  %v13594_v27 = vld [vmem:[%s19701_s17 + $0x40] sm:$0xf] }
 0xb3a   : > { %v20026_v51 = vmul.bf16 %v20024_v45, %v20025_v34  ;;  %v10591_v34 = vld [vmem:[#allocation2 + $0x8] sm:$0xff] }
 0xb3b   : > { %v9329_v10 = vpop.permute.xlu1 %9328  ;;  %10193 = vperm.xlu0 %13480, %v13592_v56   ;;  %v8956_v56 = vmul.bf16 %v17874_v59, %v17899_v16 }
 0xb3c   : > { %v9618_v38 = vsel %vm2688_vm8, %v9586_v29, %v9329_v10  ;;  %v18439_v21 = vpop.permute.xlu0 %9163  ;;  %v9370_v24 = vsel %vm604_vm0, %v20026_v51, %v18258_v46  ;;  %v8979_v46 = vmul.bf16 %v18330_v13, %v18291_v37  ;;  %v13595_v10 = vld [vmem:[%s19701_s17 + $0x50] sm:$0xf] }
 0xb3d   : > { %9298 = vrot.lane.b32.xlu1 %v18265_v6, %s19891_s1  ;;  %12771 = vmatprep.mubr.msk.bf16.mxu1 %vm9754_vm15, %v9618_v38  ;;  %v9411_v18 = vsel %vm2622_vm7, %v9370_v24, %v9058_v25  ;;  %v8940_v6 = vld [vmem:[#allocation2 + $0x117] sm:$0xff] }
 0xb3e   : > { %9863 = vmatmul.mubr.bf16.gmra.mxu1 %v9511_v11  ;;  %v9443_v28 = vsel %vm2764_vm10, %v9411_v18, %v18288_v5  ;;  %v8942_v25 = vpack.c.bf16 %v8941_v33, %v8940_v6  ;;  %v13596_v11 = vld [vmem:[%s19701_s17 + $0x60] sm:$0xf]  ;;  %v10592_v51 = vld [vmem:[#allocation2 + $0x10] sm:$0xff] }
 0xb3f   : > { %v9250_v4 = vpop.permute.xlu1 %9249  ;;  %10241 = vperm.xlu0 %13480, %v13593_v42   ;;  %v10041_v42 = vld [vmem:[%s19701_s17 + $0x68] sm:$0xf]  ;;  %v20027_v6 = vld [vmem:[#allocation89_spill] sm:$0xff] }
 0xb40   : > { %v18455_v32 = vpop.permute.xlu0 %9021  ;;  %v9556_v47 = vsel %vm643_vm2, %v18271_v1, %v9250_v4  ;;  %v8958_v37 = vmul.bf16 %v17905_v8, %v8942_v25  ;;  %v10623_v4 = vpack.c.bf16 %v10592_v51, %v10591_v34  ;;  %v20028_v33 = vmul.bf16 %v17753_v58, %v20027_v6 }
 0xb41   : > { %9296 = vrot.lane.b32.xlu1 %v18274_v36, %s19891_s1  ;;  %v9475_v36 = vsel %vm6956_vm12, %v9443_v28, %v18262_v22  ;;  %v9588_v5 = vsel %vm2589_vm6, %v9556_v47, %v9283_v54 }
 0xb42   : > { %v9514_v22 = vsel %vm9494_vm1, %v9475_v36, %v18271_v1  ;;  %v8978_v1 = vmul.bf16 %v18245_v14, %v18328_v48  ;;  %v9373_v28 = vsel %vm604_vm0, %v20028_v33, %v18409_v2  ;;  %v10045_v33 = vld [vmem:[%s19701_s17 + $0x78] sm:$0xf] }
 0xb43   : > { %v9060_v57 = vpop.permute.xlu1 %9059  ;;  %10289 = vperm.xlu0 %13480, %v13594_v27   ;;  %v8957_v27 = vmul.bf16 %v17876_v61, %v18402_v60 }
 0xb44   : > { %v18468_v49 = vpop.permute.xlu0 %9161  ;;  %v9413_v14 = vsel %vm2622_vm7, %v9373_v28, %v9060_v57  ;;  %v20032_v28 = vld [vmem:[#allocation91_spill] sm:$0xff] }
 0xb45   : > { %9346 = vrot.lane.b32.xlu1 %v8979_v46, %s19842_s22  ;;  %v9445_v25 = vsel %vm2764_vm10, %v9413_v14, %v18301_v19 }
 0xb46   : > { %v9477_v2 = vsel %vm6956_vm12, %v9445_v25, %v18237_v30 }
 0xb47   : > { %v9331_v29 = vpop.permute.xlu1 %9330  ;;  %10337 = vperm.xlu0 %13480, %v13595_v10   ;;  %v9517_v60 = vsel %vm9494_vm1, %v9477_v2, %v18322_v3 }
 0xb48   : > { %v9620_v13 = vsel %vm2688_vm8, %v9588_v5, %v9331_v29  ;;  %v18479_v38 = vpop.permute.xlu0 %9019 }
 0xb49   : > { %9267 = vrot.lane.b32.xlu1 %v8958_v37, %s19889_s25  ;;  %12772 = vmatprep.mubr.msk.bf16.mxu1 %vm9754_vm15, %v9620_v13  ;;  %v20029_v37 = vld [vmem:[#allocation90_spill] sm:$0xff] }
 0xb4a   : > { %9871 = vmatmul.mubr.bf16.gmra.mxu1 %v9514_v22  ;;  %v20030_v13 = vmul.bf16 %v17755_v39, %v20029_v37  ;;  %v8763_v22 = vmul.bf16 %v20019_v40, %v18328_v48 }
 0xb4b   : > { %v9062_v54 = vpop.permute.xlu1 %9061  ;;  %10385 = vperm.xlu0 %13480, %v13596_v11  }
 0xb4c   : > { %v18490_v45 = vpop.permute.xlu0 %9209  ;;  %v9376_v30 = vsel %vm604_vm0, %v20030_v13, %v18252_v20  ;;  %v20034_v13 = vld [vmem:[#allocation92_spill] sm:$0xff] }
 0xb4d   : > { %9263 = vrot.lane.b32.xlu1 %v8956_v56, %s19889_s25  ;;  %v9415_v56 = vsel %vm2622_vm7, %v9376_v30, %v9062_v54  ;;  %v10044_v54 = vld [vmem:[%s19701_s17 + $0x74] sm:$0xf] }
 0xb4f   : > { %v9287_v24 = vpop.permute.xlu1 %9286  ;;  %10433 = vperm.xlu0 %13480, %v18368_v35  }
 0xb50   : > { %v18496_v18 = vpop.permute.xlu0 %9113 }
 0xb51   : > { %9344 = vrot.lane.b32.xlu1 %v8978_v1, %s19842_s22 }
 0xb53   : > { %v9285_v46 = vpop.permute.xlu1 %9284  ;;  %11384 = vrot.lane.b32.xlu0 %v10623_v4, %s19886_s23  ;;  %v20031_v4 = vmov 1  }
 0xb54   : > { %v18509_v35 = vpop.permute.xlu0 %9115 }
 0xb55   : > { %10974 = vperm.xlu1 %13475, %v10041_v42  }
 0xb57   : > { %v9252_v47 = vpop.permute.xlu1 %9251 }
 0xb58   : > { %v9558_v58 = vsel %vm643_vm2, %v18322_v3, %v9252_v47  ;;  %v18517_v36 = vpop.permute.xlu0 %9211  ;;  %v9447_v3 = vsel %vm2764_vm10, %v9415_v56, %v18399_v17 }
 0xb59   : > { %9265 = vrot.lane.b32.xlu1 %v8957_v27, %s19889_s25  ;;  %v9590_v57 = vsel %vm2589_vm6, %v9558_v58, %v9285_v46  ;;  %v9479_v20 = vsel %vm6956_vm12, %v9447_v3, %v18370_v43  ;;  %v20033_v46 = vmul.bf16 %v17793_v26, %v20032_v28 }
 0xb5a   : > { %13476 = vset.pattern.permute.xlu1 %v19869_v55 }
 0xb5b   : > { %v9333_v5 = vpop.permute.xlu1 %9332 }
 0xb5c   : > { %v9622_v19 = vsel %vm2688_vm8, %v9590_v57, %v9333_v5  ;;  %v18525_v29 = vpop.permute.xlu0 %9167  ;;  %v11346_v57 = vld [vmem:[#allocation2 + $0x118] sm:$0xff]  ;;  %v11347_v5 = vld [vmem:[#allocation2 + $0x120] sm:$0xff] }
 0xb5d   : > { %10409 = vperm.xlu1 %13476, %v10041_v42   ;;  %12773 = vmatprep.mubr.msk.bf16.mxu1 %vm9754_vm15, %v9622_v19 }
 0xb5e   : > { %9879 = vmatmul.mubr.bf16.gmra.mxu1 %v9517_v60 }
 0xb5f   : > { %v9254_v10 = vpop.permute.xlu1 %9253 }
 0xb60   : > { %v18538_v11 = vpop.permute.xlu0 %9025  ;;  %v9560_v51 = vsel %vm643_vm2, %v18390_v53, %v9254_v10 }
 0xb61   : > { %9075 = vrot.lane.b32.xlu1 %v8763_v22, %s19892_s4  ;;  %v9592_v40 = vsel %vm2589_vm6, %v9560_v51, %v9287_v24 }
 0xb63   : > { %v9064_v34 = vpop.permute.xlu1 %9063 }
 0xb64   : > { %v18545_v39 = vpop.permute.xlu0 %9165 }
 0xb65   : > { %10421 = vperm.xlu1 %13476, %v18320_v31   ;;  %v9520_v31 = vsel %vm9494_vm1, %v9479_v20, %v18390_v53  ;;  %v9379_v53 = vsel %vm604_vm0, %v20033_v46, %v18384_v15 }
 0xb66   : > { %v9417_v25 = vsel %vm2622_vm7, %v9379_v53, %v9064_v34 }
 0xb67   : > { %v9335_v48 = vpop.permute.xlu1 %9334  ;;  %v9449_v27 = vsel %vm2764_vm10, %v9417_v25, %v18417_v62 }
 0xb68   : > { %v9624_v17 = vsel %vm2688_vm8, %v9592_v40, %v9335_v48  ;;  %v18555_v1 = vpop.permute.xlu0 %9023  ;;  %v9481_v15 = vsel %vm6956_vm12, %v9449_v27, %v18340_v7  ;;  %v20035_v7 = vmul.bf16 %v17795_v9, %v20034_v13  ;;  %v20039_v13 = vld [vmem:[#allocation22_spill] sm:$0xff] }
 0xb69   : > { %13477 = vset.pattern.permute.xlu1 %v20031_v4  ;;  %12774 = vmatprep.mubr.msk.bf16.mxu1 %vm9754_vm15, %v9624_v17  ;;  %v9523_v62 = vsel %vm9494_vm1, %v9481_v15, %v18429_v52 }
 0xb6a   : > { %11007 = vperm.xlu1 %13477, %v10044_v54   ;;  %9887 = vmatmul.mubr.bf16.gmra.mxu1 %v9520_v31  ;;  %v9382_v30 = vsel %vm604_vm0, %v20035_v7, %v18351_v44  ;;  %v20040_v7 = vmul.bf16 %v17833_v63, %v20039_v13  ;;  %v20043_v63 = vld [vmem:[#allocation46_spill] sm:$0xff] }
 0xb6b   : > { %v9066_v43 = vpop.permute.xlu1 %9065 }
 0xb6c   : > { %v18561_v24 = vpop.permute.xlu0 %9213  ;;  %v9419_v22 = vsel %vm2622_vm7, %v9382_v30, %v9066_v43  ;;  %v9388_v30 = vsel %vm604_vm0, %v20040_v7, %v18455_v32  ;;  %v10142_v32 = vrot.slane %v20043_v63, %v14071_v12 }
 0xb6e   : > { %13478 = vset.pattern.permute.xlu1 %v19869_v55 }
 0xb6f   : > { %10445 = vperm.xlu1 %13478, %v10044_v54   ;;  %v9291_v42 = vpop.permute.xlu1 %9290 }
 0xb70   : > { %v18564_v6 = vpop.permute.xlu0 %9117 }
 0xb73   : > { %13479 = vset.pattern.permute.xlu1 %v20031_v4  ;;  %v9289_v14 = vpop.permute.xlu1 %9288 }
 0xb74   : > { %11018 = vperm.xlu1 %13479, %v10045_v33   ;;  %v18576_v47 = vpop.permute.xlu0 %9119 }
 0xb77   : > { %v9256_v58 = vpop.permute.xlu1 %9255 }
 0xb78   : > { %v9562_v2 = vsel %vm643_vm2, %v18429_v52, %v9256_v58  ;;  %13481 = vset.pattern.permute.xlu1 %v19869_v55  ;;  %v18583_v26 = vpop.permute.xlu0 %9215  ;;  %v11348_v55 = vpack.c.bf16 %v11347_v5, %v11346_v57  ;;  %v9451_v52 = vsel %vm2764_vm10, %v9419_v22, %v18496_v18  ;;  %v20041_v22 = vld [vmem:[#allocation59_spill] sm:$0xff] }
 0xb79   : > { %10457 = vperm.xlu1 %13481, %v10045_v33   ;;  %v9594_v19 = vsel %vm2589_vm6, %v9562_v2, %v9289_v14  ;;  %v9483_v9 = vsel %vm6956_vm12, %v9451_v52, %v18468_v49  ;;  %v20036_v49 = vld [vmem:[#allocation20_spill] sm:$0xff]  ;;  %v10697_v52 = vrot.slane %v20041_v22, %v14071_v12 }
 0xb7a   : > { %v9526_v40 = vsel %vm9494_vm1, %v9483_v9, %v18490_v45  ;;  %v20037_v4 = vmul.bf16 %v17831_v23, %v20036_v49 }
 0xb7b   : > { %v9337_v60 = vpop.permute.xlu1 %9336 }
 0xb7c   : > { %v9626_v37 = vsel %vm2688_vm8, %v9594_v19, %v9337_v60  ;;  %v18599_v56 = vpop.permute.xlu0 %9171  ;;  %v9385_v31 = vsel %vm604_vm0, %v20037_v4, %v18479_v38 }
 0xb7d   : > { %12775 = vmatprep.mubr.msk.bf16.mxu1 %vm9754_vm15, %v9626_v37  ;;  %10469 = vperm.xlu1 %13481, %v18382_v41  }
 0xb7e   : > { %9895 = vmatmul.mubr.bf16.gmra.mxu1 %v9523_v62  ;;  %v20038_v62 = vld [vmem:[#allocation42_spill] sm:$0xff] }
 0xb7f   : > { %v9258_v10 = vpop.permute.xlu1 %9257 }
 0xb80   : > { %v9564_v41 = vsel %vm643_vm2, %v18490_v45, %v9258_v10  ;;  %v18606_v34 = vpop.permute.xlu0 %9169  ;;  %v18628_v45 = vld [vmem:[%s19694_s10] ss:$0 sm:$0xff] }
 0xb81   : > { %11687 = vrot.lane.b32.xlu1 %v11348_v55, %s19841_s2  ;;  %v9596_v44 = vsel %vm2589_vm6, %v9564_v41, %v9291_v42  ;;  %v10708_v55 = vrot.slane %v20038_v62, %v14071_v12 }
 0xb83   : > { %v9068_v3 = vpop.permute.xlu1 %9067  ;;  %v18661_v41 = vcombine.low %v10697_v52, %v10708_v55 }
 0xb84   : > { %v18615_v48 = vpop.permute.xlu0 %9027  ;;  %v9421_v42 = vsel %vm2622_vm7, %v9385_v31, %v9068_v3  ;;  %v10639_v3 = vld [vmem:[#allocation2 + $0x9] sm:$0xff] }
 0xb85   : > { %v9453_v46 = vsel %vm2764_vm10, %v9421_v42, %v18509_v35 }
 0xb86   : > { %v9485_v2 = vsel %vm6956_vm12, %v9453_v46, %v18439_v21 }
 0xb87   : > { %v9339_v51 = vpop.permute.xlu1 %9338  ;;  %v9529_v37 = vsel %vm9494_vm1, %v9485_v2, %v18517_v36 }
 0xb88   : > { %v9628_v20 = vsel %vm2688_vm8, %v9596_v44, %v9339_v51  ;;  %v18617_v17 = vpop.permute.xlu0 %9219  ;;  %v20042_v51 = vld [vmem:[#allocation45_spill] sm:$0xff] }
 0xb89   : > { %12776 = vmatprep.mubr.msk.bf16.mxu1 %vm9754_vm15, %v9628_v20  ;;  %v10130_v20 = vrot.slane %v20042_v51, %v14071_v12 }
 0xb8a   : > { %9903 = vmatmul.mubr.bf16.gmra.mxu1 %v9526_v40 }
 0xb8b   : > { %v9070_v18 = vpop.permute.xlu1 %9069 }
 0xb8f   : > { %v9295_v54 = vpop.permute.xlu1 %9294 }
 0xb93   : > { %v9293_v43 = vpop.permute.xlu1 %9292 }
 0xb95   : > { %v18630_v33 = vpop.permute.xlu0 %10985 }
 0xb96   : > { %v9824_v28 = vpop.f32.mrf.mxu1 }
 0xb97   : > { %v9825_v53 = vadd.f32 %v18628_v45, %v9824_v28  ;;  %v9260_v14 = vpop.permute.xlu1 %9259 }
 0xb98   : > { %v9566_v23 = vsel %vm643_vm2, %v18517_v36, %v9260_v14  ;;  %v9826_v38 = vpop.f32.mrf.mxu1  ;;  %v9423_v36 = vsel %vm2622_vm7, %v9388_v30, %v9070_v18 }
 0xb99   : > { %v9951_v25 = vmax.f32 %v9825_v53, 0.0  ;;  %v18637_v27 = vpop.permute.xlu0 %9217  ;;  %v9598_v35 = vsel %vm2589_vm6, %v9566_v23, %v9293_v43  ;;  %v9455_v40 = vsel %vm2764_vm10, %v9423_v36, %v18564_v6  ;;  %v18678_v23 = vcombine.low %v10130_v20, %v10142_v32 }
 0xb9a   : > { %v9827_v58 = vpop.f32.mrf.mxu1  ;;  %v9487_v46 = vsel %vm6956_vm12, %v9455_v40, %v18545_v39  ;;  %v20046_v20 = vmul.bf16 %v17874_v59, %v17868_v50 }
 0xb9b   : > { %9983 = vst.msk [vmem:[#allocation2 + $0x18] sm:$0xff] %vm2443_vm4, %v9951_v25  ;;  %v9828_v15 = vadd.f32 %v18628_v45, %v9827_v58  ;;  %v9341_v57 = vpop.permute.xlu1 %9340  ;;  %v9532_v39 = vsel %vm9494_vm1, %v9487_v46, %v18561_v24 }
 0xb9c   : > { %v9630_v5 = vsel %vm2688_vm8, %v9598_v35, %v9341_v57  ;;  %v9829_v19 = vpop.f32.mrf.mxu1  ;;  %v20044_v57 = vld [vmem:[#allocation43_spill] sm:$0xff]  ;;  %v9391_v63 = vsel %vm604_vm0, %v20046_v20, %v18555_v1 }
 0xb9d   : > { %v9952_v60 = vmax.f32 %v9828_v15, 0.0  ;;  %12777 = vmatprep.mubr.msk.bf16.mxu1 %vm9754_vm15, %v9630_v5  ;;  %v18650_v21 = vpop.permute.xlu0 %9121  ;;  %v10118_v5 = vrot.slane %v20044_v57, %v14071_v12 }
 0xb9e   : > { %9911 = vmatmul.mubr.bf16.gmra.mxu1 %v9529_v37 }
 0xb9f   : > { %9984 = vst.msk [vmem:[#allocation2 + $0x20] sm:$0xff] %vm2443_vm4, %v9952_v60  ;;  %v9262_v10 = vpop.permute.xlu1 %9261 }
 0xba0   : > { %v9568_v18 = vsel %vm643_vm2, %v18561_v24, %v9262_v10 }
 0xba1   : > { %v18663_v9 = vpop.permute.xlu0 %10996  ;;  %v9600_v6 = vsel %vm2589_vm6, %v9568_v18, %v9295_v54  ;;  %v20047_v18 = vld [vmem:[#allocation61_spill] sm:$0xff] }
 0xba2   : > { %v10640_v44 = vld [vmem:[#allocation2 + $0x11] sm:$0xff] }
 0xba3   : > { %v9072_v49 = vpop.permute.xlu1 %9071  ;;  %v10671_v4 = vpack.c.bf16 %v10640_v44, %v10639_v3  ;;  %v10593_v43 = vld [vmem:[#allocation2 + $0x18] sm:$0xff]  ;;  %v20045_v44 = vld [vmem:[#allocation44_spill] sm:$0xff] }
 0xba4   : > { %v11151_v53 = vld [vmem:[#allocation2 + $0x17] sm:$0xff]  ;;  %v10719_v51 = vrot.slane %v20045_v44, %v14071_v12 }
 0xba5   : > { %v11135_v31 = vmul.bf16 %v18661_v41, %v10671_v4  ;;  %v18674_v42 = vpop.permute.xlu0 %11029  ;;  %v9425_v4 = vsel %vm2622_vm7, %v9391_v63, %v9072_v49 }
 0xba6   : > { %v10594_v28 = vld [vmem:[#allocation2 + $0x20] sm:$0xff]  ;;  %v9457_v59 = vsel %vm2764_vm10, %v9425_v4, %v18576_v47 }
 0xba7   : > { %v11152_v14 = vld [vmem:[#allocation2 + $0x1f] sm:$0xff]  ;;  %v9343_v38 = vpop.permute.xlu1 %9342  ;;  %11432 = vrot.lane.b32.xlu0 %v11135_v31, %s19889_s25  ;;  %v10624_v25 = vpack.c.bf16 %v10594_v28, %v10593_v43  ;;  %v10730_v31 = vrot.slane %v20047_v18, %v14071_v12  ;;  %v9489_v47 = vsel %vm6956_vm12, %v9457_v59, %v18525_v29 }
 0xba8   : > { %v18682_v58 = vpack.c.bf16 %v11152_v14, %v11151_v53  ;;  %v9632_v2 = vsel %vm2688_vm8, %v9600_v6, %v9343_v38  ;;  %v11263_v46 = vld [vmem:[#allocation2 + $0x19] sm:$0xff]  ;;  %v20048_v38 = vld [vmem:[#allocation48_spill] sm:$0xff]  ;;  %v20049_v18 = vld [vmem:[#allocation47_spill] sm:$0xff] }
 0xba9   : > { %11386 = vrot.lane.b32.xlu1 %v10624_v25, %s19886_s23  ;;  %12778 = vmatprep.mubr.msk.bf16.mxu1 %vm9754_vm15, %v9632_v2  ;;  %v18723_v14 = vcombine.low %v10719_v51, %v10730_v31  ;;  %v10166_v49 = vrot.slane %v20048_v38, %v14071_v12  ;;  %v9535_v51 = vsel %vm9494_vm1, %v9489_v47, %v18583_v26  ;;  %v20052_v59 = vld [vmem:[#allocation63_spill] sm:$0xff] }
 0xbaa   : > { %v10576_v15 = vmul.bf16 %v18678_v23, %v18682_v58  ;;  %9919 = vmatmul.mubr.bf16.gmra.mxu1 %v9532_v39  ;;  %v10098_v54 = vpop.permute.xlu0 %10097  ;;  %v10752_v31 = vrot.slane %v20049_v18, %v14071_v12  ;;  %v20053_v38 = vmul.bf16 %v17876_v61, %v17870_v0 }
 0xbab   : > { %v18691_v35 = vpop.permute.xlu1 %9073  ;;  %11528 = vrot.lane.b32.xlu0 %v10624_v25, %s19888_s3  ;;  %v10106_v19 = vrot.slane %v10098_v54, %v14071_v12 }
 0xbad   : > { %v18697_v60 = vcombine.low %v10106_v19, %v10118_v5 }
 0xbae   : > { %v10146_v32 = vpop.permute.xlu0 %10145 }
 0xbaf   : > { %v18699_v37 = vpop.permute.xlu1 %9298  ;;  %v11199_v24 = vmul.bf16 %v18697_v60, %v18682_v58  ;;  %v10154_v43 = vrot.slane %v10146_v32, %v14071_v12 }
 0xbb1   : > { %11480 = vrot.lane.b32.xlu0 %v11199_v24, %s19890_s14  ;;  %v18734_v5 = vcombine.low %v10154_v43, %v10166_v49  ;;  %v20050_v43 = vld [vmem:[#allocation50_spill] sm:$0xff]  ;;  %v9394_v49 = vsel %vm604_vm0, %v20053_v38, %v18538_v11 }
 0xbb2   : > { %v9832_v62 = vpop.f32.mrf.mxu1 }
 0xbb3   : > { %v9833_v55 = vadd.f32 %v18628_v45, %v9832_v62  ;;  %v9297_v13 = vpop.permute.xlu1 %9296 }
 0xbb4   : > { %v9834_v7 = vpop.f32.mrf.mxu1 }
 0xbb5   : > { %v9953_v30 = vmax.f32 %v9833_v55, 0.0 }
 0xbb6   : > { %v9835_v10 = vpop.f32.mrf.mxu1 }
 0xbb7   : > { %9985 = vst.msk [vmem:[#allocation2 + $0x28] sm:$0xff] %vm2443_vm4, %v9953_v30  ;;  %v9836_v22 = vadd.f32 %v18628_v45, %v9835_v10  ;;  %v18707_v52 = vpop.permute.xlu1 %9346 }
 0xbb8   : > { %v9837_v36 = vpop.f32.mrf.mxu1 }
 0xbb9   : > { %v9954_v3 = vmax.f32 %v9836_v22, 0.0 }
 0xbbb   : > { %9986 = vst.msk [vmem:[#allocation2 + $0x30] sm:$0xff] %vm2443_vm4, %v9954_v3  ;;  %v18717_v40 = vpop.permute.xlu1 %9267 }
 0xbbe   : > { %v9840_v28 = vpop.f32.mrf.mxu1  ;;  %v11264_v53 = vld [vmem:[#allocation2 + $0x21] sm:$0xff] }
 0xbbf   : > { %v9841_v50 = vadd.f32 %v18628_v45, %v9840_v28  ;;  %v9264_v1 = vpop.permute.xlu1 %9263  ;;  %v11295_v6 = vpack.c.bf16 %v11264_v53, %v11263_v46  ;;  %v11153_v62 = vld [vmem:[#allocation2 + $0x27] sm:$0xff]  ;;  %v10178_v28 = vrot.slane %v20050_v43, %v14071_v12 }
 0xbc0   : > { %v9570_v25 = vsel %vm643_vm2, %v18583_v26, %v9264_v1  ;;  %v9842_v2 = vpop.f32.mrf.mxu1  ;;  %v11217_v29 = vld [vmem:[#allocation2 + $0x28] sm:$0xff] }
 0xbc1   : > { %v9955_v39 = vmax.f32 %v9841_v50, 0.0  ;;  %v11311_v54 = vmul.bf16 %v18661_v41, %v11295_v6  ;;  %v11136_v57 = vmul.bf16 %v18723_v14, %v11295_v6  ;;  %v9602_v30 = vsel %vm2589_vm6, %v9570_v25, %v9297_v13  ;;  %v20051_v46 = vld [vmem:[#allocation51_spill] sm:$0xff] }
 0xbc2   : > { %v9843_v19 = vpop.f32.mrf.mxu1  ;;  %v11218_v24 = vld [vmem:[#allocation2 + $0x30] sm:$0xff]  ;;  %v10190_v53 = vrot.slane %v20051_v46, %v14071_v12  ;;  %v10741_v50 = vrot.slane %v20052_v59, %v14071_v12 }
 0xbc3   : > { %v11154_v55 = vld [vmem:[#allocation2 + $0x2f] sm:$0xff]  ;;  %9987 = vst.msk [vmem:[#allocation2 + $0x38] sm:$0xff] %vm2443_vm4, %v9955_v39  ;;  %v9844_v7 = vadd.f32 %v18628_v45, %v9843_v19  ;;  %v9345_v10 = vpop.permute.xlu1 %9344  ;;  %11576 = vrot.lane.b32.xlu0 %v11311_v54, %s19891_s1  ;;  %11434 = vrot.lane.b32.xlu1 %v11136_v57, %s19889_s25  ;;  %v11248_v20 = vpack.c.bf16 %v11218_v24, %v11217_v29  ;;  %v13584_v57 = vld [vmem:[%s19695_s11 + $0x20] ss:$0 sps:$4 sm:$0xff]  }
 0xbc4   : > { %v18743_v22 = vpack.c.bf16 %v11154_v55, %v11153_v62  ;;  %v9634_v36 = vsel %vm2688_vm8, %v9602_v30, %v9345_v10  ;;  %v9845_v3 = vpop.f32.mrf.mxu1  ;;  %v11265_v32 = vld [vmem:[#allocation2 + $0x29] sm:$0xff]  ;;  %v18774_v39 = vcombine.low %v10741_v50, %v10752_v31  ;;  %v9427_v54 = vsel %vm2622_vm7, %v9394_v49, %v18691_v35  ;;  %13308 = vmatprep.subr.msk.bf16.mxu0 %vm2797_vm3, %v13584_v57 }
 0xbc5   : > { %v9956_v44 = vmax.f32 %v9844_v7, 0.0  ;;  %12779 = vmatprep.mubr.msk.bf16.mxu1 %vm9754_vm15, %v9634_v36  ;;  %v18785_v0 = vcombine.low %v10178_v28, %v10190_v53  ;;  %v12085_v35 = vsel %vm2797_vm3, %v13584_v57, 0  ;;  %v9459_v47 = vsel %vm2764_vm10, %v9427_v54, %v18650_v21  ;;  %v13585_v7 = vld [vmem:[%s19695_s11 + $0x18] sm:$0xff]   ;;  %v13586_v21 = vld [vmem:[%s19695_s11 + $0x10] sm:$0xff]   ;;  %v9124_v53 = vpop.permute.xlu0 %9123 }
 0xbc6   : > { %v10577_v13 = vmul.bf16 %v18734_v5, %v18743_v22  ;;  %9927 = vmatmul.mubr.bf16.gmra.mxu1 %v9535_v51  ;;  %v11330_v63 = vmul.bf16 %v18697_v60, %v18743_v22  ;;  %v11200_v6 = vmul.bf16 %v18678_v23, %v18743_v22  ;;  %13253 = vmatpush3.bf16.msra.mxu0 %v12085_v35  ;;  %v20054_v29 = vld [vmem:[#allocation40_spill] sm:$0xff]  ;;  %v20058_v57 = vld [vmem:[#allocation65_spill] sm:$0xff] }
 0xbc7   : > { %9988 = vst.msk [vmem:[#allocation2 + $0x40] sm:$0xff] %vm2443_vm4, %v9956_v44  ;;  %11657 = vrot.lane.b32.xlu0 %v11248_v20, %s19841_s2  ;;  %11530 = vrot.lane.b32.xlu1 %v11248_v20, %s19888_s3  ;;  %v9574_v55 = vsel %vm643_vm2, %v18617_v17, %v18717_v40  ;;  %v9491_v40 = vsel %vm6956_vm12, %v9459_v47, %v18606_v34 }
 0xbc8   : > { %13254 = vmatprep.subr.bf16.mxu0 %v13585_v7  ;;  %v9606_v44 = vsel %vm2589_vm6, %v9574_v55, %v20054_v29  ;;  %v9538_v34 = vsel %vm9494_vm1, %v9491_v40, %v18637_v27 }
 0xbca   : > { %v11266_v4 = vld [vmem:[#allocation2 + $0x31] sm:$0xff]  ;;  %13255 = vmatpush3.bf16.msra.mxu0 %v13585_v7 }
 0xbcb   : > { %11624 = vrot.lane.b32.xlu0 %v11330_v63, %s19892_s4  ;;  %11388 = vrot.lane.b32.xlu1 %v11248_v20, %s19886_s23  ;;  %v11296_v26 = vpack.c.bf16 %v11266_v4, %v11265_v32  ;;  %v11155_v25 = vld [vmem:[#allocation2 + $0x37] sm:$0xff] }
 0xbcc   : > { %v11219_v10 = vld [vmem:[#allocation2 + $0x38] sm:$0xff]  ;;  %13256 = vmatprep.subr.bf16.mxu0 %v13586_v21 }
 0xbcd   : > { %v11352_v1 = vmul.bf16 %v18661_v41, %v11296_v26  ;;  %v11137_v11 = vmul.bf16 %v18774_v39, %v11296_v26  ;;  %v11312_v19 = vmul.bf16 %v18723_v14, %v11296_v26  ;;  %v20055_v32 = vld [vmem:[#allocation41_spill] sm:$0xff]  ;;  %v20056_v26 = vmul.bf16 %v17905_v8, %v17899_v16 }
 0xbce   : > { %v11156_v2 = vld [vmem:[#allocation2 + $0x3f] sm:$0xff]  ;;  %v9638_v4 = vsel %vm2688_vm8, %v9606_v44, %v20055_v32  ;;  %13257 = vmatpush3.bf16.msra.mxu0 %v13586_v21 }
 0xbcf   : > { %11705 = vrot.lane.b32.xlu0 %v11352_v1, %s19842_s22  ;;  %11482 = vrot.lane.b32.xlu1 %v11200_v6, %s19890_s14  ;;  %v18780_v41 = vpack.c.bf16 %v11156_v2, %v11155_v25  ;;  %v11220_v24 = vld [vmem:[#allocation2 + $0x40] sm:$0xff]  ;;  %v9397_v43 = vsel %vm604_vm0, %v20056_v26, %v18615_v48  ;;  %v20057_v2 = vld [vmem:[#allocation49_spill] sm:$0xff] }
 0xbd0   : > { %v18787_v61 = vpop.permute.xlu1 %10974  ;;  %v11249_v3 = vpack.c.bf16 %v11220_v24, %v11219_v10  ;;  %v10763_v54 = vrot.slane %v20057_v2, %v14071_v12  ;;  %v11267_v47 = vld [vmem:[#allocation2 + $0x39] sm:$0xff]  ;;  %v20063_v2 = vld [vmem:[#allocation68_spill] sm:$0xff] }
 0xbd1   : > { %v11201_v18 = vmul.bf16 %v18734_v5, %v18780_v41  ;;  %v11331_v1 = vmul.bf16 %v18678_v23, %v18780_v41  ;;  %v20082_v23 = vld [vmem:[#allocation82_spill] sm:$0xff] }
 0xbd2   : > { %v10382_v58 = vrot.slane %v20082_v23, %v14071_v12 }
 0xbd3   : > { %11436 = vrot.lane.b32.xlu0 %v11137_v11, %s19889_s25  ;;  %11578 = vrot.lane.b32.xlu1 %v11312_v19, %s19891_s1  ;;  %v10774_v11 = vrot.slane %v20058_v57, %v14071_v12  ;;  %v10194_v19 = vpop.permute.xlu0 %10193 }
 0xbd4   : > { %v9266_v30 = vpop.permute.xlu1 %9265  ;;  %v10202_v7 = vrot.slane %v10194_v19, %v14071_v12 }
 0xbd5   : > { %v9572_v36 = vsel %vm643_vm2, %v18637_v27, %v9266_v30  ;;  %v13588_v27 = vld [vmem:[%s19695_s11] sm:$0xff]   ;;  %v18860_v24 = vcombine.low %v10763_v54, %v10774_v11  ;;  %v10785_v54 = vrot.slane %v20063_v2, %v14071_v12 }
 0xbd6   : > { %v9604_v51 = vsel %vm2589_vm6, %v9572_v36, %v18699_v37  ;;  %v13587_v37 = vld [vmem:[%s19695_s11 + $0x8] sm:$0xff]  }
 0xbd7   : > { %11532 = vrot.lane.b32.xlu0 %v11249_v3, %s19888_s3  ;;  %11659 = vrot.lane.b32.xlu1 %v11249_v3, %s19841_s2  ;;  %v9636_v20 = vsel %vm2688_vm8, %v9604_v51, %v18707_v52 }
 0xbd8   : > { %v18820_v63 = vpop.permute.xlu1 %10409  ;;  %12780 = vmatprep.mubr.msk.bf16.mxu1 %vm9754_vm15, %v9636_v20  ;;  %13258 = vmatprep.subr.bf16.mxu0 %v13587_v37 }
 0xbd9   : > { %9935 = vmatmul.mubr.bf16.gmra.mxu1 %v9538_v34  ;;  %13259 = vmatpush3.bf16.msra.mxu0 %v13587_v37 }
 0xbda   : > { %v9848_v52 = vpop.f32.mrf.mxu1  ;;  %12781 = vmatprep.mubr.msk.bf16.mxu1 %vm9754_vm15, %v9638_v4  ;;  %13260 = vmatprep.subr.bf16.mxu0 %v13588_v27 }
 0xbdb   : > { %v9849_v31 = vadd.f32 %v18628_v45, %v9848_v52  ;;  %11484 = vrot.lane.b32.xlu0 %v11201_v18, %s19890_s14  ;;  %11390 = vrot.lane.b32.xlu1 %v11249_v3, %s19886_s23  ;;  %v20059_v3 = vld [vmem:[#allocation53_spill] sm:$0xff] }
 0xbdc   : > { %v9076_v28 = vpop.permute.xlu1 %9075  ;;  %v9850_v46 = vpop.f32.mrf.mxu1  ;;  %v10214_v40 = vrot.slane %v20059_v3, %v14071_v12 }
 0xbdd   : > { %v9957_v59 = vmax.f32 %v9849_v31, 0.0  ;;  %v9429_v50 = vsel %vm2622_vm7, %v9397_v43, %v9076_v28  ;;  %13261 = vmatpush3.bf16.msra.mxu0 %v13588_v27  ;;  %v20060_v43 = vld [vmem:[#allocation55_spill] sm:$0xff]  ;;  %v20061_v46 = vld [vmem:[#allocation56_spill] sm:$0xff] }
 0xbde   : > { %v9461_v6 = vsel %vm2764_vm10, %v9429_v50, %v9124_v53  ;;  %v9851_v38 = vpop.f32.mrf.mxu1  ;;  %v18872_v37 = vcombine.low %v10202_v7, %v10214_v40  ;;  %v10226_v28 = vrot.slane %v20060_v43, %v14071_v12  ;;  %v10238_v53 = vrot.slane %v20061_v46, %v14071_v12  ;;  %v10242_v40 = vpop.permute.xlu0 %10241 }
 0xbdf   : > { %9989 = vst.msk [vmem:[#allocation2 + $0x48] sm:$0xff] %vm2443_vm4, %v9957_v59  ;;  %v9852_v8 = vadd.f32 %v18628_v45, %v9851_v38  ;;  %11626 = vrot.lane.b32.xlu1 %v11331_v1, %s19892_s4  ;;  %v9493_v16 = vsel %vm6956_vm12, %v9461_v6, %v18599_v56 }
 0xbe0   : > { %v9853_v48 = vpop.f32.mrf.mxu1  ;;  %v9541_v49 = vsel %vm9494_vm1, %v9493_v16, %v18617_v17  ;;  %v20062_v16 = vld [vmem:[#allocation52_spill] sm:$0xff] }
 0xbe1   : > { %v9958_v25 = vmax.f32 %v9852_v8, 0.0  ;;  %9943 = vmatmul.mubr.bf16.gmra.mxu1 %v9541_v49  ;;  %v10796_v48 = vrot.slane %v20062_v16, %v14071_v12  ;;  %v18894_v49 = vcombine.low %v10226_v28, %v10238_v53  ;;  %v10250_v28 = vrot.slane %v10242_v40, %v14071_v12  ;;  %v20067_v40 = vld [vmem:[#allocation62_spill] sm:$0xff] }
 0xbe2   : > { %v18934_v46 = vpop.permute.xlu0 %10289 }
 0xbe3   : > { %9990 = vst.msk [vmem:[#allocation2 + $0x50] sm:$0xff] %vm2443_vm4, %v9958_v25 }
 0xbe6   : > { %v9856_v35 = vpop.f32.mrf.mxu1  ;;  %v11268_v56 = vld [vmem:[#allocation2 + $0x41] sm:$0xff] }
 0xbe7   : > { %v9857_v55 = vadd.f32 %v18628_v45, %v9856_v35  ;;  %v11297_v17 = vpack.c.bf16 %v11268_v56, %v11267_v47  ;;  %v11157_v34 = vld [vmem:[#allocation2 + $0x47] sm:$0xff]  ;;  %v18906_v47 = vcombine.low %v10785_v54, %v10796_v48 }
 0xbe8   : > { %v9858_v30 = vpop.f32.mrf.mxu1  ;;  %v11221_v32 = vld [vmem:[#allocation2 + $0x48] sm:$0xff] }
 0xbe9   : > { %v9959_v10 = vmax.f32 %v9857_v55, 0.0  ;;  %v11353_v21 = vmul.bf16 %v18723_v14, %v11297_v17  ;;  %v11138_v36 = vmul.bf16 %v18860_v24, %v11297_v17  ;;  %v11313_v52 = vmul.bf16 %v18774_v39, %v11297_v17 }
 0xbea   : > { %v9859_v29 = vpop.f32.mrf.mxu1  ;;  %v11222_v44 = vld [vmem:[#allocation2 + $0x50] sm:$0xff] }
 0xbeb   : > { %v11158_v51 = vld [vmem:[#allocation2 + $0x4f] sm:$0xff]  ;;  %9991 = vst.msk [vmem:[#allocation2 + $0x58] sm:$0xff] %vm2443_vm4, %v9959_v10  ;;  %v9860_v20 = vadd.f32 %v18628_v45, %v9859_v29  ;;  %11707 = vrot.lane.b32.xlu0 %v11353_v21, %s19842_s22  ;;  %11438 = vrot.lane.b32.xlu1 %v11138_v36, %s19889_s25  ;;  %v11250_v31 = vpack.c.bf16 %v11222_v44, %v11221_v32 }
 0xbec   : > { %v9861_v14 = vpop.f32.mrf.mxu1  ;;  %v18874_v4 = vpack.c.bf16 %v11158_v51, %v11157_v34  ;;  %v11269_v59 = vld [vmem:[#allocation2 + $0x49] sm:$0xff] }
 0xbed   : > { %v9960_v18 = vmax.f32 %v9860_v20, 0.0  ;;  %v20064_v20 = vld [vmem:[#allocation54_spill] sm:$0xff] }
 0xbee   : > { %v11332_v50 = vmul.bf16 %v18734_v5, %v18874_v4  ;;  %v11202_v1 = vmul.bf16 %v18785_v0, %v18874_v4  ;;  %v10807_v34 = vrot.slane %v20064_v20, %v14071_v12  ;;  %v20065_v14 = vld [vmem:[#allocation70_spill] sm:$0xff]  ;;  %v20085_v5 = vld [vmem:[#allocation79_spill] sm:$0xff] }
 0xbef   : > { %9992 = vst.msk [vmem:[#allocation2 + $0x60] sm:$0xff] %vm2443_vm4, %v9960_v18  ;;  %11580 = vrot.lane.b32.xlu0 %v11313_v52, %s19891_s1  ;;  %11534 = vrot.lane.b32.xlu1 %v11250_v31, %s19888_s3  ;;  %v10818_v32 = vrot.slane %v20065_v14, %v14071_v12  ;;  %v18929_v18 = vpop.permute.xlu1 %10421  ;;  %v10939_v22 = vrot.slane %v20085_v5, %v14071_v12 }
 0xbf1   : > { %v18931_v43 = vcombine.low %v10807_v34, %v10818_v32 }
 0xbf2   : > { %v11270_v26 = vld [vmem:[#allocation2 + $0x51] sm:$0xff] }
 0xbf3   : > { %11661 = vrot.lane.b32.xlu0 %v11250_v31, %s19841_s2  ;;  %11392 = vrot.lane.b32.xlu1 %v11250_v31, %s19886_s23  ;;  %v11298_v6 = vpack.c.bf16 %v11270_v26, %v11269_v59  ;;  %v11159_v38 = vld [vmem:[#allocation2 + $0x57] sm:$0xff] }
 0xbf4   : > { %v11223_v56 = vld [vmem:[#allocation2 + $0x58] sm:$0xff] }
 0xbf5   : > { %v11354_v57 = vmul.bf16 %v18774_v39, %v11298_v6  ;;  %v11314_v11 = vmul.bf16 %v18860_v24, %v11298_v6  ;;  %v11139_v55 = vmul.bf16 %v18906_v47, %v11298_v6 }
 0xbf6   : > { %v11160_v8 = vld [vmem:[#allocation2 + $0x5f] sm:$0xff] }
 0xbf7   : > { %11628 = vrot.lane.b32.xlu0 %v11332_v50, %s19892_s4  ;;  %11486 = vrot.lane.b32.xlu1 %v11202_v1, %s19890_s14  ;;  %v18898_v25 = vpack.c.bf16 %v11160_v8, %v11159_v38  ;;  %v11224_v35 = vld [vmem:[#allocation2 + $0x60] sm:$0xff] }
 0xbf8   : > { %v11251_v17 = vpack.c.bf16 %v11224_v35, %v11223_v56  ;;  %v11271_v31 = vld [vmem:[#allocation2 + $0x59] sm:$0xff]  ;;  %v18943_v35 = vpop.permute.xlu1 %11007 }
 0xbf9   : > { %v11203_v44 = vmul.bf16 %v18872_v37, %v18898_v25  ;;  %v11333_v51 = vmul.bf16 %v18785_v0, %v18898_v25  ;;  %v20066_v1 = vld [vmem:[#allocation58_spill] sm:$0xff] }
 0xbfa   : > { %v10262_v6 = vrot.slane %v20066_v1, %v14071_v12 }
 0xbfb   : > { %11709 = vrot.lane.b32.xlu0 %v11354_v57, %s19842_s22  ;;  %11582 = vrot.lane.b32.xlu1 %v11314_v11, %s19891_s1 }
 0xbfc   : > { %v18941_v11 = vcombine.low %v10250_v28, %v10262_v6  ;;  %v20069_v28 = vld [vmem:[#allocation57_spill] sm:$0xff]  ;;  %v20070_v6 = vld [vmem:[#allocation72_spill] sm:$0xff] }
 0xbfe   : > { %v9864_v7 = vpop.f32.mrf.mxu1 }
 0xbff   : > { %v9865_v30 = vadd.f32 %v18628_v45, %v9864_v7  ;;  %11440 = vrot.lane.b32.xlu0 %v11139_v55, %s19889_s25  ;;  %11663 = vrot.lane.b32.xlu1 %v11251_v17, %s19841_s2  ;;  %v18951_v7 = vpop.permute.xlu0 %10337 }
 0xc00   : > { %v9866_v39 = vpop.f32.mrf.mxu1 }
 0xc01   : > { %v9961_v10 = vmax.f32 %v9865_v30, 0.0 }
 0xc02   : > { %v9867_v21 = vpop.f32.mrf.mxu1 }
 0xc03   : > { %9993 = vst.msk [vmem:[#allocation2 + $0x68] sm:$0xff] %vm2443_vm4, %v9961_v10  ;;  %v9868_v36 = vadd.f32 %v18628_v45, %v9867_v21  ;;  %11536 = vrot.lane.b32.xlu0 %v11251_v17, %s19888_s3  ;;  %11394 = vrot.lane.b32.xlu1 %v11251_v17, %s19886_s23  ;;  %v18965_v20 = vpop.permute.xlu0 %10385 }
 0xc04   : > { %v9869_v3 = vpop.f32.mrf.mxu1 }
 0xc05   : > { %v9962_v29 = vmax.f32 %v9868_v36, 0.0  ;;  %v18959_v36 = vpop.permute.xlu1 %10445 }
 0xc07   : > { %9994 = vst.msk [vmem:[#allocation2 + $0x70] sm:$0xff] %vm2443_vm4, %v9962_v29  ;;  %11488 = vrot.lane.b32.xlu0 %v11203_v44, %s19890_s14  ;;  %11630 = vrot.lane.b32.xlu1 %v11333_v51, %s19892_s4  ;;  %v10274_v29 = vrot.slane %v20067_v40, %v14071_v12  ;;  %v20068_v44 = vld [vmem:[#allocation64_spill] sm:$0xff] }
 0xc08   : > { %v10286_v51 = vrot.slane %v20068_v44, %v14071_v12 }
 0xc0a   : > { %v9872_v52 = vpop.f32.mrf.mxu1  ;;  %v11272_v26 = vld [vmem:[#allocation2 + $0x61] sm:$0xff] }
 0xc0b   : > { %v9873_v53 = vadd.f32 %v18628_v45, %v9872_v52  ;;  %v11299_v59 = vpack.c.bf16 %v11272_v26, %v11271_v31  ;;  %v11161_v54 = vld [vmem:[#allocation2 + $0x67] sm:$0xff] }
 0xc0c   : > { %v9874_v50 = vpop.f32.mrf.mxu1  ;;  %v11225_v17 = vld [vmem:[#allocation2 + $0x68] sm:$0xff] }
 0xc0d   : > { %v9963_v38 = vmax.f32 %v9873_v53, 0.0  ;;  %v11355_v8 = vmul.bf16 %v18860_v24, %v11299_v59  ;;  %v11140_v16 = vmul.bf16 %v18931_v43, %v11299_v59  ;;  %v11315_v39 = vmul.bf16 %v18906_v47, %v11299_v59  ;;  %v18977_v50 = vpop.permute.xlu1 %11018 }
 0xc0e   : > { %v9875_v48 = vpop.f32.mrf.mxu1  ;;  %v11226_v2 = vld [vmem:[#allocation2 + $0x70] sm:$0xff]  ;;  %v10840_v53 = vrot.slane %v20069_v28, %v14071_v12  ;;  %v18975_v59 = vcombine.low %v10274_v29, %v10286_v51 }
 0xc0f   : > { %v11162_v57 = vld [vmem:[#allocation2 + $0x6f] sm:$0xff]  ;;  %9995 = vst.msk [vmem:[#allocation2 + $0x78] sm:$0xff] %vm2443_vm4, %v9963_v38  ;;  %v9876_v56 = vadd.f32 %v18628_v45, %v9875_v48  ;;  %11711 = vrot.lane.b32.xlu0 %v11355_v8, %s19842_s22  ;;  %11442 = vrot.lane.b32.xlu1 %v11140_v16, %s19889_s25  ;;  %v11252_v10 = vpack.c.bf16 %v11226_v2, %v11225_v17  ;;  %v18985_v8 = vpop.permute.xlu0 %10433 }
 0xc10   : > { %v18949_v55 = vpack.c.bf16 %v11162_v57, %v11161_v54  ;;  %v9877_v24 = vpop.f32.mrf.mxu1  ;;  %v11273_v34 = vld [vmem:[#allocation2 + $0x69] sm:$0xff]  ;;  %v10829_v38 = vrot.slane %v20070_v6, %v14071_v12 }
 0xc11   : > { %v9964_v30 = vmax.f32 %v9876_v56, 0.0  ;;  %v18993_v24 = vpop.permute.xlu1 %10457 }
 0xc12   : > { %v11334_v14 = vmul.bf16 %v18872_v37, %v18949_v55  ;;  %v11204_v32 = vmul.bf16 %v18894_v49, %v18949_v55  ;;  %v18991_v56 = vcombine.low %v10829_v38, %v10840_v53 }
 0xc13   : > { %9996 = vst.msk [vmem:[#allocation2 + $0x80] sm:$0xff] %vm2443_vm4, %v9964_v30  ;;  %11584 = vrot.lane.b32.xlu0 %v11315_v39, %s19891_s1  ;;  %11538 = vrot.lane.b32.xlu1 %v11252_v10, %s19888_s3  ;;  %v18999_v29 = vpop.permute.xlu0 %11384 }
 0xc16   : > { %v11274_v3 = vld [vmem:[#allocation2 + $0x71] sm:$0xff] }
 0xc17   : > { %11665 = vrot.lane.b32.xlu0 %v11252_v10, %s19841_s2  ;;  %11396 = vrot.lane.b32.xlu1 %v11252_v10, %s19886_s23  ;;  %v11300_v52 = vpack.c.bf16 %v11274_v3, %v11273_v34  ;;  %v11163_v31 = vld [vmem:[#allocation2 + $0x77] sm:$0xff]  ;;  %v19005_v34 = vpop.permute.xlu1 %10469 }
 0xc18   : > { %v11227_v39 = vld [vmem:[#allocation2 + $0x78] sm:$0xff] }
 0xc19   : > { %v11356_v16 = vmul.bf16 %v18906_v47, %v11300_v52  ;;  %v11316_v48 = vmul.bf16 %v18931_v43, %v11300_v52  ;;  %v11141_v10 = vmul.bf16 %v18991_v56, %v11300_v52  ;;  %v11433_v52 = vpop.permute.xlu0 %11432 }
 0xc1a   : > { %v11164_v26 = vld [vmem:[#allocation2 + $0x7f] sm:$0xff] }
 0xc1b   : > { %11632 = vrot.lane.b32.xlu0 %v11334_v14, %s19892_s4  ;;  %11490 = vrot.lane.b32.xlu1 %v11204_v32, %s19890_s14  ;;  %v18981_v1 = vpack.c.bf16 %v11164_v26, %v11163_v31  ;;  %v11228_v57 = vld [vmem:[#allocation2 + $0x80] sm:$0xff]  ;;  %v20071_v32 = vld [vmem:[#allocation60_spill] sm:$0xff] }
 0xc1c   : > { %v11253_v3 = vpack.c.bf16 %v11228_v57, %v11227_v39  ;;  %v10851_v31 = vrot.slane %v20071_v32, %v14071_v12  ;;  %v20072_v26 = vld [vmem:[#allocation74_spill] sm:$0xff]  ;;  %v10298_v57 = vrot.slane %v18934_v46, %v14071_v12 }
 0xc1d   : > { %v10862_v28 = vrot.slane %v20072_v26, %v14071_v12  ;;  %v11205_v53 = vmul.bf16 %v18941_v11, %v18981_v1  ;;  %v11335_v6 = vmul.bf16 %v18894_v49, %v18981_v1 }
 0xc1e   : > { %v9880_v54 = vpop.f32.mrf.mxu1 }
 0xc1f   : > { %v9881_v17 = vadd.f32 %v18628_v45, %v9880_v54  ;;  %11713 = vrot.lane.b32.xlu0 %v11356_v16, %s19842_s22  ;;  %11586 = vrot.lane.b32.xlu1 %v11316_v48, %s19891_s1  ;;  %v19018_v38 = vcombine.low %v10851_v31, %v10862_v28  ;;  %v11275_v48 = vld [vmem:[#allocation2 + $0x79] sm:$0xff] }
 0xc20   : > { %v9882_v30 = vpop.f32.mrf.mxu1 }
 0xc21   : > { %v9965_v47 = vmax.f32 %v9881_v17, 0.0  ;;  %v19022_v17 = vpop.permute.xlu1 %11687 }
 0xc22   : > { %v9883_v40 = vpop.f32.mrf.mxu1 }
 0xc23   : > { %9997 = vst.msk [vmem:[#allocation2 + $0x88] sm:$0xff] %vm2443_vm4, %v9965_v47  ;;  %v9884_v44 = vadd.f32 %v18628_v45, %v9883_v40  ;;  %11444 = vrot.lane.b32.xlu0 %v11141_v10, %s19889_s25  ;;  %11667 = vrot.lane.b32.xlu1 %v11253_v3, %s19841_s2  ;;  %v20073_v10 = vld [vmem:[#allocation67_spill] sm:$0xff] }
 0xc24   : > { %v9885_v51 = vpop.f32.mrf.mxu1  ;;  %v10047_v40 = vld [vmem:[#allocation2 + $0x7] sm:$0xff] }
 0xc25   : > { %v9966_v14 = vmax.f32 %v9884_v44, 0.0  ;;  %v10048_v44 = vld [vmem:[#allocation2 + $0xf] sm:$0xff]  ;;  %v11529_v51 = vpop.permute.xlu0 %11528 }
 0xc27   : > { %9998 = vst.msk [vmem:[#allocation2 + $0x90] sm:$0xff] %vm2443_vm4, %v9966_v14  ;;  %11540 = vrot.lane.b32.xlu0 %v11253_v3, %s19888_s3  ;;  %11398 = vrot.lane.b32.xlu1 %v11253_v3, %s19886_s23  ;;  %v10310_v3 = vrot.slane %v20073_v10, %v14071_v12 }
 0xc29   : > { %v11481_v10 = vpop.permute.xlu0 %11480 }
 0xc2a   : > { %v9888_v16 = vpop.f32.mrf.mxu1  ;;  %v11276_v54 = vld [vmem:[#allocation2 + $0x81] sm:$0xff] }
 0xc2b   : > { %v9889_v30 = vadd.f32 %v18628_v45, %v9888_v16  ;;  %11492 = vrot.lane.b32.xlu0 %v11205_v53, %s19890_s14  ;;  %11634 = vrot.lane.b32.xlu1 %v11335_v6, %s19892_s4  ;;  %v11301_v39 = vpack.c.bf16 %v11276_v54, %v11275_v48  ;;  %v11165_v28 = vld [vmem:[#allocation2 + $0x87] sm:$0xff]  ;;  %v19031_v53 = vcombine.low %v10298_v57, %v10310_v3 }
 0xc2c   : > { %v9890_v47 = vpop.f32.mrf.mxu1  ;;  %v10079_v54 = vpack.c.bf16 %v10048_v44, %v10047_v40 }
 0xc2d   : > { %v9967_v14 = vmax.f32 %v9889_v30, 0.0  ;;  %v11357_v32 = vmul.bf16 %v18931_v43, %v11301_v39  ;;  %v11142_v46 = vmul.bf16 %v19018_v38, %v11301_v39  ;;  %v11229_v30 = vld [vmem:[#allocation2 + $0x88] sm:$0xff]  ;;  %v19039_v47 = vpop.permute.xlu1 %11386  ;;  %v11317_v57 = vmul.bf16 %v18991_v56, %v11301_v39  ;;  %v20075_v39 = vld [vmem:[#allocation73_spill] sm:$0xff] }
 0xc2e   : > { %v9891_v31 = vpop.f32.mrf.mxu1  ;;  %v11230_v26 = vld [vmem:[#allocation2 + $0x90] sm:$0xff]  ;;  %v10575_v40 = vmul.bf16 %v18697_v60, %v10079_v54 }
 0xc2f   : > { %v11166_v16 = vld [vmem:[#allocation2 + $0x8f] sm:$0xff]  ;;  %9999 = vst.msk [vmem:[#allocation2 + $0x98] sm:$0xff] %vm2443_vm4, %v9967_v14  ;;  %v9892_v6 = vadd.f32 %v18628_v45, %v9891_v31  ;;  %11715 = vrot.lane.b32.xlu0 %v11357_v32, %s19842_s22  ;;  %11446 = vrot.lane.b32.xlu1 %v11142_v46, %s19889_s25  ;;  %v11254_v3 = vpack.c.bf16 %v11230_v26, %v11229_v30  ;;  %v20074_v31 = vld [vmem:[#allocation71_spill] sm:$0xff] }
 0xc30   : > { %v19037_v48 = vpack.c.bf16 %v11166_v16, %v11165_v28  ;;  %v9893_v43 = vpop.f32.mrf.mxu1  ;;  %v10322_v28 = vrot.slane %v20074_v31, %v14071_v12  ;;  %v10334_v26 = vrot.slane %v20075_v39, %v14071_v12  ;;  %v11739_v16 = vsel %vm2443_vm4, %v10575_v40, %v18999_v29  ;;  %v11277_v60 = vld [vmem:[#allocation2 + $0x89] sm:$0xff]  ;;  %v20076_v39 = vld [vmem:[#allocation66_spill] sm:$0xff] }
 0xc31   : > { %v9968_v2 = vmax.f32 %v9892_v6, 0.0 }
 0xc32   : > { %v11336_v30 = vmul.bf16 %v18941_v11, %v19037_v48  ;;  %v19068_v14 = vcombine.low %v10322_v28, %v10334_v26 }
 0xc33   : > { %10000 = vst.msk [vmem:[#allocation2 + $0xa0] sm:$0xff] %vm2443_vm4, %v9968_v2  ;;  %11588 = vrot.lane.b32.xlu0 %v11317_v57, %s19891_s1  ;;  %11542 = vrot.lane.b32.xlu1 %v11254_v3, %s19888_s3  ;;  %v11786_v2 = vsel %vm643_vm2, %v11739_v16, %v11433_v52  ;;  %v11206_v57 = vmul.bf16 %v18975_v59, %v19037_v48 }
 0xc34   : > { %v11818_v6 = vsel %vm604_vm0, %v11786_v2, %v11481_v10  ;;  %v20077_v10 = vld [vmem:[#allocation76_spill] sm:$0xff] }
 0xc35   : > { %v11577_v44 = vpop.permute.xlu0 %11576  ;;  %v19048_v32 = vpop.permute.xlu1 %11434  ;;  %v10873_v16 = vrot.slane %v20077_v10, %v14071_v12  ;;  %v11850_v2 = vsel %vm2556_vm5, %v11818_v6, %v11529_v51 }
 0xc36   : > { %v11278_v46 = vld [vmem:[#allocation2 + $0x91] sm:$0xff] }
 0xc37   : > { %11669 = vrot.lane.b32.xlu0 %v11254_v3, %s19841_s2  ;;  %11400 = vrot.lane.b32.xlu1 %v11254_v3, %s19886_s23  ;;  %v11302_v31 = vpack.c.bf16 %v11278_v46, %v11277_v60  ;;  %v11167_v29 = vld [vmem:[#allocation2 + $0x97] sm:$0xff]  ;;  %v10884_v3 = vrot.slane %v20076_v39, %v14071_v12  ;;  %v11882_v46 = vsel %vm2589_vm6, %v11850_v2, %v11577_v44 }
 0xc38   : > { %v11231_v19 = vld [vmem:[#allocation2 + $0x98] sm:$0xff] }
 0xc39   : > { %v11658_v54 = vpop.permute.xlu0 %11657  ;;  %v19060_v43 = vpop.permute.xlu1 %11530  ;;  %v11358_v39 = vmul.bf16 %v18991_v56, %v11302_v31  ;;  %v11318_v28 = vmul.bf16 %v19018_v38, %v11302_v31 }
 0xc3a   : > { %v11168_v40 = vld [vmem:[#allocation2 + $0x9f] sm:$0xff] }
 0xc3b   : > { %11636 = vrot.lane.b32.xlu0 %v11336_v30, %s19892_s4  ;;  %11494 = vrot.lane.b32.xlu1 %v11206_v57, %s19890_s14  ;;  %v19072_v52 = vpack.c.bf16 %v11168_v40, %v11167_v29  ;;  %v19085_v29 = vcombine.low %v10873_v16, %v10884_v3  ;;  %v11232_v51 = vld [vmem:[#allocation2 + $0xa0] sm:$0xff] }
 0xc3c   : > { %v11255_v16 = vpack.c.bf16 %v11232_v51, %v11231_v19  ;;  %v20079_v19 = vld [vmem:[#allocation78_spill] sm:$0xff] }
 0xc3d   : > { %v11625_v60 = vpop.permute.xlu0 %11624  ;;  %v19078_v21 = vpop.permute.xlu1 %11388  ;;  %v11143_v26 = vmul.bf16 %v19085_v29, %v11302_v31  ;;  %v20078_v31 = vld [vmem:[#allocation69_spill] sm:$0xff]  ;;  %v11337_v51 = vmul.bf16 %v18975_v59, %v19072_v52 }
 0xc3e   : > { %v11914_v30 = vsel %vm2622_vm7, %v11882_v46, %v11625_v60  ;;  %v9896_v57 = vpop.f32.mrf.mxu1 }
 0xc3f   : > { %v9897_v40 = vadd.f32 %v18628_v45, %v9896_v57  ;;  %11717 = vrot.lane.b32.xlu0 %v11358_v39, %s19842_s22  ;;  %11590 = vrot.lane.b32.xlu1 %v11318_v28, %s19891_s1  ;;  %v11946_v56 = vsel %vm2655_vm9, %v11914_v30, %v11658_v54  ;;  %v10895_v30 = vrot.slane %v20078_v31, %v14071_v12 }
 0xc40   : > { %v9898_v44 = vpop.f32.mrf.mxu1  ;;  %v10906_v57 = vrot.slane %v20079_v19, %v14071_v12 }
 0xc41   : > { %v9969_v6 = vmax.f32 %v9897_v40, 0.0  ;;  %v11706_v10 = vpop.permute.xlu0 %11705  ;;  %v11483_v2 = vpop.permute.xlu1 %11482  ;;  %v11279_v44 = vld [vmem:[#allocation2 + $0x99] sm:$0xff] }
 0xc42   : > { %v11978_v46 = vsel %vm2688_vm8, %v11946_v56, %v11706_v10  ;;  %v9899_v3 = vpop.f32.mrf.mxu1  ;;  %v19109_v56 = vcombine.low %v10895_v30, %v10906_v57  ;;  %v10346_v10 = vrot.slane %v18951_v7, %v14071_v12 }
 0xc43   : > { %10001 = vst.msk [vmem:[#allocation2 + $0xa8] sm:$0xff] %vm2443_vm4, %v9969_v6  ;;  %v9900_v60 = vadd.f32 %v18628_v45, %v9899_v3  ;;  %13262 = vmatprep.mubr.msk.bf16.mxu0 %vm2764_vm10, %v11978_v46  ;;  %11448 = vrot.lane.b32.xlu0 %v11143_v26, %s19889_s25  ;;  %v11207_v26 = vmul.bf16 %v19031_v53, %v19072_v52 }
 0xc44   : > { %11671 = vrot.lane.b32.xlu1 %v11255_v16, %s19841_s2  ;;  %v9901_v54 = vpop.f32.mrf.mxu1 }
 0xc45   : > { %v9970_v39 = vmax.f32 %v9900_v60, 0.0  ;;  %v11579_v28 = vpop.permute.xlu1 %11578  ;;  %v20080_v54 = vld [vmem:[#allocation77_spill] sm:$0xff]  ;;  %v19118_v31 = vpop.permute.xlu0 %11436 }
 0xc47   : > { %10002 = vst.msk [vmem:[#allocation2 + $0xb0] sm:$0xff] %vm2443_vm4, %v9970_v39  ;;  %11544 = vrot.lane.b32.xlu0 %v11255_v16, %s19888_s3  ;;  %v10358_v39 = vrot.slane %v20080_v54, %v14071_v12 }
 0xc48   : > { %11402 = vrot.lane.b32.xlu1 %v11255_v16, %s19886_s23 }
 0xc49   : > { %v11660_v46 = vpop.permute.xlu1 %11659 }
 0xc4a   : > { %v9904_v40 = vpop.f32.mrf.mxu1  ;;  %v11280_v6 = vld [vmem:[#allocation2 + $0xa1] sm:$0xff] }
 0xc4b   : > { %v9905_v3 = vadd.f32 %v18628_v45, %v9904_v40  ;;  %11496 = vrot.lane.b32.xlu0 %v11207_v26, %s19890_s14  ;;  %v11303_v16 = vpack.c.bf16 %v11280_v6, %v11279_v44  ;;  %v11169_v27 = vld [vmem:[#allocation2 + $0xa7] sm:$0xff]  ;;  %v19122_v40 = vcombine.low %v10346_v10, %v10358_v39 }
 0xc4c   : > { %11638 = vrot.lane.b32.xlu1 %v11337_v51, %s19892_s4  ;;  %v9906_v60 = vpop.f32.mrf.mxu1  ;;  %v11233_v54 = vld [vmem:[#allocation2 + $0xa8] sm:$0xff] }
 0xc4d   : > { %v9971_v19 = vmax.f32 %v9905_v3, 0.0  ;;  %v11359_v30 = vmul.bf16 %v19018_v38, %v11303_v16  ;;  %v11144_v57 = vmul.bf16 %v19109_v56, %v11303_v16  ;;  %v19130_v38 = vpop.permute.xlu1 %11390  ;;  %v11319_v60 = vmul.bf16 %v19085_v29, %v11303_v16 }
 0xc4e   : > { %v9907_v7 = vpop.f32.mrf.mxu1  ;;  %v11170_v62 = vld [vmem:[#allocation2 + $0xaf] sm:$0xff] }
 0xc4f   : > { %10003 = vst.msk [vmem:[#allocation2 + $0xb8] sm:$0xff] %vm2443_vm4, %v9971_v19  ;;  %v9908_v26 = vadd.f32 %v18628_v45, %v9907_v7  ;;  %11719 = vrot.lane.b32.xlu0 %v11359_v30, %s19842_s22  ;;  %v11234_v51 = vld [vmem:[#allocation2 + $0xb0] sm:$0xff]  ;;  %v19127_v44 = vpack.c.bf16 %v11170_v62, %v11169_v27  ;;  %v11742_v45 = vsel %vm2443_vm4, %v10576_v15, %v19039_v47  ;;  %v19140_v62 = vpop.permute.xlu0 %11532 }
 0xc50   : > { %11450 = vrot.lane.b32.xlu1 %v11144_v57, %s19889_s25  ;;  %v9909_v6 = vpop.f32.mrf.mxu1  ;;  %v11256_v39 = vpack.c.bf16 %v11234_v51, %v11233_v54  ;;  %v11788_v27 = vsel %vm643_vm2, %v11742_v45, %v19048_v32  ;;  %v20081_v30 = vld [vmem:[#allocation80_spill] sm:$0xff]  ;;  %v20083_v45 = vld [vmem:[#allocation75_spill] sm:$0xff] }
 0xc51   : > { %v9972_v3 = vmax.f32 %v9908_v26, 0.0  ;;  %v10585_v10 = vmul.bf16 %v19122_v40, %v19127_v44  ;;  %v11820_v16 = vsel %vm604_vm0, %v11788_v27, %v11483_v2  ;;  %v10370_v57 = vrot.slane %v20081_v30, %v14071_v12  ;;  %v11627_v15 = vpop.permute.xlu1 %11626  ;;  %v11281_v32 = vld [vmem:[#allocation2 + $0xa9] sm:$0xff] }
 0xc52   : > { %v11852_v47 = vsel %vm2556_vm5, %v11820_v16, %v19060_v43  ;;  %v11338_v2 = vmul.bf16 %v19031_v53, %v19127_v44  ;;  %v10928_v43 = vrot.slane %v20083_v45, %v14071_v12 }
 0xc53   : > { %10004 = vst.msk [vmem:[#allocation2 + $0xc0] sm:$0xff] %vm2443_vm4, %v9972_v3  ;;  %11592 = vrot.lane.b32.xlu0 %v11319_v60, %s19891_s1  ;;  %v11884_v7 = vsel %vm2589_vm6, %v11852_v47, %v11579_v28  ;;  %v11485_v26 = vpop.permute.xlu0 %11484  ;;  %v11208_v3 = vmul.bf16 %v19068_v14, %v19127_v44  ;;  %v19164_v27 = vcombine.low %v10370_v57, %v10382_v58 }
 0xc54   : > { %11546 = vrot.lane.b32.xlu1 %v11256_v39, %s19888_s3  ;;  %v11916_v6 = vsel %vm2622_vm7, %v11884_v7, %v11627_v15 }
 0xc55   : > { %v11948_v30 = vsel %vm2655_vm9, %v11916_v6, %v11660_v46 }
 0xc56   : > { %v11282_v19 = vld [vmem:[#allocation2 + $0xb1] sm:$0xff] }
 0xc57   : > { %11673 = vrot.lane.b32.xlu0 %v11256_v39, %s19841_s2  ;;  %v11304_v51 = vpack.c.bf16 %v11282_v19, %v11281_v32  ;;  %v11171_v60 = vld [vmem:[#allocation2 + $0xb7] sm:$0xff] }
 0xc58   : > { %11404 = vrot.lane.b32.xlu1 %v11256_v39, %s19886_s23  ;;  %v20084_v39 = vld [vmem:[#allocation81_spill] sm:$0xff] }
 0xc59   : > { %v10917_v16 = vrot.slane %v20084_v39, %v14071_v12  ;;  %v11360_v15 = vmul.bf16 %v19085_v29, %v11304_v51  ;;  %v11320_v32 = vmul.bf16 %v19109_v56, %v11304_v51 }
 0xc5a   : > { %v11172_v54 = vld [vmem:[#allocation2 + $0xbf] sm:$0xff] }
 0xc5b   : > { %11640 = vrot.lane.b32.xlu0 %v11338_v2, %s19892_s4  ;;  %v19167_v28 = vpack.c.bf16 %v11172_v54, %v11171_v60  ;;  %v19180_v7 = vcombine.low %v10917_v16, %v10928_v43  ;;  %v19185_v2 = vld [vmem:[%s19694_s10] ss:$0 sm:$0xff]  ;;  %v11235_v43 = vld [vmem:[#allocation2 + $0xb8] sm:$0xff] }
 0xc5c   : > { %11498 = vrot.lane.b32.xlu1 %v11208_v3, %s19890_s14  ;;  %v11236_v29 = vld [vmem:[#allocation2 + $0xc0] sm:$0xff] }
 0xc5d   : > { %v11708_v19 = vpop.permute.xlu0 %11707  ;;  %v19173_v23 = vpop.permute.xlu1 %11438  ;;  %v10586_v57 = vmul.bf16 %v19164_v27, %v19167_v28  ;;  %v11145_v45 = vmul.bf16 %v19180_v7, %v11304_v51  ;;  %v11257_v16 = vpack.c.bf16 %v11236_v29, %v11235_v43 }
 0xc5e   : > { %v11980_v58 = vsel %vm2688_vm8, %v11948_v30, %v11708_v19  ;;  %v9912_v47 = vpop.f32.mrf.mxu1  ;;  %v11745_v19 = vsel %vm2443_vm4, %v10577_v13, %v19078_v21  ;;  %v20086_v21 = vld [vmem:[#allocation83_spill] sm:$0xff] }
 0xc5f   : > { %v9913_v46 = vadd.f32 %v19185_v2, %v9912_v47  ;;  %11721 = vrot.lane.b32.xlu0 %v11360_v15, %s19842_s22  ;;  %13263 = vmatmul.mubr.msk.bf16.vlgmr.msra.gmra.mxu0 %vm2764_vm10, %v11980_v58  ;;  %v11790_v15 = vsel %vm643_vm2, %v11745_v19, %v19118_v31  ;;  %v10950_v31 = vrot.slane %v20086_v21, %v14071_v12  ;;  %v11283_v19 = vld [vmem:[#allocation2 + $0xb9] sm:$0xff] }
 0xc60   : > { %11594 = vrot.lane.b32.xlu1 %v11320_v32, %s19891_s1  ;;  %v9914_v6 = vpop.f32.mrf.mxu1  ;;  %v11822_v58 = vsel %vm604_vm0, %v11790_v15, %v11485_v26 }
 0xc61   : > { %v9973_v3 = vmax.f32 %v9913_v46, 0.0  ;;  %v11581_v60 = vpop.permute.xlu0 %11580  ;;  %v19191_v54 = vpop.permute.xlu1 %11534  ;;  %v11854_v13 = vsel %vm2556_vm5, %v11822_v58, %v19140_v62 }
 0xc62   : > { %v9915_v39 = vpop.f32.mrf.mxu1  ;;  %v11886_v26 = vsel %vm2589_vm6, %v11854_v13, %v11581_v60 }
 0xc63   : > { %10005 = vst.msk [vmem:[#allocation2 + $0xc8] sm:$0xff] %vm2443_vm4, %v9973_v3  ;;  %v9916_v30 = vadd.f32 %v19185_v2, %v9915_v39  ;;  %11452 = vrot.lane.b32.xlu0 %v11145_v45, %s19889_s25  ;;  %v11209_v3 = vmul.bf16 %v19122_v40, %v19167_v28  ;;  %v11339_v39 = vmul.bf16 %v19068_v14, %v19167_v28 }
 0xc64   : > { %11675 = vrot.lane.b32.xlu1 %v11257_v16, %s19841_s2  ;;  %v9917_v51 = vpop.f32.mrf.mxu1 }
 0xc65   : > { %v9974_v47 = vmax.f32 %v9916_v30, 0.0  ;;  %v11662_v32 = vpop.permute.xlu0 %11661  ;;  %v19206_v46 = vpop.permute.xlu1 %11392  ;;  %v19223_v30 = vcombine.low %v10939_v22, %v10950_v31  ;;  %v20087_v51 = vld [vmem:[#allocation86_spill] sm:$0xff] }
 0xc66   : > { %v10406_v58 = vrot.slane %v20087_v51, %v14071_v12 }
 0xc67   : > { %10006 = vst.msk [vmem:[#allocation2 + $0xd0] sm:$0xff] %vm2443_vm4, %v9974_v47  ;;  %11548 = vrot.lane.b32.xlu0 %v11257_v16, %s19888_s3 }
 0xc68   : > { %11406 = vrot.lane.b32.xlu1 %v11257_v16, %s19886_s23  ;;  %v10394_v16 = vrot.slane %v18965_v20, %v14071_v12 }
 0xc69   : > { %v11629_v29 = vpop.permute.xlu0 %11628  ;;  %v11487_v6 = vpop.permute.xlu1 %11486 }
 0xc6a   : > { %v11918_v45 = vsel %vm2622_vm7, %v11886_v26, %v11629_v29  ;;  %v9920_v43 = vpop.f32.mrf.mxu1  ;;  %v11284_v62 = vld [vmem:[#allocation2 + $0xc1] sm:$0xff] }
 0xc6b   : > { %v9921_v60 = vadd.f32 %v19185_v2, %v9920_v43  ;;  %11500 = vrot.lane.b32.xlu0 %v11209_v3, %s19890_s14  ;;  %v11305_v15 = vpack.c.bf16 %v11284_v62, %v11283_v19  ;;  %v11950_v21 = vsel %vm2655_vm9, %v11918_v45, %v11662_v32  ;;  %v11173_v3 = vld [vmem:[#allocation2 + $0xc7] sm:$0xff]  ;;  %v19236_v19 = vcombine.low %v10394_v16, %v10406_v58 }
 0xc6c   : > { %11642 = vrot.lane.b32.xlu1 %v11339_v39, %s19892_s4  ;;  %v9922_v47 = vpop.f32.mrf.mxu1  ;;  %v11237_v58 = vld [vmem:[#allocation2 + $0xc8] sm:$0xff] }
 0xc6d   : > { %v9975_v5 = vmax.f32 %v9921_v60, 0.0  ;;  %v11710_v13 = vpop.permute.xlu0 %11709  ;;  %v11583_v22 = vpop.permute.xlu1 %11582  ;;  %v11361_v31 = vmul.bf16 %v19109_v56, %v11305_v15  ;;  %v11146_v20 = vmul.bf16 %v19223_v30, %v11305_v15  ;;  %v11321_v16 = vmul.bf16 %v19180_v7, %v11305_v15 }
 0xc6e   : > { %v11982_v26 = vsel %vm2688_vm8, %v11950_v21, %v11710_v13  ;;  %v9923_v29 = vpop.f32.mrf.mxu1  ;;  %v11174_v43 = vld [vmem:[#allocation2 + $0xcf] sm:$0xff]  ;;  %v10430_v15 = vrot.slane %v18929_v18, %v14071_v12 }
 0xc6f   : > { %10007 = vst.msk [vmem:[#allocation2 + $0xd8] sm:$0xff] %vm2443_vm4, %v9975_v5  ;;  %v9924_v39 = vadd.f32 %v19185_v2, %v9923_v29  ;;  %11723 = vrot.lane.b32.xlu0 %v11361_v31, %s19842_s22  ;;  %13266 = vmatprep.mubr.msk.bf16.mxu0 %vm2764_vm10, %v11982_v26  ;;  %v11238_v32 = vld [vmem:[#allocation2 + $0xd0] sm:$0xff]  ;;  %v19242_v45 = vpack.c.bf16 %v11174_v43, %v11173_v3 }
 0xc70   : > { %11454 = vrot.lane.b32.xlu1 %v11146_v20, %s19889_s25  ;;  %v9925_v56 = vpop.f32.mrf.mxu1  ;;  %v11258_v5 = vpack.c.bf16 %v11238_v32, %v11237_v58  ;;  %v10418_v31 = vrot.slane %v18820_v63, %v14071_v12  ;;  %v20088_v20 = vmul.bf16 %v18785_v0, %v18780_v41  ;;  %v11285_v43 = vld [vmem:[#allocation2 + $0xc9] sm:$0xff]  ;;  %v20090_v58 = vld [vmem:[#allocation85_spill] sm:$0xff] }
 0xc71   : > { %v9976_v62 = vmax.f32 %v9924_v39, 0.0  ;;  %v11441_v60 = vpop.permute.xlu0 %11440  ;;  %v11664_v51 = vpop.permute.xlu1 %11663  ;;  %v10587_v47 = vmul.bf16 %v19236_v19, %v19242_v45  ;;  %v11340_v18 = vmul.bf16 %v19122_v40, %v19242_v45  ;;  %v11210_v41 = vmul.bf16 %v19164_v27, %v19242_v45  ;;  %v20089_v32 = vld [vmem:[#allocation84_spill] sm:$0xff] }
 0xc72   : > { %v11748_v26 = vsel %vm2443_vm4, %v20088_v20, %v19130_v38  ;;  %v10972_v56 = vrot.slane %v20089_v32, %v14071_v12 }
 0xc73   : > { %10008 = vst.msk [vmem:[#allocation2 + $0xe0] sm:$0xff] %vm2443_vm4, %v9976_v62  ;;  %11596 = vrot.lane.b32.xlu0 %v11321_v16, %s19891_s1  ;;  %v11792_v3 = vsel %vm643_vm2, %v11748_v26, %v19173_v23  ;;  %v19273_v62 = vcombine.low %v10418_v31, %v10430_v15 }
 0xc74   : > { %11550 = vrot.lane.b32.xlu1 %v11258_v5, %s19888_s3  ;;  %v11824_v63 = vsel %vm604_vm0, %v11792_v3, %v11487_v6 }
 0xc75   : > { %v19251_v13 = vpop.permute.xlu1 %11394  ;;  %v11537_v29 = vpop.permute.xlu0 %11536  ;;  %v11856_v6 = vsel %vm2556_vm5, %v11824_v63, %v19191_v54 }
 0xc76   : > { %v11286_v21 = vld [vmem:[#allocation2 + $0xd1] sm:$0xff] }
 0xc77   : > { %11677 = vrot.lane.b32.xlu0 %v11258_v5, %s19841_s2  ;;  %v11306_v39 = vpack.c.bf16 %v11286_v21, %v11285_v43  ;;  %v11175_v0 = vld [vmem:[#allocation2 + $0xd7] sm:$0xff]  ;;  %v11888_v21 = vsel %vm2589_vm6, %v11856_v6, %v11583_v22 }
 0xc78   : > { %11408 = vrot.lane.b32.xlu1 %v11258_v5, %s19886_s23  ;;  %v10961_v5 = vrot.slane %v20090_v58, %v14071_v12 }
 0xc79   : > { %v11631_v23 = vpop.permute.xlu1 %11630  ;;  %v11489_v20 = vpop.permute.xlu0 %11488  ;;  %v11362_v26 = vmul.bf16 %v19180_v7, %v11306_v39  ;;  %v11322_v3 = vmul.bf16 %v19223_v30, %v11306_v39 }
 0xc7a   : > { %v11176_v38 = vld [vmem:[#allocation2 + $0xdf] sm:$0xff]  ;;  %v11920_v15 = vsel %vm2622_vm7, %v11888_v21, %v11631_v23  ;;  %v19289_v43 = vcombine.low %v10961_v5, %v10972_v56 }
 0xc7b   : > { %11644 = vrot.lane.b32.xlu0 %v11340_v18, %s19892_s4  ;;  %v19276_v16 = vpack.c.bf16 %v11176_v38, %v11175_v0  ;;  %v11240_v54 = vld [vmem:[#allocation2 + $0xe0] sm:$0xff]  ;;  %v11952_v22 = vsel %vm2655_vm9, %v11920_v15, %v11664_v51  ;;  %v20091_v51 = vmul.bf16 %v18872_v37, %v18874_v4 }
 0xc7c   : > { %11502 = vrot.lane.b32.xlu1 %v11210_v41, %s19890_s14  ;;  %v11147_v7 = vmul.bf16 %v19289_v43, %v11306_v39  ;;  %v11239_v41 = vld [vmem:[#allocation2 + $0xd8] sm:$0xff] }
 0xc7d   : > { %v10588_v31 = vmul.bf16 %v19273_v62, %v19276_v16  ;;  %v11259_v38 = vpack.c.bf16 %v11240_v54, %v11239_v41  ;;  %v11751_v39 = vsel %vm2443_vm4, %v20091_v51, %v19206_v46  ;;  %v11211_v37 = vmul.bf16 %v19236_v19, %v19276_v16 }
 0xc7e   : > { %v11794_v58 = vsel %vm643_vm2, %v11751_v39, %v11441_v60  ;;  %v11341_v46 = vmul.bf16 %v19164_v27, %v19276_v16 }
 0xc7f   : > { %11725 = vrot.lane.b32.xlu0 %v11362_v26, %s19842_s22  ;;  %v11826_v21 = vsel %vm604_vm0, %v11794_v58, %v11489_v20 }
 0xc80   : > { %11598 = vrot.lane.b32.xlu1 %v11322_v3, %s19891_s1  ;;  %v11858_v54 = vsel %vm2556_vm5, %v11826_v21, %v11537_v29  ;;  %v10454_v21 = vrot.slane %v18959_v36, %v14071_v12 }
 0xc81   : > { %v11712_v63 = vpop.permute.xlu0 %11711  ;;  %v19294_v18 = vpop.permute.xlu1 %11442 }
 0xc82   : > { %v11984_v0 = vsel %vm2688_vm8, %v11952_v22, %v11712_v63 }
 0xc83   : > { %11456 = vrot.lane.b32.xlu0 %v11147_v7, %s19889_s25  ;;  %13267 = vmatmul.mubr.msk.bf16.gmra.mxu0 %vm2764_vm10, %v11984_v0 }
 0xc84   : > { %11679 = vrot.lane.b32.xlu1 %v11259_v38, %s19841_s2 }
 0xc85   : > { %v11585_v32 = vpop.permute.xlu0 %11584  ;;  %v19301_v56 = vpop.permute.xlu1 %11538 }
 0xc86   : > { %v9928_v23 = vpop.f32.mrf.mxu1  ;;  %v11890_v63 = vsel %vm2589_vm6, %v11858_v54, %v11585_v32  ;;  %v11287_v32 = vld [vmem:[#allocation2 + $0xd9] sm:$0xff] }
 0xc87   : > { %v9929_v6 = vadd.f32 %v19185_v2, %v9928_v23  ;;  %11552 = vrot.lane.b32.xlu0 %v11259_v38, %s19888_s3  ;;  %v10994_v23 = vrot.slane %v18630_v33, %v14071_v12 }
 0xc88   : > { %11410 = vrot.lane.b32.xlu1 %v11259_v38, %s19886_s23  ;;  %v9930_v5 = vpop.f32.mrf.mxu1  ;;  %v10983_v38 = vrot.slane %v18787_v61, %v14071_v12 }
 0xc89   : > { %v9977_v26 = vmax.f32 %v9929_v6, 0.0  ;;  %v11666_v15 = vpop.permute.xlu0 %11665  ;;  %v19313_v3 = vpop.permute.xlu1 %11396 }
 0xc8a   : > { %v9931_v4 = vpop.f32.mrf.mxu1  ;;  %v19333_v5 = vcombine.low %v10983_v38, %v10994_v23 }
 0xc8b   : > { %10009 = vst.msk [vmem:[#allocation2 + $0xe8] sm:$0xff] %vm2443_vm4, %v9977_v26  ;;  %v9932_v60 = vadd.f32 %v19185_v2, %v9931_v4  ;;  %11504 = vrot.lane.b32.xlu0 %v11211_v37, %s19890_s14  ;;  %v10442_v26 = vrot.slane %v18985_v8, %v14071_v12  ;;  %v20092_v8 = vmul.bf16 %v18894_v49, %v18898_v25 }
 0xc8c   : > { %11646 = vrot.lane.b32.xlu1 %v11341_v46, %s19892_s4  ;;  %v9933_v20 = vpop.f32.mrf.mxu1 }
 0xc8d   : > { %v9978_v22 = vmax.f32 %v9932_v60, 0.0  ;;  %v11633_v7 = vpop.permute.xlu0 %11632  ;;  %v11491_v41 = vpop.permute.xlu1 %11490  ;;  %v19344_v20 = vcombine.low %v10442_v26, %v10454_v21 }
 0xc8e   : > { %v11922_v0 = vsel %vm2622_vm7, %v11890_v63, %v11633_v7  ;;  %v11754_v63 = vsel %vm2443_vm4, %v20092_v8, %v19251_v13 }
 0xc8f   : > { %10010 = vst.msk [vmem:[#allocation2 + $0xf0] sm:$0xff] %vm2443_vm4, %v9978_v22  ;;  %v11954_v29 = vsel %vm2655_vm9, %v11922_v0, %v11666_v15  ;;  %v11796_v22 = vsel %vm643_vm2, %v11754_v63, %v19294_v18 }
 0xc91   : > { %v11714_v51 = vpop.permute.xlu0 %11713  ;;  %v11587_v39 = vpop.permute.xlu1 %11586 }
 0xc92   : > { %v11986_v6 = vsel %vm2688_vm8, %v11954_v29, %v11714_v51  ;;  %v11288_v58 = vld [vmem:[#allocation2 + $0xe1] sm:$0xff]  ;;  %v11828_v29 = vsel %vm604_vm0, %v11796_v22, %v11491_v41 }
 0xc93   : > { %13270 = vmatprep.mubr.msk.bf16.mxu0 %vm2764_vm10, %v11986_v6  ;;  %v11307_v61 = vpack.c.bf16 %v11288_v58, %v11287_v32  ;;  %v11177_v60 = vld [vmem:[#allocation2 + $0xe7] sm:$0xff]  ;;  %v11860_v18 = vsel %vm2556_vm5, %v11828_v29, %v19301_v56 }
 0xc94   : > { %v11892_v21 = vsel %vm2589_vm6, %v11860_v18, %v11587_v39 }
 0xc95   : > { %v19340_v33 = vpop.permute.xlu0 %11444  ;;  %v11668_v37 = vpop.permute.xlu1 %11667  ;;  %v11363_v15 = vmul.bf16 %v19223_v30, %v11307_v61  ;;  %v11148_v4 = vmul.bf16 %v19333_v5, %v11307_v61  ;;  %v11241_v30 = vld [vmem:[#allocation2 + $0xe8] sm:$0xff]  ;;  %v11323_v38 = vmul.bf16 %v19289_v43, %v11307_v61 }
 0xc96   : > { %v11242_v46 = vld [vmem:[#allocation2 + $0xf0] sm:$0xff] }
 0xc97   : > { %v11178_v54 = vld [vmem:[#allocation2 + $0xef] sm:$0xff]  ;;  %11727 = vrot.lane.b32.xlu0 %v11363_v15, %s19842_s22  ;;  %11458 = vrot.lane.b32.xlu1 %v11148_v4, %s19889_s25  ;;  %v11260_v23 = vpack.c.bf16 %v11242_v46, %v11241_v30 }
 0xc98   : > { %v19348_v36 = vpack.c.bf16 %v11178_v54, %v11177_v60  ;;  %v11289_v29 = vld [vmem:[#allocation2 + $0xe9] sm:$0xff] }
 0xc99   : > { %v9936_v7 = vpop.f32.mrf.mxu1  ;;  %v19357_v0 = vpop.permute.xlu0 %11540 }
 0xc9a   : > { %v10589_v51 = vmul.bf16 %v19344_v20, %v19348_v36  ;;  %v9937_v6 = vadd.f32 %v19185_v2, %v9936_v7  ;;  %v19364_v49 = vpop.permute.xlu1 %11398  ;;  %v11342_v39 = vmul.bf16 %v19236_v19, %v19348_v36  ;;  %v11212_v54 = vmul.bf16 %v19273_v62, %v19348_v36 }
 0xc9b   : > { %v9938_v25 = vpop.f32.mrf.mxu1  ;;  %11600 = vrot.lane.b32.xlu0 %v11323_v38, %s19891_s1  ;;  %11554 = vrot.lane.b32.xlu1 %v11260_v23, %s19888_s3  ;;  %v11016_v7 = vrot.slane %v18943_v35, %v14071_v12  ;;  %v11005_v35 = vrot.slane %v18663_v9, %v14071_v12 }
 0xc9c   : > { %v9979_v13 = vmax.f32 %v9937_v6, 0.0  ;;  %v10466_v25 = vrot.slane %v18993_v24, %v14071_v12 }
 0xc9d   : > { %v9939_v32 = vpop.f32.mrf.mxu1  ;;  %v11493_v58 = vpop.permute.xlu0 %11492 }
 0xc9e   : > { %10011 = vst.msk [vmem:[#allocation2 + $0xf8] sm:$0xff] %vm2443_vm4, %v9979_v13  ;;  %v9940_v41 = vadd.f32 %v19185_v2, %v9939_v32  ;;  %v11635_v61 = vpop.permute.xlu1 %11634  ;;  %v10478_v13 = vrot.slane %v19005_v34, %v14071_v12 }
 0xc9f   : > { %v11924_v26 = vsel %vm2622_vm7, %v11892_v21, %v11635_v61  ;;  %v9941_v15 = vpop.f32.mrf.mxu1  ;;  %11681 = vrot.lane.b32.xlu0 %v11260_v23, %s19841_s2  ;;  %11412 = vrot.lane.b32.xlu1 %v11260_v23, %s19886_s23 }
 0xca0   : > { %v9980_v4 = vmax.f32 %v9940_v41, 0.0  ;;  %v11956_v56 = vsel %vm2655_vm9, %v11924_v26, %v11668_v37  ;;  %v20093_v41 = vmul.bf16 %v18941_v11, %v18949_v55  ;;  %v19413_v11 = vcombine.low %v10466_v25, %v10478_v13 }
 0xca1   : > { %v9944_v46 = vpop.f32.mrf.mxu1  ;;  %v11716_v60 = vpop.permute.xlu0 %11715 }
 0xca2   : > { %10012 = vst.msk [vmem:[#allocation2 + $0x100] sm:$0xff] %vm2443_vm4, %v9980_v4  ;;  %v9945_v8 = vadd.f32 %v19185_v2, %v9944_v46  ;;  %v11988_v63 = vsel %vm2688_vm8, %v11956_v56, %v11716_v60  ;;  %v19384_v30 = vpop.permute.xlu1 %11446  ;;  %v11757_v61 = vsel %vm2443_vm4, %v20093_v41, %v19313_v3 }
 0xca3   : > { %v9946_v22 = vpop.f32.mrf.mxu1  ;;  %11648 = vrot.lane.b32.xlu0 %v11342_v39, %s19892_s4  ;;  %11506 = vrot.lane.b32.xlu1 %v11212_v54, %s19890_s14  ;;  %v11798_v34 = vsel %vm643_vm2, %v11757_v61, %v19340_v33  ;;  %v19411_v39 = vcombine.low %v11005_v35, %v11016_v7 }
 0xca4   : > { %v9981_v37 = vmax.f32 %v9945_v8, 0.0  ;;  %13271 = vmatmul.mubr.msk.bf16.gmra.mxu0 %vm2764_vm10, %v11988_v63  ;;  %v11830_v4 = vsel %vm604_vm0, %v11798_v34, %v11493_v58  ;;  %v20094_v34 = vmul.bf16 %v18975_v59, %v18981_v1 }
 0xca5   : > { %v9947_v38 = vpop.f32.mrf.mxu1  ;;  %v11589_v23 = vpop.permute.xlu0 %11588  ;;  %v11290_v6 = vld [vmem:[#allocation2 + $0xf1] sm:$0xff]  ;;  %v11862_v33 = vsel %vm2556_vm5, %v11830_v4, %v19357_v0 }
 0xca6   : > { %10013 = vst.msk [vmem:[#allocation2 + $0x108] sm:$0xff] %vm2443_vm4, %v9981_v37  ;;  %v9948_v18 = vadd.f32 %v19185_v2, %v9947_v38  ;;  %v19397_v32 = vpop.permute.xlu1 %11542  ;;  %v11308_v21 = vpack.c.bf16 %v11290_v6, %v11289_v29  ;;  %v11179_v9 = vld [vmem:[#allocation2 + $0xf7] sm:$0xff]  ;;  %v11894_v63 = vsel %vm2589_vm6, %v11862_v33, %v11589_v23  ;;  %v11027_v6 = vrot.slane %v18977_v50, %v14071_v12 }
 0xca7   : > { %v9949_v24 = vpop.f32.mrf.mxu1  ;;  %v11243_v3 = vld [vmem:[#allocation2 + $0xf8] sm:$0xff] }
 0xca8   : > { %v9982_v26 = vmax.f32 %v9948_v18, 0.0  ;;  %v11364_v15 = vmul.bf16 %v19289_v43, %v11308_v21  ;;  %v11324_v2 = vmul.bf16 %v19333_v5, %v11308_v21  ;;  %v11149_v58 = vmul.bf16 %v19411_v39, %v11308_v21 }
 0xca9   : > { %v11670_v46 = vpop.permute.xlu0 %11669  ;;  %v11244_v60 = vld [vmem:[#allocation2 + $0x100] sm:$0xff]  ;;  %v11038_v18 = vrot.slane %v18674_v42, %v14071_v12  ;;  %v11760_v12 = vsel %vm2443_vm4, %v20094_v34, %v19364_v49 }
 0xcaa   : > { %v11180_v56 = vld [vmem:[#allocation2 + $0xff] sm:$0xff]  ;;  %10014 = vst.msk [vmem:[#allocation2 + $0x110] sm:$0xff] %vm2443_vm4, %v9982_v26  ;;  %v19416_v55 = vpop.permute.xlu1 %11400  ;;  %11729 = vrot.lane.b32.xlu0 %v11364_v15, %s19842_s22  ;;  %11602 = vrot.lane.b32.xlu1 %v11324_v2, %s19891_s1  ;;  %v11261_v54 = vpack.c.bf16 %v11244_v60, %v11243_v3  ;;  %v11800_v15 = vsel %vm643_vm2, %v11760_v12, %v19384_v30 }
 0xcab   : > { %v19420_v43 = vpack.c.bf16 %v11180_v56, %v11179_v9  ;;  %v11291_v23 = vld [vmem:[#allocation2 + $0xf9] sm:$0xff]  ;;  %v12813_v61 = vcombine.low %v11027_v6, %v11038_v18 }
 0xcad   : > { %v10590_v8 = vmul.bf16 %v19413_v11, %v19420_v43  ;;  %v11637_v22 = vpop.permute.xlu0 %11636  ;;  %v11292_v0 = vld [vmem:[#allocation2 + $0x101] sm:$0xff]  ;;  %v11213_v21 = vmul.bf16 %v19344_v20, %v19420_v43  ;;  %v11343_v35 = vmul.bf16 %v19273_v62, %v19420_v43 }
 0xcae   : > { %v11926_v37 = vsel %vm2622_vm7, %v11894_v63, %v11637_v22  ;;  %v11495_v7 = vpop.permute.xlu1 %11494  ;;  %11460 = vrot.lane.b32.xlu0 %v11149_v58, %s19889_s25  ;;  %11683 = vrot.lane.b32.xlu1 %v11261_v54, %s19841_s2  ;;  %v11309_v50 = vpack.c.bf16 %v11292_v0, %v11291_v23  ;;  %v11245_v59 = vld [vmem:[#allocation2 + $0x108] sm:$0xff] }
 0xcaf   : > { %v11958_v29 = vsel %vm2655_vm9, %v11926_v37, %v11670_v46  ;;  %v11832_v60 = vsel %vm604_vm0, %v11800_v15, %v11495_v7  ;;  %v11181_v1 = vld [vmem:[#allocation2 + $0x107] sm:$0xff] }
 0xcb0   : > { %v11365_v42 = vmul.bf16 %v19333_v5, %v11309_v50  ;;  %v11150_v26 = vmul.bf16 %v12813_v61, %v11309_v50  ;;  %v11325_v49 = vmul.bf16 %v19411_v39, %v11309_v50  ;;  %v11864_v30 = vsel %vm2556_vm5, %v11832_v60, %v19397_v32  ;;  %v11328_v32 = vld [vmem:[#allocation2 + $0x11f] sm:$0xff] }
 0xcb1   : > { %v11718_v38 = vpop.permute.xlu0 %11717  ;;  %v11246_v4 = vld [vmem:[#allocation2 + $0x110] sm:$0xff]  ;;  %v11350_v50 = vld [vmem:[#allocation2 + $0x121] sm:$0xff] }
 0xcb2   : > { %v11990_v25 = vsel %vm2688_vm8, %v11958_v29, %v11718_v38  ;;  %v11591_v13 = vpop.permute.xlu1 %11590  ;;  %11556 = vrot.lane.b32.xlu0 %v11261_v54, %s19888_s3  ;;  %11414 = vrot.lane.b32.xlu1 %v11261_v54, %s19886_s23  ;;  %v11182_v46 = vld [vmem:[#allocation2 + $0x10f] sm:$0xff]  ;;  %v11262_v5 = vpack.c.bf16 %v11246_v4, %v11245_v59  ;;  %v11327_v0 = vld [vmem:[#allocation2 + $0x117] sm:$0xff] }
 0xcb3   : > { %13274 = vmatprep.mubr.msk.bf16.mxu0 %vm2764_vm10, %v11990_v25  ;;  %v11198_v56 = vpack.c.bf16 %v11182_v46, %v11181_v1  ;;  %v11293_v33 = vld [vmem:[#allocation2 + $0x109] sm:$0xff]  ;;  %v11294_v58 = vld [vmem:[#allocation2 + $0x111] sm:$0xff]  ;;  %v11896_v54 = vsel %vm2589_vm6, %v11864_v30, %v11591_v13  ;;  %v11329_v18 = vpack.c.bf16 %v11328_v32, %v11327_v0 }
 0xcb4   : > { %v11310_v7 = vpack.c.bf16 %v11294_v58, %v11293_v33  ;;  %v12297_v1 = vld [vmem:[#allocation4] sm:$0x1] }
 0xcb5   : > { %v11449_v41 = vpop.permute.xlu0 %11448  ;;  %v11214_v37 = vmul.bf16 %v19413_v11, %v11198_v56  ;;  %v11344_v13 = vmul.bf16 %v19344_v20, %v11198_v56  ;;  %v11345_v15 = vmul.bf16 %v19413_v11, %v11329_v18 }
 0xcb6   : > { %v11672_v24 = vpop.permute.xlu1 %11671  ;;  %11508 = vrot.lane.b32.xlu0 %v11213_v21, %s19890_s14  ;;  %11650 = vrot.lane.b32.xlu1 %v11343_v35, %s19892_s4  ;;  %v11326_v23 = vmul.bf16 %v12813_v61, %v11310_v7  ;;  %v11349_v35 = vld [vmem:[#allocation2 + $0x119] sm:$0xff] }
 0xcb7   : > { %v11351_v4 = vpack.c.bf16 %v11350_v50, %v11349_v35 }
 0xcb9   : > { %v11545_v2 = vpop.permute.xlu0 %11544 }
 0xcba   : > { %v19455_v9 = vpop.permute.xlu1 %11402  ;;  %11731 = vrot.lane.b32.xlu0 %v11365_v42, %s19842_s22  ;;  %11462 = vrot.lane.b32.xlu1 %v11150_v26, %s19889_s25  ;;  %v11366_v26 = vmul.bf16 %v19411_v39, %v11310_v7  ;;  %s12482_s25 = sshll.u32 %s20100_s21, 1 }
 0xcbd   : > { %v11497_v3 = vpop.permute.xlu0 %11496 }
 0xcbe   : > { %v11639_v63 = vpop.permute.xlu1 %11638  ;;  %11604 = vrot.lane.b32.xlu0 %v11325_v49, %s19891_s1  ;;  %11558 = vrot.lane.b32.xlu1 %v11262_v5, %s19888_s3 }
 0xcbf   : > { %v11928_v22 = vsel %vm2622_vm7, %v11896_v54, %v11639_v63 }
 0xcc0   : > { %v11960_v29 = vsel %vm2655_vm9, %v11928_v22, %v11672_v24  ;;  %v20095_v24 = vmul.bf16 %v19031_v53, %v19037_v48  ;;  %v11367_v48 = vmul.bf16 %v12813_v61, %v11351_v4  ;;  %v20096_v61 = vmul.bf16 %v19068_v14, %v19072_v52 }
 0xcc1   : > { %v11720_v38 = vpop.permute.xlu0 %11719 }
 0xcc2   : > { %v11992_v6 = vsel %vm2688_vm8, %v11960_v29, %v11720_v38  ;;  %v11451_v25 = vpop.permute.xlu1 %11450  ;;  %11685 = vrot.lane.b32.xlu0 %v11262_v5, %s19841_s2  ;;  %11510 = vrot.lane.b32.xlu1 %v11214_v37, %s19890_s14  ;;  %v11763_v12 = vsel %vm2443_vm4, %v20095_v24, %v19416_v55  ;;  %v11766_v58 = vsel %vm2443_vm4, %v20096_v61, %v19455_v9 }
 0xcc3   : > { %13275 = vmatmul.mubr.msk.bf16.gmra.mxu0 %vm2764_vm10, %v11992_v6  ;;  %v11802_v42 = vsel %vm643_vm2, %v11763_v12, %v11449_v41  ;;  %v11804_v54 = vsel %vm643_vm2, %v11766_v58, %v11451_v25 }
 0xcc4   : > { %v11834_v46 = vsel %vm604_vm0, %v11802_v42, %v11497_v3 }
 0xcc5   : > { %v11593_v21 = vpop.permute.xlu0 %11592  ;;  %v11866_v53 = vsel %vm2556_vm5, %v11834_v46, %v11545_v2 }
 0xcc6   : > { %v11547_v34 = vpop.permute.xlu1 %11546  ;;  %11652 = vrot.lane.b32.xlu0 %v11344_v13, %s19892_s4  ;;  %11606 = vrot.lane.b32.xlu1 %v11326_v23, %s19891_s1  ;;  %v11898_v55 = vsel %vm2589_vm6, %v11866_v53, %v11593_v21 }
 0xcc9   : > { %v11674_v60 = vpop.permute.xlu0 %11673 }
 0xcca   : > { %v11405_v59 = vpop.permute.xlu1 %11404  ;;  %11733 = vrot.lane.b32.xlu0 %v11366_v26, %s19842_s22  ;;  %11654 = vrot.lane.b32.xlu1 %v11345_v15, %s19892_s4  ;;  %s602_s4 = scalar_lea.vmem %s19703_s19, %s12482_s25 }
 0xccb   : > { %v11769_v23 = vsel %vm2443_vm4, %v10585_v10, %v11405_v59 }
 0xccd   : > { %v11641_v41 = vpop.permute.xlu0 %11640 }
 0xcce   : > { %v11930_v39 = vsel %vm2622_vm7, %v11898_v55, %v11641_v41  ;;  %v11499_v49 = vpop.permute.xlu1 %11498  ;;  %12300 = vperm.xlu0 %13480, %v12297_v1   ;;  %11735 = vrot.lane.b32.xlu1 %v11367_v48, %s19842_s22 }
 0xccf   : > { %v11962_v56 = vsel %vm2655_vm9, %v11930_v39, %v11674_v60  ;;  %v11836_v22 = vsel %vm604_vm0, %v11804_v54, %v11499_v49 }
 0xcd0   : > { %v11868_v7 = vsel %vm2556_vm5, %v11836_v22, %v11547_v34 }
 0xcd1   : > { %v11722_v5 = vpop.permute.xlu0 %11721 }
 0xcd2   : > { %v11994_v30 = vsel %vm2688_vm8, %v11962_v56, %v11722_v5  ;;  %v11595_v3 = vpop.permute.xlu1 %11594 }
 0xcd3   : > { %13278 = vmatprep.mubr.msk.bf16.mxu0 %vm2764_vm10, %v11994_v30  ;;  %v11900_v29 = vsel %vm2589_vm6, %v11868_v7, %v11595_v3 }
 0xcd5   : > { %v11453_v33 = vpop.permute.xlu0 %11452 }
 0xcd6   : > { %v11676_v2 = vpop.permute.xlu1 %11675  ;;  %v11806_v18 = vsel %vm643_vm2, %v11769_v23, %v11453_v33 }
 0xcd9   : > { %v11549_v63 = vpop.permute.xlu0 %11548 }
 0xcda   : > { %v11407_v37 = vpop.permute.xlu1 %11406 }
 0xcdb   : > { %v11772_v59 = vsel %vm2443_vm4, %v10586_v57, %v11407_v37 }
 0xcdd   : > { %v11501_v38 = vpop.permute.xlu0 %11500 }
 0xcde   : > { %v11643_v0 = vpop.permute.xlu1 %11642  ;;  %v11838_v21 = vsel %vm604_vm0, %v11806_v18, %v11501_v38 }
 0xcdf   : > { %v11932_v32 = vsel %vm2622_vm7, %v11900_v29, %v11643_v0  ;;  %v11870_v34 = vsel %vm2556_vm5, %v11838_v21, %v11549_v63 }
 0xce0   : > { %v11964_v13 = vsel %vm2655_vm9, %v11932_v32, %v11676_v2 }
 0xce1   : > { %v11724_v6 = vpop.permute.xlu0 %11723 }
 0xce2   : > { %v11996_v14 = vsel %vm2688_vm8, %v11964_v13, %v11724_v6  ;;  %v11455_v52 = vpop.permute.xlu1 %11454 }
 0xce3   : > { %13279 = vmatmul.mubr.msk.bf16.gmra.mxu0 %vm2764_vm10, %v11996_v14  ;;  %v11808_v53 = vsel %vm643_vm2, %v11772_v59, %v11455_v52 }
 0xce5   : > { %v11597_v9 = vpop.permute.xlu0 %11596 }
 0xce6   : > { %v11551_v25 = vpop.permute.xlu1 %11550  ;;  %v11902_v24 = vsel %vm2589_vm6, %v11870_v34, %v11597_v9 }
 0xce9   : > { %v11678_v35 = vpop.permute.xlu0 %11677 }
 0xcea   : > { %v11409_v50 = vpop.permute.xlu1 %11408 }
 0xceb   : > { %v11775_v2 = vsel %vm2443_vm4, %v10587_v47, %v11409_v50  ;;  %v19545_v47 = vld [vmem:[%s19696_s12] ss:$0 sm:$0xff] }
 0xced   : > { %v11645_v12 = vpop.permute.xlu0 %11644 }
 0xcee   : > { %v11934_v42 = vsel %vm2622_vm7, %v11902_v24, %v11645_v12  ;;  %v11503_v26 = vpop.permute.xlu1 %11502 }
 0xcef   : > { %v11966_v4 = vsel %vm2655_vm9, %v11934_v42, %v11678_v35  ;;  %v11840_v48 = vsel %vm604_vm0, %v11808_v53, %v11503_v26 }
 0xcf0   : > { %v11872_v41 = vsel %vm2556_vm5, %v11840_v48, %v11551_v25 }
 0xcf1   : > { %v11726_v15 = vpop.permute.xlu0 %11725 }
 0xcf2   : > { %v11998_v40 = vsel %vm2688_vm8, %v11966_v4, %v11726_v15  ;;  %v11599_v44 = vpop.permute.xlu1 %11598 }
 0xcf3   : > { %13282 = vmatprep.mubr.msk.bf16.mxu0 %vm2764_vm10, %v11998_v40  ;;  %v11904_v39 = vsel %vm2589_vm6, %v11872_v41, %v11599_v44 }
 0xcf5   : > { %v11457_v46 = vpop.permute.xlu0 %11456 }
 0xcf6   : > { %v11680_v10 = vpop.permute.xlu1 %11679  ;;  %v11810_v58 = vsel %vm643_vm2, %v11775_v2, %v11457_v46 }
 0xcf9   : > { %v11553_v1 = vpop.permute.xlu0 %11552 }
 0xcfa   : > { %v11411_v60 = vpop.permute.xlu1 %11410 }
 0xcfb   : > { %v11778_v52 = vsel %vm2443_vm4, %v10588_v31, %v11411_v60 }
 0xcfd   : > { %v11505_v49 = vpop.permute.xlu0 %11504 }
 0xcfe   : > { %v11647_v55 = vpop.permute.xlu1 %11646  ;;  %v11842_v54 = vsel %vm604_vm0, %v11810_v58, %v11505_v49 }
 0xcff   : > { %v11936_v5 = vsel %vm2622_vm7, %v11904_v39, %v11647_v55  ;;  %v11874_v22 = vsel %vm2556_vm5, %v11842_v54, %v11553_v1 }
 0xd00   : > { %v11968_v30 = vsel %vm2655_vm9, %v11936_v5, %v11680_v10 }
 0xd09   : > { %v11728_v56 = vpop.permute.xlu0 %11727  ;;  %v11459_v3 = vpop.permute.xlu1 %11458 }
 0xd0a   : > { %v12000_v27 = vsel %vm2688_vm8, %v11968_v30, %v11728_v56  ;;  %v11812_v25 = vsel %vm643_vm2, %v11778_v52, %v11459_v3 }
 0xd0b   : > { %13283 = vmatmul.mubr.msk.bf16.gmra.mxu0 %vm2764_vm10, %v12000_v27 }
 0xd0d   : > { %v11601_v28 = vpop.permute.xlu0 %11600  ;;  %v11555_v57 = vpop.permute.xlu1 %11554 }
 0xd0e   : > { %v11906_v37 = vsel %vm2589_vm6, %v11874_v22, %v11601_v28 }
 0xd11   : > { %v11682_v33 = vpop.permute.xlu0 %11681  ;;  %v11413_v61 = vpop.permute.xlu1 %11412 }
 0xd12   : > { %v11781_v41 = vsel %vm2443_vm4, %v10589_v51, %v11413_v61 }
 0xd15   : > { %v11649_v63 = vpop.permute.xlu0 %11648  ;;  %v11507_v7 = vpop.permute.xlu1 %11506 }
 0xd16   : > { %v11938_v38 = vsel %vm2622_vm7, %v11906_v37, %v11649_v63  ;;  %v11844_v18 = vsel %vm604_vm0, %v11812_v25, %v11507_v7 }
 0xd17   : > { %v11970_v0 = vsel %vm2655_vm9, %v11938_v38, %v11682_v33  ;;  %v11876_v16 = vsel %vm2556_vm5, %v11844_v18, %v11555_v57 }
 0xd1c   : > { %v11730_v29 = vpop.permute.xlu0 %11729  ;;  %v11603_v32 = vpop.permute.xlu1 %11602 }
 0xd1d   : > { %v12002_v19 = vsel %vm2688_vm8, %v11970_v0, %v11730_v29  ;;  %v11908_v31 = vsel %vm2589_vm6, %v11876_v16, %v11603_v32 }
 0xd1e   : > { %13286 = vmatprep.mubr.msk.bf16.mxu0 %vm2764_vm10, %v12002_v19 }
 0xd1f   : > { %v13264_v45 = vpop.f32.mrf.mxu0 }
 0xd20   : > { %v11461_v6 = vpop.permute.xlu0 %11460  ;;  %v11684_v13 = vpop.permute.xlu1 %11683  ;;  %v12130_v9 = vadd.f32 %v13264_v45, %v19545_v47 }
 0xd21   : > { %v12121_v14 = vpop.f32.mrf.mxu0  ;;  %v11814_v39 = vsel %vm643_vm2, %v11781_v41, %v11461_v6 }
 0xd22   : > { %v12122_v21 = vadd.f32 %v19545_v47, %v12121_v14  ;;  %v12250_v12 = vmax.f32 %v12130_v9, 0.0 }
 0xd23   : > { %v13265_v23 = vpop.f32.mrf.mxu0 }
 0xd24   : > { %v12133_v35 = vadd.f32 %v13265_v23, %v19545_v47  ;;  %v11557_v50 = vpop.permute.xlu0 %11556  ;;  %v11415_v34 = vpop.permute.xlu1 %11414  ;;  %v12248_v26 = vmax.f32 %v12122_v21, 0.0 }
 0xd25   : > { %v12124_v24 = vpop.f32.mrf.mxu0  ;;  %v11784_v30 = vsel %vm2443_vm4, %v10590_v8, %v11415_v34 }
 0xd26   : > { %v12251_v42 = vmax.f32 %v12133_v35, 0.0  ;;  %v12125_v62 = vadd.f32 %v19545_v47, %v12124_v24 }
 0xd28   : > { %v19559_v15 = vpack.c.bf16 %v12251_v42, %v12250_v12  ;;  %v12249_v4 = vmax.f32 %v12125_v62, 0.0  ;;  %v11509_v40 = vpop.permute.xlu0 %11508  ;;  %v11651_v44 = vpop.permute.xlu1 %11650 }
 0xd29   : > { %v11940_v10 = vsel %vm2622_vm7, %v11908_v31, %v11651_v44  ;;  %v11846_v49 = vsel %vm604_vm0, %v11814_v39, %v11509_v40 }
 0xd2a   : > { %v19562_v46 = vpack.c.bf16 %v12249_v4, %v12248_v26  ;;  %v11972_v59 = vsel %vm2655_vm9, %v11940_v10, %v11684_v13  ;;  %v11878_v27 = vsel %vm2556_vm5, %v11846_v49, %v11557_v50 }
 0xd2c   : > { %v11732_v60 = vpop.permute.xlu0 %11731  ;;  %v11463_v1 = vpop.permute.xlu1 %11462 }
 0xd2d   : > { %v12004_v53 = vsel %vm2688_vm8, %v11972_v59, %v11732_v60  ;;  %v11816_v3 = vsel %vm643_vm2, %v11784_v30, %v11463_v1 }
 0xd2e   : > { %13287 = vmatmul.mubr.msk.bf16.gmra.mxu0 %vm2764_vm10, %v12004_v53 }
 0xd30   : > { %v11605_v48 = vpop.permute.xlu0 %11604  ;;  %v11559_v55 = vpop.permute.xlu1 %11558 }
 0xd31   : > { %v11910_v28 = vsel %vm2589_vm6, %v11878_v27, %v11605_v48  ;;  %v19617_v48 = vld [vmem:[%s19697_s13] sm:$0x1] }
 0xd32   : > { %13108 = vmatprep.mubr.msk.bf16.mxu1 %vm2443_vm4, %v19617_v48 }
 0xd34   : > { %v11686_v5 = vpop.permute.xlu0 %11685  ;;  %v11511_v56 = vpop.permute.xlu1 %11510 }
 0xd35   : > { %v11848_v20 = vsel %vm604_vm0, %v11816_v3, %v11511_v56 }
 0xd36   : > { %v11880_v33 = vsel %vm2556_vm5, %v11848_v20, %v11559_v55 }
 0xd38   : > { %v11653_v36 = vpop.permute.xlu0 %11652  ;;  %v11607_v51 = vpop.permute.xlu1 %11606 }
 0xd39   : > { %v11942_v57 = vsel %vm2622_vm7, %v11910_v28, %v11653_v36  ;;  %v11912_v2 = vsel %vm2589_vm6, %v11880_v33, %v11607_v51 }
 0xd3a   : > { %v11974_v11 = vsel %vm2655_vm9, %v11942_v57, %v11686_v5 }
 0xd3c   : > { %v11734_v61 = vpop.permute.xlu0 %11733  ;;  %v11655_v43 = vpop.permute.xlu1 %11654 }
 0xd3d   : > { %v12006_v8 = vsel %vm2688_vm8, %v11974_v11, %v11734_v61  ;;  %v11944_v58 = vsel %vm2622_vm7, %v11912_v2, %v11655_v43 }
 0xd3e   : > { %13290 = vmatprep.mubr.msk.bf16.mxu0 %vm2764_vm10, %v12006_v8  ;;  %v11976_v54 = vsel %vm2655_vm9, %v11944_v58, %v19022_v17 }
 0xd40   : > { %v11736_v63 = vpop.permute.xlu1 %11735 }
 0xd41   : > { %v12008_v22 = vsel %vm2688_vm8, %v11976_v54, %v11736_v63 }
 0xd42   : > { %13291 = vmatmul.mubr.msk.bf16.gmra.mxu0 %vm2764_vm10, %v12008_v22 }
 0xd43   : > { %v13268_v37 = vpop.f32.mrf.mxu0 }
 0xd44   : > { %v12146_v38 = vadd.f32 %v13268_v37, %v19545_v47 }
 0xd45   : > { %v12137_v7 = vpop.f32.mrf.mxu0 }
 0xd46   : > { %v12138_v0 = vadd.f32 %v19545_v47, %v12137_v7  ;;  %v12254_v45 = vmax.f32 %v12146_v38, 0.0 }
 0xd47   : > { %v13269_v29 = vpop.f32.mrf.mxu0 }
 0xd48   : > { %v12149_v32 = vadd.f32 %v13269_v29, %v19545_v47  ;;  %v12252_v17 = vmax.f32 %v12138_v0, 0.0 }
 0xd49   : > { %v12140_v19 = vpop.f32.mrf.mxu0 }
 0xd4a   : > { %v12255_v6 = vmax.f32 %v12149_v32, 0.0  ;;  %v12141_v13 = vadd.f32 %v19545_v47, %v12140_v19 }
 0xd4c   : > { %v19596_v14 = vpack.c.bf16 %v12255_v6, %v12254_v45  ;;  %v12253_v52 = vmax.f32 %v12141_v13, 0.0 }
 0xd4e   : > { %v19598_v9 = vpack.c.bf16 %v12253_v52, %v12252_v17 }
 0xd64   : > { %v19600_v25 = vpop.f32.mrf.mxu0 }
 0xd66   : > { %v19602_v23 = vpop.f32.mrf.mxu0 }
 0xd68   : > { %v13273_v18 = vpop.f32.mrf.mxu0 }
 0xd69   : > { %v12165_v17 = vadd.f32 %v13273_v18, %v19545_v47 }
 0xd6a   : > { %v19604_v21 = vpop.f32.mrf.mxu0 }
 0xd6b   : > { %v12157_v18 = vadd.f32 %v19545_v47, %v19604_v21 }
 0xd83   : > { %v13276_v35 = vpop.f32.mrf.mxu0 }
 0xd84   : > { %v12178_v20 = vadd.f32 %v13276_v35, %v19545_v47 }
 0xd85   : > { %v12169_v50 = vpop.f32.mrf.mxu0 }
 0xd86   : > { %v12262_v2 = vmax.f32 %v12178_v20, 0.0  ;;  %v12170_v37 = vadd.f32 %v19545_v47, %v12169_v50  ;;  %v12162_v50 = vadd.f32 %v19600_v25, %v19545_v47  ;;  %v12154_v25 = vadd.f32 %v19545_v47, %v19602_v23 }
 0xd87   : > { %v13277_v34 = vpop.f32.mrf.mxu0 }
 0xd88   : > { %v12181_v27 = vadd.f32 %v13277_v34, %v19545_v47  ;;  %v12260_v6 = vmax.f32 %v12170_v37, 0.0 }
 0xd89   : > { %v12172_v24 = vpop.f32.mrf.mxu0 }
 0xd8a   : > { %v12263_v51 = vmax.f32 %v12181_v27, 0.0  ;;  %v12173_v43 = vadd.f32 %v19545_v47, %v12172_v24  ;;  %v12259_v24 = vmax.f32 %v12165_v17, 0.0 }
 0xd8c   : > { %v12288_v58 = vpack.c.bf16 %v12263_v51, %v12262_v2  ;;  %v12261_v0 = vmax.f32 %v12173_v43, 0.0  ;;  %v12320_v51 = vsel %vm2443_vm4, %v19596_v14, 0  ;;  %v12311_v14 = vsel %vm2443_vm4, %v19562_v46, 0 }
 0xd8e   : > { %v12332_v45 = vsel %vm2443_vm4, %v12288_v58, 0  ;;  %v12287_v52 = vpack.c.bf16 %v12261_v0, %v12260_v6 }
 0xda3   : > { %v13280_v12 = vpop.f32.mrf.mxu0 }
 0xda4   : > { %v12194_v62 = vadd.f32 %v13280_v12, %v19545_v47 }
 0xda5   : > { %v12185_v42 = vpop.f32.mrf.mxu0 }
 0xda6   : > { %v12186_v31 = vadd.f32 %v19545_v47, %v12185_v42  ;;  %v12266_v40 = vmax.f32 %v12194_v62, 0.0  ;;  %v12329_v62 = vsel %vm2443_vm4, %v12287_v52, 0 }
 0xda7   : > { %v13281_v16 = vpop.f32.mrf.mxu0 }
 0xda8   : > { %v12197_v26 = vadd.f32 %v13281_v16, %v19545_v47  ;;  %v12264_v60 = vmax.f32 %v12186_v31, 0.0  ;;  %v12258_v16 = vmax.f32 %v12162_v50, 0.0 }
 0xda9   : > { %v12188_v4 = vpop.f32.mrf.mxu0 }
 0xdaa   : > { %v12267_v44 = vmax.f32 %v12197_v26, 0.0  ;;  %v12189_v10 = vadd.f32 %v19545_v47, %v12188_v4  ;;  %v12286_v26 = vpack.c.bf16 %v12259_v24, %v12258_v16 }
 0xdac   : > { %v19610_v59 = vpack.c.bf16 %v12267_v44, %v12266_v40  ;;  %v12265_v1 = vmax.f32 %v12189_v10, 0.0  ;;  %v12257_v44 = vmax.f32 %v12157_v18, 0.0 }
 0xdae   : > { %v19612_v53 = vpack.c.bf16 %v12265_v1, %v12264_v60  ;;  %v12326_v1 = vsel %vm2443_vm4, %v12286_v26, 0 }
 0xdcb   : > { %v13284_v55 = vpop.f32.mrf.mxu0 }
 0xdcd   : > { %v19621_v41 = vpop.f32.mrf.mxu0 }
 0xdcf   : > { %v13285_v39 = vpop.f32.mrf.mxu0 }
 0xdd0   : > { %v12213_v10 = vadd.f32 %v13285_v39, %v19545_v47  ;;  %v12202_v39 = vadd.f32 %v19545_v47, %v19621_v41 }
 0xdd1   : > { %v19623_v49 = vpop.f32.mrf.mxu0 }
 0xdd2   : > { %v12205_v23 = vadd.f32 %v19545_v47, %v19623_v49  ;;  %v12317_v49 = vsel %vm2443_vm4, %v19598_v9, 0  ;;  %v13623_v9 = vmov 1966171168  }
 0xdd3   : > { %v12403_v41 = vunpack.c.l.s4 %v13623_v9 }
 0xdd4   : > { %v12269_v20 = vmax.f32 %v12205_v23, 0.0 }
 0xdd5   : > { %v12404_v2 = vunpack.c.0.s8 %v12403_v41 }
 0xdee   : > { %v13288_v5 = vpop.f32.mrf.mxu0 }
 0xdef   : > { %v12226_v13 = vadd.f32 %v13288_v5, %v19545_v47  ;;  %v12256_v5 = vmax.f32 %v12154_v25, 0.0 }
 0xdf0   : > { %v12217_v56 = vpop.f32.mrf.mxu0 }
 0xdf1   : > { %v12274_v34 = vmax.f32 %v12226_v13, 0.0  ;;  %v12218_v31 = vadd.f32 %v19545_v47, %v12217_v56  ;;  %v12210_v56 = vadd.f32 %v13284_v55, %v19545_v47 }
 0xdf2   : > { %v13289_v30 = vpop.f32.mrf.mxu0 }
 0xdf3   : > { %v12229_v32 = vadd.f32 %v13289_v30, %v19545_v47  ;;  %v12272_v40 = vmax.f32 %v12218_v31, 0.0  ;;  %v12285_v30 = vpack.c.bf16 %v12257_v44, %v12256_v5  ;;  %v12270_v21 = vmax.f32 %v12210_v56, 0.0 }
 0xdf4   : > { %v12220_v3 = vpop.f32.mrf.mxu0 }
 0xdf5   : > { %v12275_v35 = vmax.f32 %v12229_v32, 0.0  ;;  %v12221_v42 = vadd.f32 %v19545_v47, %v12220_v3  ;;  %v12271_v3 = vmax.f32 %v12213_v10, 0.0 }
 0xdf7   : > { %v12294_v12 = vpack.c.bf16 %v12275_v35, %v12274_v34  ;;  %v12273_v4 = vmax.f32 %v12221_v42, 0.0  ;;  %v12292_v27 = vpack.c.bf16 %v12271_v3, %v12270_v21 }
 0xdf9   : > { %v12293_v60 = vpack.c.bf16 %v12273_v4, %v12272_v40 }
 0xe02   : > { %v13292_v28 = vpop.f32.mrf.mxu0 }
 0xe03   : > { %v12242_v57 = vadd.f32 %v13292_v28, %v19545_v47  ;;  %v12323_v28 = vsel %vm2443_vm4, %v12285_v30, 0 }
 0xe04   : > { %v12233_v36 = vpop.f32.mrf.mxu0 }
 0xe05   : > { %v12234_v61 = vadd.f32 %v19545_v47, %v12233_v36  ;;  %v12278_v54 = vmax.f32 %v12242_v57, 0.0  ;;  %v12268_v36 = vmax.f32 %v12202_v39, 0.0  ;;  %v20097_v57 = vld [vmem:[#allocation5_spill] sm:$0xff] }
 0xe06   : > { %v13293_v33 = vpop.f32.mrf.mxu0 }
 0xe07   : > { %v12245_v11 = vadd.f32 %v13293_v33, %v19545_v47  ;;  %v12276_v7 = vmax.f32 %v12234_v61, 0.0  ;;  %v12291_v55 = vpack.c.bf16 %v12269_v20, %v12268_v36  ;;  %v12305_v33 = vsub.s32 0, %v20097_v57 }
 0xe08   : > { %v12236_v8 = vpop.f32.mrf.mxu0 }
 0xe09   : > { %v12279_v63 = vmax.f32 %v12245_v11, 0.0  ;;  %v12237_v22 = vadd.f32 %v19545_v47, %v12236_v8  ;;  %v12314_v47 = vsel %vm2443_vm4, %v19559_v15, 0 }
 0xe0b   : > { %v12296_v38 = vpack.c.bf16 %v12279_v63, %v12278_v54  ;;  %v12277_v29 = vmax.f32 %v12237_v22, 0.0 }
 0xe0d   : > { %v12295_v19 = vpack.c.bf16 %v12277_v29, %v12276_v7  ;;  %13309 = vmatprep.subr.msk.bf16.mxu1 %vm2443_vm4, %v12296_v38 }
 0xe0e   : > { %13093 = vmatpush3.bf16.xpose.msra.mxu1 %v12332_v45 }
 0xe0f   : > { %13310 = vmatprep.subr.msk.bf16.mxu1 %vm2443_vm4, %v12295_v19 }
 0xe16   : > { %13095 = vmatpush3.bf16.xpose.msra.mxu1 %v12329_v62 }
 0xe17   : > { %13311 = vmatprep.subr.msk.bf16.mxu1 %vm2443_vm4, %v12294_v12 }
 0xe1e   : > { %13097 = vmatpush3.bf16.xpose.msra.mxu1 %v12326_v1 }
 0xe1f   : > { %13312 = vmatprep.subr.msk.bf16.mxu1 %vm2443_vm4, %v12293_v60 }
 0xe26   : > { %13099 = vmatpush3.bf16.xpose.msra.mxu1 %v12323_v28 }
 0xe27   : > { %13313 = vmatprep.subr.msk.bf16.mxu1 %vm2443_vm4, %v12292_v27 }
 0xe2e   : > { %13101 = vmatpush3.bf16.xpose.msra.mxu1 %v12320_v51 }
 0xe2f   : > { %13314 = vmatprep.subr.msk.bf16.mxu1 %vm2443_vm4, %v12291_v55 }
 0xe36   : > { %13103 = vmatpush3.bf16.xpose.msra.mxu1 %v12317_v49 }
 0xe37   : > { %13315 = vmatprep.subr.msk.bf16.mxu1 %vm2443_vm4, %v19610_v59  ;;  %v12301_v59 = vpop.permute.xlu0 %12300 }
 0xe38   : > { %v12306_v15 = vrot.slane %v12301_v59, %v12305_v33 }
 0xe3e   : > { %13105 = vmatpush3.bf16.xpose.msra.mxu1 %v12314_v47 }
 0xe3f   : > { %13316 = vmatprep.subr.msk.bf16.mxu1 %vm2443_vm4, %v19612_v53  ;;  %v12407_v53 = vsub.s32 %v12404_v2, %v20097_v57 }
 0xe46   : > { %13107 = vmatpush3.bf16.xpose.msra.mxu1 %v12311_v14 }
 0xe4d   : > { %13109 = vmatmul.mubr.msk.bf16.vlgmr.msra.gmra.mxu1 %vm2443_vm4, %v19617_v48  ;;  %v20098_v48 = vlaneseq }
 0xe4f   : > { %vm12419_vm0 = vcmp.lt.s32.totalorder %v20098_v48, 256 }
 0xf0d   : > { %v12392_v61 = vpop.f32.mrf.mxu1 }
 0xf0e   : > { %v12393_v43 = vadd.f32 %v12392_v61, %v12306_v15 }
 0xf0f   : > { %v12394_v11 = vpop.f32.mrf.mxu1 }
 0xf10   : > { %v12395_v8 = vadd.f32 %v12394_v11, %v12306_v15 }
 0xf11   : > { %v12396_v58 = vpop.f32.mrf.mxu1 }
 0xf12   : > { %v12401_v46 = vcombine.low %v12393_v43, %v12395_v8 }
 0xf13   : > { %v12397_v54 = vpop.f32.mrf.mxu1 }
 0xf14   : > { %v12408_v63 = vrot.slane %v12401_v46, %v12407_v53 }
 0xf16   : > { %v12415_v22 = vrot.slane %v12408_v63, %v12407_v53 }
 0xf18   : > { %12421 = vst.msk [vmem:[%s602_s4] sm:$0x3] %vm12419_vm0, %v12415_v22 }
 0xf19 PF: > { %s31_s20 = sadd.s32 1, %s13604_s20  }
 0xf1a   : > { %p28_p4 = scmp.ge.s32.totalorder %s31_s20, 4  }
 0xf1c   :  { %30 = sbr.rel (!%p28_p4) target bundleno = 10 (0xa), region = 129 }

</bundles_post_ra>
